<compile_context>
chip_gen: v7x
topology: tpu7x:2x2x1
jax: 0.10.0
libtpu: 0.0.40
codegen_flags: <defaults>
</compile_context>

<pallas_src>
import functools

import jax
import jax.numpy as jnp
import numpy as np
from jax import lax
from jax.experimental import pallas as pl
from jax.experimental.pallas import tpu as pltpu


def _round_up(x, m):
    return (x + m - 1) // m * m


def _choose_row_tile(H, max_rows=32):
    """Largest row tile <= max_rows that divides H (or max_rows with bottom padding)."""
    if H <= max_rows:
        return H
    for t in range(max_rows, 7, -1):
        if H % t == 0:
            return t
    return max_rows


def _silu_f32(x):
    # x * sigmoid(x) in f32: exp + approximate reciprocal run on the EUP slot.
    return x * pl.reciprocal(1.0 + jnp.exp(-x), approx=True)


def _bottleneck_kernel(x_ref, w1_ref, b1_ref, w2_ref, b2_ref, o_ref,
                       mid_ref, p1_ref, p2_ref, *,
                       TH, H, W, C_in, C_mid, C_out, cp_out,
                       shortcut, compute_dtype):
    """One (TILE_H x W) output row-block of the fused Bottleneck.

    x_ref:  (TH+4, W+2, C_in)   activation block with 2-row halo + 1-col conv1 pad.
    w1_ref: (9*C_in, C_mid)     tap-packed, BN-folded conv1 weight.
    w2_ref: (9*C_mid, cp_out)   tap-packed, BN-folded conv2 weight (cout lane-padded).
    o_ref:  (TH, W, cp_out)     output block.
    mid_ref/p1_ref/p2_ref:      VMEM scratch (intermediate + im2col patches).
    """
    r = pl.program_id(1)
    OH = TH + 2  # mid rows produced per block (1-row halo on each side for conv2)

    # ---- conv1: tap-packed im2col (K = 9*C_in) -> ONE MXU matmul ----
    for t in range(9):
        di, dj = divmod(t, 3)
        p1_ref[:, :, t * C_in:(t + 1) * C_in] = x_ref[di:di + OH, dj:dj + W, :]
    acc1 = jnp.dot(p1_ref[...].reshape(OH * W, 9 * C_in), w1_ref[...],
                   preferred_element_type=jnp.float32)
    acc1 = acc1 + b1_ref[...]                      # folded-BN bias (single fused add)
    h1 = _silu_f32(acc1).reshape(OH, W, C_mid)

    # Mid rows outside [0, H) are conv2's zero padding -> mask them (safe under the
    # "parallel"/megacore grid; no reliance on program_id == 0 initialisation).
    g_row = r * TH - 1 + lax.broadcasted_iota(jnp.int32, (OH, 1, 1), 0)
    h1 = jnp.where((g_row >= 0) & (g_row < H), h1, 0.0).astype(compute_dtype)

    # VMEM-resident intermediate with a zero COLUMN halo (conv2's left/right pad).
    # Only the two border columns are re-zeroed per step; the interior is always
    # fully overwritten (no full-scratch zero pass).
    mid_ref[:, 0, :] = jnp.zeros((OH, C_mid), compute_dtype)
    mid_ref[:, W + 1, :] = jnp.zeros((OH, C_mid), compute_dtype)
    mid_ref[:, 1:W + 1, :] = h1

    # ---- conv2: tap-packed im2col (K = 9*C_mid) -> ONE MXU matmul ----
    for t in range(9):
        di, dj = divmod(t, 3)
        p2_ref[:, :, t * C_mid:(t + 1) * C_mid] = mid_ref[di:di + TH, dj:dj + W, :]
    acc2 = jnp.dot(p2_ref[...].reshape(TH * W, 9 * C_mid), w2_ref[...],
                   preferred_element_type=jnp.float32)
    acc2 = acc2 + b2_ref[...]
    out = _silu_f32(acc2).reshape(TH, W, cp_out)   # f32

    # Lane-dense full-width store of the (128-padded) output block.
    o_ref[...] = out.astype(o_ref.dtype)
    if shortcut:
        # Residual from the SAME input block already in VMEM (no second DMA of x).
        res = x_ref[2:TH + 2, 1:W + 1, :].astype(jnp.float32)       # (TH, W, C_in)
        o_ref[:, :, :C_out] = (out[:, :, :C_out] + res).astype(o_ref.dtype)


def _fold_bn(w_oihw, gamma, beta, mean, var, eps):
    """Fold eval-mode BatchNorm into an HWIO conv weight and a per-channel f32 bias."""
    scale = gamma / jnp.sqrt(var + eps)                  # (cout,)
    w_hwio = jnp.transpose(w_oihw, (2, 3, 1, 0))         # (kh, kw, cin, cout)
    return w_hwio * scale[None, None, None, :], beta - mean * scale


def bottleneck_forward(x, params, *, shortcut=True, compute_dtype=jnp.bfloat16,
                       eps=1e-5, row_tile=None):
    """x: (N, C_in, H, W) NCHW (PyTorch layout). Returns (N, C_out, H, W) in compute_dtype."""
    N, C_in, H, W = x.shape
    w1, g1, be1, m1, v1 = (params[k] for k in ("w1", "gamma1", "beta1", "mean1", "var1"))
    w2, g2, be2, m2, v2 = (params[k] for k in ("w2", "gamma2", "beta2", "mean2", "var2"))
    C_mid = w1.shape[0]
    C_out = w2.shape[0]
    if shortcut:
        assert C_in == C_out, "shortcut=True requires C_in == C_out"

    # Fold BN in f32, then cast/pad for the MXU.
    w1f, b1f = _fold_bn(w1.astype(jnp.float32), g1, be1, m1, v1, eps)
    w2f, b2f = _fold_bn(w2.astype(jnp.float32), g2, be2, m2, v2, eps)

    cp_out = _round_up(C_out, 128)                       # lane-dense output store

    TH = int(row_tile) if row_tile is not None else _choose_row_tile(H)
    assert TH >= 1
    nb = -(-H // TH)
    H_eff = nb * TH

    # NCHW -> NHWC, conv1 zero pad (1) + fused-stack halo (1 extra) rows, 1-col pad.
    x_nhwc = jnp.transpose(x, (0, 2, 3, 1)).astype(compute_dtype)
    x_pad = jnp.pad(x_nhwc, ((0, 0), (2, 2 + H_eff - H), (1, 1), (0, 0)))
    # Overlapping row blocks (TH+4 rows each, stride TH) so plain BlockSpecs can
    # double-buffer the activation DMA while keeping the 2-row halo per block.
    ridx = jnp.arange(nb)[:, None] * TH + jnp.arange(TH + 4)[None, :]
    x_blk = x_pad[:, ridx]                               # (N, nb, TH+4, W+2, C_in)

    # Tap-packed weights: HWIO (3,3,cin,cout) -> (9*cin, cout); conv2 cout lane-padded.
    w1p = w1f.reshape(9 * C_in, C_mid).astype(compute_dtype)
    b1p = b1f.reshape(1, C_mid).astype(jnp.float32)
    w2p = jnp.pad(w2f, ((0, 0), (0, 0), (0, 0), (0, cp_out - C_out)))
    w2p = w2p.reshape(9 * C_mid, cp_out).astype(compute_dtype)
    b2p = jnp.pad(b2f, (0, cp_out - C_out)).reshape(1, cp_out).astype(jnp.float32)

    kernel = functools.partial(
        _bottleneck_kernel, TH=TH, H=H, W=W, C_in=C_in, C_mid=C_mid, C_out=C_out,
        cp_out=cp_out, shortcut=shortcut, compute_dtype=compute_dtype)

    # Explicit VMEM budget (conservative: narrow channel dims counted as full lanes).
    bpe = jnp.dtype(compute_dtype).itemsize
    lanes = lambda c: _round_up(max(int(c), 1), 128)
    est = (2 * (TH + 4) * (W + 2) * lanes(C_in) * bpe            # x blocks (2 bufs)
           + 2 * TH * W * cp_out * bpe                           # out blocks (2 bufs)
           + (TH + 2) * (W + 2) * lanes(C_mid) * bpe             # mid scratch
           + (TH + 2) * W * lanes(9 * C_in) * bpe                # patch1 scratch
           + TH * W * lanes(9 * C_mid) * bpe                     # patch2 scratch
           + (9 * C_in * lanes(C_mid) + 9 * C_mid * cp_out) * bpe  # weights
           + 4 * TH * W * max(lanes(9 * C_in), cp_out) * 4)      # f32 temporaries
    vmem_limit = int(min(64 * 2**20, max(32 * 2**20, 2 * est)))

    def run(single_buffer_weights):
        # Constant-index weights: request single buffering (no 2nd VMEM copy).
        wkw = {"pipeline_mode": pl.Buffered(1)} if single_buffer_weights else {}
        grid_spec = pltpu.PrefetchScalarGridSpec(
            num_scalar_prefetch=0,
            grid=(N, nb),
            in_specs=[
                # Activation row block (with halo) per grid step.
                pl.BlockSpec((None, None, TH + 4, W + 2, C_in),
                             lambda n, r: (n, r, 0, 0, 0)),
                # Weights / biases: constant block index -> loaded once, VMEM resident.
                pl.BlockSpec((9 * C_in, C_mid), lambda n, r: (0, 0), **wkw),
                pl.BlockSpec((1, C_mid), lambda n, r: (0, 0), **wkw),
                pl.BlockSpec((9 * C_mid, cp_out), lambda n, r: (0, 0), **wkw),
                pl.BlockSpec((1, cp_out), lambda n, r: (0, 0), **wkw),
            ],
            out_specs=pl.BlockSpec((None, TH, W, cp_out), lambda n, r: (n, r, 0, 0)),
            scratch_shapes=[
                pltpu.VMEM((TH + 2, W + 2, C_mid), compute_dtype),   # mid (+ zero halo)
                pltpu.VMEM((TH + 2, W, 9 * C_in), compute_dtype),    # conv1 im2col patch
                pltpu.VMEM((TH, W, 9 * C_mid), compute_dtype),       # conv2 im2col patch
            ],
        )
        return pl.pallas_call(
            kernel,
            out_shape=jax.ShapeDtypeStruct((N, H_eff, W, cp_out), compute_dtype),
            grid_spec=grid_spec,
            compiler_params=pltpu.CompilerParams(
                dimension_semantics=("parallel", "parallel"),
                vmem_limit_bytes=vmem_limit,
            ),
        )(x_blk, w1p, b1p, w2p, b2p)

    try:
        out = run(True)
    except Exception:  # pragma: no cover - Pallas version without pipeline_mode support
        out = run(False)

    out = out[:, :H, :, :C_out]
    return jnp.transpose(out, (0, 3, 1, 2))


def bottleneck_reference(x, params, *, shortcut=True, compute_dtype=jnp.bfloat16,
                         eps=1e-5):
    """Pure-JAX reference (same folded weights / same compute dtype)."""
    w1, g1, be1, m1, v1 = (params[k] for k in ("w1", "gamma1", "beta1", "mean1", "var1"))
    w2, g2, be2, m2, v2 = (params[k] for k in ("w2", "gamma2", "beta2", "mean2", "var2"))
    w1f, b1f = _fold_bn(w1.astype(jnp.float32), g1, be1, m1, v1, eps)
    w2f, b2f = _fold_bn(w2.astype(jnp.float32), g2, be2, m2, v2, eps)

    dn = ("NHWC", "HWIO", "NHWC")
    x_nhwc = jnp.transpose(x, (0, 2, 3, 1)).astype(compute_dtype)

    y1 = lax.conv_general_dilated(x_nhwc, w1f.astype(compute_dtype), (1, 1), "SAME",
                                  dimension_numbers=dn,
                                  preferred_element_type=jnp.float32)
    y1 = y1 + b1f
    h1 = (y1 * jax.nn.sigmoid(y1)).astype(compute_dtype)

    y2 = lax.conv_general_dilated(h1, w2f.astype(compute_dtype), (1, 1), "SAME",
                                  dimension_numbers=dn,
                                  preferred_element_type=jnp.float32)
    y2 = y2 + b2f
    out = y2 * jax.nn.sigmoid(y2)
    if shortcut:
        out = out + x_nhwc.astype(jnp.float32)
    return jnp.transpose(out.astype(compute_dtype), (0, 3, 1, 2))


def _make_params(key, c_in, c_out):
    c_mid = c_out // 2
    ks = jax.random.split(key, 10)
    return {
        "w1": jax.random.normal(ks[0], (c_mid, c_in, 3, 3), jnp.float32) * 0.2,
        "gamma1": jax.random.uniform(ks[1], (c_mid,), jnp.float32, 0.5, 1.5),
        "beta1": jax.random.normal(ks[2], (c_mid,), jnp.float32) * 0.1,
        "mean1": jax.random.normal(ks[3], (c_mid,), jnp.float32) * 0.1,
        "var1": jax.random.uniform(ks[4], (c_mid,), jnp.float32, 0.5, 1.5),
        "w2": jax.random.normal(ks[5], (c_out, c_mid, 3, 3), jnp.float32) * 0.2,
        "gamma2": jax.random.uniform(ks[6], (c_out,), jnp.float32, 0.5, 1.5),
        "beta2": jax.random.normal(ks[7], (c_out,), jnp.float32) * 0.1,
        "mean2": jax.random.normal(ks[8], (c_out,), jnp.float32) * 0.1,
        "var2": jax.random.uniform(ks[9], (c_out,), jnp.float32, 0.5, 1.5),
    }


if __name__ == "__main__":
    key = jax.random.PRNGKey(0)
    k_x1, k_p1, k_x2, k_p2 = jax.random.split(key, 4)

    # Case 1: shortcut=True (C_in == C_out), row tiling exercised (H=16 -> two 8-row blocks).
    x1 = jax.random.normal(k_x1, (2, 4, 16, 16), jnp.float32)
    p1 = _make_params(k_p1, 4, 4)
    out1 = jax.block_until_ready(bottleneck_forward(x1, p1, shortcut=True, row_tile=8))
    ref1 = jax.block_until_ready(bottleneck_reference(x1, p1, shortcut=True))
    np.testing.assert_allclose(np.asarray(out1).astype(np.float32),
                               np.asarray(ref1).astype(np.float32),
                               atol=5e-2, rtol=5e-2)

    # Case 2: shortcut=False, channel change, H not a multiple of the row tile (padding path).
    x2 = jax.random.normal(k_x2, (1, 4, 12, 16), jnp.float32)
    p2 = _make_params(k_p2, 4, 8)
    out2 = jax.block_until_ready(bottleneck_forward(x2, p2, shortcut=False, row_tile=8))
    ref2 = jax.block_until_ready(bottleneck_reference(x2, p2, shortcut=False))
    np.testing.assert_allclose(np.asarray(out2).astype(np.float32),
                               np.asarray(ref2).astype(np.float32),
                               atol=5e-2, rtol=5e-2)

    print("KERNEL_OK")
</pallas_src>

<mosaic_0001>
module attributes {stable_mosaic.version = 11 : i64} {
  func.func @_bottleneck_kernel(%arg0: i32, %arg1: i32, %arg2: memref<1x1x12x18x4xbf16, #tpu.memory_space<vmem>>, %arg3: memref<36x2xbf16, #tpu.memory_space<vmem>>, %arg4: memref<1x2xf32, #tpu.memory_space<vmem>>, %arg5: memref<18x128xbf16, #tpu.memory_space<vmem>>, %arg6: memref<1x128xf32, #tpu.memory_space<vmem>>, %arg7: memref<1x8x16x128xbf16, #tpu.memory_space<vmem>>, %arg8: memref<10x18x2xbf16, #tpu.memory_space<vmem>>, %arg9: memref<10x16x36xbf16, #tpu.memory_space<vmem>>, %arg10: memref<8x16x18xbf16, #tpu.memory_space<vmem>>) attributes {dimension_semantics = [#tpu.dimension_semantics<parallel>, #tpu.dimension_semantics<parallel>], iteration_bounds = array<i64: 2, 2>, scalar_prefetch = 0 : i64, scratch_operands = 3 : i64, tpu.core_type = #tpu.core_type<tc>, window_params = [{transform_indices = @transform_0, window_bounds = array<i64: 1, 1, 12, 18, 4>}, {pipeline_mode = #tpu.pipeline_mode<synchronous>, transform_indices = @transform_1, window_bounds = array<i64: 36, 2>}, {pipeline_mode = #tpu.pipeline_mode<synchronous>, transform_indices = @transform_2, window_bounds = array<i64: 1, 2>}, {pipeline_mode = #tpu.pipeline_mode<synchronous>, transform_indices = @transform_3, window_bounds = array<i64: 18, 128>}, {pipeline_mode = #tpu.pipeline_mode<synchronous>, transform_indices = @transform_4, window_bounds = array<i64: 1, 128>}, {transform_indices = @transform_5, window_bounds = array<i64: 1, 8, 16, 128>}]} {
    %c0 = arith.constant 0 : index
    %c0_0 = arith.constant 0 : index
    %c0_1 = arith.constant 0 : index
    %c0_2 = arith.constant 0 : index
    %c0_3 = arith.constant 0 : index
    %0 = vector.load %arg2[%c0, %c0_0, %c0_1, %c0_2, %c0_3] : memref<1x1x12x18x4xbf16, #tpu.memory_space<vmem>>, vector<1x1x10x16x4xbf16>
    %1 = vector.shape_cast %0 : vector<1x1x10x16x4xbf16> to vector<10x16x4xbf16>
    %c0_4 = arith.constant 0 : index
    %c0_5 = arith.constant 0 : index
    %c0_6 = arith.constant 0 : index
    %2 = vector.load %arg9[%c0_4, %c0_5, %c0_6] : memref<10x16x36xbf16, #tpu.memory_space<vmem>>, vector<10x16x4xbf16>
    tpu.vector_store %arg9[%c0_4, %c0_5, %c0_6], %1 {strides = array<i32>} : memref<10x16x36xbf16, #tpu.memory_space<vmem>>, vector<10x16x4xbf16>,
    %c0_7 = arith.constant 0 : index
    %c0_8 = arith.constant 0 : index
    %c0_9 = arith.constant 0 : index
    %c1 = arith.constant 1 : index
    %c0_10 = arith.constant 0 : index
    %3 = vector.load %arg2[%c0_7, %c0_8, %c0_9, %c1, %c0_10] : memref<1x1x12x18x4xbf16, #tpu.memory_space<vmem>>, vector<1x1x10x16x4xbf16>
    %4 = vector.shape_cast %3 : vector<1x1x10x16x4xbf16> to vector<10x16x4xbf16>
    %c0_11 = arith.constant 0 : index
    %c0_12 = arith.constant 0 : index
    %c4 = arith.constant 4 : index
    %5 = vector.load %arg9[%c0_11, %c0_12, %c4] : memref<10x16x36xbf16, #tpu.memory_space<vmem>>, vector<10x16x4xbf16>
    tpu.vector_store %arg9[%c0_11, %c0_12, %c4], %4 {strides = array<i32>} : memref<10x16x36xbf16, #tpu.memory_space<vmem>>, vector<10x16x4xbf16>,
    %c0_13 = arith.constant 0 : index
    %c0_14 = arith.constant 0 : index
    %c0_15 = arith.constant 0 : index
    %c2 = arith.constant 2 : index
    %c0_16 = arith.constant 0 : index
    %6 = vector.load %arg2[%c0_13, %c0_14, %c0_15, %c2, %c0_16] : memref<1x1x12x18x4xbf16, #tpu.memory_space<vmem>>, vector<1x1x10x16x4xbf16>
    %7 = vector.shape_cast %6 : vector<1x1x10x16x4xbf16> to vector<10x16x4xbf16>
    %c0_17 = arith.constant 0 : index
    %c0_18 = arith.constant 0 : index
    %c8 = arith.constant 8 : index
    %8 = vector.load %arg9[%c0_17, %c0_18, %c8] : memref<10x16x36xbf16, #tpu.memory_space<vmem>>, vector<10x16x4xbf16>
    tpu.vector_store %arg9[%c0_17, %c0_18, %c8], %7 {strides = array<i32>} : memref<10x16x36xbf16, #tpu.memory_space<vmem>>, vector<10x16x4xbf16>,
    %c0_19 = arith.constant 0 : index
    %c0_20 = arith.constant 0 : index
    %c1_21 = arith.constant 1 : index
    %c0_22 = arith.constant 0 : index
    %c0_23 = arith.constant 0 : index
    %9 = vector.load %arg2[%c0_19, %c0_20, %c1_21, %c0_22, %c0_23] : memref<1x1x12x18x4xbf16, #tpu.memory_space<vmem>>, vector<1x1x10x16x4xbf16>
    %10 = vector.shape_cast %9 : vector<1x1x10x16x4xbf16> to vector<10x16x4xbf16>
    %c0_24 = arith.constant 0 : index
    %c0_25 = arith.constant 0 : index
    %c12 = arith.constant 12 : index
    %11 = vector.load %arg9[%c0_24, %c0_25, %c12] : memref<10x16x36xbf16, #tpu.memory_space<vmem>>, vector<10x16x4xbf16>
    tpu.vector_store %arg9[%c0_24, %c0_25, %c12], %10 {strides = array<i32>} : memref<10x16x36xbf16, #tpu.memory_space<vmem>>, vector<10x16x4xbf16>,
    %c0_26 = arith.constant 0 : index
    %c0_27 = arith.constant 0 : index
    %c1_28 = arith.constant 1 : index
    %c1_29 = arith.constant 1 : index
    %c0_30 = arith.constant 0 : index
    %12 = vector.load %arg2[%c0_26, %c0_27, %c1_28, %c1_29, %c0_30] : memref<1x1x12x18x4xbf16, #tpu.memory_space<vmem>>, vector<1x1x10x16x4xbf16>
    %13 = vector.shape_cast %12 : vector<1x1x10x16x4xbf16> to vector<10x16x4xbf16>
    %c0_31 = arith.constant 0 : index
    %c0_32 = arith.constant 0 : index
    %c16 = arith.constant 16 : index
    %14 = vector.load %arg9[%c0_31, %c0_32, %c16] : memref<10x16x36xbf16, #tpu.memory_space<vmem>>, vector<10x16x4xbf16>
    tpu.vector_store %arg9[%c0_31, %c0_32, %c16], %13 {strides = array<i32>} : memref<10x16x36xbf16, #tpu.memory_space<vmem>>, vector<10x16x4xbf16>,
    %c0_33 = arith.constant 0 : index
    %c0_34 = arith.constant 0 : index
    %c1_35 = arith.constant 1 : index
    %c2_36 = arith.constant 2 : index
    %c0_37 = arith.constant 0 : index
    %15 = vector.load %arg2[%c0_33, %c0_34, %c1_35, %c2_36, %c0_37] : memref<1x1x12x18x4xbf16, #tpu.memory_space<vmem>>, vector<1x1x10x16x4xbf16>
    %16 = vector.shape_cast %15 : vector<1x1x10x16x4xbf16> to vector<10x16x4xbf16>
    %c0_38 = arith.constant 0 : index
    %c0_39 = arith.constant 0 : index
    %c20 = arith.constant 20 : index
    %17 = vector.load %arg9[%c0_38, %c0_39, %c20] : memref<10x16x36xbf16, #tpu.memory_space<vmem>>, vector<10x16x4xbf16>
    tpu.vector_store %arg9[%c0_38, %c0_39, %c20], %16 {strides = array<i32>} : memref<10x16x36xbf16, #tpu.memory_space<vmem>>, vector<10x16x4xbf16>,
    %c0_40 = arith.constant 0 : index
    %c0_41 = arith.constant 0 : index
    %c2_42 = arith.constant 2 : index
    %c0_43 = arith.constant 0 : index
    %c0_44 = arith.constant 0 : index
    %18 = vector.load %arg2[%c0_40, %c0_41, %c2_42, %c0_43, %c0_44] : memref<1x1x12x18x4xbf16, #tpu.memory_space<vmem>>, vector<1x1x10x16x4xbf16>
    %19 = vector.shape_cast %18 : vector<1x1x10x16x4xbf16> to vector<10x16x4xbf16>
    %c0_45 = arith.constant 0 : index
    %c0_46 = arith.constant 0 : index
    %c24 = arith.constant 24 : index
    %20 = vector.load %arg9[%c0_45, %c0_46, %c24] : memref<10x16x36xbf16, #tpu.memory_space<vmem>>, vector<10x16x4xbf16>
    tpu.vector_store %arg9[%c0_45, %c0_46, %c24], %19 {strides = array<i32>} : memref<10x16x36xbf16, #tpu.memory_space<vmem>>, vector<10x16x4xbf16>,
    %c0_47 = arith.constant 0 : index
    %c0_48 = arith.constant 0 : index
    %c2_49 = arith.constant 2 : index
    %c1_50 = arith.constant 1 : index
    %c0_51 = arith.constant 0 : index
    %21 = vector.load %arg2[%c0_47, %c0_48, %c2_49, %c1_50, %c0_51] : memref<1x1x12x18x4xbf16, #tpu.memory_space<vmem>>, vector<1x1x10x16x4xbf16>
    %22 = vector.shape_cast %21 : vector<1x1x10x16x4xbf16> to vector<10x16x4xbf16>
    %c0_52 = arith.constant 0 : index
    %c0_53 = arith.constant 0 : index
    %c28 = arith.constant 28 : index
    %23 = vector.load %arg9[%c0_52, %c0_53, %c28] : memref<10x16x36xbf16, #tpu.memory_space<vmem>>, vector<10x16x4xbf16>
    tpu.vector_store %arg9[%c0_52, %c0_53, %c28], %22 {strides = array<i32>} : memref<10x16x36xbf16, #tpu.memory_space<vmem>>, vector<10x16x4xbf16>,
    %c0_54 = arith.constant 0 : index
    %c0_55 = arith.constant 0 : index
    %c2_56 = arith.constant 2 : index
    %c2_57 = arith.constant 2 : index
    %c0_58 = arith.constant 0 : index
    %24 = vector.load %arg2[%c0_54, %c0_55, %c2_56, %c2_57, %c0_58] : memref<1x1x12x18x4xbf16, #tpu.memory_space<vmem>>, vector<1x1x10x16x4xbf16>
    %25 = vector.shape_cast %24 : vector<1x1x10x16x4xbf16> to vector<10x16x4xbf16>
    %c0_59 = arith.constant 0 : index
    %c0_60 = arith.constant 0 : index
    %c32 = arith.constant 32 : index
    %26 = vector.load %arg9[%c0_59, %c0_60, %c32] : memref<10x16x36xbf16, #tpu.memory_space<vmem>>, vector<10x16x4xbf16>
    tpu.vector_store %arg9[%c0_59, %c0_60, %c32], %25 {strides = array<i32>} : memref<10x16x36xbf16, #tpu.memory_space<vmem>>, vector<10x16x4xbf16>,
    %c0_61 = arith.constant 0 : index
    %c0_62 = arith.constant 0 : index
    %c0_63 = arith.constant 0 : index
    %27 = vector.load %arg9[%c0_61, %c0_62, %c0_63] : memref<10x16x36xbf16, #tpu.memory_space<vmem>>, vector<10x16x36xbf16>
    %28 = vector.shape_cast %27 : vector<10x16x36xbf16> to vector<160x36xbf16>
    %c0_64 = arith.constant 0 : index
    %c0_65 = arith.constant 0 : index
    %29 = vector.load %arg3[%c0_64, %c0_65] : memref<36x2xbf16, #tpu.memory_space<vmem>>, vector<36x2xbf16>
    %cst = arith.constant dense<0.000000e+00> : vector<160x2xf32>
    %30 = tpu.matmul %28, %29, %cst {dimension_numbers = #tpu.dot_dimension_numbers<[1], [0], [0], [1], [0, 0, 1, 1], [], []>} : vector<160x36xbf16>, vector<36x2xbf16>, vector<160x2xf32> -> vector<160x2xf32>
    %c0_66 = arith.constant 0 : index
    %c0_67 = arith.constant 0 : index
    %31 = vector.load %arg4[%c0_66, %c0_67] : memref<1x2xf32, #tpu.memory_space<vmem>>, vector<1x2xf32>
    %32 = vector.broadcast %31 : vector<1x2xf32> to vector<160x2xf32>
    %33 = arith.addf %30, %32 : vector<160x2xf32>
    %cst_68 = arith.constant 0.000000e+00 : f32
    %34 = vector.broadcast %cst_68 : f32 to vector<160x2xf32>
    %35 = arith.subf %34, %33 : vector<160x2xf32>
    %36 = math.exp %35 : vector<160x2xf32>
    %cst_69 = arith.constant 1.000000e+00 : f32
    %37 = vector.broadcast %cst_69 : f32 to vector<160x2xf32>
    %38 = arith.addf %37, %36 : vector<160x2xf32>
    %39 = tpu.reciprocal %38 {approx = true} : vector<160x2xf32> -> vector<160x2xf32>
    %40 = arith.mulf %33, %39 : vector<160x2xf32>
    %41 = vector.shape_cast %40 : vector<160x2xf32> to vector<10x16x2xf32>
    %c8_i32 = arith.constant 8 : i32
    %42 = arith.muli %arg1, %c8_i32 : i32
    %c1_i32 = arith.constant 1 : i32
    %43 = arith.subi %42, %c1_i32 : i32
    %44 = tpu.iota {dimensions = array<i32: 0>} : vector<10x1x1xi32>
    %45 = vector.broadcast %43 : i32 to vector<10x1x1xi32>
    %46 = arith.addi %45, %44 : vector<10x1x1xi32>
    %c0_i32 = arith.constant 0 : i32
    %47 = vector.broadcast %c0_i32 : i32 to vector<10x1x1xi32>
    %48 = arith.cmpi sge, %46, %47 : vector<10x1x1xi32>
    %c16_i32 = arith.constant 16 : i32
    %49 = vector.broadcast %c16_i32 : i32 to vector<10x1x1xi32>
    %50 = arith.cmpi slt, %46, %49 : vector<10x1x1xi32>
    %51 = arith.andi %48, %50 : vector<10x1x1xi1>
    %cst_70 = arith.constant 0.000000e+00 : f32
    %52 = vector.shape_cast %51 : vector<10x1x1xi1> to vector<10x1x1xi1>
    %53 = vector.broadcast %52 : vector<10x1x1xi1> to vector<10x16x2xi1>
    %54 = vector.broadcast %cst_70 : f32 to vector<10x16x2xf32>
    %55 = arith.select %53, %41, %54 : vector<10x16x2xi1>, vector<10x16x2xf32>
    %56 = arith.truncf %55 : vector<10x16x2xf32> to vector<10x16x2xbf16>
    %cst_71 = arith.constant 0.000000e+00 : bf16
    %57 = vector.broadcast %cst_71 : bf16 to vector<10x2xbf16>
    %c0_72 = arith.constant 0 : index
    %c0_73 = arith.constant 0 : index
    %c0_74 = arith.constant 0 : index
    %58 = vector.load %arg8[%c0_72, %c0_73, %c0_74] : memref<10x18x2xbf16, #tpu.memory_space<vmem>>, vector<10x1x2xbf16>
    %59 = vector.shape_cast %58 : vector<10x1x2xbf16> to vector<10x2xbf16>
    %60 = vector.shape_cast %57 : vector<10x2xbf16> to vector<10x1x2xbf16>
    tpu.vector_store %arg8[%c0_72, %c0_73, %c0_74], %60 {strides = array<i32>} : memref<10x18x2xbf16, #tpu.memory_space<vmem>>, vector<10x1x2xbf16>,
    %cst_75 = arith.constant 0.000000e+00 : bf16
    %61 = vector.broadcast %cst_75 : bf16 to vector<10x2xbf16>
    %c0_76 = arith.constant 0 : index
    %c17 = arith.constant 17 : index
    %c0_77 = arith.constant 0 : index
    %62 = vector.load %arg8[%c0_76, %c17, %c0_77] : memref<10x18x2xbf16, #tpu.memory_space<vmem>>, vector<10x1x2xbf16>
    %63 = vector.shape_cast %62 : vector<10x1x2xbf16> to vector<10x2xbf16>
    %64 = vector.shape_cast %61 : vector<10x2xbf16> to vector<10x1x2xbf16>
    tpu.vector_store %arg8[%c0_76, %c17, %c0_77], %64 {strides = array<i32>} : memref<10x18x2xbf16, #tpu.memory_space<vmem>>, vector<10x1x2xbf16>,
    %c0_78 = arith.constant 0 : index
    %c1_79 = arith.constant 1 : index
    %c0_80 = arith.constant 0 : index
    %65 = vector.load %arg8[%c0_78, %c1_79, %c0_80] : memref<10x18x2xbf16, #tpu.memory_space<vmem>>, vector<10x16x2xbf16>
    tpu.vector_store %arg8[%c0_78, %c1_79, %c0_80], %56 {strides = array<i32>} : memref<10x18x2xbf16, #tpu.memory_space<vmem>>, vector<10x16x2xbf16>,
    %c0_81 = arith.constant 0 : index
    %c0_82 = arith.constant 0 : index
    %c0_83 = arith.constant 0 : index
    %66 = vector.load %arg8[%c0_81, %c0_82, %c0_83] : memref<10x18x2xbf16, #tpu.memory_space<vmem>>, vector<8x16x2xbf16>
    %c0_84 = arith.constant 0 : index
    %c0_85 = arith.constant 0 : index
    %c0_86 = arith.constant 0 : index
    %67 = vector.load %arg10[%c0_84, %c0_85, %c0_86] : memref<8x16x18xbf16, #tpu.memory_space<vmem>>, vector<8x16x2xbf16>
    tpu.vector_store %arg10[%c0_84, %c0_85, %c0_86], %66 {strides = array<i32>} : memref<8x16x18xbf16, #tpu.memory_space<vmem>>, vector<8x16x2xbf16>,
    %c0_87 = arith.constant 0 : index
    %c1_88 = arith.constant 1 : index
    %c0_89 = arith.constant 0 : index
    %68 = vector.load %arg8[%c0_87, %c1_88, %c0_89] : memref<10x18x2xbf16, #tpu.memory_space<vmem>>, vector<8x16x2xbf16>
    %c0_90 = arith.constant 0 : index
    %c0_91 = arith.constant 0 : index
    %c2_92 = arith.constant 2 : index
    %69 = vector.load %arg10[%c0_90, %c0_91, %c2_92] : memref<8x16x18xbf16, #tpu.memory_space<vmem>>, vector<8x16x2xbf16>
    tpu.vector_store %arg10[%c0_90, %c0_91, %c2_92], %68 {strides = array<i32>} : memref<8x16x18xbf16, #tpu.memory_space<vmem>>, vector<8x16x2xbf16>,
    %c0_93 = arith.constant 0 : index
    %c2_94 = arith.constant 2 : index
    %c0_95 = arith.constant 0 : index
    %70 = vector.load %arg8[%c0_93, %c2_94, %c0_95] : memref<10x18x2xbf16, #tpu.memory_space<vmem>>, vector<8x16x2xbf16>
    %c0_96 = arith.constant 0 : index
    %c0_97 = arith.constant 0 : index
    %c4_98 = arith.constant 4 : index
    %71 = vector.load %arg10[%c0_96, %c0_97, %c4_98] : memref<8x16x18xbf16, #tpu.memory_space<vmem>>, vector<8x16x2xbf16>
    tpu.vector_store %arg10[%c0_96, %c0_97, %c4_98], %70 {strides = array<i32>} : memref<8x16x18xbf16, #tpu.memory_space<vmem>>, vector<8x16x2xbf16>,
    %c1_99 = arith.constant 1 : index
    %c0_100 = arith.constant 0 : index
    %c0_101 = arith.constant 0 : index
    %72 = vector.load %arg8[%c1_99, %c0_100, %c0_101] : memref<10x18x2xbf16, #tpu.memory_space<vmem>>, vector<8x16x2xbf16>
    %c0_102 = arith.constant 0 : index
    %c0_103 = arith.constant 0 : index
    %c6 = arith.constant 6 : index
    %73 = vector.load %arg10[%c0_102, %c0_103, %c6] : memref<8x16x18xbf16, #tpu.memory_space<vmem>>, vector<8x16x2xbf16>
    tpu.vector_store %arg10[%c0_102, %c0_103, %c6], %72 {strides = array<i32>} : memref<8x16x18xbf16, #tpu.memory_space<vmem>>, vector<8x16x2xbf16>,
    %c1_104 = arith.constant 1 : index
    %c1_105 = arith.constant 1 : index
    %c0_106 = arith.constant 0 : index
    %74 = vector.load %arg8[%c1_104, %c1_105, %c0_106] : memref<10x18x2xbf16, #tpu.memory_space<vmem>>, vector<8x16x2xbf16>
    %c0_107 = arith.constant 0 : index
    %c0_108 = arith.constant 0 : index
    %c8_109 = arith.constant 8 : index
    %75 = vector.load %arg10[%c0_107, %c0_108, %c8_109] : memref<8x16x18xbf16, #tpu.memory_space<vmem>>, vector<8x16x2xbf16>
    tpu.vector_store %arg10[%c0_107, %c0_108, %c8_109], %74 {strides = array<i32>} : memref<8x16x18xbf16, #tpu.memory_space<vmem>>, vector<8x16x2xbf16>,
    %c1_110 = arith.constant 1 : index
    %c2_111 = arith.constant 2 : index
    %c0_112 = arith.constant 0 : index
    %76 = vector.load %arg8[%c1_110, %c2_111, %c0_112] : memref<10x18x2xbf16, #tpu.memory_space<vmem>>, vector<8x16x2xbf16>
    %c0_113 = arith.constant 0 : index
    %c0_114 = arith.constant 0 : index
    %c10 = arith.constant 10 : index
    %77 = vector.load %arg10[%c0_113, %c0_114, %c10] : memref<8x16x18xbf16, #tpu.memory_space<vmem>>, vector<8x16x2xbf16>
    tpu.vector_store %arg10[%c0_113, %c0_114, %c10], %76 {strides = array<i32>} : memref<8x16x18xbf16, #tpu.memory_space<vmem>>, vector<8x16x2xbf16>,
    %c2_115 = arith.constant 2 : index
    %c0_116 = arith.constant 0 : index
    %c0_117 = arith.constant 0 : index
    %78 = vector.load %arg8[%c2_115, %c0_116, %c0_117] : memref<10x18x2xbf16, #tpu.memory_space<vmem>>, vector<8x16x2xbf16>
    %c0_118 = arith.constant 0 : index
    %c0_119 = arith.constant 0 : index
    %c12_120 = arith.constant 12 : index
    %79 = vector.load %arg10[%c0_118, %c0_119, %c12_120] : memref<8x16x18xbf16, #tpu.memory_space<vmem>>, vector<8x16x2xbf16>
    tpu.vector_store %arg10[%c0_118, %c0_119, %c12_120], %78 {strides = array<i32>} : memref<8x16x18xbf16, #tpu.memory_space<vmem>>, vector<8x16x2xbf16>,
    %c2_121 = arith.constant 2 : index
    %c1_122 = arith.constant 1 : index
    %c0_123 = arith.constant 0 : index
    %80 = vector.load %arg8[%c2_121, %c1_122, %c0_123] : memref<10x18x2xbf16, #tpu.memory_space<vmem>>, vector<8x16x2xbf16>
    %c0_124 = arith.constant 0 : index
    %c0_125 = arith.constant 0 : index
    %c14 = arith.constant 14 : index
    %81 = vector.load %arg10[%c0_124, %c0_125, %c14] : memref<8x16x18xbf16, #tpu.memory_space<vmem>>, vector<8x16x2xbf16>
    tpu.vector_store %arg10[%c0_124, %c0_125, %c14], %80 {strides = array<i32>} : memref<8x16x18xbf16, #tpu.memory_space<vmem>>, vector<8x16x2xbf16>,
    %c2_126 = arith.constant 2 : index
    %c2_127 = arith.constant 2 : index
    %c0_128 = arith.constant 0 : index
    %82 = vector.load %arg8[%c2_126, %c2_127, %c0_128] : memref<10x18x2xbf16, #tpu.memory_space<vmem>>, vector<8x16x2xbf16>
    %c0_129 = arith.constant 0 : index
    %c0_130 = arith.constant 0 : index
    %c16_131 = arith.constant 16 : index
    %83 = vector.load %arg10[%c0_129, %c0_130, %c16_131] : memref<8x16x18xbf16, #tpu.memory_space<vmem>>, vector<8x16x2xbf16>
    tpu.vector_store %arg10[%c0_129, %c0_130, %c16_131], %82 {strides = array<i32>} : memref<8x16x18xbf16, #tpu.memory_space<vmem>>, vector<8x16x2xbf16>,
    %c0_132 = arith.constant 0 : index
    %c0_133 = arith.constant 0 : index
    %c0_134 = arith.constant 0 : index
    %84 = vector.load %arg10[%c0_132, %c0_133, %c0_134] : memref<8x16x18xbf16, #tpu.memory_space<vmem>>, vector<8x16x18xbf16>
    %85 = vector.shape_cast %84 : vector<8x16x18xbf16> to vector<128x18xbf16>
    %c0_135 = arith.constant 0 : index
    %c0_136 = arith.constant 0 : index
    %86 = vector.load %arg5[%c0_135, %c0_136] : memref<18x128xbf16, #tpu.memory_space<vmem>>, vector<18x128xbf16>
    %cst_137 = arith.constant dense<0.000000e+00> : vector<128x128xf32>
    %87 = tpu.matmul %85, %86, %cst_137 {dimension_numbers = #tpu.dot_dimension_numbers<[1], [0], [0], [1], [0, 0, 1, 1], [], []>} : vector<128x18xbf16>, vector<18x128xbf16>, vector<128x128xf32> -> vector<128x128xf32>
    %c0_138 = arith.constant 0 : index
    %c0_139 = arith.constant 0 : index
    %88 = vector.load %arg6[%c0_138, %c0_139] : memref<1x128xf32, #tpu.memory_space<vmem>>, vector<1x128xf32>
    %89 = vector.broadcast %88 : vector<1x128xf32> to vector<128x128xf32>
    %90 = arith.addf %87, %89 : vector<128x128xf32>
    %cst_140 = arith.constant 0.000000e+00 : f32
    %91 = vector.broadcast %cst_140 : f32 to vector<128x128xf32>
    %92 = arith.subf %91, %90 : vector<128x128xf32>
    %93 = math.exp %92 : vector<128x128xf32>
    %cst_141 = arith.constant 1.000000e+00 : f32
    %94 = vector.broadcast %cst_141 : f32 to vector<128x128xf32>
    %95 = arith.addf %94, %93 : vector<128x128xf32>
    %96 = tpu.reciprocal %95 {approx = true} : vector<128x128xf32> -> vector<128x128xf32>
    %97 = arith.mulf %90, %96 : vector<128x128xf32>
    %98 = vector.shape_cast %97 : vector<128x128xf32> to vector<8x16x128xf32>
    %99 = arith.truncf %98 : vector<8x16x128xf32> to vector<8x16x128xbf16>
    %c0_142 = arith.constant 0 : index
    %c0_143 = arith.constant 0 : index
    %c0_144 = arith.constant 0 : index
    %c0_145 = arith.constant 0 : index
    %100 = vector.load %arg7[%c0_142, %c0_143, %c0_144, %c0_145] : memref<1x8x16x128xbf16, #tpu.memory_space<vmem>>, vector<1x8x16x128xbf16>
    %101 = vector.shape_cast %100 : vector<1x8x16x128xbf16> to vector<8x16x128xbf16>
    %102 = vector.shape_cast %99 : vector<8x16x128xbf16> to vector<1x8x16x128xbf16>
    tpu.vector_store %arg7[%c0_142, %c0_143, %c0_144, %c0_145], %102 {strides = array<i32>} : memref<1x8x16x128xbf16, #tpu.memory_space<vmem>>, vector<1x8x16x128xbf16>,
    %c0_146 = arith.constant 0 : index
    %c0_147 = arith.constant 0 : index
    %c2_148 = arith.constant 2 : index
    %c1_149 = arith.constant 1 : index
    %c0_150 = arith.constant 0 : index
    %103 = vector.load %arg2[%c0_146, %c0_147, %c2_148, %c1_149, %c0_150] : memref<1x1x12x18x4xbf16, #tpu.memory_space<vmem>>, vector<1x1x8x16x4xbf16>
    %104 = vector.shape_cast %103 : vector<1x1x8x16x4xbf16> to vector<8x16x4xbf16>
    %105 = arith.extf %104 : vector<8x16x4xbf16> to vector<8x16x4xf32>
    %106 = vector.extract_strided_slice %98 {offsets = [0, 0, 0], sizes = [8, 16, 4], strides = [1, 1, 1]} : vector<8x16x128xf32> to vector<8x16x4xf32>
    %107 = arith.addf %106, %105 : vector<8x16x4xf32>
    %108 = arith.truncf %107 : vector<8x16x4xf32> to vector<8x16x4xbf16>
    %c0_151 = arith.constant 0 : index
    %c0_152 = arith.constant 0 : index
    %c0_153 = arith.constant 0 : index
    %c0_154 = arith.constant 0 : index
    %109 = vector.load %arg7[%c0_151, %c0_152, %c0_153, %c0_154] : memref<1x8x16x128xbf16, #tpu.memory_space<vmem>>, vector<1x8x16x4xbf16>
    %110 = vector.shape_cast %109 : vector<1x8x16x4xbf16> to vector<8x16x4xbf16>
    %111 = vector.shape_cast %108 : vector<8x16x4xbf16> to vector<1x8x16x4xbf16>
    tpu.vector_store %arg7[%c0_151, %c0_152, %c0_153, %c0_154], %111 {strides = array<i32>} : memref<1x8x16x128xbf16, #tpu.memory_space<vmem>>, vector<1x8x16x4xbf16>,
    return
  }
  func.func @transform_0(%arg0: i32, %arg1: i32) -> (i32, i32, i32, i32, i32) {
    %c0_i32 = arith.constant 0 : i32
    %c0_i32_0 = arith.constant 0 : i32
    %c0_i32_1 = arith.constant 0 : i32
    %c0_i32_2 = arith.constant 0 : i32
    return %arg0, %arg1, %c0_i32, %c0_i32_0, %c0_i32_1 : i32, i32, i32, i32, i32
  }
  func.func @transform_1(%arg0: i32, %arg1: i32) -> (i32, i32) {
    %c0_i32 = arith.constant 0 : i32
    %c0_i32_0 = arith.constant 0 : i32
    %c0_i32_1 = arith.constant 0 : i32
    return %c0_i32, %c0_i32_0 : i32, i32
  }
  func.func @transform_2(%arg0: i32, %arg1: i32) -> (i32, i32) {
    %c0_i32 = arith.constant 0 : i32
    %c0_i32_0 = arith.constant 0 : i32
    %c0_i32_1 = arith.constant 0 : i32
    return %c0_i32, %c0_i32_0 : i32, i32
  }
  func.func @transform_3(%arg0: i32, %arg1: i32) -> (i32, i32) {
    %c0_i32 = arith.constant 0 : i32
    %c0_i32_0 = arith.constant 0 : i32
    %c0_i32_1 = arith.constant 0 : i32
    return %c0_i32, %c0_i32_0 : i32, i32
  }
  func.func @transform_4(%arg0: i32, %arg1: i32) -> (i32, i32) {
    %c0_i32 = arith.constant 0 : i32
    %c0_i32_0 = arith.constant 0 : i32
    %c0_i32_1 = arith.constant 0 : i32
    return %c0_i32, %c0_i32_0 : i32, i32
  }
  func.func @transform_5(%arg0: i32, %arg1: i32) -> (i32, i32, i32, i32) {
    %c0_i32 = arith.constant 0 : i32
    %c0_i32_0 = arith.constant 0 : i32
    %c0_i32_1 = arith.constant 0 : i32
    return %arg0, %arg1, %c0_i32, %c0_i32_0 : i32, i32, i32, i32
  }
}

module attributes {stable_mosaic.version = 11 : i64} {
  func.func @_bottleneck_kernel(%arg0: i32, %arg1: i32, %arg2: memref<1x1x12x18x4xbf16, #tpu.memory_space<vmem>>, %arg3: memref<36x2xbf16, #tpu.memory_space<vmem>>, %arg4: memref<1x2xf32, #tpu.memory_space<vmem>>, %arg5: memref<18x128xbf16, #tpu.memory_space<vmem>>, %arg6: memref<1x128xf32, #tpu.memory_space<vmem>>, %arg7: memref<1x8x16x128xbf16, #tpu.memory_space<vmem>>, %arg8: memref<10x18x2xbf16, #tpu.memory_space<vmem>>, %arg9: memref<10x16x36xbf16, #tpu.memory_space<vmem>>, %arg10: memref<8x16x18xbf16, #tpu.memory_space<vmem>>) attributes {dimension_semantics = [#tpu.dimension_semantics<parallel>, #tpu.dimension_semantics<parallel>], iteration_bounds = array<i64: 2, 2>, scalar_prefetch = 0 : i64, scratch_operands = 3 : i64, tpu.core_type = #tpu.core_type<tc>, window_params = [{transform_indices = @transform_0, window_bounds = array<i64: 1, 1, 12, 18, 4>}, {pipeline_mode = #tpu.pipeline_mode<synchronous>, transform_indices = @transform_1, window_bounds = array<i64: 36, 2>}, {pipeline_mode = #tpu.pipeline_mode<synchronous>, transform_indices = @transform_2, window_bounds = array<i64: 1, 2>}, {pipeline_mode = #tpu.pipeline_mode<synchronous>, transform_indices = @transform_3, window_bounds = array<i64: 18, 128>}, {pipeline_mode = #tpu.pipeline_mode<synchronous>, transform_indices = @transform_4, window_bounds = array<i64: 1, 128>}, {transform_indices = @transform_5, window_bounds = array<i64: 1, 8, 16, 128>}]} {
    %c0 = arith.constant 0 : index
    %c0_0 = arith.constant 0 : index
    %c0_1 = arith.constant 0 : index
    %c0_2 = arith.constant 0 : index
    %c0_3 = arith.constant 0 : index
    %0 = vector.load %arg2[%c0, %c0_0, %c0_1, %c0_2, %c0_3] : memref<1x1x12x18x4xbf16, #tpu.memory_space<vmem>>, vector<1x1x10x16x4xbf16>
    %1 = vector.shape_cast %0 : vector<1x1x10x16x4xbf16> to vector<10x16x4xbf16>
    %c0_4 = arith.constant 0 : index
    %c0_5 = arith.constant 0 : index
    %c0_6 = arith.constant 0 : index
    %2 = vector.load %arg9[%c0_4, %c0_5, %c0_6] : memref<10x16x36xbf16, #tpu.memory_space<vmem>>, vector<10x16x4xbf16>
    tpu.vector_store %arg9[%c0_4, %c0_5, %c0_6], %1 {strides = array<i32>} : memref<10x16x36xbf16, #tpu.memory_space<vmem>>, vector<10x16x4xbf16>,
    %c0_7 = arith.constant 0 : index
    %c0_8 = arith.constant 0 : index
    %c0_9 = arith.constant 0 : index
    %c1 = arith.constant 1 : index
    %c0_10 = arith.constant 0 : index
    %3 = vector.load %arg2[%c0_7, %c0_8, %c0_9, %c1, %c0_10] : memref<1x1x12x18x4xbf16, #tpu.memory_space<vmem>>, vector<1x1x10x16x4xbf16>
    %4 = vector.shape_cast %3 : vector<1x1x10x16x4xbf16> to vector<10x16x4xbf16>
    %c0_11 = arith.constant 0 : index
    %c0_12 = arith.constant 0 : index
    %c4 = arith.constant 4 : index
    %5 = vector.load %arg9[%c0_11, %c0_12, %c4] : memref<10x16x36xbf16, #tpu.memory_space<vmem>>, vector<10x16x4xbf16>
    tpu.vector_store %arg9[%c0_11, %c0_12, %c4], %4 {strides = array<i32>} : memref<10x16x36xbf16, #tpu.memory_space<vmem>>, vector<10x16x4xbf16>,
    %c0_13 = arith.constant 0 : index
    %c0_14 = arith.constant 0 : index
    %c0_15 = arith.constant 0 : index
    %c2 = arith.constant 2 : index
    %c0_16 = arith.constant 0 : index
    %6 = vector.load %arg2[%c0_13, %c0_14, %c0_15, %c2, %c0_16] : memref<1x1x12x18x4xbf16, #tpu.memory_space<vmem>>, vector<1x1x10x16x4xbf16>
    %7 = vector.shape_cast %6 : vector<1x1x10x16x4xbf16> to vector<10x16x4xbf16>
    %c0_17 = arith.constant 0 : index
    %c0_18 = arith.constant 0 : index
    %c8 = arith.constant 8 : index
    %8 = vector.load %arg9[%c0_17, %c0_18, %c8] : memref<10x16x36xbf16, #tpu.memory_space<vmem>>, vector<10x16x4xbf16>
    tpu.vector_store %arg9[%c0_17, %c0_18, %c8], %7 {strides = array<i32>} : memref<10x16x36xbf16, #tpu.memory_space<vmem>>, vector<10x16x4xbf16>,
    %c0_19 = arith.constant 0 : index
    %c0_20 = arith.constant 0 : index
    %c1_21 = arith.constant 1 : index
    %c0_22 = arith.constant 0 : index
    %c0_23 = arith.constant 0 : index
    %9 = vector.load %arg2[%c0_19, %c0_20, %c1_21, %c0_22, %c0_23] : memref<1x1x12x18x4xbf16, #tpu.memory_space<vmem>>, vector<1x1x10x16x4xbf16>
    %10 = vector.shape_cast %9 : vector<1x1x10x16x4xbf16> to vector<10x16x4xbf16>
    %c0_24 = arith.constant 0 : index
    %c0_25 = arith.constant 0 : index
    %c12 = arith.constant 12 : index
    %11 = vector.load %arg9[%c0_24, %c0_25, %c12] : memref<10x16x36xbf16, #tpu.memory_space<vmem>>, vector<10x16x4xbf16>
    tpu.vector_store %arg9[%c0_24, %c0_25, %c12], %10 {strides = array<i32>} : memref<10x16x36xbf16, #tpu.memory_space<vmem>>, vector<10x16x4xbf16>,
    %c0_26 = arith.constant 0 : index
    %c0_27 = arith.constant 0 : index
    %c1_28 = arith.constant 1 : index
    %c1_29 = arith.constant 1 : index
    %c0_30 = arith.constant 0 : index
    %12 = vector.load %arg2[%c0_26, %c0_27, %c1_28, %c1_29, %c0_30] : memref<1x1x12x18x4xbf16, #tpu.memory_space<vmem>>, vector<1x1x10x16x4xbf16>
    %13 = vector.shape_cast %12 : vector<1x1x10x16x4xbf16> to vector<10x16x4xbf16>
    %c0_31 = arith.constant 0 : index
    %c0_32 = arith.constant 0 : index
    %c16 = arith.constant 16 : index
    %14 = vector.load %arg9[%c0_31, %c0_32, %c16] : memref<10x16x36xbf16, #tpu.memory_space<vmem>>, vector<10x16x4xbf16>
    tpu.vector_store %arg9[%c0_31, %c0_32, %c16], %13 {strides = array<i32>} : memref<10x16x36xbf16, #tpu.memory_space<vmem>>, vector<10x16x4xbf16>,
    %c0_33 = arith.constant 0 : index
    %c0_34 = arith.constant 0 : index
    %c1_35 = arith.constant 1 : index
    %c2_36 = arith.constant 2 : index
    %c0_37 = arith.constant 0 : index
    %15 = vector.load %arg2[%c0_33, %c0_34, %c1_35, %c2_36, %c0_37] : memref<1x1x12x18x4xbf16, #tpu.memory_space<vmem>>, vector<1x1x10x16x4xbf16>
    %16 = vector.shape_cast %15 : vector<1x1x10x16x4xbf16> to vector<10x16x4xbf16>
    %c0_38 = arith.constant 0 : index
    %c0_39 = arith.constant 0 : index
    %c20 = arith.constant 20 : index
    %17 = vector.load %arg9[%c0_38, %c0_39, %c20] : memref<10x16x36xbf16, #tpu.memory_space<vmem>>, vector<10x16x4xbf16>
    tpu.vector_store %arg9[%c0_38, %c0_39, %c20], %16 {strides = array<i32>} : memref<10x16x36xbf16, #tpu.memory_space<vmem>>, vector<10x16x4xbf16>,
    %c0_40 = arith.constant 0 : index
    %c0_41 = arith.constant 0 : index
    %c2_42 = arith.constant 2 : index
    %c0_43 = arith.constant 0 : index
    %c0_44 = arith.constant 0 : index
    %18 = vector.load %arg2[%c0_40, %c0_41, %c2_42, %c0_43, %c0_44] : memref<1x1x12x18x4xbf16, #tpu.memory_space<vmem>>, vector<1x1x10x16x4xbf16>
    %19 = vector.shape_cast %18 : vector<1x1x10x16x4xbf16> to vector<10x16x4xbf16>
    %c0_45 = arith.constant 0 : index
    %c0_46 = arith.constant 0 : index
    %c24 = arith.constant 24 : index
    %20 = vector.load %arg9[%c0_45, %c0_46, %c24] : memref<10x16x36xbf16, #tpu.memory_space<vmem>>, vector<10x16x4xbf16>
    tpu.vector_store %arg9[%c0_45, %c0_46, %c24], %19 {strides = array<i32>} : memref<10x16x36xbf16, #tpu.memory_space<vmem>>, vector<10x16x4xbf16>,
    %c0_47 = arith.constant 0 : index
    %c0_48 = arith.constant 0 : index
    %c2_49 = arith.constant 2 : index
    %c1_50 = arith.constant 1 : index
    %c0_51 = arith.constant 0 : index
    %21 = vector.load %arg2[%c0_47, %c0_48, %c2_49, %c1_50, %c0_51] : memref<1x1x12x18x4xbf16, #tpu.memory_space<vmem>>, vector<1x1x10x16x4xbf16>
    %22 = vector.shape_cast %21 : vector<1x1x10x16x4xbf16> to vector<10x16x4xbf16>
    %c0_52 = arith.constant 0 : index
    %c0_53 = arith.constant 0 : index
    %c28 = arith.constant 28 : index
    %23 = vector.load %arg9[%c0_52, %c0_53, %c28] : memref<10x16x36xbf16, #tpu.memory_space<vmem>>, vector<10x16x4xbf16>
    tpu.vector_store %arg9[%c0_52, %c0_53, %c28], %22 {strides = array<i32>} : memref<10x16x36xbf16, #tpu.memory_space<vmem>>, vector<10x16x4xbf16>,
    %c0_54 = arith.constant 0 : index
    %c0_55 = arith.constant 0 : index
    %c2_56 = arith.constant 2 : index
    %c2_57 = arith.constant 2 : index
    %c0_58 = arith.constant 0 : index
    %24 = vector.load %arg2[%c0_54, %c0_55, %c2_56, %c2_57, %c0_58] : memref<1x1x12x18x4xbf16, #tpu.memory_space<vmem>>, vector<1x1x10x16x4xbf16>
    %25 = vector.shape_cast %24 : vector<1x1x10x16x4xbf16> to vector<10x16x4xbf16>
    %c0_59 = arith.constant 0 : index
    %c0_60 = arith.constant 0 : index
    %c32 = arith.constant 32 : index
    %26 = vector.load %arg9[%c0_59, %c0_60, %c32] : memref<10x16x36xbf16, #tpu.memory_space<vmem>>, vector<10x16x4xbf16>
    tpu.vector_store %arg9[%c0_59, %c0_60, %c32], %25 {strides = array<i32>} : memref<10x16x36xbf16, #tpu.memory_space<vmem>>, vector<10x16x4xbf16>,
    %c0_61 = arith.constant 0 : index
    %c0_62 = arith.constant 0 : index
    %c0_63 = arith.constant 0 : index
    %27 = vector.load %arg9[%c0_61, %c0_62, %c0_63] : memref<10x16x36xbf16, #tpu.memory_space<vmem>>, vector<10x16x36xbf16>
    %28 = vector.shape_cast %27 : vector<10x16x36xbf16> to vector<160x36xbf16>
    %c0_64 = arith.constant 0 : index
    %c0_65 = arith.constant 0 : index
    %29 = vector.load %arg3[%c0_64, %c0_65] : memref<36x2xbf16, #tpu.memory_space<vmem>>, vector<36x2xbf16>
    %cst = arith.constant dense<0.000000e+00> : vector<160x2xf32>
    %30 = tpu.matmul %28, %29, %cst {dimension_numbers = #tpu.dot_dimension_numbers<[1], [0], [0], [1], [0, 0, 1, 1], [], []>} : vector<160x36xbf16>, vector<36x2xbf16>, vector<160x2xf32> -> vector<160x2xf32>
    %c0_66 = arith.constant 0 : index
    %c0_67 = arith.constant 0 : index
    %31 = vector.load %arg4[%c0_66, %c0_67] : memref<1x2xf32, #tpu.memory_space<vmem>>, vector<1x2xf32>
    %32 = vector.broadcast %31 : vector<1x2xf32> to vector<160x2xf32>
    %33 = arith.addf %30, %32 : vector<160x2xf32>
    %cst_68 = arith.constant 0.000000e+00 : f32
    %34 = vector.broadcast %cst_68 : f32 to vector<160x2xf32>
    %35 = arith.subf %34, %33 : vector<160x2xf32>
    %36 = math.exp %35 : vector<160x2xf32>
    %cst_69 = arith.constant 1.000000e+00 : f32
    %37 = vector.broadcast %cst_69 : f32 to vector<160x2xf32>
    %38 = arith.addf %37, %36 : vector<160x2xf32>
    %39 = tpu.reciprocal %38 {approx = true} : vector<160x2xf32> -> vector<160x2xf32>
    %40 = arith.mulf %33, %39 : vector<160x2xf32>
    %41 = vector.shape_cast %40 : vector<160x2xf32> to vector<10x16x2xf32>
    %c8_i32 = arith.constant 8 : i32
    %42 = arith.muli %arg1, %c8_i32 : i32
    %c1_i32 = arith.constant 1 : i32
    %43 = arith.subi %42, %c1_i32 : i32
    %44 = tpu.iota {dimensions = array<i32: 0>} : vector<10x1x1xi32>
    %45 = vector.broadcast %43 : i32 to vector<10x1x1xi32>
    %46 = arith.addi %45, %44 : vector<10x1x1xi32>
    %c0_i32 = arith.constant 0 : i32
    %47 = vector.broadcast %c0_i32 : i32 to vector<10x1x1xi32>
    %48 = arith.cmpi sge, %46, %47 : vector<10x1x1xi32>
    %c16_i32 = arith.constant 16 : i32
    %49 = vector.broadcast %c16_i32 : i32 to vector<10x1x1xi32>
    %50 = arith.cmpi slt, %46, %49 : vector<10x1x1xi32>
    %51 = arith.andi %48, %50 : vector<10x1x1xi1>
    %cst_70 = arith.constant 0.000000e+00 : f32
    %52 = vector.shape_cast %51 : vector<10x1x1xi1> to vector<10x1x1xi1>
    %53 = vector.broadcast %52 : vector<10x1x1xi1> to vector<10x16x2xi1>
    %54 = vector.broadcast %cst_70 : f32 to vector<10x16x2xf32>
    %55 = arith.select %53, %41, %54 : vector<10x16x2xi1>, vector<10x16x2xf32>
    %56 = arith.truncf %55 : vector<10x16x2xf32> to vector<10x16x2xbf16>
    %cst_71 = arith.constant 0.000000e+00 : bf16
    %57 = vector.broadcast %cst_71 : bf16 to vector<10x2xbf16>
    %c0_72 = arith.constant 0 : index
    %c0_73 = arith.constant 0 : index
    %c0_74 = arith.constant 0 : index
    %58 = vector.load %arg8[%c0_72, %c0_73, %c0_74] : memref<10x18x2xbf16, #tpu.memory_space<vmem>>, vector<10x1x2xbf16>
    %59 = vector.shape_cast %58 : vector<10x1x2xbf16> to vector<10x2xbf16>
    %60 = vector.shape_cast %57 : vector<10x2xbf16> to vector<10x1x2xbf16>
    tpu.vector_store %arg8[%c0_72, %c0_73, %c0_74], %60 {strides = array<i32>} : memref<10x18x2xbf16, #tpu.memory_space<vmem>>, vector<10x1x2xbf16>,
    %cst_75 = arith.constant 0.000000e+00 : bf16
    %61 = vector.broadcast %cst_75 : bf16 to vector<10x2xbf16>
    %c0_76 = arith.constant 0 : index
    %c17 = arith.constant 17 : index
    %c0_77 = arith.constant 0 : index
    %62 = vector.load %arg8[%c0_76, %c17, %c0_77] : memref<10x18x2xbf16, #tpu.memory_space<vmem>>, vector<10x1x2xbf16>
    %63 = vector.shape_cast %62 : vector<10x1x2xbf16> to vector<10x2xbf16>
    %64 = vector.shape_cast %61 : vector<10x2xbf16> to vector<10x1x2xbf16>
    tpu.vector_store %arg8[%c0_76, %c17, %c0_77], %64 {strides = array<i32>} : memref<10x18x2xbf16, #tpu.memory_space<vmem>>, vector<10x1x2xbf16>,
    %c0_78 = arith.constant 0 : index
    %c1_79 = arith.constant 1 : index
    %c0_80 = arith.constant 0 : index
    %65 = vector.load %arg8[%c0_78, %c1_79, %c0_80] : memref<10x18x2xbf16, #tpu.memory_space<vmem>>, vector<10x16x2xbf16>
    tpu.vector_store %arg8[%c0_78, %c1_79, %c0_80], %56 {strides = array<i32>} : memref<10x18x2xbf16, #tpu.memory_space<vmem>>, vector<10x16x2xbf16>,
    %c0_81 = arith.constant 0 : index
    %c0_82 = arith.constant 0 : index
    %c0_83 = arith.constant 0 : index
    %66 = vector.load %arg8[%c0_81, %c0_82, %c0_83] : memref<10x18x2xbf16, #tpu.memory_space<vmem>>, vector<8x16x2xbf16>
    %c0_84 = arith.constant 0 : index
    %c0_85 = arith.constant 0 : index
    %c0_86 = arith.constant 0 : index
    %67 = vector.load %arg10[%c0_84, %c0_85, %c0_86] : memref<8x16x18xbf16, #tpu.memory_space<vmem>>, vector<8x16x2xbf16>
    tpu.vector_store %arg10[%c0_84, %c0_85, %c0_86], %66 {strides = array<i32>} : memref<8x16x18xbf16, #tpu.memory_space<vmem>>, vector<8x16x2xbf16>,
    %c0_87 = arith.constant 0 : index
    %c1_88 = arith.constant 1 : index
    %c0_89 = arith.constant 0 : index
    %68 = vector.load %arg8[%c0_87, %c1_88, %c0_89] : memref<10x18x2xbf16, #tpu.memory_space<vmem>>, vector<8x16x2xbf16>
    %c0_90 = arith.constant 0 : index
    %c0_91 = arith.constant 0 : index
    %c2_92 = arith.constant 2 : index
    %69 = vector.load %arg10[%c0_90, %c0_91, %c2_92] : memref<8x16x18xbf16, #tpu.memory_space<vmem>>, vector<8x16x2xbf16>
    tpu.vector_store %arg10[%c0_90, %c0_91, %c2_92], %68 {strides = array<i32>} : memref<8x16x18xbf16, #tpu.memory_space<vmem>>, vector<8x16x2xbf16>,
    %c0_93 = arith.constant 0 : index
    %c2_94 = arith.constant 2 : index
    %c0_95 = arith.constant 0 : index
    %70 = vector.load %arg8[%c0_93, %c2_94, %c0_95] : memref<10x18x2xbf16, #tpu.memory_space<vmem>>, vector<8x16x2xbf16>
    %c0_96 = arith.constant 0 : index
    %c0_97 = arith.constant 0 : index
    %c4_98 = arith.constant 4 : index
    %71 = vector.load %arg10[%c0_96, %c0_97, %c4_98] : memref<8x16x18xbf16, #tpu.memory_space<vmem>>, vector<8x16x2xbf16>
    tpu.vector_store %arg10[%c0_96, %c0_97, %c4_98], %70 {strides = array<i32>} : memref<8x16x18xbf16, #tpu.memory_space<vmem>>, vector<8x16x2xbf16>,
    %c1_99 = arith.constant 1 : index
    %c0_100 = arith.constant 0 : index
    %c0_101 = arith.constant 0 : index
    %72 = vector.load %arg8[%c1_99, %c0_100, %c0_101] : memref<10x18x2xbf16, #tpu.memory_space<vmem>>, vector<8x16x2xbf16>
    %c0_102 = arith.constant 0 : index
    %c0_103 = arith.constant 0 : index
    %c6 = arith.constant 6 : index
    %73 = vector.load %arg10[%c0_102, %c0_103, %c6] : memref<8x16x18xbf16, #tpu.memory_space<vmem>>, vector<8x16x2xbf16>
    tpu.vector_store %arg10[%c0_102, %c0_103, %c6], %72 {strides = array<i32>} : memref<8x16x18xbf16, #tpu.memory_space<vmem>>, vector<8x16x2xbf16>,
    %c1_104 = arith.constant 1 : index
    %c1_105 = arith.constant 1 : index
    %c0_106 = arith.constant 0 : index
    %74 = vector.load %arg8[%c1_104, %c1_105, %c0_106] : memref<10x18x2xbf16, #tpu.memory_space<vmem>>, vector<8x16x2xbf16>
    %c0_107 = arith.constant 0 : index
    %c0_108 = arith.constant 0 : index
    %c8_109 = arith.constant 8 : index
    %75 = vector.load %arg10[%c0_107, %c0_108, %c8_109] : memref<8x16x18xbf16, #tpu.memory_space<vmem>>, vector<8x16x2xbf16>
    tpu.vector_store %arg10[%c0_107, %c0_108, %c8_109], %74 {strides = array<i32>} : memref<8x16x18xbf16, #tpu.memory_space<vmem>>, vector<8x16x2xbf16>,
    %c1_110 = arith.constant 1 : index
    %c2_111 = arith.constant 2 : index
    %c0_112 = arith.constant 0 : index
    %76 = vector.load %arg8[%c1_110, %c2_111, %c0_112] : memref<10x18x2xbf16, #tpu.memory_space<vmem>>, vector<8x16x2xbf16>
    %c0_113 = arith.constant 0 : index
    %c0_114 = arith.constant 0 : index
    %c10 = arith.constant 10 : index
    %77 = vector.load %arg10[%c0_113, %c0_114, %c10] : memref<8x16x18xbf16, #tpu.memory_space<vmem>>, vector<8x16x2xbf16>
    tpu.vector_store %arg10[%c0_113, %c0_114, %c10], %76 {strides = array<i32>} : memref<8x16x18xbf16, #tpu.memory_space<vmem>>, vector<8x16x2xbf16>,
    %c2_115 = arith.constant 2 : index
    %c0_116 = arith.constant 0 : index
    %c0_117 = arith.constant 0 : index
    %78 = vector.load %arg8[%c2_115, %c0_116, %c0_117] : memref<10x18x2xbf16, #tpu.memory_space<vmem>>, vector<8x16x2xbf16>
    %c0_118 = arith.constant 0 : index
    %c0_119 = arith.constant 0 : index
    %c12_120 = arith.constant 12 : index
    %79 = vector.load %arg10[%c0_118, %c0_119, %c12_120] : memref<8x16x18xbf16, #tpu.memory_space<vmem>>, vector<8x16x2xbf16>
    tpu.vector_store %arg10[%c0_118, %c0_119, %c12_120], %78 {strides = array<i32>} : memref<8x16x18xbf16, #tpu.memory_space<vmem>>, vector<8x16x2xbf16>,
    %c2_121 = arith.constant 2 : index
    %c1_122 = arith.constant 1 : index
    %c0_123 = arith.constant 0 : index
    %80 = vector.load %arg8[%c2_121, %c1_122, %c0_123] : memref<10x18x2xbf16, #tpu.memory_space<vmem>>, vector<8x16x2xbf16>
    %c0_124 = arith.constant 0 : index
    %c0_125 = arith.constant 0 : index
    %c14 = arith.constant 14 : index
    %81 = vector.load %arg10[%c0_124, %c0_125, %c14] : memref<8x16x18xbf16, #tpu.memory_space<vmem>>, vector<8x16x2xbf16>
    tpu.vector_store %arg10[%c0_124, %c0_125, %c14], %80 {strides = array<i32>} : memref<8x16x18xbf16, #tpu.memory_space<vmem>>, vector<8x16x2xbf16>,
    %c2_126 = arith.constant 2 : index
    %c2_127 = arith.constant 2 : index
    %c0_128 = arith.constant 0 : index
    %82 = vector.load %arg8[%c2_126, %c2_127, %c0_128] : memref<10x18x2xbf16, #tpu.memory_space<vmem>>, vector<8x16x2xbf16>
    %c0_129 = arith.constant 0 : index
    %c0_130 = arith.constant 0 : index
    %c16_131 = arith.constant 16 : index
    %83 = vector.load %arg10[%c0_129, %c0_130, %c16_131] : memref<8x16x18xbf16, #tpu.memory_space<vmem>>, vector<8x16x2xbf16>
    tpu.vector_store %arg10[%c0_129, %c0_130, %c16_131], %82 {strides = array<i32>} : memref<8x16x18xbf16, #tpu.memory_space<vmem>>, vector<8x16x2xbf16>,
    %c0_132 = arith.constant 0 : index
    %c0_133 = arith.constant 0 : index
    %c0_134 = arith.constant 0 : index
    %84 = vector.load %arg10[%c0_132, %c0_133, %c0_134] : memref<8x16x18xbf16, #tpu.memory_space<vmem>>, vector<8x16x18xbf16>
    %85 = vector.shape_cast %84 : vector<8x16x18xbf16> to vector<128x18xbf16>
    %c0_135 = arith.constant 0 : index
    %c0_136 = arith.constant 0 : index
    %86 = vector.load %arg5[%c0_135, %c0_136] : memref<18x128xbf16, #tpu.memory_space<vmem>>, vector<18x128xbf16>
    %cst_137 = arith.constant dense<0.000000e+00> : vector<128x128xf32>
    %87 = tpu.matmul %85, %86, %cst_137 {dimension_numbers = #tpu.dot_dimension_numbers<[1], [0], [0], [1], [0, 0, 1, 1], [], []>} : vector<128x18xbf16>, vector<18x128xbf16>, vector<128x128xf32> -> vector<128x128xf32>
    %c0_138 = arith.constant 0 : index
    %c0_139 = arith.constant 0 : index
    %88 = vector.load %arg6[%c0_138, %c0_139] : memref<1x128xf32, #tpu.memory_space<vmem>>, vector<1x128xf32>
    %89 = vector.broadcast %88 : vector<1x128xf32> to vector<128x128xf32>
    %90 = arith.addf %87, %89 : vector<128x128xf32>
    %cst_140 = arith.constant 0.000000e+00 : f32
    %91 = vector.broadcast %cst_140 : f32 to vector<128x128xf32>
    %92 = arith.subf %91, %90 : vector<128x128xf32>
    %93 = math.exp %92 : vector<128x128xf32>
    %cst_141 = arith.constant 1.000000e+00 : f32
    %94 = vector.broadcast %cst_141 : f32 to vector<128x128xf32>
    %95 = arith.addf %94, %93 : vector<128x128xf32>
    %96 = tpu.reciprocal %95 {approx = true} : vector<128x128xf32> -> vector<128x128xf32>
    %97 = arith.mulf %90, %96 : vector<128x128xf32>
    %98 = vector.shape_cast %97 : vector<128x128xf32> to vector<8x16x128xf32>
    %99 = arith.truncf %98 : vector<8x16x128xf32> to vector<8x16x128xbf16>
    %c0_142 = arith.constant 0 : index
    %c0_143 = arith.constant 0 : index
    %c0_144 = arith.constant 0 : index
    %c0_145 = arith.constant 0 : index
    %100 = vector.load %arg7[%c0_142, %c0_143, %c0_144, %c0_145] : memref<1x8x16x128xbf16, #tpu.memory_space<vmem>>, vector<1x8x16x128xbf16>
    %101 = vector.shape_cast %100 : vector<1x8x16x128xbf16> to vector<8x16x128xbf16>
    %102 = vector.shape_cast %99 : vector<8x16x128xbf16> to vector<1x8x16x128xbf16>
    tpu.vector_store %arg7[%c0_142, %c0_143, %c0_144, %c0_145], %102 {strides = array<i32>} : memref<1x8x16x128xbf16, #tpu.memory_space<vmem>>, vector<1x8x16x128xbf16>,
    %c0_146 = arith.constant 0 : index
    %c0_147 = arith.constant 0 : index
    %c2_148 = arith.constant 2 : index
    %c1_149 = arith.constant 1 : index
    %c0_150 = arith.constant 0 : index
    %103 = vector.load %arg2[%c0_146, %c0_147, %c2_148, %c1_149, %c0_150] : memref<1x1x12x18x4xbf16, #tpu.memory_space<vmem>>, vector<1x1x8x16x4xbf16>
    %104 = vector.shape_cast %103 : vector<1x1x8x16x4xbf16> to vector<8x16x4xbf16>
    %105 = arith.extf %104 : vector<8x16x4xbf16> to vector<8x16x4xf32>
    %106 = vector.extract_strided_slice %98 {offsets = [0, 0, 0], sizes = [8, 16, 4], strides = [1, 1, 1]} : vector<8x16x128xf32> to vector<8x16x4xf32>
    %107 = arith.addf %106, %105 : vector<8x16x4xf32>
    %108 = arith.truncf %107 : vector<8x16x4xf32> to vector<8x16x4xbf16>
    %c0_151 = arith.constant 0 : index
    %c0_152 = arith.constant 0 : index
    %c0_153 = arith.constant 0 : index
    %c0_154 = arith.constant 0 : index
    %109 = vector.load %arg7[%c0_151, %c0_152, %c0_153, %c0_154] : memref<1x8x16x128xbf16, #tpu.memory_space<vmem>>, vector<1x8x16x4xbf16>
    %110 = vector.shape_cast %109 : vector<1x8x16x4xbf16> to vector<8x16x4xbf16>
    %111 = vector.shape_cast %108 : vector<8x16x4xbf16> to vector<1x8x16x4xbf16>
    tpu.vector_store %arg7[%c0_151, %c0_152, %c0_153, %c0_154], %111 {strides = array<i32>} : memref<1x8x16x128xbf16, #tpu.memory_space<vmem>>, vector<1x8x16x4xbf16>,
    return
  }
  func.func @transform_0(%arg0: i32, %arg1: i32) -> (i32, i32, i32, i32, i32) {
    %c0_i32 = arith.constant 0 : i32
    %c0_i32_0 = arith.constant 0 : i32
    %c0_i32_1 = arith.constant 0 : i32
    %c0_i32_2 = arith.constant 0 : i32
    return %arg0, %arg1, %c0_i32, %c0_i32_0, %c0_i32_1 : i32, i32, i32, i32, i32
  }
  func.func @transform_1(%arg0: i32, %arg1: i32) -> (i32, i32) {
    %c0_i32 = arith.constant 0 : i32
    %c0_i32_0 = arith.constant 0 : i32
    %c0_i32_1 = arith.constant 0 : i32
    return %c0_i32, %c0_i32_0 : i32, i32
  }
  func.func @transform_2(%arg0: i32, %arg1: i32) -> (i32, i32) {
    %c0_i32 = arith.constant 0 : i32
    %c0_i32_0 = arith.constant 0 : i32
    %c0_i32_1 = arith.constant 0 : i32
    return %c0_i32, %c0_i32_0 : i32, i32
  }
  func.func @transform_3(%arg0: i32, %arg1: i32) -> (i32, i32) {
    %c0_i32 = arith.constant 0 : i32
    %c0_i32_0 = arith.constant 0 : i32
    %c0_i32_1 = arith.constant 0 : i32
    return %c0_i32, %c0_i32_0 : i32, i32
  }
  func.func @transform_4(%arg0: i32, %arg1: i32) -> (i32, i32) {
    %c0_i32 = arith.constant 0 : i32
    %c0_i32_0 = arith.constant 0 : i32
    %c0_i32_1 = arith.constant 0 : i32
    return %c0_i32, %c0_i32_0 : i32, i32
  }
  func.func @transform_5(%arg0: i32, %arg1: i32) -> (i32, i32, i32, i32) {
    %c0_i32 = arith.constant 0 : i32
    %c0_i32_0 = arith.constant 0 : i32
    %c0_i32_1 = arith.constant 0 : i32
    return %arg0, %arg1, %c0_i32, %c0_i32_0 : i32, i32, i32, i32
  }
}

</mosaic_0001>

<bundles_post_ra>
// kernel: tpu_custom_call.1
= control target key start
LH: loop header
LB: loop body
LE: loop exit
PB: predicated region body
PF: predicated region fallthrough
CT: control target
= control target key end

     0   :  { %10 = vsyncpa [#allocation6], 0  ;;  %s7408_s0 = inlined_call_operand.vmem [shape: bf16[2,2,12,18,4], index: 0, kind: input, shape index: {}]   ;;  %s7409_s1 = inlined_call_operand.vmem [shape: bf16[36,2], index: 1, kind: input, shape index: {}]   ;;  %s7410_s2 = inlined_call_operand.vmem [shape: f32[1,2], index: 2, kind: input, shape index: {}]   ;;  %s7411_s3 = inlined_call_operand.vmem [shape: bf16[18,128], index: 3, kind: input, shape index: {}]   ;;  %s7412_s4 = inlined_call_operand.vmem [shape: f32[1,128], index: 4, kind: input, shape index: {}]   ;;  %s7413_s5 = inlined_call_operand.hbm [shape: bf16[2,16,16,128], index: 5, kind: output, shape index: {}]  }
   0x1   :  { %12 = vsyncpa [#allocation6 + $0x1], 0  ;;  %s6093_s18 = smov 0   ;;  %s6095_s19 = smov 0  }
   0x2   :  { %s6097_s20 = smov 0   ;;  %s6099_s21 = smov 0  }
   0x3   :  { %s6101_s22 = smov 0   ;;  %s6103_s23 = smov 0  }
   0x4   :  { %s6105_s24 = smov 0   ;;  %s6107_s25 = smov 0  }
   0x5 LB: > { %s4709_s26 = sadd.s32 4294967295, %s6047_s25   ;;  %s4710_s27 = sadd.s32 4294967294, %s6047_s25   ;;  %s6047_s25 = sphi %s6107_s25, %s18_s25   ;;  %s6043_s24 = sphi %s6105_s24, %s7450_s24   ;;  %s6039_s23 = sphi %s6103_s23, %s7449_s23   ;;  %s6035_s22 = sphi %s6101_s22, %s7448_s22   ;;  %s6031_s21 = sphi %s6099_s21, %s7447_s21   ;;  %s6027_s20 = sphi %s6097_s20, %s7446_s20   ;;  %s6023_s19 = sphi %s6095_s19, %s7445_s19   ;;  %s6019_s18 = sphi %s6093_s18, %s7444_s18  }
   0x6   : > { %s27_s28 = sadd.s32 1, %s6039_s23  ;;  %s30_s29 = sadd.s32 1, %s6043_s24 }
   0x7   : > { %p28_p0 = scmp.ge.s32.totalorder %s27_s28, 2  ;;  %p161_p1 = scmp.ne.s32.totalorder %s6027_s20, %s6023_s19 }
   0x8   : > { %p162_p2 = scmp.eq.s32.totalorder %s4709_s26, 3  ;;  %p167_p5 = scmp.ne.s32.totalorder %s6023_s19, %s6019_s18 }
   0x9   : > { %s7452_s28 = smov (%p28_p0, %s27_s28), 0  ;;  %s7454_s29 = smov (!%p28_p0, %s30_s29), %s6043_s24 }
   0xa   : > { %s147_s30 = ssub.s32 %s6039_s23, %s7452_s28  ;;  %p6144_p3 = por %p162_p2, %p161_p1 }
   0xb   : > { %p32_p4 = scmp.ge.s32.totalorder %s7454_s29, 2  ;;  %p168_p6 = scmp.eq.s32.totalorder %s4710_s27, 3 }
   0xc   : > { %p4713_p7 = scmp.ge.s32.totalorder %s6047_s25, 1  ;;  %p210_p9 = scmp.lt.s32.totalorder %s6047_s25, 5 }
   0xd   : > { %s7456_s29 = smov (%p32_p4, %s7454_s29), 0  ;;  %p6153_p8 = por %p168_p6, %p167_p5 }
   0xe   : > { %s146_s8 = ssub.s32 %s6043_s24, %s7456_s29  ;;  %s151_s9 = sadd.s32 1, %s6027_s20 }
   0xf   : > { %s148_s10 = sor.u32 %s147_s30, %s146_s8  ;;  %p211_p10 = pnand %p4713_p7, %p210_p9 }
  0x10   : > { %p149_p11 = scmp.eq.s32.totalorder %s148_s10, 0  ;;  %p242_p12 = scmp.lt.s32.totalorder (!%p211_p10), %s6035_s22, 1  ;;  %vm726_vm0 = vcmask (!%p211_p10), 1046528   ;;  %vm454_vm1 = vsmask.f32 (!%p211_p10), 7424  ;;  %vm333_vm2 = vcmask (!%p211_p10), 31744  }
  0x11   : > { %214 = sbr.rel (%p211_p10) target bundleno = 1011 (0x3f3), region = 40  ;;  %p244_p13 = scmp.lt.s32.totalorder (!%p211_p10), %s6031_s21, 1  ;;  %vm605_vm3 = vcmask (!%p211_p10), 64544   ;;  %vm787_vm4 = vcmask (!%p211_p10), 97344   ;;  %vm899_vm5 = vcmask (!%p211_p10), 130144   ;;  %vm1170_vm6 = vcmask (!%p211_p10), 162944  }
  0x12   : > { %s6162_s11 = scalar_select %p149_p11, %s6027_s20, %s151_s9  }
  0x13   : > { %s6049_s8 = smov (!%p211_p10), 12   ;;  %s6050_s9 = smov (!%p211_p10), 20   ;;  %vm1351_vm7 = vcmask (!%p211_p10), 195744   ;;  %vm1463_vm8 = vcmask (!%p211_p10), 228544   ;;  %vm1734_vm9 = vcmask (!%p211_p10), 261344   ;;  %vm1915_vm10 = vcmask (!%p211_p10), 294144  }
  0x14   : > { %s6051_s10 = smov (!%p211_p10), 8   ;;  %vm1994_vm11 = vcmask (!%p211_p10), 1041408   ;;  %vm1963_vm12 = vcmask (!%p211_p10), 293888   ;;  %vm2323_vm13 = vcmask (!%p211_p10), 8192   ;;  %vm2324_vm14 = vsmask.f32 (!%p211_p10), 256 }
  0x15   : > { %vm6579_vm15 = vmand (!%p211_p10), %vm2323_vm13, %vm2324_vm14  ;;  %s6058_s26 = smov (!%p211_p10), 10   ;;  %s6059_s27 = smov (!%p211_p10), 2  }
  0x18   : > { %s243_s12 = scalar_select %p242_p12, %s6035_s22, 1 }
  0x19   : > { %s245_s13 = scalar_select %p244_p13, %s6031_s21, 1 }
  0x1a   : > { %s5448_s14 = smul.u32 72, %s243_s12  ;;  %s6052_s12 = smov 4  }
  0x1b   : > { %s5447_s15 = smul.u32 36, %s245_s13  ;;  %s6053_s13 = smov 16  }
  0x1d   : > { %s248_s16 = sadd.s32 %s5448_s14, %s5447_s15  ;;  %s6054_s14 = smov 24  }
  0x1e   : > { %s4715_s17 = sshll.u32 %s248_s16, 2  ;;  %s6055_s15 = smov 28  }
  0x1f   : > { %s6171_s30 = scalar_lea.vmem %s7408_s0, %s4715_s17  ;;  %s6056_s16 = smov 32  }
  0x20   : > { %v5533_v0 = vld [vmem:[%s6171_s30 + $0x18] sm:$0xff]   ;;  %v5534_v1 = vld [vmem:[%s6171_s30 + $0xc] sm:$0xff]   ;;  %v5536_v3 = vld [vmem:[%s6171_s30 + $0x14] ss:$0 sps:$4 sm:$0x11]   ;;  %s6057_s17 = smov 6  }
  0x21   : > { %871 = vrot.lane.b32.xlu1 %v5533_v0, %s6049_s8  ;;  %869 = vrot.lane.b32.xlu0 %v5534_v1, %s6049_s8  ;;  %v5535_v2 = vld [vmem:[%s6171_s30 + $0xc] sm:$0xfe]   ;;  %v5541_v4 = vld [vmem:[%s6171_s30] sm:$0xff]   ;;  %v1292_v6 = vrot.slane %v5536_v3, 1 }
  0x22   : > { %v1291_v5 = vrot.slane %v5535_v2, 1  ;;  %v5537_v7 = vld [vmem:[%s6171_s30] sm:$0xfe]   ;;  %v5538_v8 = vld [vmem:[%s6171_s30 + $0x8] ss:$0 sps:$4 sm:$0x11]  }
  0x23   : > { %v456_v9 = vshrl.u32 %v5541_v4, 16  ;;  %v727_v11 = vrot.slane %v5537_v7, 1  ;;  %v5539_v12 = vld [vmem:[%s6171_s30 + $0xc] sm:$0xfe]   ;;  %v458_v13 = vshll.u32 %v5541_v4, 16  ;;  %v728_v14 = vrot.slane %v5538_v8, 1 }
  0x24   : > { %v1293_v10 = vsel %vm726_vm0, %v1291_v5, %v1292_v6  ;;  %v5540_v15 = vld [vmem:[%s6171_s30 + $0x14] ss:$0 sps:$4 sm:$0x11]   ;;  %v730_v16 = vrot.slane %v5539_v12, 1  ;;  %v5543_v21 = vld [vmem:[%s6171_s30 + $0x18] sm:$0xfe]  }
  0x25   : > { %1321 = vrot.lane.b32.xlu0 %v1293_v10, %s6050_s9  ;;  %v460_v17 = vrot.slane %v458_v13, 1  ;;  %v729_v18 = vsel %vm726_vm0, %v727_v11, %v728_v14  ;;  %v731_v19 = vrot.slane %v5540_v15, 1  ;;  %v5542_v20 = vld [vmem:[%s6171_s30 + $0x8] ss:$0 sps:$4 sm:$0x11]   ;;  %v1294_v26 = vrot.slane %v5543_v21, 1 }
  0x26   : > { %757 = vrot.lane.b32.xlu1 %v729_v18, %s6051_s10  ;;  %v463_v24 = vshll.u32 %v5542_v20, 16  ;;  %v5544_v25 = vld [vmem:[%s6171_s30 + $0x20] ss:$0 sps:$4 sm:$0x11]   ;;  %v5545_v27 = vld [vmem:[%s6171_s30 + $0xc] sm:$0xff]   ;;  %v5547_v31 = vld [vmem:[%s6171_s30 + $0x18] sm:$0xff]  }
  0x27   : > { %v732_v22 = vsel %vm726_vm0, %v730_v16, %v731_v19  ;;  %v461_v23 = vor.u32 %v460_v17, %v456_v9  ;;  %v1295_v29 = vrot.slane %v5544_v25, 1  ;;  %v5546_v30 = vld [vmem:[%s6171_s30 + $0x14] ss:$0 sps:$4 sm:$0x11]   ;;  %v468_v32 = vshrl.u32 %v5545_v27, 16  ;;  %v5549_v41 = vld [vmem:[%s6171_s30 + $0xc] sm:$0xff]  }
  0x28   : > { %v465_v28 = vrot.slane %v463_v24, 1  ;;  %v470_v33 = vshll.u32 %v5545_v27, 16  ;;  %v475_v36 = vshll.u32 %v5546_v30, 16  ;;  %v5548_v37 = vld [vmem:[%s6171_s30 + $0x20] ss:$0 sps:$4 sm:$0x11]  }
  0x29   : > { %v1296_v35 = vsel %vm726_vm0, %v1294_v26, %v1295_v29  ;;  %v1033_v39 = vshrl.u32 %v5547_v31, 16  ;;  %v1035_v40 = vshll.u32 %v5547_v31, 16  ;;  %v1040_v43 = vshll.u32 %v5548_v37, 16  ;;  %v5550_v46 = vld [vmem:[%s6171_s30 + $0x14] ss:$0 sps:$4 sm:$0x11]  }
  0x2a   : > { %759 = vrot.lane.b32.xlu1 %v732_v22, %s6051_s10  ;;  %v466_v34 = vsel %vm454_vm1, %v461_v23, %v465_v28  ;;  %v472_v38 = vrot.slane %v470_v33, 1  ;;  %v477_v42 = vrot.slane %v475_v36, 1  ;;  %v1021_v47 = vshrl.u32 %v5549_v41, 16  ;;  %v5552_v54 = vld [vmem:[%s6171_s30 + $0x24] sm:$0xff]   ;;  %v5553_v58 = vld [vmem:[%s6171_s30 + $0x18] sm:$0xff]  }
  0x2b   : > { %575 = vrot.lane.b32.xlu0 %v466_v34, %s6052_s12  ;;  %v1037_v45 = vrot.slane %v1035_v40, 1  ;;  %v1023_v48 = vshll.u32 %v5549_v41, 16  ;;  %v1042_v49 = vrot.slane %v1040_v43, 1  ;;  %v1028_v53 = vshll.u32 %v5550_v46, 16  ;;  %v5551_v59 = vld [vmem:[%s6171_s30 + $0x18] sm:$0xff]   ;;  %v5555_v61 = vld [vmem:[%s6171_s30 + $0x24] sm:$0xff]  }
  0x2c   : > { %v473_v44 = vor.u32 %v472_v38, %v468_v32  ;;  %v5554_v60 = vld [vmem:[%s6171_s30 + $0x20] ss:$0 sps:$4 sm:$0x11]   ;;  %v1585_v63 = vshrl.u32 %v5553_v58, 16  ;;  %v1587_v0 = vshll.u32 %v5553_v58, 16  ;;  %v1597_v3 = vshrl.u32 %v5555_v61, 16 }
  0x2d   : > { %v1038_v51 = vor.u32 %v1037_v45, %v1033_v39  ;;  %v1025_v52 = vrot.slane %v1023_v48, 1  ;;  %v1030_v57 = vrot.slane %v1028_v53, 1  ;;  %v1592_v1 = vshll.u32 %v5554_v60, 16  ;;  %v5556_v2 = vld [vmem:[%s6171_s30 + $0x2c] ss:$0 sps:$4 sm:$0x11]  }
  0x2e   : > { %1323 = vrot.lane.b32.xlu1 %v1296_v35, %s6050_s9  ;;  %v478_v50 = vsel %vm454_vm1, %v473_v44, %v477_v42  ;;  %v1599_v4 = vshll.u32 %v5555_v61, 16  ;;  %v1589_v5 = vrot.slane %v1587_v0, 1  ;;  %v5559_v6 = vld [vmem:[%s6171_s30 + $0x18] sm:$0xff]   ;;  %v1604_v9 = vshll.u32 %v5556_v2, 16  ;;  %v5563_v11 = vld [vmem:[%s6171_s30 + $0x24] sm:$0xff]   ;;  %v5570_v58 = vld [vmem:[%s6171_s30 + $0x30] sm:$0xff]  }
  0x2f   : > { %577 = vrot.lane.b32.xlu0 %v478_v50, %s6052_s12  ;;  %v1043_v55 = vsel %vm454_vm1, %v1038_v51, %v1042_v49  ;;  %v1026_v56 = vor.u32 %v1025_v52, %v1021_v47  ;;  %v1594_v7 = vrot.slane %v1592_v1, 1  ;;  %v5557_v10 = vld [vmem:[%s6171_s30 + $0x18] sm:$0xfe]   ;;  %v5558_v13 = vld [vmem:[%s6171_s30 + $0x20] ss:$0 sps:$4 sm:$0x11]  }
  0x30   : > { %v1601_v8 = vrot.slane %v1599_v4, 1  ;;  %v1590_v12 = vor.u32 %v1589_v5, %v1585_v63  ;;  %v480_v14 = vshrl.u32 %v5559_v6, 16  ;;  %v1606_v16 = vrot.slane %v1604_v9, 1  ;;  %v5560_v20 = vld [vmem:[%s6171_s30 + $0x20] ss:$0 sps:$4 sm:$0x11]  }
  0x31   : > { %v1031_v62 = vsel %vm454_vm1, %v1026_v56, %v1030_v57  ;;  %v1855_v17 = vrot.slane %v5557_v10, 1  ;;  %v1856_v19 = vrot.slane %v5558_v13, 1  ;;  %v482_v21 = vshll.u32 %v5559_v6, 16  ;;  %v5561_v26 = vld [vmem:[%s6171_s30 + $0x24] sm:$0xfe]   ;;  %v5573_v50 = vld [vmem:[%s6171_s30 + $0x30] sm:$0xff]  }
  0x32   : > { %1142 = vrot.lane.b32.xlu1 %v1043_v55, %s6053_s13  ;;  %v1602_v15 = vor.u32 %v1601_v8, %v1597_v3  ;;  %v1595_v18 = vsel %vm454_vm1, %v1590_v12, %v1594_v7  ;;  %v492_v22 = vshrl.u32 %v5563_v11, 16  ;;  %v487_v25 = vshll.u32 %v5560_v20, 16  ;;  %v5562_v27 = vld [vmem:[%s6171_s30 + $0x2c] ss:$0 sps:$4 sm:$0x11]   ;;  %v5571_v47 = vld [vmem:[%s6171_s30 + $0x24] sm:$0xff]  }
  0x33   : > { %1140 = vrot.lane.b32.xlu0 %v1031_v62, %s6053_s13  ;;  %v484_v24 = vrot.slane %v482_v21, 1  ;;  %v494_v28 = vshll.u32 %v5563_v11, 16  ;;  %v1857_v29 = vsel %vm726_vm0, %v1855_v17, %v1856_v19  ;;  %v1858_v32 = vrot.slane %v5561_v26, 1  ;;  %v5564_v34 = vld [vmem:[%s6171_s30 + $0x2c] ss:$0 sps:$4 sm:$0x11]  }
  0x34   : > { %v1607_v23 = vsel %vm454_vm1, %v1602_v15, %v1606_v16  ;;  %v489_v31 = vrot.slane %v487_v25, 1  ;;  %v1859_v33 = vrot.slane %v5562_v27, 1  ;;  %v5565_v37 = vld [vmem:[%s6171_s30 + $0x18] sm:$0xfe]   ;;  %v499_v39 = vshll.u32 %v5564_v34, 16  ;;  %v5581_v16 = vld [vmem:[%s6171_s30 + $0x30] sm:$0xff]  }
  0x35   : > { %v485_v30 = vor.u32 %v484_v24, %v480_v14  ;;  %v496_v35 = vrot.slane %v494_v28, 1  ;;  %v5566_v40 = vld [vmem:[%s6171_s30 + $0x20] ss:$0 sps:$4 sm:$0x11]   ;;  %v733_v42 = vrot.slane %v5565_v37, 1  ;;  %v1045_v53 = vshrl.u32 %v5571_v47, 16 }
  0x36   : > { %1435 = vrot.lane.b32.xlu1 %v5552_v54, %s6054_s14  ;;  %v1860_v41 = vsel %vm726_vm0, %v1858_v32, %v1859_v33  ;;  %v501_v43 = vrot.slane %v499_v39, 1  ;;  %v734_v44 = vrot.slane %v5566_v40, 1  ;;  %v5567_v45 = vld [vmem:[%s6171_s30 + $0x24] sm:$0xfe]   ;;  %v1047_v56 = vshll.u32 %v5571_v47, 16  ;;  %v5583_v21 = vld [vmem:[%s6171_s30 + $0x3c] sm:$0xff]  }
  0x37   : > { %1433 = vrot.lane.b32.xlu0 %v5551_v59, %s6054_s14  ;;  %v490_v36 = vsel %vm454_vm1, %v485_v30, %v489_v31  ;;  %v497_v38 = vor.u32 %v496_v35, %v492_v22  ;;  %v5568_v46 = vld [vmem:[%s6171_s30 + $0x2c] ss:$0 sps:$4 sm:$0x11]   ;;  %v736_v49 = vrot.slane %v5567_v45, 1  ;;  %v5569_v54 = vld [vmem:[%s6171_s30 + $0x24] sm:$0xff]   ;;  %v1057_v62 = vshrl.u32 %v5573_v50, 16 }
  0x38   : > { %v735_v51 = vsel %vm726_vm0, %v733_v42, %v734_v44  ;;  %v737_v52 = vrot.slane %v5568_v46, 1  ;;  %v5572_v55 = vld [vmem:[%s6171_s30 + $0x2c] ss:$0 sps:$4 sm:$0x11]   ;;  %v1049_v59 = vrot.slane %v1047_v56, 1  ;;  %v1059_v63 = vshll.u32 %v5573_v50, 16 }
  0x39   : > { %v502_v48 = vsel %vm454_vm1, %v497_v38, %v501_v43  ;;  %v1052_v60 = vshll.u32 %v5572_v55, 16  ;;  %v5574_v61 = vld [vmem:[%s6171_s30 + $0x38] ss:$0 sps:$4 sm:$0x11]   ;;  %v5575_v3 = vld [vmem:[%s6171_s30 + $0x24] sm:$0xfe]  }
  0x3a   : > { %1706 = vrot.lane.b32.xlu1 %v1607_v23, %s6055_s15  ;;  %v738_v57 = vsel %vm726_vm0, %v736_v49, %v737_v52  ;;  %v1050_v0 = vor.u32 %v1049_v59, %v1045_v53  ;;  %v1064_v2 = vshll.u32 %v5574_v61, 16  ;;  %v1061_v4 = vrot.slane %v1059_v63, 1  ;;  %v5576_v5 = vld [vmem:[%s6171_s30 + $0x2c] ss:$0 sps:$4 sm:$0x11]   ;;  %v5579_v23 = vld [vmem:[%s6171_s30 + $0x30] sm:$0xff]  }
  0x3b   : > { %1704 = vrot.lane.b32.xlu0 %v1595_v18, %s6055_s15  ;;  %v1054_v1 = vrot.slane %v1052_v60, 1  ;;  %v1297_v7 = vrot.slane %v5575_v3, 1  ;;  %v1298_v10 = vrot.slane %v5576_v5, 1  ;;  %v5577_v11 = vld [vmem:[%s6171_s30 + $0x30] sm:$0xfe]   ;;  %v1609_v19 = vshrl.u32 %v5581_v16, 16 }
  0x3c   : > { %v1066_v6 = vrot.slane %v1064_v2, 1  ;;  %v1062_v9 = vor.u32 %v1061_v4, %v1057_v62  ;;  %v5578_v12 = vld [vmem:[%s6171_s30 + $0x38] ss:$0 sps:$4 sm:$0x11]   ;;  %v1300_v14 = vrot.slane %v5577_v11, 1  ;;  %v1611_v20 = vshll.u32 %v5581_v16, 16 }
  0x3d   : > { %v1055_v8 = vsel %vm454_vm1, %v1050_v0, %v1054_v1  ;;  %v1301_v15 = vrot.slane %v5578_v12, 1  ;;  %v1299_v17 = vsel %vm726_vm0, %v1297_v7, %v1298_v10  ;;  %v5582_v18 = vld [vmem:[%s6171_s30 + $0x38] ss:$0 sps:$4 sm:$0x11]   ;;  %v5580_v24 = vld [vmem:[%s6171_s30 + $0x3c] sm:$0xff]   ;;  %v1621_v28 = vshrl.u32 %v5583_v21, 16 }
  0x3e   : > { %579 = vrot.lane.b32.xlu1 %v490_v36, %s6052_s12  ;;  %v1067_v13 = vsel %vm454_vm1, %v1062_v9, %v1066_v6  ;;  %v1613_v25 = vrot.slane %v1611_v20, 1  ;;  %v1616_v26 = vshll.u32 %v5582_v18, 16  ;;  %v5584_v27 = vld [vmem:[%s6171_s30 + $0x44] ss:$0 sps:$4 sm:$0x11]   ;;  %v5587_v30 = vld [vmem:[%s6171_s30 + $0x30] sm:$0xff]  }
  0x3f   : > { %1885 = vrot.lane.b32.xlu0 %v1857_v29, %s6056_s16  ;;  %v1302_v22 = vsel %vm726_vm0, %v1300_v14, %v1301_v15  ;;  %v1623_v29 = vshll.u32 %v5583_v21, 16  ;;  %v1628_v33 = vshll.u32 %v5584_v27, 16  ;;  %v5585_v34 = vld [vmem:[%s6171_s30 + $0x30] sm:$0xfe]   ;;  %v504_v42 = vshrl.u32 %v5587_v30, 16  ;;  %v5591_v50 = vld [vmem:[%s6171_s30 + $0x3c] sm:$0xff]  }
  0x40   : > { %v1614_v31 = vor.u32 %v1613_v25, %v1609_v19  ;;  %v1618_v32 = vrot.slane %v1616_v26, 1  ;;  %v5586_v36 = vld [vmem:[%s6171_s30 + $0x38] ss:$0 sps:$4 sm:$0x11]   ;;  %v1861_v38 = vrot.slane %v5585_v34, 1  ;;  %v506_v43 = vshll.u32 %v5587_v30, 16 }
  0x41   : > { %v1625_v35 = vrot.slane %v1623_v29, 1  ;;  %v1630_v37 = vrot.slane %v1628_v33, 1  ;;  %v1862_v40 = vrot.slane %v5586_v36, 1  ;;  %v5590_v49 = vld [vmem:[%s6171_s30 + $0x44] ss:$0 sps:$4 sm:$0x11]  }
  0x42   : > { %581 = vrot.lane.b32.xlu1 %v502_v48, %s6052_s12  ;;  %v1619_v44 = vsel %vm454_vm1, %v1614_v31, %v1618_v32  ;;  %v508_v46 = vrot.slane %v506_v43, 1  ;;  %v5589_v48 = vld [vmem:[%s6171_s30 + $0x3c] sm:$0xfe]   ;;  %v1865_v55 = vrot.slane %v5590_v49, 1  ;;  %v5593_v60 = vld [vmem:[%s6171_s30 + $0x30] sm:$0xfe]  }
  0x43   : > { %1887 = vrot.lane.b32.xlu0 %v1860_v41, %s6056_s16  ;;  %v1626_v39 = vor.u32 %v1625_v35, %v1621_v28  ;;  %v5588_v41 = vld [vmem:[%s6171_s30 + $0x38] ss:$0 sps:$4 sm:$0x11]   ;;  %v1864_v53 = vrot.slane %v5589_v48, 1  ;;  %v739_v0 = vrot.slane %v5593_v60, 1  ;;  %v5599_v7 = vld [vmem:[%s6171_s30 + $0x3c] sm:$0xff]  }
  0x44   : > { %v511_v47 = vshll.u32 %v5588_v41, 16  ;;  %v5592_v56 = vld [vmem:[%s6171_s30 + $0x44] ss:$0 sps:$4 sm:$0x11]   ;;  %v5595_v5 = vld [vmem:[%s6171_s30 + $0x3c] sm:$0xfe]  }
  0x45   : > { %v1631_v45 = vsel %vm454_vm1, %v1626_v39, %v1630_v37  ;;  %v523_v62 = vshll.u32 %v5592_v56, 16  ;;  %v5594_v63 = vld [vmem:[%s6171_s30 + $0x38] ss:$0 sps:$4 sm:$0x11]   ;;  %v1866_v1 = vsel %vm726_vm0, %v1864_v53, %v1865_v55  ;;  %v742_v9 = vrot.slane %v5595_v5, 1  ;;  %v5601_v10 = vld [vmem:[%s6171_s30 + $0x48] sm:$0xff]  }
  0x46   : > { %763 = vrot.lane.b32.xlu1 %v738_v57, %s6051_s10  ;;  %v513_v52 = vrot.slane %v511_v47, 1  ;;  %v516_v57 = vshrl.u32 %v5591_v50, 16  ;;  %v740_v4 = vrot.slane %v5594_v63, 1  ;;  %v5596_v6 = vld [vmem:[%s6171_s30 + $0x44] ss:$0 sps:$4 sm:$0x11]  }
  0x47   : > { %761 = vrot.lane.b32.xlu0 %v735_v51, %s6051_s10  ;;  %v509_v51 = vor.u32 %v508_v46, %v504_v42  ;;  %v525_v3 = vrot.slane %v523_v62, 1  ;;  %v743_v11 = vrot.slane %v5596_v6, 1  ;;  %v1069_v12 = vshrl.u32 %v5599_v7, 16  ;;  %v5597_v19 = vld [vmem:[%s6171_s30 + $0x3c] sm:$0xff]   ;;  %v5598_v21 = vld [vmem:[%s6171_s30 + $0x48] sm:$0xff]   ;;  %v5611_v48 = vld [vmem:[%s6171_s30 + $0x54] sm:$0xff]  }
  0x48   : > { %v1071_v14 = vshll.u32 %v5599_v7, 16  ;;  %v1081_v15 = vshrl.u32 %v5601_v10, 16  ;;  %v1083_v18 = vshll.u32 %v5601_v10, 16  ;;  %v5603_v29 = vld [vmem:[%s6171_s30 + $0x3c] sm:$0xfe]   ;;  %v5609_v31 = vld [vmem:[%s6171_s30 + $0x48] sm:$0xff]  }
  0x49   : > { %v514_v59 = vsel %vm454_vm1, %v509_v51, %v513_v52  ;;  %v744_v16 = vsel %vm726_vm0, %v742_v9, %v743_v11  ;;  %v5604_v30 = vld [vmem:[%s6171_s30 + $0x44] ss:$0 sps:$4 sm:$0x11]   ;;  %v1303_v33 = vrot.slane %v5603_v29, 1  ;;  %v5605_v34 = vld [vmem:[%s6171_s30 + $0x48] sm:$0xfe]  }
  0x4a   : > { %875 = vrot.lane.b32.xlu1 %v5570_v58, %s6049_s8  ;;  %v518_v58 = vshll.u32 %v5591_v50, 16  ;;  %v1073_v20 = vrot.slane %v1071_v14, 1  ;;  %v1304_v36 = vrot.slane %v5604_v30, 1  ;;  %v5606_v37 = vld [vmem:[%s6171_s30 + $0x50] ss:$0 sps:$4 sm:$0x11]  }
  0x4b   : > { %873 = vrot.lane.b32.xlu0 %v5569_v54, %s6049_s8  ;;  %v1863_v54 = vsel %vm726_vm0, %v1861_v38, %v1862_v40  ;;  %v1306_v39 = vrot.slane %v5605_v34, 1  ;;  %v1633_v40 = vshrl.u32 %v5609_v31, 16  ;;  %v1307_v41 = vrot.slane %v5606_v37, 1  ;;  %v5607_v47 = vld [vmem:[%s6171_s30 + $0x48] sm:$0xff]   ;;  %v5608_v50 = vld [vmem:[%s6171_s30 + $0x54] sm:$0xff]  }
  0x4c   : > { %v520_v61 = vrot.slane %v518_v58, 1  ;;  %v1074_v25 = vor.u32 %v1073_v20, %v1069_v12  ;;  %v1635_v42 = vshll.u32 %v5609_v31, 16  ;;  %v1305_v43 = vsel %vm726_vm0, %v1303_v33, %v1304_v36  ;;  %v5612_v49 = vld [vmem:[%s6171_s30 + $0x5c] ss:$0 sps:$4 sm:$0x11]   ;;  %v5615_v55 = vld [vmem:[%s6171_s30 + $0x48] sm:$0xff]  }
  0x4d   : > { %v1308_v46 = vsel %vm726_vm0, %v1306_v39, %v1307_v41  ;;  %v1645_v52 = vshrl.u32 %v5611_v48, 16  ;;  %v1647_v53 = vshll.u32 %v5611_v48, 16  ;;  %v5613_v58 = vld [vmem:[%s6171_s30 + $0x48] sm:$0xfe]   ;;  %v5617_v6 = vld [vmem:[%s6171_s30 + $0x54] sm:$0xfe]  }
  0x4e   : > { %1146 = vrot.lane.b32.xlu1 %v1067_v13, %s6053_s13  ;;  %v521_v2 = vor.u32 %v520_v61, %v516_v57  ;;  %v741_v13 = vsel %vm726_vm0, %v739_v0, %v740_v4  ;;  %v1867_v62 = vrot.slane %v5613_v58, 1  ;;  %v528_v0 = vshrl.u32 %v5615_v55, 16  ;;  %v5618_v10 = vld [vmem:[%s6171_s30 + $0x5c] ss:$0 sps:$4 sm:$0x11]   ;;  %v5627_v31 = vld [vmem:[%s6171_s30 + $0x54] sm:$0xff]  }
  0x4f   : > { %1144 = vrot.lane.b32.xlu0 %v1055_v8, %s6053_s13  ;;  %v1649_v60 = vrot.slane %v1647_v53, 1  ;;  %v530_v4 = vshll.u32 %v5615_v55, 16  ;;  %v1870_v12 = vrot.slane %v5617_v6, 1  ;;  %v5624_v30 = vld [vmem:[%s6171_s30 + $0x5c] ss:$0 sps:$4 sm:$0x11]  }
  0x50   : > { %v526_v8 = vsel %vm454_vm1, %v521_v2, %v525_v3  ;;  %v5616_v3 = vld [vmem:[%s6171_s30 + $0x50] ss:$0 sps:$4 sm:$0x11]   ;;  %v5629_v33 = vld [vmem:[%s6171_s30 + $0x60] sm:$0xff]   ;;  %v1093_v36 = vshrl.u32 %v5627_v31, 16  ;;  %v1095_v39 = vshll.u32 %v5627_v31, 16 }
  0x51   : > { %v1650_v2 = vor.u32 %v1649_v60, %v1645_v52  ;;  %v535_v9 = vshll.u32 %v5616_v3, 16  ;;  %v1105_v41 = vshrl.u32 %v5629_v33, 16  ;;  %v5631_v52 = vld [vmem:[%s6171_s30 + $0x54] sm:$0xfe]   ;;  %v5637_v55 = vld [vmem:[%s6171_s30 + $0x60] sm:$0xff]   ;;  %v5639_v3 = vld [vmem:[%s6171_s30 + $0x6c] sm:$0xff]  }
  0x52   : > { %1327 = vrot.lane.b32.xlu1 %v1302_v22, %s6050_s9  ;;  %v5634_v60 = vld [vmem:[%s6171_s30 + $0x68] ss:$0 sps:$4 sm:$0x11]  }
  0x53   : > { %1325 = vrot.lane.b32.xlu0 %v1299_v17, %s6050_s9  ;;  %v5600_v17 = vld [vmem:[%s6171_s30 + $0x44] ss:$0 sps:$4 sm:$0x11]   ;;  %v5645_v31 = vld [vmem:[%s6171_s30 + $0x68] ss:$0 sps:$4 sm:$0x11]  }
  0x54   : > { %v1076_v22 = vshll.u32 %v5600_v17, 16 }
  0x56   : > { %1439 = vrot.lane.b32.xlu1 %v5580_v24, %s6054_s14  ;;  %v1085_v24 = vrot.slane %v1083_v18, 1  ;;  %v1078_v26 = vrot.slane %v1076_v22, 1  ;;  %v5620_v18 = vld [vmem:[%s6171_s30 + $0x5c] ss:$0 sps:$4 sm:$0x11]  }
  0x57   : > { %1437 = vrot.lane.b32.xlu0 %v5579_v23, %s6054_s14  ;;  %v5602_v23 = vld [vmem:[%s6171_s30 + $0x50] ss:$0 sps:$4 sm:$0x11]  }
  0x58   : > { %v1086_v27 = vor.u32 %v1085_v24, %v1081_v15  ;;  %v1088_v28 = vshll.u32 %v5602_v23, 16  ;;  %v1079_v35 = vsel %vm454_vm1, %v1074_v25, %v1078_v26  ;;  %v537_v15 = vrot.slane %v535_v9, 1  ;;  %v5622_v24 = vld [vmem:[%s6171_s30 + $0x50] ss:$0 sps:$4 sm:$0x11]  }
  0x59   : > { %v547_v23 = vshll.u32 %v5620_v18, 16  ;;  %v5623_v26 = vld [vmem:[%s6171_s30 + $0x54] sm:$0xfe]   ;;  %v746_v29 = vrot.slane %v5622_v24, 1 }
  0x5a   : > { %1710 = vrot.lane.b32.xlu1 %v1631_v45, %s6055_s15  ;;  %v1090_v32 = vrot.slane %v1088_v28, 1  ;;  %v1637_v45 = vrot.slane %v1635_v42, 1  ;;  %v1107_v42 = vshll.u32 %v5629_v33, 16  ;;  %v5646_v33 = vld [vmem:[%s6171_s30 + $0xc] sm:$0xff]  }
  0x5b   : > { %1708 = vrot.lane.b32.xlu0 %v1619_v44, %s6055_s15  ;;  %v5610_v44 = vld [vmem:[%s6171_s30 + $0x50] ss:$0 sps:$4 sm:$0x11]   ;;  %v549_v28 = vrot.slane %v547_v23, 1  ;;  %335 = vst.msk [vmem:[#allocation3 + $0x8] sm:$0xff] %vm333_vm2, %v5646_v33 }
  0x5c   : > { %v1091_v38 = vsel %vm454_vm1, %v1086_v27, %v1090_v32  ;;  %v1640_v51 = vshll.u32 %v5610_v44, 16  ;;  %v1638_v56 = vor.u32 %v1637_v45, %v1633_v40  ;;  %v748_v32 = vrot.slane %v5623_v26, 1 }
  0x5d   : > { %v1097_v44 = vrot.slane %v1095_v39, 1  ;;  %v1109_v48 = vrot.slane %v1107_v42, 1  ;;  %v5647_v39 = vld [vmem:[%s6171_s30 + $0x6c] sm:$0xfe]  }
  0x5e   : > { %583 = vrot.lane.b32.xlu1 %v514_v59, %s6052_s12  ;;  %v1642_v57 = vrot.slane %v1640_v51, 1  ;;  %v5614_v59 = vld [vmem:[%s6171_s30 + $0x50] ss:$0 sps:$4 sm:$0x11]  }
  0x5f   : > { %1889 = vrot.lane.b32.xlu0 %v1863_v54, %s6056_s16  ;;  %v1652_v54 = vshll.u32 %v5612_v49, 16  ;;  %v1868_v63 = vrot.slane %v5614_v59, 1  ;;  %v1098_v49 = vor.u32 %v1097_v44, %v1093_v36  ;;  %v1110_v53 = vor.u32 %v1109_v48, %v1105_v41  ;;  %v5633_v59 = vld [vmem:[%s6171_s30 + $0x60] sm:$0xfe]   ;;  %v5649_v41 = vld [vmem:[%s6171_s30 + $0x6c] sm:$0xff]  }
  0x60   : > { %v1643_v5 = vsel %vm454_vm1, %v1638_v56, %v1642_v57  ;;  %v1309_v57 = vrot.slane %v5631_v52, 1  ;;  %v564_v48 = vshrl.u32 %v5649_v41, 16 }
  0x61   : > { %v1654_v61 = vrot.slane %v1652_v54, 1  ;;  %v1869_v17 = vsel %vm726_vm0, %v1867_v62, %v1868_v63  ;;  %v5632_v54 = vld [vmem:[%s6171_s30 + $0x5c] ss:$0 sps:$4 sm:$0x11]   ;;  %v1312_v63 = vrot.slane %v5633_v59, 1 }
  0x62   : > { %585 = vrot.lane.b32.xlu1 %v526_v8, %s6052_s12  ;;  %v532_v8 = vrot.slane %v530_v4, 1  ;;  %v1310_v58 = vrot.slane %v5632_v54, 1 }
  0x63   : > { %1891 = vrot.lane.b32.xlu0 %v1866_v1, %s6056_s16  ;;  %v5619_v1 = vld [vmem:[%s6171_s30 + $0x54] sm:$0xff]   ;;  %v1655_v7 = vsel %vm454_vm1, %v1650_v2, %v1654_v61  ;;  %v5638_v2 = vld [vmem:[%s6171_s30 + $0x68] ss:$0 sps:$4 sm:$0x11]  }
  0x64   : > { %v540_v11 = vshrl.u32 %v5619_v1, 16  ;;  %v533_v14 = vor.u32 %v532_v8, %v528_v0  ;;  %v1313_v0 = vrot.slane %v5634_v60, 1  ;;  %v1311_v4 = vsel %vm726_vm0, %v1309_v57, %v1310_v58 }
  0x66   : > { %767 = vrot.lane.b32.xlu1 %v744_v16, %s6051_s10  ;;  %v1871_v16 = vrot.slane %v5618_v10, 1  ;;  %v538_v20 = vsel %vm454_vm1, %v533_v14, %v537_v15  ;;  %v1314_v9 = vsel %vm726_vm0, %v1312_v63, %v1313_v0  ;;  %v5635_v10 = vld [vmem:[%s6171_s30 + $0x60] sm:$0xff]   ;;  %v1671_v14 = vshll.u32 %v5639_v3, 16  ;;  %v5636_v15 = vld [vmem:[%s6171_s30 + $0x6c] sm:$0xff]  }
  0x67   : > { %765 = vrot.lane.b32.xlu0 %v741_v13, %s6051_s10  ;;  %v542_v13 = vshll.u32 %v5619_v1, 16  ;;  %v1659_v1 = vshll.u32 %v5637_v55, 16  ;;  %v5653_v63 = vld [vmem:[%s6171_s30 + $0x6c] sm:$0xfe]  }
  0x68   : > { %v1872_v27 = vsel %vm726_vm0, %v1870_v12, %v1871_v16  ;;  %v5640_v12 = vld [vmem:[%s6171_s30 + $0x74] ss:$0 sps:$4 sm:$0x11]   ;;  %v5641_v16 = vld [vmem:[%s6171_s30] sm:$0xff]   ;;  %v1673_v18 = vrot.slane %v1671_v14, 1 }
  0x69   : > { %v1661_v8 = vrot.slane %v1659_v1, 1  ;;  %334 = vst.msk [vmem:[#allocation3] sm:$0xff] %vm333_vm2, %v5641_v16  ;;  %v5654_v0 = vld [vmem:[%s6171_s30 + $0x74] ss:$0 sps:$4 sm:$0x11]  }
  0x6a   : > { %879 = vrot.lane.b32.xlu1 %v5598_v21, %s6049_s8  ;;  %v5621_v21 = vld [vmem:[%s6171_s30 + $0x48] sm:$0xfe]  }
  0x6b   : > { %877 = vrot.lane.b32.xlu0 %v5597_v19, %s6049_s8  ;;  %v544_v19 = vrot.slane %v542_v13, 1  ;;  %v745_v25 = vrot.slane %v5621_v21, 1  ;;  %v1669_v13 = vshrl.u32 %v5639_v3, 16  ;;  %v754_v3 = vrot.slane %v5653_v63, 1  ;;  %v5681_v63 = vld [vmem:[%s6171_s30 + $0x3c] sm:$0xff]  }
  0x6c   : > { %339 = vst.msk [vmem:[#allocation3 + $0x28] sm:$0xff] %vm333_vm2, %v5681_v63 }
  0x6d   : > { %v545_v22 = vor.u32 %v544_v19, %v540_v11  ;;  %v747_v37 = vsel %vm726_vm0, %v745_v25, %v746_v29  ;;  %v1664_v11 = vshll.u32 %v5638_v2, 16  ;;  %v1676_v19 = vshll.u32 %v5640_v12, 16  ;;  %v5643_v25 = vld [vmem:[%s6171_s30 + $0x68] ss:$0 sps:$4 sm:$0x11]  }
  0x6e   : > { %1150 = vrot.lane.b32.xlu1 %v1091_v38, %s6053_s13  ;;  %v5628_v38 = vld [vmem:[%s6171_s30 + $0x5c] ss:$0 sps:$4 sm:$0x11]   ;;  %v1674_v23 = vor.u32 %v1673_v18, %v1669_v13  ;;  %v5658_v12 = vld [vmem:[%s6171_s30 + $0x74] ss:$0 sps:$4 sm:$0x11]  }
  0x6f   : > { %1148 = vrot.lane.b32.xlu0 %v1079_v35, %s6053_s13  ;;  %v550_v34 = vsel %vm454_vm1, %v545_v22, %v549_v28  ;;  %v749_v35 = vrot.slane %v5624_v30, 1  ;;  %v1100_v45 = vshll.u32 %v5628_v38, 16  ;;  %v5642_v22 = vld [vmem:[%s6171_s30 + $0x60] sm:$0xfe]   ;;  %v1678_v24 = vrot.slane %v1676_v19, 1 }
  0x70   : > { %v1873_v28 = vrot.slane %v5642_v22, 1  ;;  %v1874_v30 = vrot.slane %v5643_v25, 1  ;;  %v1124_v16 = vshll.u32 %v5658_v12, 16  ;;  %v5661_v22 = vld [vmem:[%s7409_s1] sm:$0xff]  }
  0x71   : > { %v750_v40 = vsel %vm726_vm0, %v748_v32, %v749_v35  ;;  %v1679_v35 = vsel %vm454_vm1, %v1674_v23, %v1678_v24  ;;  %5399 = vmatprep.subr.bf16.mxu0 %v5661_v22 }
  0x72   : > { %1331 = vrot.lane.b32.xlu1 %v1308_v46, %s6050_s9  ;;  %v5630_v46 = vld [vmem:[%s6171_s30 + $0x68] ss:$0 sps:$4 sm:$0x11]   ;;  %v1875_v42 = vsel %vm726_vm0, %v1873_v28, %v1874_v30  ;;  %v1126_v23 = vrot.slane %v1124_v16, 1  ;;  %v5663_v28 = vld [vmem:[%s6171_s30 + $0x6c] sm:$0xfe]   ;;  %5400 = vmatpush3.bf16.msra.mxu0 %v5661_v22 }
  0x73   : > { %1329 = vrot.lane.b32.xlu0 %v1305_v43, %s6050_s9  ;;  %v5625_v43 = vld [vmem:[%s6171_s30 + $0x54] sm:$0xff]   ;;  %v1112_v51 = vshll.u32 %v5630_v46, 16  ;;  %v1876_v46 = vrot.slane %v5647_v39, 1 }
  0x74   : > { %v5665_v39 = vld [vmem:[%s6171_s30 + $0x78] sm:$0xfe]  }
  0x75   : > { %v1114_v56 = vrot.slane %v1112_v51, 1  ;;  %v5650_v51 = vld [vmem:[%s6171_s30 + $0x74] ss:$0 sps:$4 sm:$0x11]  }
  0x76   : > { %1443 = vrot.lane.b32.xlu1 %v5608_v50, %s6054_s14  ;;  %v1102_v50 = vrot.slane %v1100_v45, 1  ;;  %v571_v54 = vshll.u32 %v5650_v51, 16  ;;  %v5672_v51 = vld [vmem:[%s6171_s30 + $0x78] sm:$0xff]  }
  0x77   : > { %1441 = vrot.lane.b32.xlu0 %v5607_v47, %s6054_s14  ;;  %v5626_v47 = vld [vmem:[%s6171_s30 + $0x60] sm:$0xff]   ;;  %v1115_v62 = vsel %vm454_vm1, %v1110_v53, %v1114_v56  ;;  %v5652_v56 = vld [vmem:[%s6171_s30 + $0x68] ss:$0 sps:$4 sm:$0x11]  }
  0x78   : > { %v1103_v61 = vsel %vm454_vm1, %v1098_v49, %v1102_v50  ;;  %v566_v49 = vshll.u32 %v5649_v41, 16  ;;  %v573_v60 = vrot.slane %v571_v54, 1  ;;  %v5668_v41 = vld [vmem:[%s6171_s30 + $0x24] sm:$0xff]  }
  0x79   : > { %337 = vst.msk [vmem:[#allocation3 + $0x18] sm:$0xff] %vm333_vm2, %v5668_v41 }
  0x7a   : > { %1714 = vrot.lane.b32.xlu1 %v1655_v7, %s6055_s15  ;;  %v1657_v7 = vshrl.u32 %v5637_v55, 16  ;;  %v568_v53 = vrot.slane %v566_v49, 1  ;;  %v5651_v55 = vld [vmem:[%s6171_s30 + $0x60] sm:$0xfe]  }
  0x7b   : > { %1712 = vrot.lane.b32.xlu0 %v1643_v5, %s6055_s15  ;;  %v5670_v49 = vld [vmem:[%s6171_s30 + $0x84] sm:$0xff]  }
  0x7c   : > { %v1662_v21 = vor.u32 %v1661_v8, %v1657_v7  ;;  %v569_v58 = vor.u32 %v568_v53, %v564_v48  ;;  %v5655_v8 = vld [vmem:[%s6171_s30 + $0x6c] sm:$0xff]   ;;  %v5673_v53 = vld [vmem:[%s6171_s30 + $0x80] ss:$0 sps:$4 sm:$0x11]  }
  0x7e   : > { %587 = vrot.lane.b32.xlu1 %v538_v20, %s6052_s12  ;;  %v5644_v20 = vld [vmem:[%s6171_s30 + $0x60] sm:$0xff]   ;;  %v574_v1 = vsel %vm454_vm1, %v569_v58, %v573_v60  ;;  %v1688_v58 = vshll.u32 %v5673_v53, 16  ;;  %v5675_v60 = vld [vmem:[%s6171_s30 + $0x8c] ss:$0 sps:$4 sm:$0x11]  }
  0x7f   : > { %1893 = vrot.lane.b32.xlu0 %v1869_v17, %s6056_s16  ;;  %v1666_v17 = vrot.slane %v1664_v11, 1  ;;  %v552_v29 = vshrl.u32 %v5644_v20, 16  ;;  %v554_v32 = vshll.u32 %v5644_v20, 16  ;;  %v5656_v11 = vld [vmem:[%s6171_s30 + $0x78] sm:$0xff]  }
  0x81   : > { %v556_v36 = vrot.slane %v554_v32, 1  ;;  %v5664_v32 = vld [vmem:[%s6171_s30 + $0x74] ss:$0 sps:$4 sm:$0x11]  }
  0x82   : > { %589 = vrot.lane.b32.xlu1 %v550_v34, %s6052_s12  ;;  %v1667_v34 = vsel %vm454_vm1, %v1662_v21, %v1666_v17  ;;  %v5660_v17 = vld [vmem:[%s6171_s30 + $0x80] ss:$0 sps:$4 sm:$0x11]  }
  0x83   : > { %1895 = vrot.lane.b32.xlu0 %v1872_v27, %s6056_s16  ;;  %v1136_v25 = vshll.u32 %v5660_v17, 16  ;;  %v5679_v17 = vld [vmem:[%s6171_s30 + $0x8c] ss:$0 sps:$4 sm:$0x11]  }
  0x86   : > { %771 = vrot.lane.b32.xlu1 %v750_v40, %s6051_s10  ;;  %v5648_v40 = vld [vmem:[%s6171_s30 + $0x74] ss:$0 sps:$4 sm:$0x11]  }
  0x87   : > { %769 = vrot.lane.b32.xlu0 %v747_v37, %s6051_s10  ;;  %v559_v37 = vshll.u32 %v5645_v31, 16  ;;  %v1138_v31 = vrot.slane %v1136_v25, 1  ;;  %v1883_v25 = vrot.slane %v5679_v17, 1 }
  0x89   : > { %v561_v44 = vrot.slane %v559_v37, 1 }
  0x8a   : > { %883 = vrot.lane.b32.xlu1 %v5626_v47, %s6049_s8  ;;  %v1877_v47 = vrot.slane %v5648_v40, 1  ;;  %v5666_v40 = vld [vmem:[%s6171_s30 + $0x80] ss:$0 sps:$4 sm:$0x11]  }
  0x8b   : > { %881 = vrot.lane.b32.xlu0 %v5625_v43, %s6049_s8  ;;  %v557_v43 = vor.u32 %v556_v36, %v552_v29  ;;  %v5667_v36 = vld [vmem:[%s7409_s1 + $0x8] sm:$0xff]  }
  0x8c   : > { %v1878_v57 = vsel %vm726_vm0, %v1876_v46, %v1877_v47  ;;  %5401 = vmatprep.subr.bf16.mxu0 %v5667_v36  ;;  %v5669_v47 = vld [vmem:[%s6171_s30 + $0x78] sm:$0xff]  }
  0x8d   : > { %v562_v50 = vsel %vm454_vm1, %v557_v43, %v561_v44  ;;  %v1318_v43 = vrot.slane %v5665_v39, 1  ;;  %v1319_v44 = vrot.slane %v5666_v40, 1  ;;  %5402 = vmatpush3.bf16.msra.mxu0 %v5667_v36 }
  0x8e   : > { %1154 = vrot.lane.b32.xlu1 %v1115_v62, %s6053_s13  ;;  %v752_v62 = vrot.slane %v5652_v56, 1  ;;  %v1683_v56 = vshll.u32 %v5672_v51, 16 }
  0x8f   : > { %1152 = vrot.lane.b32.xlu0 %v1103_v61, %s6053_s13  ;;  %v751_v61 = vrot.slane %v5651_v55, 1  ;;  %v1320_v48 = vsel %vm726_vm0, %v1318_v43, %v1319_v44  ;;  %v1681_v55 = vshrl.u32 %v5672_v51, 16 }
  0x92   : > { %1335 = vrot.lane.b32.xlu1 %v1314_v9, %s6050_s9  ;;  %v5657_v9 = vld [vmem:[%s6171_s30 + $0x6c] sm:$0xff]  }
  0x93   : > { %v6377_v5 = vpop.permute.xlu1 %871  ;;  %v6379_v6 = vpop.permute.xlu0 %869  ;;  %1333 = vrot.lane.b32.xlu0 %v1311_v4, %s6050_s9  ;;  %v753_v4 = vsel %vm726_vm0, %v751_v61, %v752_v62  ;;  %v1117_v14 = vshrl.u32 %v5657_v9, 16  ;;  %v5680_v61 = vld [vmem:[%s6171_s30 + $0x30] sm:$0xff]   ;;  %v1685_v62 = vrot.slane %v1683_v56, 1 }
  0x94   : > { %338 = vst.msk [vmem:[#allocation3 + $0x20] sm:$0xff] %vm333_vm2, %v5680_v61 }
  0x96   : > { %1447 = vrot.lane.b32.xlu1 %v5636_v15, %s6054_s14  ;;  %v1119_v15 = vshll.u32 %v5657_v9, 16  ;;  %v5677_v9 = vld [vmem:[%s6171_s30 + $0x80] ss:$0 sps:$4 sm:$0x11]  }
  0x97   : > { %v6392_v26 = vpop.permute.xlu0 %1321  ;;  %1445 = vrot.lane.b32.xlu0 %v5635_v10, %s6054_s14 }
  0x98   : > { %v758_v27 = vpop.permute.xlu1 %757  ;;  %v1121_v21 = vrot.slane %v1119_v15, 1  ;;  %v5678_v15 = vld [vmem:[%s6171_s30 + $0x84] sm:$0xfe]  }
  0x99   : > { %v1882_v22 = vrot.slane %v5678_v15, 1 }
  0x9a   : > { %1718 = vrot.lane.b32.xlu1 %v1679_v35, %s6055_s15  ;;  %v1315_v35 = vrot.slane %v5663_v28, 1  ;;  %v5684_v28 = vld [vmem:[%s6171_s30 + $0x60] sm:$0xff]  }
  0x9b   : > { %1716 = vrot.lane.b32.xlu0 %v1667_v34, %s6055_s15  ;;  %342 = vst.msk [vmem:[#allocation3 + $0x40] sm:$0xff] %vm333_vm2, %v5684_v28 }
  0x9c   : > { %v760_v38 = vpop.permute.xlu1 %759 }
  0x9d   : > { %v576_v45 = vpop.permute.xlu0 %575 }
  0x9e   : > { %606 = vst.msk [vmem:[#allocation3] sm:$0xff] %vm605_vm3, %v576_v45  ;;  %591 = vrot.lane.b32.xlu1 %v562_v50, %s6052_s12  ;;  %v5671_v50 = vld [vmem:[%s7409_s1 + $0x10] ss:$0 sps:$4 sm:$0x33]  }
  0x9f   : > { %788 = vst.msk [vmem:[#allocation3] sm:$0xff] %vm787_vm4, %v758_v27  ;;  %1897 = vrot.lane.b32.xlu0 %v1875_v42, %s6056_s16  ;;  %v1122_v27 = vor.u32 %v1121_v21, %v1117_v14  ;;  %5445 = vmatprep.subr.msk.bf16.mxu0 %vm1994_vm11, %v5671_v50  ;;  %v1880_v14 = vrot.slane %v5677_v9, 1 }
  0xa0   : > { %v1324_v52 = vpop.permute.xlu1 %1323  ;;  %900 = vst.msk [vmem:[#allocation3] sm:$0xff] %vm899_vm5, %v6379_v6  ;;  %v755_v6 = vrot.slane %v5654_v0, 1  ;;  %v1690_v0 = vrot.slane %v1688_v58, 1 }
  0xa1   : > { %v578_v59 = vpop.permute.xlu0 %577  ;;  %v1127_v34 = vsel %vm454_vm1, %v1122_v27, %v1126_v23  ;;  %v1884_v27 = vsel %vm726_vm0, %v1882_v22, %v1883_v25 }
  0xa2   : > { %607 = vst.msk [vmem:[#allocation3 + $0x8] sm:$0xff] %vm605_vm3, %v578_v59  ;;  %593 = vrot.lane.b32.xlu1 %v574_v1, %s6052_s12  ;;  %v756_v10 = vsel %vm726_vm0, %v754_v3, %v755_v6  ;;  %v5674_v59 = vld [vmem:[%s6171_s30 + $0x84] sm:$0xff]   ;;  %v1700_v3 = vshll.u32 %v5675_v60, 16 }
  0xa3   : > { %789 = vst.msk [vmem:[#allocation3 + $0x8] sm:$0xff] %vm787_vm4, %v760_v38  ;;  %1899 = vrot.lane.b32.xlu0 %v1878_v57, %s6056_s16  ;;  %v1316_v38 = vrot.slane %v5664_v32, 1  ;;  %v1693_v1 = vshrl.u32 %v5674_v59, 16 }
  0xa4   : > { %v1143_v2 = vpop.permute.xlu1 %1142  ;;  %901 = vst.msk [vmem:[#allocation3 + $0x8] sm:$0xff] %vm899_vm5, %v6377_v5  ;;  %v5659_v5 = vld [vmem:[%s6171_s30 + $0x78] sm:$0xff]   ;;  %v1702_v12 = vrot.slane %v1700_v3, 1 }
  0xa5   : > { %1172 = vst.msk [vmem:[#allocation3 + $0x8] sm:$0xff] %vm1170_vm6, %v1143_v2  ;;  %v1141_v7 = vpop.permute.xlu0 %1140  ;;  %v1129_v18 = vshrl.u32 %v5659_v5, 16  ;;  %v1131_v19 = vshll.u32 %v5659_v5, 16  ;;  %v1317_v42 = vsel %vm726_vm0, %v1315_v35, %v1316_v38  ;;  %v1695_v2 = vshll.u32 %v5674_v59, 16 }
  0xa6   : > { %1171 = vst.msk [vmem:[#allocation3] sm:$0xff] %vm1170_vm6, %v1141_v7  ;;  %775 = vrot.lane.b32.xlu1 %v756_v10, %s6051_s10  ;;  %v1686_v7 = vor.u32 %v1685_v62, %v1681_v55 }
  0xa7   : > { %1353 = vst.msk [vmem:[#allocation3 + $0x8] sm:$0xff] %vm1351_vm7, %v1324_v52  ;;  %773 = vrot.lane.b32.xlu0 %v753_v4, %s6051_s10  ;;  %1352 = vst.msk [vmem:[#allocation3] sm:$0xff] %vm1351_vm7, %v6392_v26  ;;  %v1133_v24 = vrot.slane %v1131_v19, 1  ;;  %v5662_v26 = vld [vmem:[%s6171_s30 + $0x18] sm:$0xff]   ;;  %v1996_v52 = vsel %vm1994_vm11, %v5671_v50, 0 }
  0xa8   : > { %v1436_v13 = vpop.permute.xlu1 %1435  ;;  %336 = vst.msk [vmem:[#allocation3 + $0x10] sm:$0xff] %vm333_vm2, %v5662_v26  ;;  %5404 = vmatpush3.bf16.msra.mxu0 %v1996_v52  ;;  %v1691_v5 = vsel %vm454_vm1, %v1686_v7, %v1690_v0  ;;  %v5683_v26 = vld [vmem:[%s6171_s30 + $0x54] sm:$0xff]   ;;  %vm2438_vm11 = vsmask.f32 4368 }
  0xa9   : > { %1465 = vst.msk [vmem:[#allocation3 + $0x8] sm:$0xff] %vm1463_vm8, %v1436_v13  ;;  %v1434_v20 = vpop.permute.xlu0 %1433  ;;  %v1134_v30 = vor.u32 %v1133_v24, %v1129_v18  ;;  %v5682_v18 = vld [vmem:[%s6171_s30 + $0x48] sm:$0xff]  }
  0xaa   : > { %1464 = vst.msk [vmem:[#allocation3] sm:$0xff] %vm1463_vm8, %v1434_v20  ;;  %887 = vrot.lane.b32.xlu1 %v5656_v11, %s6049_s8  ;;  %v1697_v11 = vrot.slane %v1695_v2, 1 }
  0xab   : > { %885 = vrot.lane.b32.xlu0 %v5655_v8, %s6049_s8  ;;  %v1139_v37 = vsel %vm454_vm1, %v1134_v30, %v1138_v31  ;;  %v5676_v8 = vld [vmem:[%s6171_s30 + $0x78] sm:$0xfe]   ;;  %340 = vst.msk [vmem:[#allocation3 + $0x30] sm:$0xff] %vm333_vm2, %v5682_v18  ;;  %341 = vst.msk [vmem:[#allocation3 + $0x38] sm:$0xff] %vm333_vm2, %v5683_v26  ;;  %v5685_v30 = vld [vmem:[%s6171_s30 + $0x6c] sm:$0xff]  }
  0xac   : > { %v1707_v29 = vpop.permute.xlu1 %1706  ;;  %v1879_v13 = vrot.slane %v5676_v8, 1  ;;  %v1698_v16 = vor.u32 %v1697_v11, %v1693_v1  ;;  %343 = vst.msk [vmem:[#allocation3 + $0x48] sm:$0xff] %vm333_vm2, %v5685_v30  ;;  %vm2356_vm2 = vsmask.f32 7938 }
  0xad   : > { %v1705_v33 = vpop.permute.xlu0 %1704  ;;  %1736 = vst.msk [vmem:[#allocation3 + $0x8] sm:$0xff] %vm1734_vm9, %v1707_v29 }
  0xae   : > { %1735 = vst.msk [vmem:[#allocation3] sm:$0xff] %vm1734_vm9, %v1705_v33  ;;  %1158 = vrot.lane.b32.xlu1 %v1139_v37, %s6053_s13  ;;  %v1881_v21 = vsel %vm726_vm0, %v1879_v13, %v1880_v14  ;;  %v1703_v23 = vsel %vm454_vm1, %v1698_v16, %v1702_v12 }
  0xaf   : > { %1156 = vrot.lane.b32.xlu0 %v1127_v34, %s6053_s13 }
  0xb0   : > { %v580_v46 = vpop.permute.xlu1 %579 }
  0xb1   : > { %v1886_v45 = vpop.permute.xlu0 %1885  ;;  %608 = vst.msk [vmem:[#allocation3 + $0x10] sm:$0xff] %vm605_vm3, %v580_v46 }
  0xb2   : > { %1916 = vst.msk [vmem:[#allocation3] sm:$0xff] %vm1915_vm10, %v1886_v45  ;;  %1339 = vrot.lane.b32.xlu1 %v1320_v48, %s6050_s9 }
  0xb3   : > { %1337 = vrot.lane.b32.xlu0 %v1317_v42, %s6050_s9  ;;  %s6060_s9 = smov 14  }
  0xb4   : > { %v582_v57 = vpop.permute.xlu1 %581 }
  0xb5   : > { %v1888_v54 = vpop.permute.xlu0 %1887  ;;  %609 = vst.msk [vmem:[#allocation3 + $0x18] sm:$0xff] %vm605_vm3, %v582_v57 }
  0xb6   : > { %1917 = vst.msk [vmem:[#allocation3 + $0x8] sm:$0xff] %vm1915_vm10, %v1888_v54  ;;  %1451 = vrot.lane.b32.xlu1 %v5670_v49, %s6054_s14 }
  0xb7   : > { %1449 = vrot.lane.b32.xlu0 %v5669_v47, %s6054_s14 }
  0xb8   : > { %v764_v10 = vpop.permute.xlu1 %763 }
  0xb9   : > { %v762_v4 = vpop.permute.xlu0 %761  ;;  %v1926_v6 = vld [vmem:[#allocation3] sm:$0xff]  ;;  %791 = vst.msk [vmem:[#allocation3 + $0x18] sm:$0xff] %vm787_vm4, %v764_v10 }
  0xba   : > { %790 = vst.msk [vmem:[#allocation3 + $0x10] sm:$0xff] %vm787_vm4, %v762_v4  ;;  %5405 = vmatprep.mubr.msk.bf16.mxu0 %vm1963_vm12, %v1926_v6  ;;  %1722 = vrot.lane.b32.xlu1 %v1703_v23, %s6055_s15 }
  0xbb   : > { %1720 = vrot.lane.b32.xlu0 %v1691_v5, %s6055_s15  ;;  %s5040_s15 = sshll.u32 %s6031_s21, 3 }
  0xbc   : > { %v876_v24 = vpop.permute.xlu1 %875 }
  0xbd   : > { %v874_v19 = vpop.permute.xlu0 %873  ;;  %v1927_v20 = vld [vmem:[#allocation3 + $0x8] sm:$0xff]  ;;  %903 = vst.msk [vmem:[#allocation3 + $0x18] sm:$0xff] %vm899_vm5, %v876_v24 }
  0xbe   : > { %902 = vst.msk [vmem:[#allocation3 + $0x10] sm:$0xff] %vm899_vm5, %v874_v19  ;;  %5406 = vmatmul.mubr.msk.bf16.vlgmr.msra.gmra.mrb[0].mxu0 %vm1963_vm12, %v1927_v20  ;;  %1903 = vrot.lane.b32.xlu1 %v1884_v27, %s6056_s16 }
  0xbf   : > { %1901 = vrot.lane.b32.xlu0 %v1881_v21, %s6056_s16  ;;  %s5041_s16 = sadd.s32 4294967295, %s5040_s15  ;;  %s5308_s15 = sshll.u32 %s6031_s21, 4 }
  0xc0   : > { %v1147_v31 = vpop.permute.xlu1 %1146 }
  0xc1   : > { %v1145_v29 = vpop.permute.xlu0 %1144  ;;  %1174 = vst.msk [vmem:[#allocation3 + $0x18] sm:$0xff] %vm1170_vm6, %v1147_v31 }
  0xc2   : > { %1173 = vst.msk [vmem:[#allocation3 + $0x10] sm:$0xff] %vm1170_vm6, %v1145_v29  ;;  %v2329_v29 = vld [vmem:[#allocation2 + $0xc] sm:$0x1] }
  0xc3   : > { %v2330_v31 = vsel %vm6579_vm15, 0, %v2329_v29 }
  0xc4   : > { %v1328_v33 = vpop.permute.xlu1 %1327  ;;  %2331 = vst [vmem:[#allocation2 + $0xc] sm:$0x1] %v2330_v31 }
  0xc5   : > { %v1326_v32 = vpop.permute.xlu0 %1325  ;;  %1355 = vst.msk [vmem:[#allocation3 + $0x18] sm:$0xff] %vm1351_vm7, %v1328_v33 }
  0xc6   : > { %1354 = vst.msk [vmem:[#allocation3 + $0x10] sm:$0xff] %vm1351_vm7, %v1326_v32 }
  0xc8   : > { %v1440_v35 = vpop.permute.xlu1 %1439 }
  0xc9   : > { %v1438_v34 = vpop.permute.xlu0 %1437  ;;  %1467 = vst.msk [vmem:[#allocation3 + $0x18] sm:$0xff] %vm1463_vm8, %v1440_v35 }
  0xca   : > { %1466 = vst.msk [vmem:[#allocation3 + $0x10] sm:$0xff] %vm1463_vm8, %v1438_v34  ;;  %v2326_v34 = vld [vmem:[#allocation2] sm:$0x1] }
  0xcb   : > { %v2327_v35 = vsel %vm6579_vm15, 0, %v2326_v34 }
  0xcc   : > { %v1711_v37 = vpop.permute.xlu1 %1710  ;;  %2328 = vst [vmem:[#allocation2] sm:$0x1] %v2327_v35 }
  0xcd   : > { %v1709_v36 = vpop.permute.xlu0 %1708  ;;  %1738 = vst.msk [vmem:[#allocation3 + $0x18] sm:$0xff] %vm1734_vm9, %v1711_v37 }
  0xce   : > { %1737 = vst.msk [vmem:[#allocation3 + $0x10] sm:$0xff] %vm1734_vm9, %v1709_v36  ;;  %v2361_v36 = vld [vmem:[#allocation2 + $0x14] sm:$0x1] }
  0xd0   : > { %v584_v39 = vpop.permute.xlu1 %583 }
  0xd1   : > { %v1890_v38 = vpop.permute.xlu0 %1889  ;;  %610 = vst.msk [vmem:[#allocation3 + $0x20] sm:$0xff] %vm605_vm3, %v584_v39 }
  0xd2   : > { %1918 = vst.msk [vmem:[#allocation3 + $0x10] sm:$0xff] %vm1915_vm10, %v1890_v38  ;;  %v2358_v38 = vld [vmem:[#allocation2 + $0x8] sm:$0x1] }
  0xd4   : > { %v586_v41 = vpop.permute.xlu1 %585 }
  0xd5   : > { %v1892_v40 = vpop.permute.xlu0 %1891  ;;  %611 = vst.msk [vmem:[#allocation3 + $0x28] sm:$0xff] %vm605_vm3, %v586_v41 }
  0xd6   : > { %1919 = vst.msk [vmem:[#allocation3 + $0x18] sm:$0xff] %vm1915_vm10, %v1892_v40 }
  0xd8   : > { %v768_v44 = vpop.permute.xlu1 %767 }
  0xd9   : > { %v766_v42 = vpop.permute.xlu0 %765  ;;  %v1928_v43 = vld [vmem:[#allocation3 + $0x10] sm:$0xff]  ;;  %793 = vst.msk [vmem:[#allocation3 + $0x28] sm:$0xff] %vm787_vm4, %v768_v44  ;;  %v2332_v44 = vld [vmem:[#allocation2 + $0x18] sm:$0x1] }
  0xda   : > { %792 = vst.msk [vmem:[#allocation3 + $0x20] sm:$0xff] %vm787_vm4, %v766_v42  ;;  %5409 = vmatprep.mubr.msk.bf16.mxu0 %vm1963_vm12, %v1928_v43  ;;  %v2335_v42 = vld [vmem:[#allocation2 + $0x24] sm:$0x1] }
  0xdb   : > { %v2336_v43 = vsel %vm6579_vm15, 0, %v2335_v42 }
  0xdc   : > { %v880_v47 = vpop.permute.xlu1 %879  ;;  %2337 = vst [vmem:[#allocation2 + $0x24] sm:$0x1] %v2336_v43 }
  0xdd   : > { %v878_v45 = vpop.permute.xlu0 %877  ;;  %v1929_v46 = vld [vmem:[#allocation3 + $0x18] sm:$0xff]  ;;  %905 = vst.msk [vmem:[#allocation3 + $0x28] sm:$0xff] %vm899_vm5, %v880_v47 }
  0xde   : > { %904 = vst.msk [vmem:[#allocation3 + $0x20] sm:$0xff] %vm899_vm5, %v878_v45  ;;  %5410 = vmatmul.mubr.msk.bf16.gmra.mrb[4].mxu0 %vm1963_vm12, %v1929_v46  ;;  %v2333_v45 = vsel %vm6579_vm15, 0, %v2332_v44  ;;  %v2367_v46 = vld [vmem:[#allocation2 + $0x2c] sm:$0x1] }
  0xdf   : > { %2334 = vst [vmem:[#allocation2 + $0x18] sm:$0x1] %v2333_v45 }
  0xe0   : > { %v1151_v49 = vpop.permute.xlu1 %1150 }
  0xe1   : > { %v1149_v48 = vpop.permute.xlu0 %1148  ;;  %1176 = vst.msk [vmem:[#allocation3 + $0x28] sm:$0xff] %vm1170_vm6, %v1151_v49 }
  0xe2   : > { %1175 = vst.msk [vmem:[#allocation3 + $0x20] sm:$0xff] %vm1170_vm6, %v1149_v48  ;;  %v2364_v48 = vld [vmem:[#allocation2 + $0x20] sm:$0x1] }
  0xe4   : > { %v1332_v51 = vpop.permute.xlu1 %1331 }
  0xe5   : > { %v1330_v50 = vpop.permute.xlu0 %1329  ;;  %1357 = vst.msk [vmem:[#allocation3 + $0x28] sm:$0xff] %vm1351_vm7, %v1332_v51 }
  0xe6   : > { %1356 = vst.msk [vmem:[#allocation3 + $0x20] sm:$0xff] %vm1351_vm7, %v1330_v50  ;;  %v2341_v50 = vld [vmem:[#allocation2 + $0x3c] sm:$0x1] }
  0xe7   : > { %v2342_v51 = vsel %vm6579_vm15, 0, %v2341_v50 }
  0xe8   : > { %v1444_v53 = vpop.permute.xlu1 %1443  ;;  %2343 = vst [vmem:[#allocation2 + $0x3c] sm:$0x1] %v2342_v51 }
  0xe9   : > { %v1442_v52 = vpop.permute.xlu0 %1441  ;;  %1469 = vst.msk [vmem:[#allocation3 + $0x28] sm:$0xff] %vm1463_vm8, %v1444_v53 }
  0xea   : > { %1468 = vst.msk [vmem:[#allocation3 + $0x20] sm:$0xff] %vm1463_vm8, %v1442_v52  ;;  %v2338_v52 = vld [vmem:[#allocation2 + $0x30] sm:$0x1] }
  0xeb   : > { %v2339_v53 = vsel %vm6579_vm15, 0, %v2338_v52 }
  0xec   : > { %v1715_v55 = vpop.permute.xlu1 %1714  ;;  %2340 = vst [vmem:[#allocation2 + $0x30] sm:$0x1] %v2339_v53 }
  0xed   : > { %v1713_v54 = vpop.permute.xlu0 %1712  ;;  %1740 = vst.msk [vmem:[#allocation3 + $0x28] sm:$0xff] %vm1734_vm9, %v1715_v55 }
  0xee   : > { %1739 = vst.msk [vmem:[#allocation3 + $0x20] sm:$0xff] %vm1734_vm9, %v1713_v54  ;;  %v2373_v54 = vld [vmem:[#allocation2 + $0x44] sm:$0x1] }
  0xf0   : > { %v588_v57 = vpop.permute.xlu1 %587 }
  0xf1   : > { %v1894_v56 = vpop.permute.xlu0 %1893  ;;  %612 = vst.msk [vmem:[#allocation3 + $0x30] sm:$0xff] %vm605_vm3, %v588_v57 }
  0xf2   : > { %1920 = vst.msk [vmem:[#allocation3 + $0x20] sm:$0xff] %vm1915_vm10, %v1894_v56  ;;  %v2370_v56 = vld [vmem:[#allocation2 + $0x38] sm:$0x1] }
  0xf4   : > { %v590_v59 = vpop.permute.xlu1 %589 }
  0xf5   : > { %v1896_v58 = vpop.permute.xlu0 %1895  ;;  %613 = vst.msk [vmem:[#allocation3 + $0x38] sm:$0xff] %vm605_vm3, %v590_v59 }
  0xf6   : > { %1921 = vst.msk [vmem:[#allocation3 + $0x28] sm:$0xff] %vm1915_vm10, %v1896_v58  ;;  %v6618_v58 = vld [vmem:[%s7410_s2] ss:$0 sm:$0xff] }
  0xf8   : > { %v772_v62 = vpop.permute.xlu1 %771 }
  0xf9   : > { %v770_v60 = vpop.permute.xlu0 %769  ;;  %v1930_v61 = vld [vmem:[#allocation3 + $0x20] sm:$0xff]  ;;  %795 = vst.msk [vmem:[#allocation3 + $0x38] sm:$0xff] %vm787_vm4, %v772_v62 }
  0xfa   : > { %794 = vst.msk [vmem:[#allocation3 + $0x30] sm:$0xff] %vm787_vm4, %v770_v60  ;;  %5413 = vmatprep.mubr.msk.bf16.mxu0 %vm1963_vm12, %v1930_v61 }
  0xfc   : > { %v884_v1 = vpop.permute.xlu1 %883 }
  0xfd   : > { %v882_v63 = vpop.permute.xlu0 %881  ;;  %v1931_v0 = vld [vmem:[#allocation3 + $0x28] sm:$0xff]  ;;  %907 = vst.msk [vmem:[#allocation3 + $0x38] sm:$0xff] %vm899_vm5, %v884_v1 }
  0xfe   : > { %906 = vst.msk [vmem:[#allocation3 + $0x30] sm:$0xff] %vm899_vm5, %v882_v63  ;;  %5414 = vmatmul.mubr.msk.bf16.gmra.mrb[8].mxu0 %vm1963_vm12, %v1931_v0 }
 0x100   : > { %v1155_v3 = vpop.permute.xlu1 %1154 }
 0x101   : > { %v1153_v2 = vpop.permute.xlu0 %1152  ;;  %1178 = vst.msk [vmem:[#allocation3 + $0x38] sm:$0xff] %vm1170_vm6, %v1155_v3  ;;  %v2347_v3 = vld [vmem:[#allocation2 + $0x54] sm:$0x1] }
 0x102   : > { %1177 = vst.msk [vmem:[#allocation3 + $0x30] sm:$0xff] %vm1170_vm6, %v1153_v2 }
 0x104   : > { %v1336_v6 = vpop.permute.xlu1 %1335 }
 0x105   : > { %v1334_v4 = vpop.permute.xlu0 %1333  ;;  %1359 = vst.msk [vmem:[#allocation3 + $0x38] sm:$0xff] %vm1351_vm7, %v1336_v6 }
 0x106   : > { %1358 = vst.msk [vmem:[#allocation3 + $0x30] sm:$0xff] %vm1351_vm7, %v1334_v4 }
 0x108   : > { %v1448_v8 = vpop.permute.xlu1 %1447 }
 0x109   : > { %v1446_v7 = vpop.permute.xlu0 %1445  ;;  %1471 = vst.msk [vmem:[#allocation3 + $0x38] sm:$0xff] %vm1463_vm8, %v1448_v8 }
 0x10a   : > { %1470 = vst.msk [vmem:[#allocation3 + $0x30] sm:$0xff] %vm1463_vm8, %v1446_v7  ;;  %v2348_v7 = vsel %vm6579_vm15, 0, %v2347_v3 }
 0x10b   : > { %2349 = vst [vmem:[#allocation2 + $0x54] sm:$0x1] %v2348_v7 }
 0x10c   : > { %v1719_v10 = vpop.permute.xlu1 %1718 }
 0x10d   : > { %v1717_v9 = vpop.permute.xlu0 %1716  ;;  %1742 = vst.msk [vmem:[#allocation3 + $0x38] sm:$0xff] %vm1734_vm9, %v1719_v10 }
 0x10e   : > { %1741 = vst.msk [vmem:[#allocation3 + $0x30] sm:$0xff] %vm1734_vm9, %v1717_v9 }
 0x110   : > { %v592_v12 = vpop.permute.xlu1 %591 }
 0x111   : > { %v1898_v11 = vpop.permute.xlu0 %1897  ;;  %614 = vst.msk [vmem:[#allocation3 + $0x40] sm:$0xff] %vm605_vm3, %v592_v12 }
 0x112   : > { %1922 = vst.msk [vmem:[#allocation3 + $0x30] sm:$0xff] %vm1915_vm10, %v1898_v11 }
 0x114   : > { %v594_v13 = vpop.permute.xlu1 %593 }
 0x115   : > { %v1900_v5 = vpop.permute.xlu0 %1899  ;;  %615 = vst.msk [vmem:[#allocation3 + $0x48] sm:$0xff] %vm605_vm3, %v594_v13  ;;  %vm6586_vm3 = vmand %vm2323_vm13, %vm2356_vm2  ;;  %v2344_v13 = vld [vmem:[#allocation2 + $0x48] sm:$0x1] }
 0x116   : > { %1923 = vst.msk [vmem:[#allocation3 + $0x38] sm:$0xff] %vm1915_vm10, %v1900_v5  ;;  %v2362_v37 = vsel %vm6586_vm3, 0, %v2361_v36  ;;  %v2359_v39 = vsel %vm6586_vm3, 0, %v2358_v38  ;;  %v2368_v47 = vsel %vm6586_vm3, 0, %v2367_v46  ;;  %v2365_v49 = vsel %vm6586_vm3, 0, %v2364_v48  ;;  %vm6673_vm13 = vmor %vm2324_vm14, %vm2438_vm11 }
 0x117   : > { %2363 = vst [vmem:[#allocation2 + $0x14] sm:$0x1] %v2362_v37  ;;  %2360 = vst [vmem:[#allocation2 + $0x8] sm:$0x1] %v2359_v39  ;;  %v2374_v55 = vsel %vm6586_vm3, 0, %v2373_v54  ;;  %v2371_v57 = vsel %vm6586_vm3, 0, %v2370_v56 }
 0x118   : > { %v776_v16 = vpop.permute.xlu1 %775  ;;  %2369 = vst [vmem:[#allocation2 + $0x2c] sm:$0x1] %v2368_v47  ;;  %2366 = vst [vmem:[#allocation2 + $0x20] sm:$0x1] %v2365_v49 }
 0x119   : > { %v774_v14 = vpop.permute.xlu0 %773  ;;  %v1932_v15 = vld [vmem:[#allocation3 + $0x30] sm:$0xff]  ;;  %797 = vst.msk [vmem:[#allocation3 + $0x48] sm:$0xff] %vm787_vm4, %v776_v16  ;;  %2375 = vst [vmem:[#allocation2 + $0x44] sm:$0x1] %v2374_v55 }
 0x11a   : > { %796 = vst.msk [vmem:[#allocation3 + $0x40] sm:$0xff] %vm787_vm4, %v774_v14  ;;  %5417 = vmatprep.mubr.msk.bf16.mxu0 %vm1963_vm12, %v1932_v15  ;;  %2372 = vst [vmem:[#allocation2 + $0x38] sm:$0x1] %v2371_v57  ;;  %v2345_v14 = vsel %vm6579_vm15, 0, %v2344_v13  ;;  %v2379_v15 = vld [vmem:[#allocation2 + $0x5c] sm:$0x1] }
 0x11b   : > { %2346 = vst [vmem:[#allocation2 + $0x48] sm:$0x1] %v2345_v14  ;;  %v2380_v16 = vsel %vm6586_vm3, 0, %v2379_v15 }
 0x11c   : > { %v888_v19 = vpop.permute.xlu1 %887  ;;  %2381 = vst [vmem:[#allocation2 + $0x5c] sm:$0x1] %v2380_v16 }
 0x11d   : > { %v886_v17 = vpop.permute.xlu0 %885  ;;  %v1933_v18 = vld [vmem:[#allocation3 + $0x38] sm:$0xff]  ;;  %909 = vst.msk [vmem:[#allocation3 + $0x48] sm:$0xff] %vm899_vm5, %v888_v19 }
 0x11e   : > { %908 = vst.msk [vmem:[#allocation3 + $0x40] sm:$0xff] %vm899_vm5, %v886_v17  ;;  %5418 = vmatmul.mubr.msk.bf16.gmra.mrb[12].mxu0 %vm1963_vm12, %v1933_v18  ;;  %v2376_v17 = vld [vmem:[#allocation2 + $0x50] sm:$0x1]  ;;  %v2654_v16 = vld [vmem:[#allocation2 + $0x14] sm:$0x1] }
 0x11f   : > { %v2377_v19 = vsel %vm6586_vm3, 0, %v2376_v17 }
 0x120   : > { %v1159_v21 = vpop.permute.xlu1 %1158  ;;  %2378 = vst [vmem:[#allocation2 + $0x50] sm:$0x1] %v2377_v19 }
 0x121   : > { %v1157_v20 = vpop.permute.xlu0 %1156  ;;  %1180 = vst.msk [vmem:[#allocation3 + $0x48] sm:$0xff] %vm1170_vm6, %v1159_v21 }
 0x122   : > { %1179 = vst.msk [vmem:[#allocation3 + $0x40] sm:$0xff] %vm1170_vm6, %v1157_v20 }
 0x124   : > { %v1340_v23 = vpop.permute.xlu1 %1339 }
 0x125   : > { %v1338_v22 = vpop.permute.xlu0 %1337  ;;  %1361 = vst.msk [vmem:[#allocation3 + $0x48] sm:$0xff] %vm1351_vm7, %v1340_v23 }
 0x126   : > { %1360 = vst.msk [vmem:[#allocation3 + $0x40] sm:$0xff] %vm1351_vm7, %v1338_v22 }
 0x128   : > { %v1452_v25 = vpop.permute.xlu1 %1451 }
 0x129   : > { %v1450_v24 = vpop.permute.xlu0 %1449  ;;  %1473 = vst.msk [vmem:[#allocation3 + $0x48] sm:$0xff] %vm1463_vm8, %v1452_v25  ;;  %v6633_v25 = vstv %s5041_s16  ;;  %s5252_s16 = sshll.u32 %s6035_s22, 5 }
 0x12a   : > { %1472 = vst.msk [vmem:[#allocation3 + $0x40] sm:$0xff] %vm1463_vm8, %v1450_v24  ;;  %vm2243_vm6 = vcmp.ge.s32.totalorder %v6633_v25, 0  ;;  %vm2253_vm7 = vcmp.lt.s32.totalorder %v6633_v25, 16 }
 0x12c   : > { %v1723_v27 = vpop.permute.xlu1 %1722 }
 0x12d   : > { %v1721_v26 = vpop.permute.xlu0 %1720  ;;  %1744 = vst.msk [vmem:[#allocation3 + $0x48] sm:$0xff] %vm1734_vm9, %v1723_v27 }
 0x12e   : > { %1743 = vst.msk [vmem:[#allocation3 + $0x40] sm:$0xff] %vm1734_vm9, %v1721_v26  ;;  %vm6642_vm9 = vmand %vm2243_vm6, %vm2253_vm7  ;;  %vm2777_vm7 = vcmask 15360  }
 0x130   : > { %v1904_v32 = vpop.permute.xlu1 %1903 }
 0x131   : > { %v1902_v28 = vpop.permute.xlu0 %1901  ;;  %1925 = vst.msk [vmem:[#allocation3 + $0x48] sm:$0xff] %vm1915_vm10, %v1904_v32 }
 0x132   : > { %1924 = vst.msk [vmem:[#allocation3 + $0x40] sm:$0xff] %vm1915_vm10, %v1902_v28  ;;  %v2234_v28 = vadd.s32 1, %v6633_v25  ;;  %vm2640_vm10 = vcmask 11264  }
 0x134   : > { %vm2244_vm4 = vcmp.ge.s32.totalorder %v2234_v28, 0  ;;  %vm2254_vm5 = vcmp.lt.s32.totalorder %v2234_v28, 16  ;;  %v2353_v28 = vld [vmem:[#allocation2 + $0x6c] sm:$0x1] }
 0x135   : > { %vm6638_vm8 = vmand %vm2244_vm4, %vm2254_vm5 }
 0x138   : > { %v1935_v41 = vld [vmem:[#allocation3 + $0x48] sm:$0xff] }
 0x139   : > { %v1934_v40 = vld [vmem:[#allocation3 + $0x40] sm:$0xff] }
 0x13a   : > { %5421 = vmatprep.mubr.msk.bf16.mxu0 %vm1963_vm12, %v1934_v40 }
 0x13b   : > { %5422 = vmatmul.mubr.msk.bf16.gmra.mrb[16].mxu0 %vm1963_vm12, %v1935_v41  ;;  %vm6667_vm12 = vmand %vm2640_vm10, %vm2356_vm2 }
 0x191   : > { %v5407_v59 = vpop.f32.mrb[0].mxu0 }
 0x192   : > { %v2041_v60 = vadd.f32 %v5407_v59, %v6618_v58  ;;  %v2032_v61 = vpop.f32.mrb[1].mxu0 }
 0x193   : > { %v2033_v62 = vadd.f32 %v6618_v58, %v2032_v61  ;;  %v5408_v63 = vpop.f32.mrb[2].mxu0 }
 0x194   : > { %v2113_v0 = vsub.f32 0.0, %v2041_v60  ;;  %v2044_v1 = vadd.f32 %v5408_v63, %v6618_v58  ;;  %v2035_v2 = vpop.f32.mrb[3].mxu0 }
 0x195   : > { %v2111_v4 = vsub.f32 0.0, %v2033_v62  ;;  %v2036_v6 = vadd.f32 %v6618_v58, %v2035_v2 }
 0x196   : > { %v2135_v8 = vmul.f32 1.442695, %v2113_v0  ;;  %v2114_v9 = vsub.f32 0.0, %v2044_v1 }
 0x197   : > { %v2131_v10 = vmul.f32 1.442695, %v2111_v4  ;;  %v2112_v11 = vsub.f32 0.0, %v2036_v6  ;;  %v2650_v4 = vld [vmem:[#allocation2 + $0xc] sm:$0xf] }
 0x198   : > { %5808 = vpow2.f32 %v2135_v8  ;;  %v2137_v12 = vmul.f32 1.442695, %v2114_v9 }
 0x199   : > { %5810 = vpow2.f32 %v2131_v10  ;;  %v2133_v5 = vmul.f32 1.442695, %v2112_v11  ;;  %v2642_v11 = vld [vmem:[#allocation2] sm:$0xf] }
 0x19a   : > { %5812 = vpow2.f32 %v2137_v12 }
 0x19b   : > { %5814 = vpow2.f32 %v2133_v5 }
 0x1a2   : > { %v5809_v18 = vpop.eup %5808 }
 0x1a3   : > { %v5811_v20 = vpop.eup %5810  ;;  %v2173_v21 = vadd.f32 1.0, %v5809_v18 }
 0x1a4   : > { %v5813_v22 = vpop.eup %5812  ;;  %v2171_v23 = vadd.f32 1.0, %v5811_v20 }
 0x1a5   : > { %v5815_v24 = vpop.eup %5814  ;;  %5816 = vrcp.f32 %v2173_v21  ;;  %v2174_v26 = vadd.f32 1.0, %v5813_v22  ;;  %v2647_v22 = vld [vmem:[#allocation2 + $0x8] sm:$0x1] }
 0x1a6   : > { %5818 = vrcp.f32 %v2171_v23  ;;  %v2172_v27 = vadd.f32 1.0, %v5815_v24 }
 0x1a7   : > { %5820 = vrcp.f32 %v2174_v26 }
 0x1a8   : > { %5822 = vrcp.f32 %v2172_v27 }
 0x1af   : > { %v5817_v29 = vpop.eup %5816 }
 0x1b0   : > { %v5819_v32 = vpop.eup %5818  ;;  %v2213_v34 = vmul.f32 %v5817_v29, %v2041_v60 }
 0x1b1   : > { %v5821_v36 = vpop.eup %5820  ;;  %v2211_v37 = vmul.f32 %v5819_v32, %v2033_v62  ;;  %v5411_v38 = vpop.f32.mrb[4].mxu0 }
 0x1b2   : > { %v5823_v39 = vpop.eup %5822  ;;  %v2295_v40 = vsel %vm6638_vm8, %v2213_v34, 0.0  ;;  %v2214_v41 = vmul.f32 %v5821_v36, %v2044_v1  ;;  %v6649_v42 = vadd.f32 %v5411_v38, %v6618_v58  ;;  %v2048_v43 = vpop.f32.mrb[5].mxu0  ;;  %v2350_v34 = vld [vmem:[#allocation2 + $0x60] sm:$0x1] }
 0x1b3   : > { %v5258_v44 = vpack.c.bf16 %v2295_v40, %v2295_v40  ;;  %v2293_v45 = vsel %vm6642_vm9, %v2211_v37, 0.0  ;;  %v2212_v46 = vmul.f32 %v5823_v39, %v2036_v6  ;;  %v6654_v47 = vadd.f32 %v6618_v58, %v2048_v43  ;;  %v5412_v48 = vpop.f32.mrb[6].mxu0  ;;  %v2385_v37 = vld [vmem:[#allocation2 + $0x74] sm:$0x1] }
 0x1b4   : > { %v5256_v49 = vpack.c.bf16 %v2293_v45, %v2293_v45  ;;  %v2296_v50 = vsel %vm6638_vm8, %v2214_v41, 0.0  ;;  %v2117_v51 = vsub.f32 0.0, %v6649_v42  ;;  %v6660_v52 = vadd.f32 %v5412_v48, %v6618_v58  ;;  %v2051_v53 = vpop.f32.mrb[7].mxu0 }
 0x1b5   : > { %v2458_v54 = vshrl.u32 %v5258_v44, 16  ;;  %v2461_v55 = vshll.u32 %v5258_v44, 16  ;;  %v5259_v56 = vpack.c.bf16 %v2296_v50, %v2296_v50  ;;  %v2294_v57 = vsel %vm6642_vm9, %v2212_v46, 0.0  ;;  %v2382_v44 = vld [vmem:[#allocation2 + $0x68] sm:$0x1] }
 0x1b6   : > { %v2441_v59 = vshrl.u32 %v5256_v49, 16  ;;  %v2444_v60 = vshll.u32 %v5256_v49, 16  ;;  %v5257_v61 = vpack.c.bf16 %v2294_v57, %v2294_v57  ;;  %v2143_v62 = vmul.f32 1.442695, %v2117_v51 }
 0x1b7   : > { %v2460_v63 = vrot.slane %v2458_v54, 7  ;;  %v2466_v0 = vshrl.u32 %v5259_v56, 16  ;;  %v2469_v1 = vshll.u32 %v5259_v56, 16  ;;  %v2115_v2 = vsub.f32 0.0, %v6654_v47 }
 0x1b8   : > { %v2443_v6 = vrot.slane %v2441_v59, 7  ;;  %v2449_v7 = vshrl.u32 %v5257_v61, 16  ;;  %v2452_v8 = vshll.u32 %v5257_v61, 16  ;;  %5824 = vpow2.f32 %v2143_v62 }
 0x1b9   : > { %v2463_v9 = vor.u32 %v2461_v55, %v2460_v63  ;;  %v2464_v10 = vrot.slane %v2460_v63, 4  ;;  %v2468_v12 = vrot.slane %v2466_v0, 7  ;;  %v2139_v5 = vmul.f32 1.442695, %v2115_v2 }
 0x1ba   : > { %v2446_v13 = vor.u32 %v2444_v60, %v2443_v6  ;;  %v2447_v14 = vrot.slane %v2443_v6, 4  ;;  %v2451_v17 = vrot.slane %v2449_v7, 7  ;;  %v2118_v18 = vsub.f32 0.0, %v6660_v52 }
 0x1bb   : > { %v2651_v19 = vsel %vm6667_vm12, %v2463_v9, %v2650_v4  ;;  %v2471_v20 = vor.u32 %v2469_v1, %v2468_v12  ;;  %v2473_v21 = vrot.slane %v2468_v12, 4  ;;  %5826 = vpow2.f32 %v2139_v5 }
 0x1bc   : > { %2652 = vst [vmem:[#allocation2 + $0xc] sm:$0xf] %v2651_v19  ;;  %v2643_v23 = vsel %vm6667_vm12, %v2446_v13, %v2642_v11  ;;  %v2454_v24 = vor.u32 %v2452_v8, %v2451_v17  ;;  %v2456_v26 = vrot.slane %v2451_v17, 4  ;;  %v2145_v27 = vmul.f32 1.442695, %v2118_v18 }
 0x1bd   : > { %2644 = vst [vmem:[#allocation2] sm:$0xf] %v2643_v23  ;;  %v2472_v29 = vsel %vm6673_vm13, %v2464_v10, %v2471_v20  ;;  %v2655_v31 = vsel %vm6579_vm15, %v2473_v21, %v2654_v16  ;;  %v6687_v32 = vadd.f32 %v6618_v58, %v2051_v53  ;;  %v2354_v39 = vsel %vm6579_vm15, 0, %v2353_v28 }
 0x1be   : > { %2653 = vst.msk [vmem:[#allocation2 + $0x10] sm:$0xf] %vm2640_vm10, %v2472_v29  ;;  %2656 = vst [vmem:[#allocation2 + $0x14] sm:$0x1] %v2655_v31  ;;  %v2455_v35 = vsel %vm6673_vm13, %v2447_v14, %v2454_v24  ;;  %v2648_v36 = vsel %vm6579_vm15, %v2456_v26, %v2647_v22  ;;  %5828 = vpow2.f32 %v2145_v27  ;;  %v2351_v40 = vsel %vm6579_vm15, 0, %v2350_v34 }
 0x1bf   : > { %2646 = vst.msk [vmem:[#allocation2 + $0x4] sm:$0xf] %vm2640_vm10, %v2455_v35  ;;  %2649 = vst [vmem:[#allocation2 + $0x8] sm:$0x1] %v2648_v36  ;;  %v2116_v38 = vsub.f32 0.0, %v6687_v32  ;;  %v2236_v41 = vadd.s32 3, %v6633_v25 }
 0x1c0   : > { %2355 = vst [vmem:[#allocation2 + $0x6c] sm:$0x1] %v2354_v39  ;;  %2352 = vst [vmem:[#allocation2 + $0x60] sm:$0x1] %v2351_v40  ;;  %v2386_v43 = vsel %vm6586_vm3, 0, %v2385_v37  ;;  %v2383_v46 = vsel %vm6586_vm3, 0, %v2382_v44 }
 0x1c1   : > { %v2141_v45 = vmul.f32 1.442695, %v2116_v38  ;;  %2387 = vst [vmem:[#allocation2 + $0x74] sm:$0x1] %v2386_v43  ;;  %2384 = vst [vmem:[#allocation2 + $0x68] sm:$0x1] %v2383_v46 }
 0x1c2   : > { %v5825_v48 = vpop.eup %5824  ;;  %v2235_v50 = vadd.s32 2, %v6633_v25  ;;  %vm2246_vm14 = vcmp.ge.s32.totalorder %v2236_v41, 0  ;;  %vm2256_vm2 = vcmp.lt.s32.totalorder %v2236_v41, 16 }
 0x1c3   : > { %v2177_v49 = vadd.f32 1.0, %v5825_v48  ;;  %5830 = vpow2.f32 %v2141_v45  ;;  %vm6715_vm3 = vmand %vm2246_vm14, %vm2256_vm2 }
 0x1c4   : > { %vm2245_vm4 = vcmp.ge.s32.totalorder %v2235_v50, 0  ;;  %vm2255_vm5 = vcmp.lt.s32.totalorder %v2235_v50, 16 }
 0x1c5   : > { %v5827_v51 = vpop.eup %5826  ;;  %5832 = vrcp.f32 %v2177_v49  ;;  %v5686_v53 = vld [vmem:[#allocation2 + $0xc] sm:$0xff]   ;;  %v5688_v33 = vld [vmem:[#allocation2 + $0x14] ss:$0 sps:$4 sm:$0x11]   ;;  %vm6726_vm6 = vmand %vm2245_vm4, %vm2255_vm5 }
 0x1c6   : > { %v2175_v54 = vadd.f32 1.0, %v5827_v51  ;;  %v5687_v55 = vld [vmem:[#allocation2 + $0xc] sm:$0xfe]   ;;  %3205 = vrot.lane.b32.xlu0 %v5686_v53, %s6057_s17  ;;  %v3095_v0 = vrot.slane %v5688_v33, 1  ;;  %v5693_v11 = vld [vmem:[#allocation2] sm:$0xfe]  }
 0x1c7   : > { %v5691_v56 = vld [vmem:[#allocation2 + $0xc] sm:$0xff]   ;;  %v3094_v60 = vrot.slane %v5687_v55, 1  ;;  %v5690_v1 = vld [vmem:[#allocation2 + $0x14] ss:$0 sps:$4 sm:$0x11]   ;;  %v3091_v18 = vrot.slane %v5693_v11, 1 }
 0x1c8   : > { %v5695_v57 = vld [vmem:[#allocation2 + $0xc] sm:$0xff]   ;;  %v5829_v59 = vpop.eup %5828  ;;  %5834 = vrcp.f32 %v2175_v54  ;;  %v2887_v62 = vshrl.u32 %v5691_v56, 16  ;;  %v2889_v2 = vshll.u32 %v5691_v56, 16  ;;  %v3544_v8 = vrot.slane %v5690_v1, 1  ;;  %v6711_v19 = vld [vmem:[#allocation2] sm:$0xff]  }
 0x1c9   : > { %v5689_v61 = vld [vmem:[#allocation2 + $0xc] sm:$0xfe]   ;;  %v2178_v63 = vadd.f32 1.0, %v5829_v59  ;;  %v3327_v6 = vshrl.u32 %v5695_v57, 16  ;;  %v3096_v7 = vsel %vm726_vm0, %v3094_v60, %v3095_v0  ;;  %v3329_v26 = vshll.u32 %v5695_v57, 16 }
 0x1ca   : > { %v3543_v4 = vrot.slane %v5689_v61, 1  ;;  %v5692_v9 = vld [vmem:[#allocation2 + $0x14] ss:$0 sps:$4 sm:$0x11]   ;;  %v2891_v10 = vrot.slane %v2889_v2, 1  ;;  %3117 = vrot.lane.b32.xlu1 %v3096_v7, %s6052_s12  ;;  %v5779_v46 = vld [vmem:[#allocation2 + $0xc] sm:$0xff]  }
 0x1cb   : > { %5836 = vrcp.f32 %v2178_v63  ;;  %v2894_v14 = vshll.u32 %v5692_v9, 16  ;;  %v5694_v16 = vld [vmem:[#allocation2 + $0x8] ss:$0 sps:$4 sm:$0x11]   ;;  %v3331_v34 = vrot.slane %v3329_v26, 1  ;;  %v2877_v53 = vshll.u32 %v6711_v19, 16 }
 0x1cc   : > { %v3545_v5 = vsel %vm726_vm0, %v3543_v4, %v3544_v8  ;;  %v2892_v13 = vor.u32 %v2891_v10, %v2887_v62  ;;  %v3092_v23 = vrot.slane %v5694_v16, 1  ;;  %v5696_v24 = vld [vmem:[#allocation2 + $0x14] ss:$0 sps:$4 sm:$0x11]   ;;  %2779 = vst.msk [vmem:[#allocation4 + $0x8] sm:$0xff] %vm2777_vm7, %v5779_v46  ;;  %v5786_v63 = vld [vmem:[#allocation2] sm:$0xff]  }
 0x1cd   : > { %v5831_v12 = vpop.eup %5830  ;;  %3567 = vrot.lane.b32.xlu0 %v3545_v5, %s6058_s26  ;;  %v2896_v22 = vrot.slane %v2894_v14, 1  ;;  %v3334_v35 = vshll.u32 %v5696_v24, 16  ;;  %v3332_v45 = vor.u32 %v3331_v34, %v3327_v6  ;;  %v2664_v57 = vld [vmem:[#allocation2 + $0x24] sm:$0xf]  ;;  %v2879_v8 = vrot.slane %v2877_v53, 1  ;;  %2778 = vst.msk [vmem:[#allocation4] sm:$0xff] %vm2777_vm7, %v5786_v63 }
 0x1ce   : > { %v2176_v17 = vadd.f32 1.0, %v5831_v12  ;;  %v3093_v29 = vsel %vm726_vm0, %v3091_v18, %v3092_v23  ;;  %v5698_v10 = vld [vmem:[#allocation2 + $0x8] ss:$0 sps:$4 sm:$0x11]   ;;  %v2875_v11 = vshrl.u32 %v6711_v19, 16  ;;  %v6777_v53 = vadd.s32 7, %v6633_v25 }
 0x1cf   : > { %v5833_v20 = vpop.eup %5832  ;;  %v2897_v28 = vsel %vm454_vm1, %v2892_v13, %v2896_v22  ;;  %v3336_v51 = vrot.slane %v3334_v35, 1  ;;  %v2657_v18 = vld [vmem:[#allocation2 + $0x18] sm:$0xf]  ;;  %v2238_v35 = vadd.s32 5, %v6633_v25  ;;  %v6785_v63 = vadd.s32 6, %v6633_v25 }
 0x1d0   : > { %v2217_v27 = vmul.f32 %v5833_v20, %v6649_v42  ;;  %5838 = vrcp.f32 %v2176_v17  ;;  %2972 = vrot.lane.b32.xlu1 %v2897_v28, %s6059_s27  ;;  %v2880_v24 = vor.u32 %v2879_v8, %v2875_v11  ;;  %v2882_v28 = vshll.u32 %v5698_v10, 16 }
 0x1d1   : > { %v5415_v31 = vpop.f32.mrb[8].mxu0  ;;  %3115 = vrot.lane.b32.xlu0 %v3093_v29, %s6052_s12  ;;  %v3337_v4 = vsel %vm454_vm1, %v3332_v45, %v3336_v51  ;;  %v2661_v51 = vld [vmem:[#allocation2 + $0x20] sm:$0x1]  ;;  %vm2248_vm8 = vcmp.ge.s32.totalorder %v2238_v35, 0  ;;  %vm2258_vm9 = vcmp.lt.s32.totalorder %v2238_v35, 16  ;;  %vm2250_vm5 = vcmp.ge.s32.totalorder %v6777_v53, 0 }
 0x1d2   : > { %v5835_v36 = vpop.eup %5834  ;;  %v2299_v37 = vsel %vm6715_vm3, %v2217_v27, 0.0  ;;  %v6733_v42 = vadd.f32 %v5415_v31, %v6618_v58  ;;  %v2064_v39 = vpop.f32.mrb[9].mxu0  ;;  %v2668_v31 = vld [vmem:[#allocation2 + $0x2c] sm:$0x1]  ;;  %vm6796_vm2 = vmand %vm2248_vm8, %vm2258_vm9  ;;  %vm2259_vm8 = vcmp.lt.s32.totalorder %v6785_v63, 16 }
 0x1d3   : > { %v5262_v40 = vpack.c.bf16 %v2299_v37, %v2299_v37  ;;  %v2215_v41 = vmul.f32 %v5835_v36, %v6654_v47  ;;  %v6737_v43 = vadd.f32 %v6618_v58, %v2064_v39  ;;  %v5416_v44 = vpop.f32.mrb[10].mxu0  ;;  %v2884_v39 = vrot.slane %v2882_v28, 1 }
 0x1d4   : > { %v2121_v48 = vsub.f32 0.0, %v6733_v42  ;;  %v6741_v49 = vadd.f32 %v5416_v44, %v6618_v58  ;;  %v2067_v50 = vpop.f32.mrb[11].mxu0  ;;  %v2237_v44 = vadd.s32 4, %v6633_v25 }
 0x1d5   : > { %v5837_v54 = vpop.eup %5836  ;;  %v2492_v55 = vshrl.u32 %v5262_v40, 16  ;;  %v2495_v56 = vshll.u32 %v5262_v40, 16  ;;  %v2297_v47 = vsel %vm6726_vm6, %v2215_v41, 0.0  ;;  %v2119_v33 = vsub.f32 0.0, %v6737_v43  ;;  %3422 = vrot.lane.b32.xlu0 %v3337_v4, %s6051_s10 }
 0x1d6   : > { %v5260_v59 = vpack.c.bf16 %v2297_v47, %v2297_v47  ;;  %v2218_v60 = vmul.f32 %v5837_v54, %v6660_v52  ;;  %v2151_v61 = vmul.f32 1.442695, %v2121_v48  ;;  %v2122_v62 = vsub.f32 0.0, %v6741_v49 }
 0x1d7   : > { %v2494_v0 = vrot.slane %v2492_v55, 7  ;;  %v2147_v1 = vmul.f32 1.442695, %v2119_v33  ;;  %v6751_v2 = vadd.f32 %v6618_v58, %v2067_v50  ;;  %v2885_v45 = vsel %vm454_vm1, %v2880_v24, %v2884_v39 }
 0x1d8   : > { %v2475_v6 = vshrl.u32 %v5260_v59, 16  ;;  %v2300_v7 = vsel %vm6715_vm3, %v2218_v60, 0.0  ;;  %5840 = vpow2.f32 %v2151_v61  ;;  %v2478_v13 = vshll.u32 %v5260_v59, 16 }
 0x1d9   : > { %v2497_v52 = vor.u32 %v2495_v56, %v2494_v0  ;;  %v5263_v9 = vpack.c.bf16 %v2300_v7, %v2300_v7  ;;  %5842 = vpow2.f32 %v2147_v1  ;;  %v2153_v14 = vmul.f32 1.442695, %v2122_v62  ;;  %2970 = vrot.lane.b32.xlu0 %v2885_v45, %s6059_s27 }
 0x1da   : > { %v5839_v12 = vpop.eup %5838  ;;  %v2477_v5 = vrot.slane %v2475_v6, 7  ;;  %v2120_v16 = vsub.f32 0.0, %v6751_v2  ;;  %vm2247_vm11 = vcmp.ge.s32.totalorder %v2237_v44, 0  ;;  %vm2257_vm14 = vcmp.lt.s32.totalorder %v2237_v44, 16 }
 0x1db   : > { %v2665_v17 = vsel %vm6667_vm12, %v2497_v52, %v2664_v57  ;;  %v2500_v20 = vshrl.u32 %v5263_v9, 16  ;;  %v2216_v21 = vmul.f32 %v5839_v12, %v6687_v32  ;;  %5844 = vpow2.f32 %v2153_v14  ;;  %vm6806_vm4 = vmand %vm2247_vm11, %vm2257_vm14 }
 0x1dc   : > { %2666 = vst [vmem:[#allocation2 + $0x24] sm:$0xf] %v2665_v17  ;;  %v2480_v22 = vor.u32 %v2478_v13, %v2477_v5  ;;  %v2149_v23 = vmul.f32 1.442695, %v2120_v16  ;;  %v2503_v19 = vshll.u32 %v5263_v9, 16  ;;  %v2498_v32 = vrot.slane %v2494_v0, 4 }
 0x1dd   : > { %v2502_v26 = vrot.slane %v2500_v20, 7  ;;  %v2298_v27 = vsel %vm6726_vm6, %v2216_v21, 0.0  ;;  %v2481_v55 = vrot.slane %v2477_v5, 4  ;;  %v6788_v7 = vadd.s32 9, %v6633_v25 }
 0x1de   : > { %v2658_v29 = vsel %vm6667_vm12, %v2480_v22, %v2657_v18  ;;  %v5261_v34 = vpack.c.bf16 %v2298_v27, %v2298_v27  ;;  %5846 = vpow2.f32 %v2149_v23  ;;  %v6801_v14 = vadd.s32 8, %v6633_v25 }
 0x1df   : > { %2659 = vst [vmem:[#allocation2 + $0x18] sm:$0xf] %v2658_v29  ;;  %v2505_v36 = vor.u32 %v2503_v19, %v2502_v26  ;;  %v2507_v37 = vrot.slane %v2502_v26, 4  ;;  %vm2260_vm3 = vcmp.lt.s32.totalorder %v6777_v53, 16  ;;  %vm2249_vm6 = vcmp.ge.s32.totalorder %v6785_v63, 0 }
 0x1e0   : > { %v2483_v40 = vshrl.u32 %v5261_v34, 16  ;;  %v2486_v50 = vshll.u32 %v5261_v34, 16  ;;  %vm6913_vm9 = vmand %vm2250_vm5, %vm2260_vm3  ;;  %vm2252_vm14 = vcmp.ge.s32.totalorder %v6788_v7, 0  ;;  %vm2261_vm5 = vcmp.lt.s32.totalorder %v6801_v14, 16 }
 0x1e1   : > { %v2506_v41 = vsel %vm6673_vm13, %v2498_v32, %v2505_v36  ;;  %v2669_v38 = vsel %vm6579_vm15, %v2507_v37, %v2668_v31  ;;  %vm6925_vm11 = vmand %vm2249_vm6, %vm2259_vm8  ;;  %vm2994_vm8 = vcmask 31760  }
 0x1e2   : > { %v5841_v46 = vpop.eup %5840  ;;  %2667 = vst.msk [vmem:[#allocation2 + $0x28] sm:$0xf] %vm2640_vm10, %v2506_v41  ;;  %2670 = vst [vmem:[#allocation2 + $0x2c] sm:$0x1] %v2669_v38  ;;  %v2485_v48 = vrot.slane %v2483_v40, 7 }
 0x1e3   : > { %v5843_v54 = vpop.eup %5842  ;;  %v2181_v56 = vadd.f32 1.0, %v5841_v46 }
 0x1e4   : > { %v2488_v47 = vor.u32 %v2486_v50, %v2485_v48  ;;  %v2490_v33 = vrot.slane %v2485_v48, 4  ;;  %v2179_v57 = vadd.f32 1.0, %v5843_v54 }
 0x1e5   : > { %5848 = vrcp.f32 %v2181_v56  ;;  %v5845_v59 = vpop.eup %5844 }
 0x1e6   : > { %v2489_v60 = vsel %vm6673_vm13, %v2481_v55, %v2488_v47  ;;  %v2662_v61 = vsel %vm6579_vm15, %v2490_v33, %v2661_v51  ;;  %5850 = vrcp.f32 %v2179_v57  ;;  %v2182_v62 = vadd.f32 1.0, %v5845_v59  ;;  %v2678_v57 = vld [vmem:[#allocation2 + $0x3c] sm:$0xf] }
 0x1e7   : > { %2660 = vst.msk [vmem:[#allocation2 + $0x1c] sm:$0xf] %vm2640_vm10, %v2489_v60  ;;  %2663 = vst [vmem:[#allocation2 + $0x20] sm:$0x1] %v2662_v61 }
 0x1e8   : > { %v5847_v0 = vpop.eup %5846  ;;  %5852 = vrcp.f32 %v2182_v62 }
 0x1e9   : > { %v2180_v1 = vadd.f32 1.0, %v5847_v0  ;;  %v5699_v4 = vld [vmem:[#allocation2 + $0x24] sm:$0xff]   ;;  %v5704_v52 = vld [vmem:[#allocation2 + $0x2c] ss:$0 sps:$4 sm:$0x11]  }
 0x1ea   : > { %v5700_v6 = vld [vmem:[#allocation2 + $0x24] sm:$0xff]   ;;  %3659 = vrot.lane.b32.xlu1 %v5699_v4, %s6049_s8  ;;  %v3101_v5 = vrot.slane %v5704_v52, 1  ;;  %v5706_v13 = vld [vmem:[#allocation2 + $0x2c] ss:$0 sps:$4 sm:$0x11]  }
 0x1eb   : > { %5854 = vrcp.f32 %v2180_v1  ;;  %v5703_v8 = vld [vmem:[#allocation2 + $0x24] sm:$0xfe]   ;;  %3209 = vrot.lane.b32.xlu0 %v5700_v6, %s6057_s17  ;;  %v3999_v21 = vrot.slane %v5706_v13, 1  ;;  %v2671_v0 = vld [vmem:[#allocation2 + $0x30] sm:$0xf] }
 0x1ec   : > { %v6791_v9 = vld [vmem:[#allocation2 + $0x24] sm:$0xff]   ;;  %v3100_v12 = vrot.slane %v5703_v8, 1 }
 0x1ed   : > { %v5705_v10 = vld [vmem:[#allocation2 + $0x24] sm:$0xfe]   ;;  %v3793_v19 = vshll.u32 %v6791_v9, 16  ;;  %v3791_v31 = vshrl.u32 %v6791_v9, 16 }
 0x1ee   : > { %v5701_v16 = vld [vmem:[#allocation2 + $0x18] sm:$0xff]   ;;  %v3998_v17 = vrot.slane %v5705_v10, 1  ;;  %v6813_v25 = vld [vmem:[#allocation2 + $0x20] ss:$0 sps:$4 sm:$0x11]  }
 0x1ef   : > { %v5849_v18 = vpop.eup %5848  ;;  %v5702_v20 = vld [vmem:[#allocation2 + $0x18] sm:$0xff]   ;;  %3207 = vrot.lane.b32.xlu1 %v5701_v16, %s6057_s17  ;;  %v6833_v44 = vrot.slane %v3793_v19, 1 }
 0x1f0   : > { %v5851_v22 = vpop.eup %5850  ;;  %v2221_v23 = vmul.f32 %v5849_v18, %v6733_v42  ;;  %v6811_v26 = vld [vmem:[#allocation2 + $0x18] sm:$0xfe]   ;;  %3657 = vrot.lane.b32.xlu0 %v5702_v20, %s6049_s8  ;;  %v3102_v42 = vsel %vm726_vm0, %v3100_v12, %v3101_v5  ;;  %v4000_v28 = vsel %vm726_vm0, %v3998_v17, %v3999_v21  ;;  %v5709_v12 = vld [vmem:[#allocation2 + $0x24] sm:$0xfe]   ;;  %v2682_v21 = vld [vmem:[#allocation2 + $0x44] sm:$0x1] }
 0x1f1   : > { %v2219_v27 = vmul.f32 %v5851_v22, %v6737_v43  ;;  %v5419_v29 = vpop.f32.mrb[12].mxu0  ;;  %v3546_v36 = vrot.slane %v6811_v26, 1  ;;  %v3547_v43 = vrot.slane %v6813_v25, 1  ;;  %v5710_v5 = vld [vmem:[#allocation2 + $0x2c] ss:$0 sps:$4 sm:$0x11]   ;;  %v3796_v26 = vor.u32 %v6833_v44, %v3791_v31 }
 0x1f2   : > { %v2303_v34 = vsel %vm6796_vm2, %v2221_v23, 0.0  ;;  %v6824_v35 = vadd.f32 %v5419_v29, %v6618_v58  ;;  %v2080_v32 = vpop.f32.mrb[13].mxu0  ;;  %v5853_v37 = vpop.eup %5852  ;;  %v5713_v23 = vld [vmem:[#allocation2 + $0x18] sm:$0xfe]  }
 0x1f3   : > { %v5266_v39 = vpack.c.bf16 %v2303_v34, %v2303_v34  ;;  %v2301_v40 = vsel %vm6806_vm4, %v2219_v27, 0.0  ;;  %v6831_v41 = vadd.f32 %v6618_v58, %v2080_v32  ;;  %v5420_v38 = vpop.f32.mrb[14].mxu0  ;;  %v2222_v46 = vmul.f32 %v5853_v37, %v6741_v49  ;;  %3121 = vrot.lane.b32.xlu1 %v3102_v42, %s6052_s12  ;;  %v5714_v42 = vld [vmem:[#allocation2 + $0x20] ss:$0 sps:$4 sm:$0x11]  }
 0x1f4   : > { %v5264_v45 = vpack.c.bf16 %v2301_v40, %v2301_v40  ;;  %v2125_v48 = vsub.f32 0.0, %v6824_v35  ;;  %v6839_v50 = vadd.f32 %v5420_v38, %v6618_v58  ;;  %v2083_v51 = vpop.f32.mrb[15].mxu0  ;;  %4021 = vrot.lane.b32.xlu0 %v4000_v28, %s6053_s13  ;;  %v6855_v28 = vld [vmem:[#allocation2 + $0x24] sm:$0xff]   ;;  %v2675_v38 = vld [vmem:[#allocation2 + $0x38] sm:$0x1] }
 0x1f5   : > { %v5855_v54 = vpop.eup %5854  ;;  %v2526_v55 = vshrl.u32 %v5266_v39, 16  ;;  %v2529_v56 = vshll.u32 %v5266_v39, 16  ;;  %v2123_v47 = vsub.f32 0.0, %v6831_v41  ;;  %v6844_v33 = vadd.f32 %v6618_v58, %v2083_v51 }
 0x1f6   : > { %v2509_v49 = vshrl.u32 %v5264_v45, 16  ;;  %v2512_v59 = vshll.u32 %v5264_v45, 16  ;;  %v2304_v60 = vsel %vm6796_vm2, %v2222_v46, 0.0  ;;  %v2220_v61 = vmul.f32 %v5855_v54, %v6751_v2  ;;  %v5712_v2 = vld [vmem:[#allocation2 + $0x2c] ss:$0 sps:$4 sm:$0x11]  }
 0x1f7   : > { %v2528_v62 = vrot.slane %v2526_v55, 7  ;;  %v5267_v1 = vpack.c.bf16 %v2304_v60, %v2304_v60  ;;  %v2159_v4 = vmul.f32 1.442695, %v2125_v48  ;;  %v2155_v6 = vmul.f32 1.442695, %v2123_v47  ;;  %v5800_v47 = vld [vmem:[#allocation2 + $0x24] sm:$0xff]  }
 0x1f8   : > { %v2511_v8 = vrot.slane %v2509_v49, 7  ;;  %v2302_v52 = vsel %vm6806_vm4, %v2220_v61, 0.0  ;;  %v2126_v58 = vsub.f32 0.0, %v6839_v50  ;;  %v2124_v10 = vsub.f32 0.0, %v6844_v33  ;;  %v5717_v55 = vld [vmem:[#allocation2 + $0x18] sm:$0xfe]  }
 0x1f9   : > { %v2531_v13 = vor.u32 %v2529_v56, %v2528_v62  ;;  %v2532_v11 = vrot.slane %v2528_v62, 4  ;;  %v2534_v16 = vshrl.u32 %v5267_v1, 16  ;;  %v2537_v17 = vshll.u32 %v5267_v1, 16  ;;  %v5716_v46 = vld [vmem:[#allocation2 + $0x2c] ss:$0 sps:$4 sm:$0x11]  }
 0x1fa   : > { %v2514_v18 = vor.u32 %v2512_v59, %v2511_v8  ;;  %v2515_v20 = vrot.slane %v2511_v8, 4  ;;  %v5265_v22 = vpack.c.bf16 %v2302_v52, %v2302_v52  ;;  %5856 = vpow2.f32 %v2159_v4  ;;  %v6865_v56 = vld [vmem:[#allocation2 + $0x18] sm:$0xff]   ;;  %2781 = vst.msk [vmem:[#allocation4 + $0x18] sm:$0xff] %vm2777_vm7, %v5800_v47  ;;  %v5721_v1 = vld [vmem:[#allocation2 + $0x24] sm:$0xff]  }
 0x1fb   : > { %v2679_v24 = vsel %vm6667_vm12, %v2531_v13, %v2678_v57  ;;  %v2536_v19 = vrot.slane %v2534_v16, 7  ;;  %5858 = vpow2.f32 %v2155_v6  ;;  %v2161_v27 = vmul.f32 1.442695, %v2126_v58  ;;  %v5720_v8 = vld [vmem:[#allocation2 + $0x20] ss:$0 sps:$4 sm:$0x11]  }
 0x1fc   : > { %2680 = vst [vmem:[#allocation2 + $0x3c] sm:$0xf] %v2679_v24  ;;  %v2672_v29 = vsel %vm6667_vm12, %v2514_v18, %v2671_v0  ;;  %v2517_v34 = vshrl.u32 %v5265_v22, 16  ;;  %v2520_v32 = vshll.u32 %v5265_v22, 16  ;;  %v2157_v37 = vmul.f32 1.442695, %v2124_v10 }
 0x1fd   : > { %2673 = vst [vmem:[#allocation2 + $0x30] sm:$0xf] %v2672_v29  ;;  %v2539_v39 = vor.u32 %v2537_v17, %v2536_v19  ;;  %v2541_v40 = vrot.slane %v2536_v19, 4  ;;  %5860 = vpow2.f32 %v2161_v27  ;;  %v3548_v45 = vsel %vm726_vm0, %v3546_v36, %v3547_v43  ;;  %v5718_v43 = vld [vmem:[#allocation2 + $0x20] ss:$0 sps:$4 sm:$0x11]  }
 0x1fe   : > { %v2519_v48 = vrot.slane %v2517_v34, 7  ;;  %5862 = vpow2.f32 %v2157_v37  ;;  %3569 = vrot.lane.b32.xlu1 %v3548_v45, %s6058_s26  ;;  %v3549_v51 = vrot.slane %v5709_v12, 1  ;;  %v3550_v54 = vrot.slane %v5710_v5, 1  ;;  %v5801_v52 = vld [vmem:[#allocation2 + $0x18] sm:$0xff]  }
 0x1ff   : > { %v2540_v57 = vsel %vm6673_vm13, %v2532_v11, %v2539_v39  ;;  %v2683_v25 = vsel %vm6579_vm15, %v2541_v40, %v2682_v21  ;;  %v3798_v36 = vshll.u32 %v5712_v2, 16  ;;  %v3995_v61 = vrot.slane %v5713_v23, 1  ;;  %v5722_v13 = vld [vmem:[#allocation2 + $0x2c] ss:$0 sps:$4 sm:$0x11]   ;;  %2780 = vst.msk [vmem:[#allocation4 + $0x10] sm:$0xff] %vm2777_vm7, %v5801_v52 }
 0x200   : > { %2681 = vst.msk [vmem:[#allocation2 + $0x40] sm:$0xf] %vm2640_vm10, %v2540_v57  ;;  %2684 = vst [vmem:[#allocation2 + $0x44] sm:$0x1] %v2683_v25  ;;  %v2522_v49 = vor.u32 %v2520_v32, %v2519_v48  ;;  %v2524_v59 = vrot.slane %v2519_v48, 4  ;;  %v3551_v60 = vsel %vm726_vm0, %v3549_v51, %v3550_v54  ;;  %v3996_v0 = vrot.slane %v5714_v42, 1 }
 0x201   : > { %3571 = vrot.lane.b32.xlu0 %v3551_v60, %s6058_s26  ;;  %v3800_v62 = vrot.slane %v3798_v36, 1  ;;  %v2913_v9 = vshll.u32 %v6855_v28, 16  ;;  %v2918_v4 = vshll.u32 %v5716_v46, 16  ;;  %v3097_v6 = vrot.slane %v5717_v55, 1 }
 0x202   : > { %v2523_v31 = vsel %vm6673_vm13, %v2515_v20, %v2522_v49  ;;  %v2676_v44 = vsel %vm6579_vm15, %v2524_v59, %v2675_v38  ;;  %v2911_v10 = vshrl.u32 %v6855_v28, 16  ;;  %v3098_v5 = vrot.slane %v5718_v43, 1  ;;  %v5723_v20 = vld [vmem:[#allocation2 + $0x18] sm:$0xff]   ;;  %v5724_v40 = vld [vmem:[#allocation2 + $0x20] ss:$0 sps:$4 sm:$0x11]  }
 0x203   : > { %2674 = vst.msk [vmem:[#allocation2 + $0x34] sm:$0xf] %vm2640_vm10, %v2523_v31  ;;  %2677 = vst [vmem:[#allocation2 + $0x38] sm:$0x1] %v2676_v44  ;;  %v3801_v58 = vsel %vm454_vm1, %v3796_v26, %v3800_v62  ;;  %v2915_v12 = vrot.slane %v2913_v9, 1  ;;  %v3997_v16 = vsel %vm726_vm0, %v3995_v61, %v3996_v0  ;;  %v2920_v17 = vrot.slane %v2918_v4, 1 }
 0x204   : > { %v5857_v11 = vpop.eup %5856  ;;  %3876 = vrot.lane.b32.xlu1 %v3801_v58, %s6060_s9  ;;  %v3341_v2 = vshll.u32 %v6865_v56, 16  ;;  %v3346_v18 = vshll.u32 %v5720_v8, 16  ;;  %v3099_v24 = vsel %vm726_vm0, %v3097_v6, %v3098_v5  ;;  %v3339_v19 = vshrl.u32 %v6865_v56, 16  ;;  %v5725_v38 = vld [vmem:[#allocation2 + $0x18] sm:$0xff]  }
 0x205   : > { %v5859_v21 = vpop.eup %5858  ;;  %v2185_v22 = vadd.f32 1.0, %v5857_v11  ;;  %4019 = vrot.lane.b32.xlu0 %v3997_v16, %s6053_s13  ;;  %v2916_v23 = vor.u32 %v2915_v12, %v2911_v10  ;;  %v3351_v28 = vshrl.u32 %v5721_v1, 16  ;;  %v3353_v29 = vshll.u32 %v5721_v1, 16  ;;  %v5726_v26 = vld [vmem:[#allocation2 + $0x20] ss:$0 sps:$4 sm:$0x11]  }
 0x206   : > { %v2183_v27 = vadd.f32 1.0, %v5859_v21  ;;  %v3343_v42 = vrot.slane %v3341_v2, 1  ;;  %v3348_v37 = vrot.slane %v3346_v18, 1  ;;  %v3358_v39 = vshll.u32 %v5722_v13, 16  ;;  %v2696_v12 = vld [vmem:[#allocation2 + $0x5c] sm:$0x1] }
 0x207   : > { %v5861_v34 = vpop.eup %5860  ;;  %5864 = vrcp.f32 %v2185_v22  ;;  %v2921_v32 = vsel %vm454_vm1, %v2916_v23, %v2920_v17  ;;  %v3355_v51 = vrot.slane %v3353_v29, 1  ;;  %v2899_v55 = vshrl.u32 %v5723_v20, 16  ;;  %v5727_v31 = vld [vmem:[#allocation2 + $0x3c] sm:$0xff]   ;;  %v5732_v52 = vld [vmem:[#allocation2 + $0x44] ss:$0 sps:$4 sm:$0x11]  }
 0x208   : > { %v5863_v45 = vpop.eup %5862  ;;  %5866 = vrcp.f32 %v2183_v27  ;;  %v2186_v46 = vadd.f32 1.0, %v5861_v34  ;;  %2976 = vrot.lane.b32.xlu1 %v2921_v32, %s6059_s27  ;;  %v3344_v48 = vor.u32 %v3343_v42, %v3339_v19  ;;  %v2901_v56 = vshll.u32 %v5723_v20, 16  ;;  %v6904_v44 = vld [vmem:[#allocation2 + $0x3c] sm:$0xff]  }
 0x209   : > { %v2184_v54 = vadd.f32 1.0, %v5863_v45  ;;  %3119 = vrot.lane.b32.xlu0 %v3099_v24, %s6052_s12  ;;  %v2906_v47 = vshll.u32 %v5724_v40, 16  ;;  %v3356_v57 = vor.u32 %v3355_v51, %v3351_v28  ;;  %v3360_v25 = vrot.slane %v3358_v39, 1  ;;  %v5731_v8 = vld [vmem:[#allocation2 + $0x3c] sm:$0xfe]  }
 0x20a   : > { %5868 = vrcp.f32 %v2186_v46  ;;  %v3349_v36 = vsel %vm454_vm1, %v3344_v48, %v3348_v37  ;;  %v2903_v43 = vrot.slane %v2901_v56, 1  ;;  %v3781_v49 = vshll.u32 %v5725_v38, 16  ;;  %v6918_v16 = vld [vmem:[#allocation2 + $0x3c] sm:$0xfe]   ;;  %v5729_v51 = vld [vmem:[#allocation2 + $0x30] sm:$0xff]  }
 0x20b   : > { %5870 = vrcp.f32 %v2184_v54  ;;  %v3361_v59 = vsel %vm454_vm1, %v3356_v57, %v3360_v25  ;;  %v3779_v60 = vshrl.u32 %v5725_v38, 16  ;;  %v3786_v61 = vshll.u32 %v5726_v26, 16  ;;  %v5728_v53 = vld [vmem:[#allocation2 + $0x3c] sm:$0xff]   ;;  %v5734_v26 = vld [vmem:[#allocation2 + $0x44] ss:$0 sps:$4 sm:$0x11]  }
 0x20c   : > { %3424 = vrot.lane.b32.xlu1 %v3349_v36, %s6051_s10  ;;  %v2904_v62 = vor.u32 %v2903_v43, %v2899_v55  ;;  %v2908_v0 = vrot.slane %v2906_v47, 1  ;;  %v3783_v9 = vrot.slane %v3781_v49, 1  ;;  %v3815_v58 = vshrl.u32 %v6904_v44, 16  ;;  %v6933_v20 = vld [vmem:[%s7410_s2] ss:$0 sm:$0xff] }
 0x20d   : > { %3426 = vrot.lane.b32.xlu0 %v3361_v59, %s6051_s10  ;;  %v3788_v1 = vrot.slane %v3786_v61, 1  ;;  %v3106_v11 = vrot.slane %v5731_v8, 1  ;;  %v3107_v22 = vrot.slane %v5732_v52, 1  ;;  %v3817_v23 = vshll.u32 %v6904_v44, 16  ;;  %v2692_v36 = vld [vmem:[#allocation2 + $0x54] sm:$0xf] }
 0x20e   : > { %v2909_v4 = vsel %vm454_vm1, %v2904_v62, %v2908_v0  ;;  %v3784_v6 = vor.u32 %v3783_v9, %v3779_v60  ;;  %v5423_v13 = vpop.f32.mrb[16].mxu0  ;;  %v4004_v27 = vrot.slane %v6918_v16, 1  ;;  %v5730_v59 = vld [vmem:[#allocation2 + $0x30] sm:$0xff]   ;;  %v2685_v62 = vld [vmem:[#allocation2 + $0x48] sm:$0xf]  ;;  %vm2262_vm2 = vcmp.lt.s32.totalorder %v6788_v7, 16 }
 0x20f   : > { %v6936_v21 = vadd.f32 %v6933_v20, %v5423_v13  ;;  %v3108_v32 = vsel %vm726_vm0, %v3106_v11, %v3107_v22  ;;  %v5735_v60 = vld [vmem:[#allocation2 + $0x30] sm:$0xfe]   ;;  %v5737_v8 = vld [vmem:[#allocation2 + $0x3c] sm:$0xfe]   ;;  %vm2251_vm4 = vcmp.ge.s32.totalorder %v6801_v14, 0  ;;  %vm7022_vm3 = vmand %vm2252_vm14, %vm2262_vm2  ;;  %vm4079_vm14 = vcmask 146432  }
 0x210   : > { %2974 = vrot.lane.b32.xlu1 %v2909_v4, %s6059_s27  ;;  %v3789_v5 = vsel %vm454_vm1, %v3784_v6, %v3788_v1  ;;  %v5736_v6 = vld [vmem:[#allocation2 + $0x38] ss:$0 sps:$4 sm:$0x11]   ;;  %v5738_v11 = vld [vmem:[#allocation2 + $0x44] ss:$0 sps:$4 sm:$0x11]   ;;  %vm7032_vm6 = vmand %vm2251_vm4, %vm2261_vm5 }
 0x211   : > { %v5865_v10 = vpop.eup %5864  ;;  %3874 = vrot.lane.b32.xlu0 %v3789_v5, %s6060_s9  ;;  %v2129_v29 = vsub.f32 0.0, %v6936_v21  ;;  %v5754_v7 = vld [vmem:[#allocation2 + $0x38] ss:$0 sps:$4 sm:$0x11]   ;;  %vm4590_vm2 = vcmask 27648  }
 0x212   : > { %v5867_v17 = vpop.eup %5866  ;;  %v2225_v2 = vmul.f32 %v5865_v10, %v6824_v35  ;;  %v2096_v35 = vpop.f32.mrb[17].mxu0  ;;  %v3810_v14 = vshll.u32 %v5754_v7, 16 }
 0x213   : > { %v2223_v63 = vmul.f32 %v5867_v17, %v6831_v41  ;;  %v6941_v24 = vadd.f32 %v6933_v20, %v2096_v35  ;;  %v5424_v19 = vpop.f32.mrb[18].mxu0  ;;  %v2167_v54 = vmul.f32 1.442695, %v2129_v29 }
 0x214   : > { %v5869_v42 = vpop.eup %5868  ;;  %v2307_v28 = vsel %vm6913_vm9, %v2225_v2, 0.0  ;;  %3663 = vrot.lane.b32.xlu1 %v5727_v31, %s6049_s8  ;;  %v6949_v34 = vadd.f32 %v6933_v20, %v5424_v19  ;;  %v2099_v41 = vpop.f32.mrb[19].mxu0 }
 0x215   : > { %v5871_v37 = vpop.eup %5870  ;;  %v5270_v39 = vpack.c.bf16 %v2307_v28, %v2307_v28  ;;  %v2305_v40 = vsel %vm6925_vm11, %v2223_v63, 0.0  ;;  %v2226_v38 = vmul.f32 %v5869_v42, %v6839_v50  ;;  %v2127_v45 = vsub.f32 0.0, %v6941_v24  ;;  %3213 = vrot.lane.b32.xlu0 %v5728_v53, %s6057_s17  ;;  %v2689_v53 = vld [vmem:[#allocation2 + $0x50] sm:$0x1] }
 0x216   : > { %v5268_v46 = vpack.c.bf16 %v2305_v40, %v2305_v40  ;;  %v2224_v48 = vmul.f32 %v5871_v37, %v6844_v33  ;;  %v2130_v55 = vsub.f32 0.0, %v6949_v34  ;;  %5872 = vpow2.f32 %v2167_v54 }
 0x217   : > { %v2560_v56 = vshrl.u32 %v5270_v39, 16  ;;  %v2563_v47 = vshll.u32 %v5270_v39, 16  ;;  %v2308_v57 = vsel %vm6913_vm9, %v2226_v38, 0.0  ;;  %v2163_v25 = vmul.f32 1.442695, %v2127_v45  ;;  %v6980_v45 = vld [vmem:[#allocation2 + $0x3c] sm:$0xff]  }
 0x218   : > { %v2543_v50 = vshrl.u32 %v5268_v46, 16  ;;  %v2546_v43 = vshll.u32 %v5268_v46, 16  ;;  %v5271_v49 = vpack.c.bf16 %v2308_v57, %v2308_v57  ;;  %v2306_v33 = vsel %vm6925_vm11, %v2224_v48, 0.0  ;;  %3211 = vrot.lane.b32.xlu1 %v5729_v51, %s6057_s17  ;;  %v5740_v39 = vld [vmem:[#allocation2 + $0x44] ss:$0 sps:$4 sm:$0x11]  }
 0x219   : > { %v2562_v61 = vrot.slane %v2560_v56, 7  ;;  %v5269_v0 = vpack.c.bf16 %v2306_v33, %v2306_v33  ;;  %v2169_v9 = vmul.f32 1.442695, %v2130_v55  ;;  %3661 = vrot.lane.b32.xlu0 %v5730_v59, %s6049_s8  ;;  %5874 = vpow2.f32 %v2163_v25  ;;  %v5741_v55 = vld [vmem:[#allocation2 + $0x30] sm:$0xfe]  }
 0x21a   : > { %v2545_v1 = vrot.slane %v2543_v50, 7  ;;  %v2568_v31 = vshrl.u32 %v5271_v49, 16  ;;  %v2571_v4 = vshll.u32 %v5271_v49, 16  ;;  %v4005_v63 = vrot.slane %v5734_v26, 1 }
 0x21b   : > { %v2565_v52 = vor.u32 %v2563_v47, %v2562_v61  ;;  %v2566_v10 = vrot.slane %v2562_v61, 4  ;;  %v2551_v5 = vshrl.u32 %v5269_v0, 16  ;;  %v2554_v13 = vshll.u32 %v5269_v0, 16  ;;  %v5742_v57 = vld [vmem:[#allocation2 + $0x38] ss:$0 sps:$4 sm:$0x11]  }
 0x21c   : > { %v2548_v17 = vor.u32 %v2546_v43, %v2545_v1  ;;  %v2549_v2 = vrot.slane %v2545_v1, 4  ;;  %v2570_v18 = vrot.slane %v2568_v31, 7  ;;  %5876 = vpow2.f32 %v2169_v9  ;;  %3125 = vrot.lane.b32.xlu1 %v3108_v32, %s6052_s12  ;;  %v5802_v32 = vld [vmem:[%s7411_s3] sm:$0xff]   ;;  %v5805_v1 = vld [vmem:[#allocation2 + $0x30] sm:$0xff]  }
 0x21d   : > { %v2693_v35 = vsel %vm6667_vm12, %v2565_v52, %v2692_v36  ;;  %v2553_v22 = vrot.slane %v2551_v5, 7  ;;  %v6969_v19 = vadd.f32 %v6933_v20, %v2099_v41  ;;  %v3552_v37 = vrot.slane %v5735_v60, 1  ;;  %5425 = vmatprep.subr.bf16.mxu1 %v5802_v32  ;;  %v5804_v43 = vld [vmem:[#allocation2 + $0x3c] sm:$0xff]   ;;  %v5744_v60 = vld [vmem:[#allocation2 + $0x44] ss:$0 sps:$4 sm:$0x11]  }
 0x21e   : > { %2694 = vst [vmem:[#allocation2 + $0x54] sm:$0xf] %v2693_v35  ;;  %v2686_v42 = vsel %vm6667_vm12, %v2548_v17, %v2685_v62  ;;  %v2573_v28 = vor.u32 %v2571_v4, %v2570_v18  ;;  %v2575_v29 = vrot.slane %v2570_v18, 4  ;;  %v4006_v20 = vsel %vm726_vm0, %v4004_v27, %v4005_v63  ;;  %5426 = vmatpush3.bf16.msra.mxu1 %v5802_v32  ;;  %v5746_v17 = vld [vmem:[#allocation2 + $0x38] ss:$0 sps:$4 sm:$0x11]  }
 0x21f   : > { %2687 = vst [vmem:[#allocation2 + $0x48] sm:$0xf] %v2686_v42  ;;  %v2556_v40 = vor.u32 %v2554_v13, %v2553_v22  ;;  %v2558_v38 = vrot.slane %v2553_v22, 4  ;;  %v2128_v41 = vsub.f32 0.0, %v6969_v19  ;;  %4025 = vrot.lane.b32.xlu0 %v4006_v20, %s6053_s13  ;;  %v3553_v51 = vrot.slane %v5736_v6, 1  ;;  %2783 = vst.msk [vmem:[#allocation4 + $0x28] sm:$0xff] %vm2777_vm7, %v5804_v43 }
 0x220   : > { %v2574_v46 = vsel %vm6673_vm13, %v2566_v10, %v2573_v28  ;;  %v2697_v48 = vsel %vm6579_vm15, %v2575_v29, %v2696_v12  ;;  %v3555_v54 = vrot.slane %v5737_v8, 1  ;;  %v3556_v47 = vrot.slane %v5738_v11, 1  ;;  %v5873_v49 = vpop.eup %5872  ;;  %v5745_v10 = vld [vmem:[#allocation2 + $0x30] sm:$0xfe]   ;;  %v5749_v12 = vld [vmem:[#allocation2 + $0x3c] sm:$0xff]   ;;  %2782 = vst.msk [vmem:[#allocation4 + $0x20] sm:$0xff] %vm2777_vm7, %v5805_v1 }
 0x221   : > { %2695 = vst.msk [vmem:[#allocation2 + $0x58] sm:$0xf] %vm2640_vm10, %v2574_v46  ;;  %2698 = vst [vmem:[#allocation2 + $0x5c] sm:$0x1] %v2697_v48  ;;  %v2557_v16 = vsel %vm6673_vm13, %v2549_v2, %v2556_v40  ;;  %v2690_v27 = vsel %vm6579_vm15, %v2558_v38, %v2689_v53  ;;  %v2165_v56 = vmul.f32 1.442695, %v2128_v41  ;;  %v3554_v25 = vsel %vm726_vm0, %v3552_v37, %v3553_v51 }
 0x222   : > { %2688 = vst.msk [vmem:[#allocation2 + $0x4c] sm:$0xf] %vm2640_vm10, %v2557_v16  ;;  %2691 = vst [vmem:[#allocation2 + $0x50] sm:$0x1] %v2690_v27  ;;  %v3819_v26 = vrot.slane %v3817_v23, 1  ;;  %v3822_v36 = vshll.u32 %v5740_v39, 16  ;;  %3573 = vrot.lane.b32.xlu1 %v3554_v25, %s6058_s26  ;;  %v3557_v33 = vsel %vm726_vm0, %v3555_v54, %v3556_v47 }
 0x223   : > { %v4001_v50 = vrot.slane %v5741_v55, 1  ;;  %5878 = vpow2.f32 %v2165_v56  ;;  %v4002_v59 = vrot.slane %v5742_v57, 1  ;;  %v5875_v61 = vpop.eup %5874  ;;  %v2189_v62 = vadd.f32 1.0, %v5873_v49  ;;  %3575 = vrot.lane.b32.xlu0 %v3557_v33, %s6058_s26  ;;  %v5747_v23 = vld [vmem:[#allocation2 + $0x30] sm:$0xff]  }
 0x224   : > { %v3820_v0 = vor.u32 %v3819_v26, %v3815_v58  ;;  %v3824_v9 = vrot.slane %v3822_v36, 1  ;;  %v2187_v31 = vadd.f32 1.0, %v5875_v61  ;;  %v2935_v4 = vshrl.u32 %v6980_v45, 16  ;;  %v5748_v22 = vld [vmem:[#allocation2 + $0x38] ss:$0 sps:$4 sm:$0x11]  }
 0x225   : > { %v2937_v6 = vshll.u32 %v6980_v45, 16  ;;  %v2942_v8 = vshll.u32 %v5744_v60, 16  ;;  %5880 = vrcp.f32 %v2189_v62  ;;  %v4003_v58 = vsel %vm726_vm0, %v4001_v50, %v4002_v59  ;;  %v5751_v42 = vld [vmem:[#allocation2 + $0x30] sm:$0xff]   ;;  %v5750_v32 = vld [vmem:[#allocation2 + $0x44] ss:$0 sps:$4 sm:$0x11]  }
 0x226   : > { %v5877_v52 = vpop.eup %5876  ;;  %v3825_v44 = vsel %vm454_vm1, %v3820_v0, %v3824_v9  ;;  %5882 = vrcp.f32 %v2187_v31  ;;  %v3103_v2 = vrot.slane %v5745_v10, 1  ;;  %v3363_v18 = vshrl.u32 %v5747_v23, 16  ;;  %v5753_v40 = vld [vmem:[#allocation2 + $0x30] sm:$0xff]   ;;  %v5752_v16 = vld [vmem:[#allocation2 + $0x38] ss:$0 sps:$4 sm:$0x11]  }
 0x227   : > { %v2190_v5 = vadd.f32 1.0, %v5877_v52  ;;  %3880 = vrot.lane.b32.xlu1 %v3825_v44, %s6060_s9  ;;  %v2939_v13 = vrot.slane %v2937_v6, 1  ;;  %v2944_v11 = vrot.slane %v2942_v8, 1  ;;  %4023 = vrot.lane.b32.xlu0 %v4003_v58, %s6053_s13  ;;  %v3104_v35 = vrot.slane %v5746_v17, 1 }
 0x228   : > { %v3365_v63 = vshll.u32 %v5747_v23, 16  ;;  %v3370_v39 = vshll.u32 %v5748_v22, 16  ;;  %v3375_v38 = vshrl.u32 %v5749_v12, 16  ;;  %v3377_v20 = vshll.u32 %v5749_v12, 16  ;;  %v7041_v31 = vld [vmem:[#allocation2 + $0x54] sm:$0xff]  }
 0x229   : > { %5884 = vrcp.f32 %v2190_v5  ;;  %v2940_v53 = vor.u32 %v2939_v13, %v2935_v4  ;;  %v3105_v29 = vsel %vm726_vm0, %v3103_v2, %v3104_v35  ;;  %v3382_v48 = vshll.u32 %v5750_v32, 16  ;;  %v5755_v10 = vld [vmem:[#allocation2 + $0x54] sm:$0xff]   ;;  %v2706_v2 = vld [vmem:[#allocation2 + $0x6c] sm:$0xf] }
 0x22a   : > { %v3367_v37 = vrot.slane %v3365_v63, 1  ;;  %v3372_v46 = vrot.slane %v3370_v39, 1  ;;  %v2923_v51 = vshrl.u32 %v5751_v42, 16  ;;  %v3379_v55 = vrot.slane %v3377_v20, 1  ;;  %v5759_v35 = vld [vmem:[#allocation2 + $0x54] sm:$0xfe]  }
 0x22b   : > { %v2945_v28 = vsel %vm454_vm1, %v2940_v53, %v2944_v11  ;;  %3123 = vrot.lane.b32.xlu0 %v3105_v29, %s6052_s12  ;;  %v2925_v27 = vshll.u32 %v5751_v42, 16  ;;  %v3384_v47 = vrot.slane %v3382_v48, 1  ;;  %v3803_v57 = vshrl.u32 %v5753_v40, 16  ;;  %v5756_v11 = vld [vmem:[#allocation2 + $0x54] sm:$0xff]   ;;  %v2699_v42 = vld [vmem:[#allocation2 + $0x60] sm:$0xf] }
 0x22c   : > { %2980 = vrot.lane.b32.xlu1 %v2945_v28, %s6059_s27  ;;  %v3368_v45 = vor.u32 %v3367_v37, %v3363_v18  ;;  %v3380_v36 = vor.u32 %v3379_v55, %v3375_v38  ;;  %v2930_v43 = vshll.u32 %v5752_v16, 16  ;;  %v3805_v60 = vshll.u32 %v5753_v40, 16  ;;  %v5760_v28 = vld [vmem:[#allocation2 + $0x5c] ss:$0 sps:$4 sm:$0x11]   ;;  %v5757_v40 = vld [vmem:[#allocation2 + $0x48] sm:$0xff]  }
 0x22d   : > { %v5879_v41 = vpop.eup %5878  ;;  %v2927_v50 = vrot.slane %v2925_v27, 1  ;;  %v3812_v58 = vrot.slane %v3810_v14, 1  ;;  %v3839_v17 = vshrl.u32 %v7041_v31, 16  ;;  %v3841_v22 = vshll.u32 %v7041_v31, 16  ;;  %v5761_v48 = vld [vmem:[#allocation2 + $0x54] sm:$0xfe]  }
 0x22e   : > { %v2188_v54 = vadd.f32 1.0, %v5879_v41  ;;  %v3373_v56 = vsel %vm454_vm1, %v3368_v45, %v3372_v46  ;;  %v3385_v62 = vsel %vm454_vm1, %v3380_v36, %v3384_v47  ;;  %v2932_v9 = vrot.slane %v2930_v43, 1  ;;  %v2710_v41 = vld [vmem:[#allocation2 + $0x74] sm:$0x1] }
 0x22f   : > { %v5881_v25 = vpop.eup %5880  ;;  %v2928_v0 = vor.u32 %v2927_v50, %v2923_v51  ;;  %3430 = vrot.lane.b32.xlu0 %v3385_v62, %s6051_s10  ;;  %v3807_v1 = vrot.slane %v3805_v60, 1  ;;  %v3112_v45 = vrot.slane %v5759_v35, 1  ;;  %v3113_v46 = vrot.slane %v5760_v28, 1  ;;  %v5762_v27 = vld [vmem:[#allocation2 + $0x5c] ss:$0 sps:$4 sm:$0x11]  }
 0x230   : > { %5886 = vrcp.f32 %v2188_v54  ;;  %3428 = vrot.lane.b32.xlu1 %v3373_v56, %s6051_s10  ;;  %v5883_v49 = vpop.eup %5882  ;;  %v2229_v33 = vmul.f32 %v5881_v25, %v6936_v21  ;;  %v7059_v56 = vld [vmem:[#allocation2 + $0x54] sm:$0xff]   ;;  %vm3139_vm9 = vcmask 48160   ;;  %v5758_v25 = vld [vmem:[#allocation2 + $0x48] sm:$0xff]   ;;  %v4010_v26 = vrot.slane %v5761_v48, 1 }
 0x231   : > { %v2227_v61 = vmul.f32 %v5883_v49, %v6941_v24  ;;  %v2933_v8 = vsel %vm454_vm1, %v2928_v0, %v2932_v9  ;;  %v3808_v44 = vor.u32 %v3807_v1, %v3803_v57  ;;  %v3114_v60 = vsel %vm726_vm0, %v3112_v45, %v3113_v46  ;;  %v5773_v45 = vld [vmem:[#allocation2 + $0x48] sm:$0xfe]   ;;  %v5774_v46 = vld [vmem:[#allocation2 + $0x50] ss:$0 sps:$4 sm:$0x11]  }
 0x232   : > { %v2311_v21 = vsel %vm7022_vm3, %v2229_v33, 0.0  ;;  %v5763_v33 = vld [vmem:[#allocation2 + $0x48] sm:$0xfe]   ;;  %v3843_v62 = vrot.slane %v3841_v22, 1  ;;  %vm4104_vm11 = vcmask 1040384  }
 0x233   : > { %v5885_v23 = vpop.eup %5884  ;;  %v5274_v4 = vpack.c.bf16 %v2311_v21, %v2311_v21  ;;  %v2309_v6 = vsel %vm7032_vm6, %v2227_v61, 0.0  ;;  %v5764_v61 = vld [vmem:[#allocation2 + $0x50] ss:$0 sps:$4 sm:$0x11]   ;;  %v3558_v21 = vrot.slane %v5763_v33, 1 }
 0x234   : > { %v2230_v24 = vmul.f32 %v5885_v23, %v6949_v34  ;;  %v5272_v52 = vpack.c.bf16 %v2309_v6, %v2309_v6  ;;  %2978 = vrot.lane.b32.xlu1 %v2933_v8, %s6059_s27  ;;  %v3813_v34 = vsel %vm454_vm1, %v3808_v44, %v3812_v58  ;;  %v4011_v23 = vrot.slane %v5762_v27, 1  ;;  %v5766_v8 = vld [vmem:[#allocation2 + $0x5c] ss:$0 sps:$4 sm:$0x11]  }
 0x235   : > { %v2594_v12 = vshrl.u32 %v5274_v4, 16  ;;  %v2597_v5 = vshll.u32 %v5274_v4, 16  ;;  %3878 = vrot.lane.b32.xlu0 %v3813_v34, %s6060_s9  ;;  %v3559_v14 = vrot.slane %v5764_v61, 1  ;;  %v5765_v4 = vld [vmem:[#allocation2 + $0x54] sm:$0xfe]   ;;  %v2959_v6 = vshrl.u32 %v7059_v56, 16 }
 0x236   : > { %v2312_v13 = vsel %vm7022_vm3, %v2230_v24, 0.0  ;;  %v2577_v18 = vshrl.u32 %v5272_v52, 16  ;;  %v2580_v37 = vshll.u32 %v5272_v52, 16  ;;  %v2703_v24 = vld [vmem:[#allocation2 + $0x68] sm:$0x1]  ;;  %v2961_v52 = vshll.u32 %v7059_v56, 16 }
 0x237   : > { %v5275_v53 = vpack.c.bf16 %v2312_v13, %v2312_v13  ;;  %v2596_v63 = vrot.slane %v2594_v12, 7  ;;  %v3561_v58 = vrot.slane %v5765_v4, 1  ;;  %v4012_v12 = vsel %vm726_vm0, %v4010_v26, %v4011_v23  ;;  %v5768_v13 = vld [vmem:[#allocation2 + $0x5c] ss:$0 sps:$4 sm:$0x11]  }
 0x238   : > { %v7054_v29 = vrot.slane %v2577_v18, 7  ;;  %3667 = vrot.lane.b32.xlu1 %v5755_v10, %s6049_s8  ;;  %v7065_v36 = vpop.permute.xlu0 %3205  ;;  %v3560_v18 = vsel %vm726_vm0, %v3558_v21, %v3559_v14  ;;  %v3844_v35 = vor.u32 %v3843_v62, %v3839_v17  ;;  %v3846_v22 = vshll.u32 %v5768_v13, 16  ;;  %v5782_v21 = vld [vmem:[#allocation2 + $0x48] sm:$0xff]  }
 0x239   : > { %v2602_v39 = vshrl.u32 %v5275_v53, 16  ;;  %v2605_v32 = vshll.u32 %v5275_v53, 16  ;;  %v2599_v20 = vor.u32 %v2597_v5, %v2596_v63  ;;  %v2600_v51 = vrot.slane %v2596_v63, 4  ;;  %3217 = vrot.lane.b32.xlu0 %v5756_v11, %s6057_s17  ;;  %v5769_v63 = vld [vmem:[#allocation2 + $0x48] sm:$0xfe]  }
 0x23a   : > { %v5887_v38 = vpop.eup %5886  ;;  %v2582_v54 = vor.u32 %v2580_v37, %v7054_v29  ;;  %v2583_v57 = vrot.slane %v7054_v29, 4  ;;  %v3562_v5 = vrot.slane %v5766_v8, 1  ;;  %v2963_v53 = vrot.slane %v2961_v52, 1  ;;  %v5775_v37 = vld [vmem:[#allocation2 + $0x48] sm:$0xff]  }
 0x23b   : > { %v2604_v55 = vrot.slane %v2602_v39, 7  ;;  %v2228_v16 = vmul.f32 %v5887_v38, %v6969_v19  ;;  %v2707_v47 = vsel %vm6667_vm12, %v2599_v20, %v2706_v2  ;;  %v3848_v17 = vrot.slane %v3846_v22, 1  ;;  %v5777_v38 = vld [vmem:[#allocation2 + $0x54] sm:$0xff]  }
 0x23c   : > { %2708 = vst [vmem:[#allocation2 + $0x6c] sm:$0xf] %v2707_v47  ;;  %v2700_v50 = vsel %vm6667_vm12, %v2582_v54, %v2699_v42  ;;  %3215 = vrot.lane.b32.xlu1 %v5757_v40, %s6057_s17  ;;  %v3118_v0 = vpop.permute.xlu1 %3117  ;;  %v5770_v42 = vld [vmem:[#allocation2 + $0x50] ss:$0 sps:$4 sm:$0x11]   ;;  %v3563_v31 = vsel %vm726_vm0, %v3561_v58, %v3562_v5  ;;  %v4007_v39 = vrot.slane %v5769_v63, 1  ;;  %v2964_v30 = vor.u32 %v2963_v53, %v2959_v6 }
 0x23d   : > { %v2607_v19 = vor.u32 %v2605_v32, %v2604_v55  ;;  %v2609_v43 = vrot.slane %v2604_v55, 4  ;;  %v2310_v49 = vsel %vm7032_vm6, %v2228_v16, 0.0  ;;  %2701 = vst [vmem:[#allocation2 + $0x60] sm:$0xf] %v2700_v50  ;;  %3665 = vrot.lane.b32.xlu0 %v5758_v25, %s6049_s8  ;;  %v4008_v32 = vrot.slane %v5770_v42, 1 }
 0x23e   : > { %v5273_v7 = vpack.c.bf16 %v2310_v49, %v2310_v49  ;;  %v5772_v40 = vld [vmem:[#allocation2 + $0x5c] ss:$0 sps:$4 sm:$0x11]   ;;  %v3849_v20 = vsel %vm454_vm1, %v3844_v35, %v3848_v17  ;;  %v3109_v54 = vrot.slane %v5773_v45, 1  ;;  %v3110_v55 = vrot.slane %v5774_v46, 1 }
 0x23f   : > { %v2608_v9 = vsel %vm6673_vm13, %v2600_v51, %v2607_v19  ;;  %v2711_v3 = vsel %vm6579_vm15, %v2609_v43, %v2710_v41  ;;  %v7082_v10 = vpop.permute.xlu0 %3567  ;;  %v2966_v41 = vshll.u32 %v5772_v40, 16  ;;  %v4009_v48 = vsel %vm726_vm0, %v4007_v39, %v4008_v32  ;;  %v5776_v16 = vld [vmem:[#allocation2 + $0x50] ss:$0 sps:$4 sm:$0x11]   ;;  %v5780_v43 = vld [vmem:[#allocation2 + $0x48] sm:$0xff]  }
 0x240   : > { %2709 = vst.msk [vmem:[#allocation2 + $0x70] sm:$0xf] %vm2640_vm10, %v2608_v9  ;;  %2712 = vst [vmem:[#allocation2 + $0x74] sm:$0x1] %v2711_v3  ;;  %v2585_v59 = vshrl.u32 %v5273_v7, 16  ;;  %v2588_v1 = vshll.u32 %v5273_v7, 16  ;;  %3129 = vrot.lane.b32.xlu1 %v3114_v60, %s6052_s12  ;;  %v3111_v33 = vsel %vm726_vm0, %v3109_v54, %v3110_v55 }
 0x241   : > { %4029 = vrot.lane.b32.xlu0 %v4012_v12, %s6053_s13  ;;  %v2968_v51 = vrot.slane %v2966_v41, 1  ;;  %v3387_v27 = vshrl.u32 %v5775_v37, 16  ;;  %v3389_v56 = vshll.u32 %v5775_v37, 16  ;;  %v5778_v25 = vld [vmem:[#allocation2 + $0x5c] ss:$0 sps:$4 sm:$0x11]  }
 0x242   : > { %v2587_v44 = vrot.slane %v2585_v59, 7  ;;  %v2973_v34 = vpop.permute.xlu1 %2972  ;;  %v3399_v50 = vshrl.u32 %v5777_v38, 16  ;;  %v3401_v19 = vshll.u32 %v5777_v38, 16  ;;  %v3406_v60 = vshll.u32 %v5778_v25, 16  ;;  %v5806_v25 = vld [vmem:[#allocation2 + $0x54] sm:$0xff]  }
 0x243   : > { %2996 = vst.msk [vmem:[#allocation4 + $0x8] sm:$0xff] %vm2994_vm8, %v2973_v34  ;;  %v3116_v15 = vpop.permute.xlu0 %3115  ;;  %v2969_v47 = vsel %vm454_vm1, %v2964_v30, %v2968_v51  ;;  %v3391_v26 = vrot.slane %v3389_v56, 1  ;;  %v2947_v9 = vshrl.u32 %v5780_v43, 16  ;;  %v2949_v3 = vshll.u32 %v5780_v43, 16 }
 0x244   : > { %v2590_v11 = vor.u32 %v2588_v1, %v2587_v44  ;;  %v2592_v2 = vrot.slane %v2587_v44, 4  ;;  %3577 = vrot.lane.b32.xlu1 %v3560_v18, %s6058_s26  ;;  %3141 = vst.msk [vmem:[#allocation4 + $0x8] sm:$0xff] %vm3139_vm9, %v3118_v0  ;;  %v3403_v62 = vrot.slane %v3401_v19, 1  ;;  %v5781_v0 = vld [vmem:[#allocation2 + $0x50] ss:$0 sps:$4 sm:$0x11]  }
 0x245   : > { %3579 = vrot.lane.b32.xlu0 %v3563_v31, %s6058_s26  ;;  %v3392_v61 = vor.u32 %v3391_v26, %v3387_v27  ;;  %v3408_v23 = vrot.slane %v3406_v60, 1  ;;  %v2951_v14 = vrot.slane %v2949_v3, 1  ;;  %v2954_v4 = vshll.u32 %v5781_v0, 16  ;;  %v5783_v6 = vld [vmem:[#allocation2 + $0x50] ss:$0 sps:$4 sm:$0x11]  }
 0x246   : > { %v2591_v28 = vsel %vm6673_vm13, %v2583_v57, %v2590_v11  ;;  %v2704_v29 = vsel %vm6579_vm15, %v2592_v2, %v2703_v24  ;;  %v3394_v57 = vshll.u32 %v5776_v16, 16  ;;  %v3404_v1 = vor.u32 %v3403_v62, %v3399_v50  ;;  %2785 = vst.msk [vmem:[#allocation4 + $0x38] sm:$0xff] %vm2777_vm7, %v5806_v25 }
 0x247   : > { %2702 = vst.msk [vmem:[#allocation2 + $0x64] sm:$0xf] %vm2640_vm10, %v2591_v28  ;;  %2705 = vst [vmem:[#allocation2 + $0x68] sm:$0x1] %v2704_v29  ;;  %v3423_v49 = vpop.permute.xlu0 %3422  ;;  %v3829_v24 = vshll.u32 %v5782_v21, 16  ;;  %vm3229_vm15 = vcmask 64560   ;;  %v2952_v52 = vor.u32 %v2951_v14, %v2947_v9 }
 0x248   : > { %3884 = vrot.lane.b32.xlu1 %v3849_v20, %s6060_s9  ;;  %v3396_v7 = vrot.slane %v3394_v57, 1  ;;  %v3409_v8 = vsel %vm454_vm1, %v3404_v1, %v3408_v23  ;;  %v2956_v44 = vrot.slane %v2954_v4, 1  ;;  %v3827_v58 = vshrl.u32 %v5782_v21, 16  ;;  %v5794_v35 = vld [vmem:[#allocation2 + $0x6c] sm:$0xff]  }
 0x249   : > { %4027 = vrot.lane.b32.xlu0 %v4009_v48, %s6053_s13  ;;  %v3831_v5 = vrot.slane %v3829_v24, 1  ;;  %v3834_v13 = vshll.u32 %v5783_v6, 16  ;;  %vm3446_vm10 = vcmask 80960   ;;  %v5784_v63 = vld [vmem:[#allocation2 + $0x6c] sm:$0xff]   ;;  %v3863_v16 = vshrl.u32 %v5794_v35, 16 }
 0x24a   : > { %v3397_v59 = vsel %vm454_vm1, %v3392_v61, %v3396_v7  ;;  %v2957_v11 = vsel %vm454_vm1, %v2952_v52, %v2956_v44  ;;  %v5795_v55 = vld [vmem:[#allocation2 + $0x74] ss:$0 sps:$4 sm:$0x11]   ;;  %vm3591_vm12 = vcmask 97360   ;;  %v5798_v7 = vld [vmem:[#allocation2 + $0x6c] sm:$0xfe]  }
 0x24b   : > { %v2971_v12 = vpop.permute.xlu0 %2970  ;;  %v3832_v2 = vor.u32 %v3831_v5, %v3827_v58  ;;  %v3836_v18 = vrot.slane %v3834_v13, 1  ;;  %v5799_v0 = vld [vmem:[#allocation2 + $0x74] ss:$0 sps:$4 sm:$0x11]   ;;  %vm3681_vm13 = vcmask 113760   ;;  %v5807_v1 = vld [vmem:[#allocation2 + $0x48] sm:$0xff]  }
 0x24c   : > { %2984 = vrot.lane.b32.xlu1 %v2969_v47, %s6059_s27  ;;  %2995 = vst.msk [vmem:[#allocation4] sm:$0xff] %vm2994_vm8, %v2971_v12  ;;  %v3870_v47 = vshll.u32 %v5795_v55, 16  ;;  %v4017_v14 = vrot.slane %v5799_v0, 1 }
 0x24d   : > { %3127 = vrot.lane.b32.xlu0 %v3111_v33, %s6052_s12  ;;  %3140 = vst.msk [vmem:[#allocation4] sm:$0xff] %vm3139_vm9, %v3116_v15  ;;  %v3837_v22 = vsel %vm454_vm1, %v3832_v2, %v3836_v18  ;;  %v3865_v15 = vshll.u32 %v5794_v35, 16 }
 0x24e   : > { %3230 = vst.msk [vmem:[#allocation4] sm:$0xff] %vm3229_vm15, %v7065_v36  ;;  %v5788_v53 = vld [vmem:[#allocation2 + $0x60] sm:$0xff]   ;;  %v5789_v34 = vld [vmem:[#allocation2 + $0x68] ss:$0 sps:$4 sm:$0x11]   ;;  %v3872_v61 = vrot.slane %v3870_v47, 1 }
 0x24f   : > { %3447 = vst.msk [vmem:[#allocation4] sm:$0xff] %vm3446_vm10, %v3423_v49  ;;  %v3853_v42 = vshll.u32 %v5788_v53, 16  ;;  %v5785_v28 = vld [vmem:[#allocation2 + $0x60] sm:$0xff]   ;;  %v3858_v29 = vshll.u32 %v5789_v34, 16  ;;  %v3851_v39 = vshrl.u32 %v5788_v53, 16  ;;  %v3867_v27 = vrot.slane %v3865_v15, 1 }
 0x250   : > { %3432 = vrot.lane.b32.xlu1 %v3397_v59, %s6051_s10  ;;  %v5790_v37 = vld [vmem:[#allocation2 + $0x60] sm:$0xfe]   ;;  %v5791_v31 = vld [vmem:[#allocation2 + $0x68] ss:$0 sps:$4 sm:$0x11]   ;;  %3592 = vst.msk [vmem:[#allocation4] sm:$0xff] %vm3591_vm12, %v7082_v10 }
 0x251   : > { %3434 = vrot.lane.b32.xlu0 %v3409_v8, %s6051_s10  ;;  %v5787_v17 = vld [vmem:[#allocation2 + $0x60] sm:$0xff]   ;;  %v3855_v36 = vrot.slane %v3853_v42, 1  ;;  %v3860_v32 = vrot.slane %v3858_v29, 1  ;;  %v3564_v40 = vrot.slane %v5790_v37, 1  ;;  %v3565_v38 = vrot.slane %v5791_v31, 1  ;;  %2784 = vst.msk [vmem:[#allocation4 + $0x30] sm:$0xff] %vm2777_vm7, %v5807_v1 }
 0x252   : > { %v5792_v30 = vld [vmem:[#allocation2 + $0x60] sm:$0xfe]   ;;  %v5793_v41 = vld [vmem:[#allocation2 + $0x68] ss:$0 sps:$4 sm:$0x11]   ;;  %v3868_v50 = vor.u32 %v3867_v27, %v3863_v16  ;;  %v4016_v59 = vrot.slane %v5798_v7, 1 }
 0x253   : > { %v3856_v20 = vor.u32 %v3855_v36, %v3851_v39  ;;  %v5796_v45 = vld [vmem:[#allocation2 + $0x60] sm:$0xff]   ;;  %v4013_v54 = vrot.slane %v5792_v30, 1  ;;  %v4014_v56 = vrot.slane %v5793_v41, 1  ;;  %v5797_v57 = vld [vmem:[#allocation2 + $0x68] ss:$0 sps:$4 sm:$0x11]   ;;  %v3566_v26 = vsel %vm726_vm0, %v3564_v40, %v3565_v38 }
 0x254   : > { %2982 = vrot.lane.b32.xlu1 %v2957_v11, %s6059_s27  ;;  %v3413_v19 = vshll.u32 %v5796_v45, 16  ;;  %v3411_v49 = vshrl.u32 %v5796_v45, 16  ;;  %v3418_v33 = vshll.u32 %v5797_v57, 16  ;;  %v3873_v3 = vsel %vm454_vm1, %v3868_v50, %v3872_v61  ;;  %v5803_v10 = vld [vmem:[%s7411_s3 + $0x8] ss:$0 sps:$4 sm:$0x11]  }
 0x255   : > { %3882 = vrot.lane.b32.xlu0 %v3837_v22, %s6060_s9  ;;  %v3861_v51 = vsel %vm454_vm1, %v3856_v20, %v3860_v32  ;;  %v4015_v9 = vsel %vm726_vm0, %v4013_v54, %v4014_v56  ;;  %5446 = vmatprep.subr.msk.bf16.mxu1 %vm4104_vm11, %v5803_v10  ;;  %v4106_v4 = vsel %vm4104_vm11, %v5803_v10, 0  ;;  %v4018_v52 = vsel %vm726_vm0, %v4016_v59, %v4017_v14 }
 0x256   : > { %v3415_v62 = vrot.slane %v3413_v19, 1  ;;  %v3420_v21 = vrot.slane %v3418_v33, 1  ;;  %5428 = vmatpush3.bf16.msra.mxu1 %v4106_v4  ;;  %vm4043_vm7 = vcmask 146560   ;;  %v7216_v4 = vld [vmem:[%s7412_s4] ss:$0 sm:$0xff] }
 0x258   : > { %3671 = vrot.lane.b32.xlu1 %v5784_v63, %s6049_s8  ;;  %v3416_v23 = vor.u32 %v3415_v62, %v3411_v49 }
 0x259   : > { %3669 = vrot.lane.b32.xlu0 %v5785_v28, %s6049_s8 }
 0x25a   : > { %v3421_v6 = vsel %vm454_vm1, %v3416_v23, %v3420_v21  ;;  %vm3898_vm1 = vcmask 130160  }
 0x25c   : > { %v7121_v46 = vpop.permute.xlu1 %3659  ;;  %3219 = vrot.lane.b32.xlu1 %v5787_v17, %s6057_s17 }
 0x25d   : > { %v7124_v48 = vpop.permute.xlu0 %3209  ;;  %3886 = vrot.lane.b32.xlu0 %v3861_v51, %s6060_s9 }
 0x260   : > { %3581 = vrot.lane.b32.xlu1 %v3566_v26, %s6058_s26  ;;  %s239_s26 = sand.u32 1, %s6023_s19  }
 0x261   : > { %v3208_v43 = vpop.permute.xlu1 %3207  ;;  %4031 = vrot.lane.b32.xlu0 %v4015_v9, %s6053_s13  ;;  %s4714_s27 = sshll.u32 %s239_s26, 6 }
 0x262   : > { %3231 = vst.msk [vmem:[#allocation4 + $0x8] sm:$0xff] %vm3229_vm15, %v3208_v43  ;;  %v3658_v60 = vpop.permute.xlu0 %3657 }
 0x263   : > { %3682 = vst.msk [vmem:[#allocation4] sm:$0xff] %vm3681_vm13, %v3658_v60 }
 0x264   : > { %3888 = vrot.lane.b32.xlu1 %v3873_v3, %s6060_s9  ;;  %s7233_s9 = scalar_lea.vmem [#allocation5], %s4714_s27  ;;  %s6061_s27 = smov [#allocation5]  }
 0x265   : > { %v3122_v24 = vpop.permute.xlu1 %3121  ;;  %s4624_s21 = sshll.u32 %s7233_s9, 4  ;;  %s7337_s21 = int_to_ptr.vmem [resolvable:$true] %s4624_s21 }
 0x266   : > { %v4022_v8 = vpop.permute.xlu0 %4021 }
 0x268   : > { %3436 = vrot.lane.b32.xlu1 %v3421_v6, %s6051_s10  ;;  %s7355_s10 = scalar_lea.sflag [#allocation6], %s239_s26 }
 0x26c   : > { %4033 = vrot.lane.b32.xlu1 %v4018_v52, %s6053_s13  ;;  %s5953_s13 = scalar_lea.vmem %s7337_s21, 1024 }
 0x26d   : > { %p5954_p0 = scmp.ne.s32.totalorder %s7337_s21, %s5953_s13 }
 0x26f   : > { %p5955_p1 = pnand %p5954_p0, %p6144_p3 }
 0x270   : > { %v3570_v44 = vpop.permute.xlu1 %3569 }
 0x271   : > { %p5956_p2 = pneg %p5955_p1 }
 0x273   : > { %v3572_v58 = vpop.permute.xlu0 %3571 }
 0x276   : > { %v3877_v12 = vpop.permute.xlu1 %3876 }
 0x277   : > { %v4020_v5 = vpop.permute.xlu0 %4019 }
 0x27a   : > { %v2977_v13 = vpop.permute.xlu1 %2976 }
 0x27b   : > { %2998 = vst.msk [vmem:[#allocation4 + $0x18] sm:$0xff] %vm2994_vm8, %v2977_v13  ;;  %v3120_v11 = vpop.permute.xlu0 %3119 }
 0x27c   : > { %3143 = vst.msk [vmem:[#allocation4 + $0x18] sm:$0xff] %vm3139_vm9, %v3122_v24 }
 0x27e   : > { %v3425_v2 = vpop.permute.xlu1 %3424 }
 0x27f   : > { %3448 = vst.msk [vmem:[#allocation4 + $0x8] sm:$0xff] %vm3446_vm10, %v3425_v2  ;;  %v3427_v18 = vpop.permute.xlu0 %3426 }
 0x280   : > { %3593 = vst.msk [vmem:[#allocation4 + $0x8] sm:$0xff] %vm3591_vm12, %v3570_v44 }
 0x281   : > { %3683 = vst.msk [vmem:[#allocation4 + $0x8] sm:$0xff] %vm3681_vm13, %v7121_v46 }
 0x282   : > { %3900 = vst.msk [vmem:[#allocation4 + $0x8] sm:$0xff] %vm3898_vm1, %v3877_v12  ;;  %v2975_v53 = vpop.permute.xlu1 %2974 }
 0x283   : > { %4045 = vst.msk [vmem:[#allocation4 + $0x8] sm:$0xff] %vm4043_vm7, %v4022_v8  ;;  %v3875_v34 = vpop.permute.xlu0 %3874 }
 0x284   : > { %2997 = vst.msk [vmem:[#allocation4 + $0x10] sm:$0xff] %vm2994_vm8, %v2975_v53 }
 0x285   : > { %3142 = vst.msk [vmem:[#allocation4 + $0x10] sm:$0xff] %vm3139_vm9, %v3120_v11 }
 0x286   : > { %3232 = vst.msk [vmem:[#allocation4 + $0x10] sm:$0xff] %vm3229_vm15, %v7124_v48  ;;  %v3664_v35 = vpop.permute.xlu1 %3663 }
 0x287   : > { %3899 = vst.msk [vmem:[#allocation4] sm:$0xff] %vm3898_vm1, %v3875_v34  ;;  %v3214_v22 = vpop.permute.xlu0 %3213 }
 0x288   : > { %3449 = vst.msk [vmem:[#allocation4 + $0x10] sm:$0xff] %vm3446_vm10, %v3427_v18 }
 0x289   : > { %4044 = vst.msk [vmem:[#allocation4] sm:$0xff] %vm4043_vm7, %v4020_v5 }
 0x28a   : > { %3594 = vst.msk [vmem:[#allocation4 + $0x10] sm:$0xff] %vm3591_vm12, %v3572_v58  ;;  %v3212_v63 = vpop.permute.xlu1 %3211  ;;  %v4053_v29 = vld [vmem:[#allocation4 + $0x8] sm:$0xff] }
 0x28b   : > { %3233 = vst.msk [vmem:[#allocation4 + $0x18] sm:$0xff] %vm3229_vm15, %v3212_v63  ;;  %v3662_v42 = vpop.permute.xlu0 %3661 }
 0x28c   : > { %3684 = vst.msk [vmem:[#allocation4 + $0x10] sm:$0xff] %vm3681_vm13, %v3662_v42 }
 0x28e   : > { %v3126_v37 = vpop.permute.xlu1 %3125 }
 0x290   : > { %v4052_v28 = vld [vmem:[#allocation4] sm:$0xff] }
 0x291   : > { %5429 = vmatprep.mubr.msk.bf16.mxu1 %vm4079_vm14, %v4052_v28  ;;  %v4026_v31 = vpop.permute.xlu0 %4025 }
 0x292   : > { %5430 = vmatmul.mubr.msk.bf16.vlgmr.msra.gmra.mrb[0].mxu1 %vm4079_vm14, %v4053_v29 }
 0x294   : > { %v3574_v17 = vpop.permute.xlu1 %3573 }
 0x295   : > { %v3576_v39 = vpop.permute.xlu0 %3575 }
 0x299   : > { %v3881_v36 = vpop.permute.xlu1 %3880  ;;  %v4024_v32 = vpop.permute.xlu0 %4023 }
 0x29d   : > { %v3124_v38 = vpop.permute.xlu0 %3123 }
 0x29e   : > { %v2981_v40 = vpop.permute.xlu1 %2980 }
 0x29f   : > { %3000 = vst.msk [vmem:[#allocation4 + $0x28] sm:$0xff] %vm2994_vm8, %v2981_v40 }
 0x2a0   : > { %3145 = vst.msk [vmem:[#allocation4 + $0x28] sm:$0xff] %vm3139_vm9, %v3126_v37  ;;  %v5212_v37 = vld [vmem:[%s6171_s30 + $0x24] sm:$0xff]  }
 0x2a1   : > { %v3431_v20 = vpop.permute.xlu0 %3430 }
 0x2a2   : > { %v3429_v15 = vpop.permute.xlu1 %3428 }
 0x2a3   : > { %3450 = vst.msk [vmem:[#allocation4 + $0x18] sm:$0xff] %vm3446_vm10, %v3429_v15  ;;  %v4409_v15 = vunpack.c.h.bf16 %v5212_v37 }
 0x2a4   : > { %3595 = vst.msk [vmem:[#allocation4 + $0x18] sm:$0xff] %vm3591_vm12, %v3574_v17 }
 0x2a5   : > { %3685 = vst.msk [vmem:[#allocation4 + $0x18] sm:$0xff] %vm3681_vm13, %v3664_v35 }
 0x2a6   : > { %3902 = vst.msk [vmem:[#allocation4 + $0x18] sm:$0xff] %vm3898_vm1, %v3881_v36  ;;  %v2979_v30 = vpop.permute.xlu1 %2978 }
 0x2a7   : > { %4047 = vst.msk [vmem:[#allocation4 + $0x18] sm:$0xff] %vm4043_vm7, %v4026_v31  ;;  %v3879_v41 = vpop.permute.xlu0 %3878 }
 0x2a8   : > { %2999 = vst.msk [vmem:[#allocation4 + $0x20] sm:$0xff] %vm2994_vm8, %v2979_v30 }
 0x2a9   : > { %3144 = vst.msk [vmem:[#allocation4 + $0x20] sm:$0xff] %vm3139_vm9, %v3124_v38  ;;  %v4408_v38 = vunpack.c.l.bf16 %v5212_v37 }
 0x2aa   : > { %3234 = vst.msk [vmem:[#allocation4 + $0x20] sm:$0xff] %vm3229_vm15, %v3214_v22  ;;  %v3668_v45 = vpop.permute.xlu1 %3667 }
 0x2ab   : > { %3451 = vst.msk [vmem:[#allocation4 + $0x20] sm:$0xff] %vm3446_vm10, %v3431_v20  ;;  %v3218_v46 = vpop.permute.xlu0 %3217  ;;  %v5211_v20 = vld [vmem:[%s6171_s30 + $0x20] sm:$0x1] }
 0x2ac   : > { %3901 = vst.msk [vmem:[#allocation4 + $0x10] sm:$0xff] %vm3898_vm1, %v3879_v41 }
 0x2ad   : > { %4046 = vst.msk [vmem:[#allocation4 + $0x10] sm:$0xff] %vm4043_vm7, %v4024_v32  ;;  %v5214_v32 = vld [vmem:[%s6171_s30 + $0x2c] sm:$0x1] }
 0x2ae   : > { %3596 = vst.msk [vmem:[#allocation4 + $0x20] sm:$0xff] %vm3591_vm12, %v3576_v39  ;;  %v3216_v48 = vpop.permute.xlu1 %3215  ;;  %v4055_v16 = vld [vmem:[#allocation4 + $0x18] sm:$0xff]  ;;  %v5372_v39 = vld [vmem:[%s6171_s30 + $0x18] sm:$0xff]  }
 0x2af   : > { %3235 = vst.msk [vmem:[#allocation4 + $0x28] sm:$0xff] %vm3229_vm15, %v3216_v48  ;;  %v3666_v51 = vpop.permute.xlu0 %3665  ;;  %v5351_v30 = vunpack.c.l.bf16 %v5372_v39  ;;  %v5352_v41 = vunpack.c.h.bf16 %v5372_v39  ;;  %v4459_v48 = vrot.slane %v4408_v38, 1 }
 0x2b0   : > { %3686 = vst.msk [vmem:[#allocation4 + $0x20] sm:$0xff] %vm3681_vm13, %v3666_v51  ;;  %v4460_v51 = vrot.slane %v4409_v15, 1  ;;  %v5217_v15 = vld [vmem:[%s6171_s30 + $0x38] sm:$0x1] }
 0x2b2   : > { %v3130_v55 = vpop.permute.xlu1 %3129 }
 0x2b3   : > { %v4030_v27 = vpop.permute.xlu0 %4029 }
 0x2b4   : > { %v4054_v54 = vld [vmem:[#allocation4 + $0x10] sm:$0xff] }
 0x2b5   : > { %5433 = vmatprep.mubr.msk.bf16.mxu1 %vm4079_vm14, %v4054_v54  ;;  %v4454_v54 = vrot.slane %v5351_v30, 1 }
 0x2b6   : > { %5434 = vmatmul.mubr.msk.bf16.gmra.mrb[4].mxu1 %vm4079_vm14, %v4055_v16  ;;  %v3578_v56 = vpop.permute.xlu1 %3577 }
 0x2b7   : > { %v3580_v47 = vpop.permute.xlu0 %3579 }
 0x2ba   : > { %v3885_v57 = vpop.permute.xlu1 %3884 }
 0x2bb   : > { %v4028_v25 = vpop.permute.xlu0 %4027 }
 0x2be   : > { %v2985_v26 = vpop.permute.xlu1 %2984 }
 0x2bf   : > { %3002 = vst.msk [vmem:[#allocation4 + $0x38] sm:$0xff] %vm2994_vm8, %v2985_v26  ;;  %v3128_v50 = vpop.permute.xlu0 %3127 }
 0x2c0   : > { %3147 = vst.msk [vmem:[#allocation4 + $0x38] sm:$0xff] %vm3139_vm9, %v3130_v55  ;;  %v4455_v55 = vrot.slane %v5352_v41, 1 }
 0x2c2   : > { %v3433_v19 = vpop.permute.xlu1 %3432  ;;  %v4456_v26 = vsel %vm726_vm0, %v4454_v54, %v4455_v55 }
 0x2c3   : > { %3452 = vst.msk [vmem:[#allocation4 + $0x28] sm:$0xff] %vm3446_vm10, %v3433_v19  ;;  %v3435_v43 = vpop.permute.xlu0 %3434 }
 0x2c4   : > { %3597 = vst.msk [vmem:[#allocation4 + $0x28] sm:$0xff] %vm3591_vm12, %v3578_v56 }
 0x2c5   : > { %3687 = vst.msk [vmem:[#allocation4 + $0x28] sm:$0xff] %vm3681_vm13, %v3668_v45  ;;  %v4410_v45 = vunpack.c.l.bf16 %v5214_v32 }
 0x2c6   : > { %3904 = vst.msk [vmem:[#allocation4 + $0x28] sm:$0xff] %vm3898_vm1, %v3885_v57  ;;  %v2983_v49 = vpop.permute.xlu1 %2982 }
 0x2c7   : > { %4049 = vst.msk [vmem:[#allocation4 + $0x28] sm:$0xff] %vm4043_vm7, %v4030_v27  ;;  %v3883_v33 = vpop.permute.xlu0 %3882  ;;  %v4462_v16 = vrot.slane %v4410_v45, 1  ;;  %v4413_v45 = vunpack.c.l.bf16 %v5217_v15  ;;  %v5226_v15 = vld [vmem:[%s6171_s30 + $0x5c] sm:$0x1] }
 0x2c8   : > { %3001 = vst.msk [vmem:[#allocation4 + $0x30] sm:$0xff] %vm2994_vm8, %v2983_v49 }
 0x2c9   : > { %3146 = vst.msk [vmem:[#allocation4 + $0x30] sm:$0xff] %vm3139_vm9, %v3128_v50 }
 0x2ca   : > { %3236 = vst.msk [vmem:[#allocation4 + $0x30] sm:$0xff] %vm3229_vm15, %v3218_v46  ;;  %v3672_v7 = vpop.permute.xlu1 %3671  ;;  %v4407_v46 = vunpack.c.l.bf16 %v5211_v20 }
 0x2cb   : > { %3453 = vst.msk [vmem:[#allocation4 + $0x30] sm:$0xff] %vm3446_vm10, %v3435_v43  ;;  %v3670_v60 = vpop.permute.xlu0 %3669  ;;  %v4463_v43 = vsel %vm726_vm0, %v4460_v51, %v4462_v16  ;;  %v4467_v16 = vrot.slane %v4413_v45, 1 }
 0x2cc   : > { %3903 = vst.msk [vmem:[#allocation4 + $0x20] sm:$0xff] %vm3898_vm1, %v3883_v33  ;;  %v4457_v27 = vrot.slane %v4407_v46, 1 }
 0x2cd   : > { %4048 = vst.msk [vmem:[#allocation4 + $0x20] sm:$0xff] %vm4043_vm7, %v4028_v25 }
 0x2ce   : > { %3598 = vst.msk [vmem:[#allocation4 + $0x30] sm:$0xff] %vm3591_vm12, %v3580_v47  ;;  %v3220_v61 = vpop.permute.xlu1 %3219  ;;  %v4057_v3 = vld [vmem:[#allocation4 + $0x28] sm:$0xff]  ;;  %v4461_v47 = vsel %vm726_vm0, %v4459_v48, %v4460_v51 }
 0x2cf   : > { %3688 = vst.msk [vmem:[#allocation4 + $0x30] sm:$0xff] %vm3681_vm13, %v3670_v60  ;;  %v3887_v62 = vpop.permute.xlu0 %3886  ;;  %v4458_v60 = vsel %vm726_vm0, %v4455_v55, %v4457_v27 }
 0x2d0   : > { %3237 = vst.msk [vmem:[#allocation4 + $0x38] sm:$0xff] %vm3229_vm15, %v3220_v61 }
 0x2d1   : > { %3905 = vst.msk [vmem:[#allocation4 + $0x30] sm:$0xff] %vm3898_vm1, %v3887_v62 }
 0x2d2   : > { %v3582_v9 = vpop.permute.xlu1 %3581 }
 0x2d3   : > { %v4032_v23 = vpop.permute.xlu0 %4031 }
 0x2d4   : > { %v4056_v0 = vld [vmem:[#allocation4 + $0x20] sm:$0xff]  ;;  %4050 = vst.msk [vmem:[#allocation4 + $0x30] sm:$0xff] %vm4043_vm7, %v4032_v23 }
 0x2d5   : > { %5437 = vmatprep.mubr.msk.bf16.mxu1 %vm4079_vm14, %v4056_v0 }
 0x2d6   : > { %5438 = vmatmul.mubr.msk.bf16.gmra.mrb[8].mxu1 %vm4079_vm14, %v4057_v3  ;;  %v3889_v21 = vpop.permute.xlu1 %3888 }
 0x2da   : > { %v3437_v59 = vpop.permute.xlu1 %3436 }
 0x2db   : > { %3454 = vst.msk [vmem:[#allocation4 + $0x38] sm:$0xff] %vm3446_vm10, %v3437_v59  ;;  %v4058_v10 = vld [vmem:[#allocation4 + $0x30] sm:$0xff] }
 0x2dc   : > { %3599 = vst.msk [vmem:[#allocation4 + $0x38] sm:$0xff] %vm3591_vm12, %v3582_v9  ;;  %5441 = vmatprep.mubr.msk.bf16.mxu1 %vm4079_vm14, %v4058_v10 }
 0x2dd   : > { %3689 = vst.msk [vmem:[#allocation4 + $0x38] sm:$0xff] %vm3681_vm13, %v3672_v7 }
 0x2de   : > { %3906 = vst.msk [vmem:[#allocation4 + $0x38] sm:$0xff] %vm3898_vm1, %v3889_v21  ;;  %v4034_v1 = vpop.permute.xlu1 %4033 }
 0x2df   : > { %4051 = vst.msk [vmem:[#allocation4 + $0x38] sm:$0xff] %vm4043_vm7, %v4034_v1 }
 0x2e6   : > { %v4059_v14 = vld [vmem:[#allocation4 + $0x38] sm:$0xff] }
 0x2e7   : > { %5442 = vmatmul.mubr.msk.bf16.gmra.mrb[12].mxu1 %vm4079_vm14, %v4059_v14 }
 0x365   : > { %v5431_v6 = vpop.f32.mrb[0].mxu1 }
 0x366   : > { %v4151_v24 = vadd.f32 %v5431_v6, %v7216_v4  ;;  %v4142_v8 = vpop.f32.mrb[1].mxu1 }
 0x367   : > { %v4143_v52 = vadd.f32 %v7216_v4, %v4142_v8  ;;  %v5432_v44 = vpop.f32.mrb[2].mxu1 }
 0x368   : > { %v4207_v58 = vsub.f32 0.0, %v4151_v24  ;;  %v4154_v12 = vadd.f32 %v5432_v44, %v7216_v4  ;;  %v4145_v5 = vpop.f32.mrb[3].mxu1 }
 0x369   : > { %v4205_v13 = vsub.f32 0.0, %v4143_v52  ;;  %v4146_v11 = vadd.f32 %v7216_v4, %v4145_v5 }
 0x36a   : > { %v4225_v2 = vmul.f32 1.442695, %v4207_v58  ;;  %v4208_v18 = vsub.f32 0.0, %v4154_v12 }
 0x36b   : > { %v4221_v53 = vmul.f32 1.442695, %v4205_v13  ;;  %v4206_v34 = vsub.f32 0.0, %v4146_v11 }
 0x36c   : > { %5888 = vpow2.f32 %v4225_v2  ;;  %v4227_v35 = vmul.f32 1.442695, %v4208_v18 }
 0x36d   : > { %5890 = vpow2.f32 %v4221_v53  ;;  %v4223_v22 = vmul.f32 1.442695, %v4206_v34 }
 0x36e   : > { %5892 = vpow2.f32 %v4227_v35 }
 0x36f   : > { %5894 = vpow2.f32 %v4223_v22 }
 0x376   : > { %v5889_v63 = vpop.eup %5888 }
 0x377   : > { %v5891_v42 = vpop.eup %5890  ;;  %v4255_v28 = vadd.f32 1.0, %v5889_v63 }
 0x378   : > { %v5893_v29 = vpop.eup %5892  ;;  %v4253_v31 = vadd.f32 1.0, %v5891_v42 }
 0x379   : > { %v5895_v17 = vpop.eup %5894  ;;  %5896 = vrcp.f32 %v4255_v28  ;;  %v4256_v36 = vadd.f32 1.0, %v5893_v29  ;;  %v5218_v29 = vld [vmem:[%s6171_s30 + $0x3c] sm:$0xff]  }
 0x37a   : > { %5898 = vrcp.f32 %v4253_v31  ;;  %v4254_v40 = vadd.f32 1.0, %v5895_v17  ;;  %v5373_v17 = vld [vmem:[%s6171_s30 + $0x30] sm:$0xff]   ;;  %v4415_v38 = vunpack.c.h.bf16 %v5218_v29 }
 0x37b   : > { %5900 = vrcp.f32 %v4256_v36  ;;  %v5220_v36 = vld [vmem:[%s6171_s30 + $0x44] sm:$0x1]  ;;  %v5355_v20 = vunpack.c.l.bf16 %v5373_v17  ;;  %v5356_v30 = vunpack.c.h.bf16 %v5373_v17 }
 0x37c   : > { %5902 = vrcp.f32 %v4254_v40  ;;  %v4414_v40 = vunpack.c.l.bf16 %v5218_v29  ;;  %v4416_v41 = vunpack.c.l.bf16 %v5220_v36  ;;  %v4470_v48 = vrot.slane %v4415_v38, 1 }
 0x37d   : > { %v4464_v51 = vrot.slane %v5355_v20, 1  ;;  %v4465_v54 = vrot.slane %v5356_v30, 1 }
 0x37e   : > { %v4469_v46 = vrot.slane %v4414_v40, 1  ;;  %v4472_v55 = vrot.slane %v4416_v41, 1 }
 0x383   : > { %v5897_v56 = vpop.eup %5896 }
 0x384   : > { %v5899_v57 = vpop.eup %5898  ;;  %v4287_v25 = vmul.f32 %v5897_v56, %v4151_v24  ;;  %v4471_v56 = vsel %vm726_vm0, %v4469_v46, %v4470_v48  ;;  %v5223_v46 = vld [vmem:[%s6171_s30 + $0x50] sm:$0x1] }
 0x385   : > { %v5901_v50 = vpop.eup %5900  ;;  %v4285_v19 = vmul.f32 %v5899_v57, %v4143_v52 }
 0x386   : > { %v5903_v49 = vpop.eup %5902  ;;  %v4512_v33 = vadd.f32 %v4461_v47, %v4287_v25  ;;  %v4288_v7 = vmul.f32 %v5901_v50, %v4154_v12 }
 0x387   : > { %v4510_v61 = vadd.f32 %v4456_v26, %v4285_v19  ;;  %v4286_v62 = vmul.f32 %v5903_v49, %v4146_v11 }
 0x388   : > { %v5294_v0 = vpack.c.bf16 %v4512_v33, %v4512_v33  ;;  %v5317_v9 = vpack.c.bf16 %v4288_v7, %v4287_v25  ;;  %v4513_v3 = vadd.f32 %v4463_v43, %v4288_v7  ;;  %v4466_v25 = vsel %vm726_vm0, %v4464_v51, %v4465_v54 }
 0x389   : > { %v5292_v23 = vpack.c.bf16 %v4510_v61, %v4510_v61  ;;  %v5312_v21 = vpack.c.bf16 %v4286_v62, %v4285_v19  ;;  %v4511_v59 = vadd.f32 %v4458_v60, %v4286_v62  ;;  %v5435_v14 = vpop.f32.mrb[4].mxu1  ;;  %v4473_v19 = vsel %vm726_vm0, %v4470_v48, %v4472_v55 }
 0x38a   : > { %5365 = vst [vmem:[%s7233_s9 + $0x8] sm:$0xff] %v5317_v9   ;;  %v5295_v10 = vpack.c.bf16 %v4513_v3, %v4513_v3  ;;  %v4167_v6 = vadd.f32 %v5435_v14, %v7216_v4  ;;  %v4158_v24 = vpop.f32.mrb[5].mxu1  ;;  %v4468_v7 = vsel %vm726_vm0, %v4465_v54, %v4467_v16 }
 0x38b   : > { %4593 = vst.msk [vmem:[%s7233_s9 + $0x8] sm:$0xf] %vm4590_vm2, %v5294_v0  ;;  %5313 = vst [vmem:[%s7233_s9] sm:$0xff] %v5312_v21   ;;  %v5293_v1 = vpack.c.bf16 %v4511_v59, %v4511_v59  ;;  %v4159_v8 = vadd.f32 %v7216_v4, %v4158_v24  ;;  %v5436_v52 = vpop.f32.mrb[6].mxu1 }
 0x38c   : > { %4594 = vst.msk [vmem:[%s7233_s9 + $0xc] sm:$0xf] %vm4590_vm2, %v5295_v10  ;;  %4591 = vst.msk [vmem:[%s7233_s9] sm:$0xf] %vm4590_vm2, %v5292_v23  ;;  %v4211_v44 = vsub.f32 0.0, %v4167_v6  ;;  %v4170_v58 = vadd.f32 %v5436_v52, %v7216_v4  ;;  %v4161_v12 = vpop.f32.mrb[7].mxu1 }
 0x38d   : > { %4592 = vst.msk [vmem:[%s7233_s9 + $0x4] sm:$0xf] %vm4590_vm2, %v5293_v1  ;;  %v4209_v5 = vsub.f32 0.0, %v4159_v8  ;;  %v4162_v13 = vadd.f32 %v7216_v4, %v4161_v12 }
 0x38e   : > { %v4233_v11 = vmul.f32 1.442695, %v4211_v44  ;;  %v4212_v2 = vsub.f32 0.0, %v4170_v58 }
 0x38f   : > { %v4229_v18 = vmul.f32 1.442695, %v4209_v5  ;;  %v4210_v53 = vsub.f32 0.0, %v4162_v13 }
 0x390   : > { %5904 = vpow2.f32 %v4233_v11  ;;  %v4235_v34 = vmul.f32 1.442695, %v4212_v2 }
 0x391   : > { %5906 = vpow2.f32 %v4229_v18  ;;  %v4231_v35 = vmul.f32 1.442695, %v4210_v53 }
 0x392   : > { %5908 = vpow2.f32 %v4235_v34 }
 0x393   : > { %5910 = vpow2.f32 %v4231_v35 }
 0x39a   : > { %v5905_v22 = vpop.eup %5904 }
 0x39b   : > { %v5907_v63 = vpop.eup %5906  ;;  %v4259_v42 = vadd.f32 1.0, %v5905_v22  ;;  %v5224_v22 = vld [vmem:[%s6171_s30 + $0x54] sm:$0xff]  }
 0x39c   : > { %v5909_v28 = vpop.eup %5908  ;;  %v4257_v37 = vadd.f32 1.0, %v5907_v63  ;;  %v4421_v38 = vunpack.c.h.bf16 %v5224_v22 }
 0x39d   : > { %v5911_v31 = vpop.eup %5910  ;;  %5912 = vrcp.f32 %v4259_v42  ;;  %v4260_v39 = vadd.f32 1.0, %v5909_v28 }
 0x39e   : > { %5914 = vrcp.f32 %v4257_v37  ;;  %v4258_v32 = vadd.f32 1.0, %v5911_v31  ;;  %v5374_v37 = vld [vmem:[%s6171_s30 + $0x48] sm:$0xff]  }
 0x39f   : > { %5916 = vrcp.f32 %v4260_v39  ;;  %v4420_v39 = vunpack.c.l.bf16 %v5224_v22  ;;  %v5359_v45 = vunpack.c.l.bf16 %v5374_v37  ;;  %v5360_v55 = vunpack.c.h.bf16 %v5374_v37 }
 0x3a0   : > { %5918 = vrcp.f32 %v4258_v32 }
 0x3a7   : > { %v5913_v27 = vpop.eup %5912 }
 0x3a8   : > { %v5915_v47 = vpop.eup %5914  ;;  %v4291_v57 = vmul.f32 %v5913_v27, %v4167_v6 }
 0x3a9   : > { %v5917_v26 = vpop.eup %5916  ;;  %v4289_v50 = vmul.f32 %v5915_v47, %v4159_v8  ;;  %v5439_v62 = vpop.f32.mrb[8].mxu1 }
 0x3aa   : > { %v5919_v43 = vpop.eup %5918  ;;  %v4516_v49 = vadd.f32 %v4471_v56, %v4291_v57  ;;  %v4292_v33 = vmul.f32 %v5917_v26, %v4170_v58  ;;  %v7258_v23 = vadd.f32 %v5439_v62, %v7216_v4  ;;  %v4174_v21 = vpop.f32.mrb[9].mxu1  ;;  %v4422_v56 = vunpack.c.l.bf16 %v5226_v15 }
 0x3ab   : > { %v4514_v60 = vadd.f32 %v4466_v25, %v4289_v50  ;;  %v4290_v61 = vmul.f32 %v5919_v43, %v4162_v13  ;;  %v7261_v14 = vadd.f32 %v7216_v4, %v4174_v21  ;;  %v5440_v6 = vpop.f32.mrb[10].mxu1  ;;  %v4419_v25 = vunpack.c.l.bf16 %v5223_v46 }
 0x3ac   : > { %v5298_v0 = vpack.c.bf16 %v4516_v49, %v4516_v49  ;;  %v5327_v9 = vpack.c.bf16 %v4292_v33, %v4291_v57  ;;  %v4517_v3 = vadd.f32 %v4473_v19, %v4292_v33  ;;  %v4215_v8 = vsub.f32 0.0, %v7258_v23  ;;  %v4177_v44 = vpop.f32.mrb[11].mxu1 }
 0x3ad   : > { %v5296_v59 = vpack.c.bf16 %v4514_v60, %v4514_v60  ;;  %v5322_v10 = vpack.c.bf16 %v4290_v61, %v4289_v50  ;;  %v4515_v1 = vadd.f32 %v4468_v7, %v4290_v61  ;;  %v7266_v52 = vadd.f32 %v5440_v6, %v7216_v4 }
 0x3ae   : > { %5367 = vst [vmem:[%s7233_s9 + $0x18] sm:$0xff] %v5327_v9   ;;  %v5299_v24 = vpack.c.bf16 %v4517_v3, %v4517_v3  ;;  %v4213_v12 = vsub.f32 0.0, %v7261_v14  ;;  %v7273_v5 = vadd.f32 %v7216_v4, %v4177_v44  ;;  %v4241_v13 = vmul.f32 1.442695, %v4215_v8 }
 0x3af   : > { %4597 = vst.msk [vmem:[%s7233_s9 + $0x18] sm:$0xf] %vm4590_vm2, %v5298_v0  ;;  %5366 = vst [vmem:[%s7233_s9 + $0x10] sm:$0xff] %v5322_v10   ;;  %v5297_v58 = vpack.c.bf16 %v4515_v1, %v4515_v1  ;;  %v4216_v11 = vsub.f32 0.0, %v7266_v52  ;;  %v4479_v19 = vrot.slane %v4420_v39, 1  ;;  %v4480_v43 = vrot.slane %v4421_v38, 1 }
 0x3b0   : > { %4598 = vst.msk [vmem:[%s7233_s9 + $0x1c] sm:$0xf] %vm4590_vm2, %v5299_v24  ;;  %4595 = vst.msk [vmem:[%s7233_s9 + $0x10] sm:$0xf] %vm4590_vm2, %v5296_v59  ;;  %v4237_v2 = vmul.f32 1.442695, %v4213_v12  ;;  %5920 = vpow2.f32 %v4241_v13 }
 0x3b1   : > { %4596 = vst.msk [vmem:[%s7233_s9 + $0x14] sm:$0xf] %vm4590_vm2, %v5297_v58  ;;  %v4214_v18 = vsub.f32 0.0, %v7273_v5  ;;  %v4243_v53 = vmul.f32 1.442695, %v4216_v11  ;;  %v4474_v33 = vrot.slane %v5359_v45, 1  ;;  %v4481_v0 = vsel %vm726_vm0, %v4479_v19, %v4480_v43 }
 0x3b2   : > { %5922 = vpow2.f32 %v4237_v2  ;;  %v4475_v7 = vrot.slane %v5360_v55, 1  ;;  %v4482_v61 = vrot.slane %v4422_v56, 1 }
 0x3b3   : > { %v4239_v34 = vmul.f32 1.442695, %v4214_v18  ;;  %5924 = vpow2.f32 %v4243_v53 }
 0x3b4   : > { %v4476_v21 = vsel %vm726_vm0, %v4474_v33, %v4475_v7  ;;  %v4483_v1 = vsel %vm726_vm0, %v4480_v43, %v4482_v61 }
 0x3b5   : > { %5926 = vpow2.f32 %v4239_v34 }
 0x3ba   : > { %v5921_v35 = vpop.eup %5920  ;;  %v5443_v31 = vpop.f32.mrb[12].mxu1 }
 0x3bb   : > { %v4263_v42 = vadd.f32 1.0, %v5921_v35  ;;  %v7286_v32 = vadd.f32 %v5443_v31, %v7216_v4  ;;  %v4190_v40 = vpop.f32.mrb[13].mxu1  ;;  %v5232_v31 = vld [vmem:[%s6171_s30 + $0x74] sm:$0x1] }
 0x3bc   : > { %v5923_v63 = vpop.eup %5922  ;;  %v7290_v30 = vadd.f32 %v7216_v4, %v4190_v40  ;;  %v5444_v41 = vpop.f32.mrb[14].mxu1  ;;  %v5229_v40 = vld [vmem:[%s6171_s30 + $0x68] sm:$0x1] }
 0x3bd   : > { %v5925_v28 = vpop.eup %5924  ;;  %v4261_v29 = vadd.f32 1.0, %v5923_v63  ;;  %5928 = vrcp.f32 %v4263_v42  ;;  %v4219_v48 = vsub.f32 0.0, %v7286_v32  ;;  %v7295_v51 = vadd.f32 %v5444_v41, %v7216_v4  ;;  %v4193_v54 = vpop.f32.mrb[15].mxu1  ;;  %v5230_v63 = vld [vmem:[%s6171_s30 + $0x6c] sm:$0xff]  }
 0x3be   : > { %v4264_v36 = vadd.f32 1.0, %v5925_v28  ;;  %v4217_v16 = vsub.f32 0.0, %v7290_v30  ;;  %v7299_v27 = vadd.f32 %v7216_v4, %v4193_v54  ;;  %v4477_v4 = vrot.slane %v4419_v25, 1 }
 0x3bf   : > { %v5927_v17 = vpop.eup %5926  ;;  %5930 = vrcp.f32 %v4261_v29  ;;  %v4249_v47 = vmul.f32 1.442695, %v4219_v48  ;;  %v4220_v57 = vsub.f32 0.0, %v7295_v51  ;;  %v5375_v29 = vld [vmem:[%s6171_s30 + $0x60] sm:$0xff]   ;;  %v4426_v39 = vunpack.c.l.bf16 %v5230_v63  ;;  %s4621_s30 = sadd.s32 %s5308_s15, %s5252_s16  ;;  %s5957_s15 = sshll.u32 %s6061_s27, 4  ;;  %s5958_s15 = int_to_ptr.vmem [resolvable:$false] %s5957_s15 }
 0x3c0   : > { %v4262_v20 = vadd.f32 1.0, %v5927_v17  ;;  %5932 = vrcp.f32 %v4264_v36  ;;  %v4245_v26 = vmul.f32 1.442695, %v4217_v16  ;;  %v4218_v50 = vsub.f32 0.0, %v7299_v27  ;;  %s5253_s22 = sshll.u32 %s4621_s30, 6  ;;  %s5959_s16 = scalar_lea.vmem %s5958_s15, 2048 }
 0x3c1   : > { %v4251_v49 = vmul.f32 1.442695, %v4220_v57  ;;  %v4478_v44 = vsel %vm726_vm0, %v4475_v7, %v4477_v4  ;;  %v4427_v36 = vunpack.c.h.bf16 %v5230_v63  ;;  %v5363_v38 = vunpack.c.l.bf16 %v5375_v29  ;;  %s7345_s17 = scalar_lea.hbm %s7413_s5, %s5253_s22  ;;  %p5960_p4 = scmp.lt.s32.totalorder %s7337_s21, %s5958_s15 }
 0x3c2   : > { %5934 = vrcp.f32 %v4262_v20  ;;  %v4247_v60 = vmul.f32 1.442695, %v4218_v50  ;;  %v5364_v15 = vunpack.c.h.bf16 %v5375_v29  ;;  %v4428_v20 = vunpack.c.l.bf16 %v5232_v31  ;;  %p5961_p5 = scmp.lt.s32.totalorder %s5959_s16, %s5953_s13 }
 0x3c3   : > { %5936 = vpow2.f32 %v4249_v47  ;;  %v4425_v41 = vunpack.c.l.bf16 %v5229_v40  ;;  %v4489_v45 = vrot.slane %v4426_v39, 1  ;;  %v4490_v46 = vrot.slane %v4427_v36, 1 }
 0x3c4   : > { %5938 = vpow2.f32 %v4245_v26  ;;  %v4484_v48 = vrot.slane %v5363_v38, 1  ;;  %v4485_v54 = vrot.slane %v5364_v15, 1  ;;  %v4492_v55 = vrot.slane %v4428_v20, 1  ;;  %p5962_p6 = por %p5961_p5, %p5960_p4 }
 0x3c5   : > { %5940 = vpow2.f32 %v4251_v49  ;;  %v4487_v16 = vrot.slane %v4425_v41, 1  ;;  %v4491_v47 = vsel %vm726_vm0, %v4489_v45, %v4490_v46 }
 0x3c6   : > { %5942 = vpow2.f32 %v4247_v60  ;;  %v4486_v26 = vsel %vm726_vm0, %v4484_v48, %v4485_v54  ;;  %v4493_v43 = vsel %vm726_vm0, %v4490_v46, %v4492_v55  ;;  %p5963_p7 = pnand %p5962_p6, %p5956_p2 }
 0x3c7   : > { %v5929_v62 = vpop.eup %5928  ;;  %v4488_v60 = vsel %vm726_vm0, %v4485_v54, %v4487_v16 }
 0x3c8   : > { %v4295_v3 = vmul.f32 %v5929_v62, %v7258_v23 }
 0x3c9   : > { %v5931_v9 = vpop.eup %5930 }
 0x3ca   : > { %v5933_v59 = vpop.eup %5932  ;;  %v4293_v10 = vmul.f32 %v5931_v9, %v7261_v14  ;;  %v4520_v24 = vadd.f32 %v4481_v0, %v4295_v3 }
 0x3cb   : > { %v4296_v8 = vmul.f32 %v5933_v59, %v7266_v52 }
 0x3cc   : > { %v5935_v6 = vpop.eup %5934  ;;  %v4518_v58 = vadd.f32 %v4476_v21, %v4293_v10  ;;  %v5302_v23 = vpack.c.bf16 %v4520_v24, %v4520_v24 }
 0x3cd   : > { %v4294_v12 = vmul.f32 %v5935_v6, %v7273_v5  ;;  %v5337_v13 = vpack.c.bf16 %v4296_v8, %v4295_v3  ;;  %v4521_v11 = vadd.f32 %v4483_v1, %v4296_v8  ;;  %v5937_v14 = vpop.eup %5936 }
 0x3ce   : > { %v5300_v2 = vpack.c.bf16 %v4518_v58, %v4518_v58  ;;  %v5939_v34 = vpop.eup %5938  ;;  %v4267_v35 = vadd.f32 1.0, %v5937_v14 }
 0x3cf   : > { %v5332_v18 = vpack.c.bf16 %v4294_v12, %v4293_v10  ;;  %v4519_v53 = vadd.f32 %v4478_v44, %v4294_v12  ;;  %5369 = vst [vmem:[%s7233_s9 + $0x28] sm:$0xff] %v5337_v13   ;;  %v5303_v52 = vpack.c.bf16 %v4521_v11, %v4521_v11  ;;  %v5941_v22 = vpop.eup %5940  ;;  %v4265_v42 = vadd.f32 1.0, %v5939_v34 }
 0x3d0   : > { %4601 = vst.msk [vmem:[%s7233_s9 + $0x28] sm:$0xf] %vm4590_vm2, %v5302_v23  ;;  %v5943_v28 = vpop.eup %5942  ;;  %5944 = vrcp.f32 %v4267_v35  ;;  %v4268_v37 = vadd.f32 1.0, %v5941_v22 }
 0x3d1   : > { %5368 = vst [vmem:[%s7233_s9 + $0x20] sm:$0xff] %v5332_v18   ;;  %v5301_v5 = vpack.c.bf16 %v4519_v53, %v4519_v53  ;;  %4602 = vst.msk [vmem:[%s7233_s9 + $0x2c] sm:$0xf] %vm4590_vm2, %v5303_v52  ;;  %5946 = vrcp.f32 %v4265_v42  ;;  %v4266_v17 = vadd.f32 1.0, %v5943_v28 }
 0x3d2   : > { %4599 = vst.msk [vmem:[%s7233_s9 + $0x20] sm:$0xf] %vm4590_vm2, %v5300_v2  ;;  %5948 = vrcp.f32 %v4268_v37 }
 0x3d3   : > { %4600 = vst.msk [vmem:[%s7233_s9 + $0x24] sm:$0xf] %vm4590_vm2, %v5301_v5  ;;  %5950 = vrcp.f32 %v4266_v17 }
 0x3da   : > { %v5945_v56 = vpop.eup %5944 }
 0x3db   : > { %v5947_v57 = vpop.eup %5946  ;;  %v4299_v25 = vmul.f32 %v5945_v56, %v7286_v32 }
 0x3dc   : > { %v5949_v50 = vpop.eup %5948  ;;  %v4297_v19 = vmul.f32 %v5947_v57, %v7290_v30 }
 0x3dd   : > { %v5951_v49 = vpop.eup %5950  ;;  %v4524_v33 = vadd.f32 %v4491_v47, %v4299_v25  ;;  %v4300_v7 = vmul.f32 %v5949_v50, %v7295_v51 }
 0x3de   : > { %v4522_v61 = vadd.f32 %v4486_v26, %v4297_v19  ;;  %v4298_v32 = vmul.f32 %v5951_v49, %v7299_v27 }
 0x3df   : > { %v5306_v4 = vpack.c.bf16 %v4524_v33, %v4524_v33  ;;  %v5347_v30 = vpack.c.bf16 %v4300_v7, %v4299_v25  ;;  %v4525_v62 = vadd.f32 %v4493_v43, %v4300_v7 }
 0x3e0   : > { %v5304_v0 = vpack.c.bf16 %v4522_v61, %v4522_v61  ;;  %v5342_v9 = vpack.c.bf16 %v4298_v32, %v4297_v19  ;;  %v4523_v3 = vadd.f32 %v4488_v60, %v4298_v32 }
 0x3e1   : > { %5371 = vst [vmem:[%s7233_s9 + $0x38] sm:$0xff] %v5347_v30   ;;  %v5307_v51 = vpack.c.bf16 %v4525_v62, %v4525_v62 }
 0x3e2   : > { %4605 = vst.msk [vmem:[%s7233_s9 + $0x38] sm:$0xf] %vm4590_vm2, %v5306_v4  ;;  %5370 = vst [vmem:[%s7233_s9 + $0x30] sm:$0xff] %v5342_v9   ;;  %v5305_v27 = vpack.c.bf16 %v4523_v3, %v4523_v3 }
 0x3e3   : > { %4606 = vst.msk [vmem:[%s7233_s9 + $0x3c] sm:$0xf] %vm4590_vm2, %v5307_v51  ;;  %4603 = vst.msk [vmem:[%s7233_s9 + $0x30] sm:$0xf] %vm4590_vm2, %v5304_v0 }
 0x3e4   : > { %4604 = vst.msk [vmem:[%s7233_s9 + $0x34] sm:$0xf] %vm4590_vm2, %v5305_v27 }
 0x3e5   : > { %5966 = shalt.err (!%p5963_p7)
}
 0x3e6   : > { %s5967_s26 = scalar_lea.hbm %s7345_s17, 1024  ;;  %s5971_s22 = scalar_lea.hbm %s7413_s5, 4096 }
 0x3e7   : > { %p5968_p9 = scmp.ne.s32.totalorder %s7345_s17, %s5967_s26  ;;  %p5972_p12 = scmp.lt.u32.totalorder %s7345_s17, %s7413_s5 }
 0x3e8   : > { %p5973_p13 = scmp.lt.u32.totalorder %s5971_s22, %s5967_s26  ;;  %p5975_p1 = scmp.lt.u32.totalorder %s5967_s26, %s7345_s17 }
 0x3e9   : > { %p5969_p10 = pnand %p5968_p9, %p6144_p3 }
 0x3ea   : > { %p5974_p0 = por %p5973_p13, %p5972_p12 }
 0x3eb   : > { %p5970_p11 = pneg %p5969_p10 }
 0x3ec   : > { %p5976_p2 = por %p5975_p1, %p5974_p0 }
 0x3ee   : > { %p5977_p4 = pnand %p5976_p2, %p5970_p11 }
 0x3f0   : > { %5980 = shalt.err (!%p5977_p4)
}
 0x3f1   : > { %s6062_s13 = smov 64  }
 0x3f2   : > { %5449 = dma.vmem_to_hbm [thread:$0]  (%p6144_p3), %s7337_s21, 1024, %s7345_s17, %s7355_s10, %s6062_s13, %s6062_s13, %s6052_s12  }
 0x3f3 PF: > { %p5455_p5 = scmp.ge.s32.totalorder %s6047_s25, 2  ;;  %s4639_s27 = sand.u32 1, %s6019_s18  }
 0x3f4   : > { %s4640_s15 = scalar_lea.sflag [#allocation6], %s4639_s27 }
 0x3f5   : > { %p5452_p6 = pnand %p5455_p5, %p6153_p8 }
 0x3f7   : > { %6014 = dma.done.wait (!%p5452_p6), %s4640_s15, 1024  }
 0x3f8   : > { %6016 = vsyncadd (!%p5452_p6), %s4640_s15, 4294966272  ;;  %s18_s25 = sadd.s32 1, %s6047_s25   ;;  %s7444_s18 = smov %s6023_s19 }
 0x3f9   : > { %p15_p7 = scmp.ge.s32.totalorder %s18_s25, 6   ;;  %s7445_s19 = smov %s6027_s20 }
 0x3fa   : > { %s7446_s20 = smov %s6162_s11  ;;  %s7447_s21 = smov %s6039_s23 }
 0x3fb   : > { %s7448_s22 = smov %s6043_s24  ;;  %s7449_s23 = smov %s7452_s28 }
 0x3fc   : > { %s7450_s24 = smov %s7456_s29  ;;  %17 = sbr.rel (!%p15_p7) target bundleno = 5 (0x5), region = 79 }
 0x403   :  { %4645 = vsyncpa [#allocation6], 1 }
 0x404   :  { %4647 = vsyncpa [#allocation6 + $0x1], 1 }

// kernel: tpu_custom_call.1
= control target key start
LH: loop header
LB: loop body
LE: loop exit
PB: predicated region body
PF: predicated region fallthrough
CT: control target
= control target key end

     0   :  { %10 = vsyncpa [#allocation6], 0  ;;  %s7408_s0 = inlined_call_operand.vmem [shape: bf16[2,2,12,18,4], index: 0, kind: input, shape index: {}]   ;;  %s7409_s1 = inlined_call_operand.vmem [shape: bf16[36,2], index: 1, kind: input, shape index: {}]   ;;  %s7410_s2 = inlined_call_operand.vmem [shape: f32[1,2], index: 2, kind: input, shape index: {}]   ;;  %s7411_s3 = inlined_call_operand.vmem [shape: bf16[18,128], index: 3, kind: input, shape index: {}]   ;;  %s7412_s4 = inlined_call_operand.vmem [shape: f32[1,128], index: 4, kind: input, shape index: {}]   ;;  %s7413_s5 = inlined_call_operand.hbm [shape: bf16[2,16,16,128], index: 5, kind: output, shape index: {}]  }
   0x1   :  { %12 = vsyncpa [#allocation6 + $0x1], 0  ;;  %s6093_s18 = smov 0   ;;  %s6095_s19 = smov 0  }
   0x2   :  { %s6097_s20 = smov 0   ;;  %s6099_s21 = smov 0  }
   0x3   :  { %s6101_s22 = smov 0   ;;  %s6103_s23 = smov 0  }
   0x4   :  { %s6105_s24 = smov 0   ;;  %s6107_s25 = smov 0  }
   0x5 LB: > { %s4709_s26 = sadd.s32 4294967295, %s6047_s25   ;;  %s4710_s27 = sadd.s32 4294967294, %s6047_s25   ;;  %s6047_s25 = sphi %s6107_s25, %s18_s25   ;;  %s6043_s24 = sphi %s6105_s24, %s7450_s24   ;;  %s6039_s23 = sphi %s6103_s23, %s7449_s23   ;;  %s6035_s22 = sphi %s6101_s22, %s7448_s22   ;;  %s6031_s21 = sphi %s6099_s21, %s7447_s21   ;;  %s6027_s20 = sphi %s6097_s20, %s7446_s20   ;;  %s6023_s19 = sphi %s6095_s19, %s7445_s19   ;;  %s6019_s18 = sphi %s6093_s18, %s7444_s18  }
   0x6   : > { %s27_s28 = sadd.s32 1, %s6039_s23  ;;  %s30_s29 = sadd.s32 1, %s6043_s24 }
   0x7   : > { %p28_p0 = scmp.ge.s32.totalorder %s27_s28, 2  ;;  %p161_p1 = scmp.ne.s32.totalorder %s6027_s20, %s6023_s19 }
   0x8   : > { %p162_p2 = scmp.eq.s32.totalorder %s4709_s26, 3  ;;  %p167_p5 = scmp.ne.s32.totalorder %s6023_s19, %s6019_s18 }
   0x9   : > { %s7452_s28 = smov (%p28_p0, %s27_s28), 0  ;;  %s7454_s29 = smov (!%p28_p0, %s30_s29), %s6043_s24 }
   0xa   : > { %s147_s30 = ssub.s32 %s6039_s23, %s7452_s28  ;;  %p6144_p3 = por %p162_p2, %p161_p1 }
   0xb   : > { %p32_p4 = scmp.ge.s32.totalorder %s7454_s29, 2  ;;  %p168_p6 = scmp.eq.s32.totalorder %s4710_s27, 3 }
   0xc   : > { %p4713_p7 = scmp.ge.s32.totalorder %s6047_s25, 1  ;;  %p210_p9 = scmp.lt.s32.totalorder %s6047_s25, 5 }
   0xd   : > { %s7456_s29 = smov (%p32_p4, %s7454_s29), 0  ;;  %p6153_p8 = por %p168_p6, %p167_p5 }
   0xe   : > { %s146_s8 = ssub.s32 %s6043_s24, %s7456_s29  ;;  %s151_s9 = sadd.s32 1, %s6027_s20 }
   0xf   : > { %s148_s10 = sor.u32 %s147_s30, %s146_s8  ;;  %p211_p10 = pnand %p4713_p7, %p210_p9 }
  0x10   : > { %p149_p11 = scmp.eq.s32.totalorder %s148_s10, 0  ;;  %p242_p12 = scmp.lt.s32.totalorder (!%p211_p10), %s6035_s22, 1  ;;  %vm726_vm0 = vcmask (!%p211_p10), 1046528   ;;  %vm454_vm1 = vsmask.f32 (!%p211_p10), 7424  ;;  %vm333_vm2 = vcmask (!%p211_p10), 31744  }
  0x11   : > { %214 = sbr.rel (%p211_p10) target bundleno = 1011 (0x3f3), region = 40  ;;  %p244_p13 = scmp.lt.s32.totalorder (!%p211_p10), %s6031_s21, 1  ;;  %vm605_vm3 = vcmask (!%p211_p10), 64544   ;;  %vm787_vm4 = vcmask (!%p211_p10), 97344   ;;  %vm899_vm5 = vcmask (!%p211_p10), 130144   ;;  %vm1170_vm6 = vcmask (!%p211_p10), 162944  }
  0x12   : > { %s6162_s11 = scalar_select %p149_p11, %s6027_s20, %s151_s9  }
  0x13   : > { %s6049_s8 = smov (!%p211_p10), 12   ;;  %s6050_s9 = smov (!%p211_p10), 20   ;;  %vm1351_vm7 = vcmask (!%p211_p10), 195744   ;;  %vm1463_vm8 = vcmask (!%p211_p10), 228544   ;;  %vm1734_vm9 = vcmask (!%p211_p10), 261344   ;;  %vm1915_vm10 = vcmask (!%p211_p10), 294144  }
  0x14   : > { %s6051_s10 = smov (!%p211_p10), 8   ;;  %vm1994_vm11 = vcmask (!%p211_p10), 1041408   ;;  %vm1963_vm12 = vcmask (!%p211_p10), 293888   ;;  %vm2323_vm13 = vcmask (!%p211_p10), 8192   ;;  %vm2324_vm14 = vsmask.f32 (!%p211_p10), 256 }
  0x15   : > { %vm6579_vm15 = vmand (!%p211_p10), %vm2323_vm13, %vm2324_vm14  ;;  %s6058_s26 = smov (!%p211_p10), 10   ;;  %s6059_s27 = smov (!%p211_p10), 2  }
  0x18   : > { %s243_s12 = scalar_select %p242_p12, %s6035_s22, 1 }
  0x19   : > { %s245_s13 = scalar_select %p244_p13, %s6031_s21, 1 }
  0x1a   : > { %s5448_s14 = smul.u32 72, %s243_s12  ;;  %s6052_s12 = smov 4  }
  0x1b   : > { %s5447_s15 = smul.u32 36, %s245_s13  ;;  %s6053_s13 = smov 16  }
  0x1d   : > { %s248_s16 = sadd.s32 %s5448_s14, %s5447_s15  ;;  %s6054_s14 = smov 24  }
  0x1e   : > { %s4715_s17 = sshll.u32 %s248_s16, 2  ;;  %s6055_s15 = smov 28  }
  0x1f   : > { %s6171_s30 = scalar_lea.vmem %s7408_s0, %s4715_s17  ;;  %s6056_s16 = smov 32  }
  0x20   : > { %v5533_v0 = vld [vmem:[%s6171_s30 + $0x18] sm:$0xff]   ;;  %v5534_v1 = vld [vmem:[%s6171_s30 + $0xc] sm:$0xff]   ;;  %v5536_v3 = vld [vmem:[%s6171_s30 + $0x14] ss:$0 sps:$4 sm:$0x11]   ;;  %s6057_s17 = smov 6  }
  0x21   : > { %871 = vrot.lane.b32.xlu1 %v5533_v0, %s6049_s8  ;;  %869 = vrot.lane.b32.xlu0 %v5534_v1, %s6049_s8  ;;  %v5535_v2 = vld [vmem:[%s6171_s30 + $0xc] sm:$0xfe]   ;;  %v5541_v4 = vld [vmem:[%s6171_s30] sm:$0xff]   ;;  %v1292_v6 = vrot.slane %v5536_v3, 1 }
  0x22   : > { %v1291_v5 = vrot.slane %v5535_v2, 1  ;;  %v5537_v7 = vld [vmem:[%s6171_s30] sm:$0xfe]   ;;  %v5538_v8 = vld [vmem:[%s6171_s30 + $0x8] ss:$0 sps:$4 sm:$0x11]  }
  0x23   : > { %v456_v9 = vshrl.u32 %v5541_v4, 16  ;;  %v727_v11 = vrot.slane %v5537_v7, 1  ;;  %v5539_v12 = vld [vmem:[%s6171_s30 + $0xc] sm:$0xfe]   ;;  %v458_v13 = vshll.u32 %v5541_v4, 16  ;;  %v728_v14 = vrot.slane %v5538_v8, 1 }
  0x24   : > { %v1293_v10 = vsel %vm726_vm0, %v1291_v5, %v1292_v6  ;;  %v5540_v15 = vld [vmem:[%s6171_s30 + $0x14] ss:$0 sps:$4 sm:$0x11]   ;;  %v730_v16 = vrot.slane %v5539_v12, 1  ;;  %v5543_v21 = vld [vmem:[%s6171_s30 + $0x18] sm:$0xfe]  }
  0x25   : > { %1321 = vrot.lane.b32.xlu0 %v1293_v10, %s6050_s9  ;;  %v460_v17 = vrot.slane %v458_v13, 1  ;;  %v729_v18 = vsel %vm726_vm0, %v727_v11, %v728_v14  ;;  %v731_v19 = vrot.slane %v5540_v15, 1  ;;  %v5542_v20 = vld [vmem:[%s6171_s30 + $0x8] ss:$0 sps:$4 sm:$0x11]   ;;  %v1294_v26 = vrot.slane %v5543_v21, 1 }
  0x26   : > { %757 = vrot.lane.b32.xlu1 %v729_v18, %s6051_s10  ;;  %v463_v24 = vshll.u32 %v5542_v20, 16  ;;  %v5544_v25 = vld [vmem:[%s6171_s30 + $0x20] ss:$0 sps:$4 sm:$0x11]   ;;  %v5545_v27 = vld [vmem:[%s6171_s30 + $0xc] sm:$0xff]   ;;  %v5547_v31 = vld [vmem:[%s6171_s30 + $0x18] sm:$0xff]  }
  0x27   : > { %v732_v22 = vsel %vm726_vm0, %v730_v16, %v731_v19  ;;  %v461_v23 = vor.u32 %v460_v17, %v456_v9  ;;  %v1295_v29 = vrot.slane %v5544_v25, 1  ;;  %v5546_v30 = vld [vmem:[%s6171_s30 + $0x14] ss:$0 sps:$4 sm:$0x11]   ;;  %v468_v32 = vshrl.u32 %v5545_v27, 16  ;;  %v5549_v41 = vld [vmem:[%s6171_s30 + $0xc] sm:$0xff]  }
  0x28   : > { %v465_v28 = vrot.slane %v463_v24, 1  ;;  %v470_v33 = vshll.u32 %v5545_v27, 16  ;;  %v475_v36 = vshll.u32 %v5546_v30, 16  ;;  %v5548_v37 = vld [vmem:[%s6171_s30 + $0x20] ss:$0 sps:$4 sm:$0x11]  }
  0x29   : > { %v1296_v35 = vsel %vm726_vm0, %v1294_v26, %v1295_v29  ;;  %v1033_v39 = vshrl.u32 %v5547_v31, 16  ;;  %v1035_v40 = vshll.u32 %v5547_v31, 16  ;;  %v1040_v43 = vshll.u32 %v5548_v37, 16  ;;  %v5550_v46 = vld [vmem:[%s6171_s30 + $0x14] ss:$0 sps:$4 sm:$0x11]  }
  0x2a   : > { %759 = vrot.lane.b32.xlu1 %v732_v22, %s6051_s10  ;;  %v466_v34 = vsel %vm454_vm1, %v461_v23, %v465_v28  ;;  %v472_v38 = vrot.slane %v470_v33, 1  ;;  %v477_v42 = vrot.slane %v475_v36, 1  ;;  %v1021_v47 = vshrl.u32 %v5549_v41, 16  ;;  %v5552_v54 = vld [vmem:[%s6171_s30 + $0x24] sm:$0xff]   ;;  %v5553_v58 = vld [vmem:[%s6171_s30 + $0x18] sm:$0xff]  }
  0x2b   : > { %575 = vrot.lane.b32.xlu0 %v466_v34, %s6052_s12  ;;  %v1037_v45 = vrot.slane %v1035_v40, 1  ;;  %v1023_v48 = vshll.u32 %v5549_v41, 16  ;;  %v1042_v49 = vrot.slane %v1040_v43, 1  ;;  %v1028_v53 = vshll.u32 %v5550_v46, 16  ;;  %v5551_v59 = vld [vmem:[%s6171_s30 + $0x18] sm:$0xff]   ;;  %v5555_v61 = vld [vmem:[%s6171_s30 + $0x24] sm:$0xff]  }
  0x2c   : > { %v473_v44 = vor.u32 %v472_v38, %v468_v32  ;;  %v5554_v60 = vld [vmem:[%s6171_s30 + $0x20] ss:$0 sps:$4 sm:$0x11]   ;;  %v1585_v63 = vshrl.u32 %v5553_v58, 16  ;;  %v1587_v0 = vshll.u32 %v5553_v58, 16  ;;  %v1597_v3 = vshrl.u32 %v5555_v61, 16 }
  0x2d   : > { %v1038_v51 = vor.u32 %v1037_v45, %v1033_v39  ;;  %v1025_v52 = vrot.slane %v1023_v48, 1  ;;  %v1030_v57 = vrot.slane %v1028_v53, 1  ;;  %v1592_v1 = vshll.u32 %v5554_v60, 16  ;;  %v5556_v2 = vld [vmem:[%s6171_s30 + $0x2c] ss:$0 sps:$4 sm:$0x11]  }
  0x2e   : > { %1323 = vrot.lane.b32.xlu1 %v1296_v35, %s6050_s9  ;;  %v478_v50 = vsel %vm454_vm1, %v473_v44, %v477_v42  ;;  %v1599_v4 = vshll.u32 %v5555_v61, 16  ;;  %v1589_v5 = vrot.slane %v1587_v0, 1  ;;  %v5559_v6 = vld [vmem:[%s6171_s30 + $0x18] sm:$0xff]   ;;  %v1604_v9 = vshll.u32 %v5556_v2, 16  ;;  %v5563_v11 = vld [vmem:[%s6171_s30 + $0x24] sm:$0xff]   ;;  %v5570_v58 = vld [vmem:[%s6171_s30 + $0x30] sm:$0xff]  }
  0x2f   : > { %577 = vrot.lane.b32.xlu0 %v478_v50, %s6052_s12  ;;  %v1043_v55 = vsel %vm454_vm1, %v1038_v51, %v1042_v49  ;;  %v1026_v56 = vor.u32 %v1025_v52, %v1021_v47  ;;  %v1594_v7 = vrot.slane %v1592_v1, 1  ;;  %v5557_v10 = vld [vmem:[%s6171_s30 + $0x18] sm:$0xfe]   ;;  %v5558_v13 = vld [vmem:[%s6171_s30 + $0x20] ss:$0 sps:$4 sm:$0x11]  }
  0x30   : > { %v1601_v8 = vrot.slane %v1599_v4, 1  ;;  %v1590_v12 = vor.u32 %v1589_v5, %v1585_v63  ;;  %v480_v14 = vshrl.u32 %v5559_v6, 16  ;;  %v1606_v16 = vrot.slane %v1604_v9, 1  ;;  %v5560_v20 = vld [vmem:[%s6171_s30 + $0x20] ss:$0 sps:$4 sm:$0x11]  }
  0x31   : > { %v1031_v62 = vsel %vm454_vm1, %v1026_v56, %v1030_v57  ;;  %v1855_v17 = vrot.slane %v5557_v10, 1  ;;  %v1856_v19 = vrot.slane %v5558_v13, 1  ;;  %v482_v21 = vshll.u32 %v5559_v6, 16  ;;  %v5561_v26 = vld [vmem:[%s6171_s30 + $0x24] sm:$0xfe]   ;;  %v5573_v50 = vld [vmem:[%s6171_s30 + $0x30] sm:$0xff]  }
  0x32   : > { %1142 = vrot.lane.b32.xlu1 %v1043_v55, %s6053_s13  ;;  %v1602_v15 = vor.u32 %v1601_v8, %v1597_v3  ;;  %v1595_v18 = vsel %vm454_vm1, %v1590_v12, %v1594_v7  ;;  %v492_v22 = vshrl.u32 %v5563_v11, 16  ;;  %v487_v25 = vshll.u32 %v5560_v20, 16  ;;  %v5562_v27 = vld [vmem:[%s6171_s30 + $0x2c] ss:$0 sps:$4 sm:$0x11]   ;;  %v5571_v47 = vld [vmem:[%s6171_s30 + $0x24] sm:$0xff]  }
  0x33   : > { %1140 = vrot.lane.b32.xlu0 %v1031_v62, %s6053_s13  ;;  %v484_v24 = vrot.slane %v482_v21, 1  ;;  %v494_v28 = vshll.u32 %v5563_v11, 16  ;;  %v1857_v29 = vsel %vm726_vm0, %v1855_v17, %v1856_v19  ;;  %v1858_v32 = vrot.slane %v5561_v26, 1  ;;  %v5564_v34 = vld [vmem:[%s6171_s30 + $0x2c] ss:$0 sps:$4 sm:$0x11]  }
  0x34   : > { %v1607_v23 = vsel %vm454_vm1, %v1602_v15, %v1606_v16  ;;  %v489_v31 = vrot.slane %v487_v25, 1  ;;  %v1859_v33 = vrot.slane %v5562_v27, 1  ;;  %v5565_v37 = vld [vmem:[%s6171_s30 + $0x18] sm:$0xfe]   ;;  %v499_v39 = vshll.u32 %v5564_v34, 16  ;;  %v5581_v16 = vld [vmem:[%s6171_s30 + $0x30] sm:$0xff]  }
  0x35   : > { %v485_v30 = vor.u32 %v484_v24, %v480_v14  ;;  %v496_v35 = vrot.slane %v494_v28, 1  ;;  %v5566_v40 = vld [vmem:[%s6171_s30 + $0x20] ss:$0 sps:$4 sm:$0x11]   ;;  %v733_v42 = vrot.slane %v5565_v37, 1  ;;  %v1045_v53 = vshrl.u32 %v5571_v47, 16 }
  0x36   : > { %1435 = vrot.lane.b32.xlu1 %v5552_v54, %s6054_s14  ;;  %v1860_v41 = vsel %vm726_vm0, %v1858_v32, %v1859_v33  ;;  %v501_v43 = vrot.slane %v499_v39, 1  ;;  %v734_v44 = vrot.slane %v5566_v40, 1  ;;  %v5567_v45 = vld [vmem:[%s6171_s30 + $0x24] sm:$0xfe]   ;;  %v1047_v56 = vshll.u32 %v5571_v47, 16  ;;  %v5583_v21 = vld [vmem:[%s6171_s30 + $0x3c] sm:$0xff]  }
  0x37   : > { %1433 = vrot.lane.b32.xlu0 %v5551_v59, %s6054_s14  ;;  %v490_v36 = vsel %vm454_vm1, %v485_v30, %v489_v31  ;;  %v497_v38 = vor.u32 %v496_v35, %v492_v22  ;;  %v5568_v46 = vld [vmem:[%s6171_s30 + $0x2c] ss:$0 sps:$4 sm:$0x11]   ;;  %v736_v49 = vrot.slane %v5567_v45, 1  ;;  %v5569_v54 = vld [vmem:[%s6171_s30 + $0x24] sm:$0xff]   ;;  %v1057_v62 = vshrl.u32 %v5573_v50, 16 }
  0x38   : > { %v735_v51 = vsel %vm726_vm0, %v733_v42, %v734_v44  ;;  %v737_v52 = vrot.slane %v5568_v46, 1  ;;  %v5572_v55 = vld [vmem:[%s6171_s30 + $0x2c] ss:$0 sps:$4 sm:$0x11]   ;;  %v1049_v59 = vrot.slane %v1047_v56, 1  ;;  %v1059_v63 = vshll.u32 %v5573_v50, 16 }
  0x39   : > { %v502_v48 = vsel %vm454_vm1, %v497_v38, %v501_v43  ;;  %v1052_v60 = vshll.u32 %v5572_v55, 16  ;;  %v5574_v61 = vld [vmem:[%s6171_s30 + $0x38] ss:$0 sps:$4 sm:$0x11]   ;;  %v5575_v3 = vld [vmem:[%s6171_s30 + $0x24] sm:$0xfe]  }
  0x3a   : > { %1706 = vrot.lane.b32.xlu1 %v1607_v23, %s6055_s15  ;;  %v738_v57 = vsel %vm726_vm0, %v736_v49, %v737_v52  ;;  %v1050_v0 = vor.u32 %v1049_v59, %v1045_v53  ;;  %v1064_v2 = vshll.u32 %v5574_v61, 16  ;;  %v1061_v4 = vrot.slane %v1059_v63, 1  ;;  %v5576_v5 = vld [vmem:[%s6171_s30 + $0x2c] ss:$0 sps:$4 sm:$0x11]   ;;  %v5579_v23 = vld [vmem:[%s6171_s30 + $0x30] sm:$0xff]  }
  0x3b   : > { %1704 = vrot.lane.b32.xlu0 %v1595_v18, %s6055_s15  ;;  %v1054_v1 = vrot.slane %v1052_v60, 1  ;;  %v1297_v7 = vrot.slane %v5575_v3, 1  ;;  %v1298_v10 = vrot.slane %v5576_v5, 1  ;;  %v5577_v11 = vld [vmem:[%s6171_s30 + $0x30] sm:$0xfe]   ;;  %v1609_v19 = vshrl.u32 %v5581_v16, 16 }
  0x3c   : > { %v1066_v6 = vrot.slane %v1064_v2, 1  ;;  %v1062_v9 = vor.u32 %v1061_v4, %v1057_v62  ;;  %v5578_v12 = vld [vmem:[%s6171_s30 + $0x38] ss:$0 sps:$4 sm:$0x11]   ;;  %v1300_v14 = vrot.slane %v5577_v11, 1  ;;  %v1611_v20 = vshll.u32 %v5581_v16, 16 }
  0x3d   : > { %v1055_v8 = vsel %vm454_vm1, %v1050_v0, %v1054_v1  ;;  %v1301_v15 = vrot.slane %v5578_v12, 1  ;;  %v1299_v17 = vsel %vm726_vm0, %v1297_v7, %v1298_v10  ;;  %v5582_v18 = vld [vmem:[%s6171_s30 + $0x38] ss:$0 sps:$4 sm:$0x11]   ;;  %v5580_v24 = vld [vmem:[%s6171_s30 + $0x3c] sm:$0xff]   ;;  %v1621_v28 = vshrl.u32 %v5583_v21, 16 }
  0x3e   : > { %579 = vrot.lane.b32.xlu1 %v490_v36, %s6052_s12  ;;  %v1067_v13 = vsel %vm454_vm1, %v1062_v9, %v1066_v6  ;;  %v1613_v25 = vrot.slane %v1611_v20, 1  ;;  %v1616_v26 = vshll.u32 %v5582_v18, 16  ;;  %v5584_v27 = vld [vmem:[%s6171_s30 + $0x44] ss:$0 sps:$4 sm:$0x11]   ;;  %v5587_v30 = vld [vmem:[%s6171_s30 + $0x30] sm:$0xff]  }
  0x3f   : > { %1885 = vrot.lane.b32.xlu0 %v1857_v29, %s6056_s16  ;;  %v1302_v22 = vsel %vm726_vm0, %v1300_v14, %v1301_v15  ;;  %v1623_v29 = vshll.u32 %v5583_v21, 16  ;;  %v1628_v33 = vshll.u32 %v5584_v27, 16  ;;  %v5585_v34 = vld [vmem:[%s6171_s30 + $0x30] sm:$0xfe]   ;;  %v504_v42 = vshrl.u32 %v5587_v30, 16  ;;  %v5591_v50 = vld [vmem:[%s6171_s30 + $0x3c] sm:$0xff]  }
  0x40   : > { %v1614_v31 = vor.u32 %v1613_v25, %v1609_v19  ;;  %v1618_v32 = vrot.slane %v1616_v26, 1  ;;  %v5586_v36 = vld [vmem:[%s6171_s30 + $0x38] ss:$0 sps:$4 sm:$0x11]   ;;  %v1861_v38 = vrot.slane %v5585_v34, 1  ;;  %v506_v43 = vshll.u32 %v5587_v30, 16 }
  0x41   : > { %v1625_v35 = vrot.slane %v1623_v29, 1  ;;  %v1630_v37 = vrot.slane %v1628_v33, 1  ;;  %v1862_v40 = vrot.slane %v5586_v36, 1  ;;  %v5590_v49 = vld [vmem:[%s6171_s30 + $0x44] ss:$0 sps:$4 sm:$0x11]  }
  0x42   : > { %581 = vrot.lane.b32.xlu1 %v502_v48, %s6052_s12  ;;  %v1619_v44 = vsel %vm454_vm1, %v1614_v31, %v1618_v32  ;;  %v508_v46 = vrot.slane %v506_v43, 1  ;;  %v5589_v48 = vld [vmem:[%s6171_s30 + $0x3c] sm:$0xfe]   ;;  %v1865_v55 = vrot.slane %v5590_v49, 1  ;;  %v5593_v60 = vld [vmem:[%s6171_s30 + $0x30] sm:$0xfe]  }
  0x43   : > { %1887 = vrot.lane.b32.xlu0 %v1860_v41, %s6056_s16  ;;  %v1626_v39 = vor.u32 %v1625_v35, %v1621_v28  ;;  %v5588_v41 = vld [vmem:[%s6171_s30 + $0x38] ss:$0 sps:$4 sm:$0x11]   ;;  %v1864_v53 = vrot.slane %v5589_v48, 1  ;;  %v739_v0 = vrot.slane %v5593_v60, 1  ;;  %v5599_v7 = vld [vmem:[%s6171_s30 + $0x3c] sm:$0xff]  }
  0x44   : > { %v511_v47 = vshll.u32 %v5588_v41, 16  ;;  %v5592_v56 = vld [vmem:[%s6171_s30 + $0x44] ss:$0 sps:$4 sm:$0x11]   ;;  %v5595_v5 = vld [vmem:[%s6171_s30 + $0x3c] sm:$0xfe]  }
  0x45   : > { %v1631_v45 = vsel %vm454_vm1, %v1626_v39, %v1630_v37  ;;  %v523_v62 = vshll.u32 %v5592_v56, 16  ;;  %v5594_v63 = vld [vmem:[%s6171_s30 + $0x38] ss:$0 sps:$4 sm:$0x11]   ;;  %v1866_v1 = vsel %vm726_vm0, %v1864_v53, %v1865_v55  ;;  %v742_v9 = vrot.slane %v5595_v5, 1  ;;  %v5601_v10 = vld [vmem:[%s6171_s30 + $0x48] sm:$0xff]  }
  0x46   : > { %763 = vrot.lane.b32.xlu1 %v738_v57, %s6051_s10  ;;  %v513_v52 = vrot.slane %v511_v47, 1  ;;  %v516_v57 = vshrl.u32 %v5591_v50, 16  ;;  %v740_v4 = vrot.slane %v5594_v63, 1  ;;  %v5596_v6 = vld [vmem:[%s6171_s30 + $0x44] ss:$0 sps:$4 sm:$0x11]  }
  0x47   : > { %761 = vrot.lane.b32.xlu0 %v735_v51, %s6051_s10  ;;  %v509_v51 = vor.u32 %v508_v46, %v504_v42  ;;  %v525_v3 = vrot.slane %v523_v62, 1  ;;  %v743_v11 = vrot.slane %v5596_v6, 1  ;;  %v1069_v12 = vshrl.u32 %v5599_v7, 16  ;;  %v5597_v19 = vld [vmem:[%s6171_s30 + $0x3c] sm:$0xff]   ;;  %v5598_v21 = vld [vmem:[%s6171_s30 + $0x48] sm:$0xff]   ;;  %v5611_v48 = vld [vmem:[%s6171_s30 + $0x54] sm:$0xff]  }
  0x48   : > { %v1071_v14 = vshll.u32 %v5599_v7, 16  ;;  %v1081_v15 = vshrl.u32 %v5601_v10, 16  ;;  %v1083_v18 = vshll.u32 %v5601_v10, 16  ;;  %v5603_v29 = vld [vmem:[%s6171_s30 + $0x3c] sm:$0xfe]   ;;  %v5609_v31 = vld [vmem:[%s6171_s30 + $0x48] sm:$0xff]  }
  0x49   : > { %v514_v59 = vsel %vm454_vm1, %v509_v51, %v513_v52  ;;  %v744_v16 = vsel %vm726_vm0, %v742_v9, %v743_v11  ;;  %v5604_v30 = vld [vmem:[%s6171_s30 + $0x44] ss:$0 sps:$4 sm:$0x11]   ;;  %v1303_v33 = vrot.slane %v5603_v29, 1  ;;  %v5605_v34 = vld [vmem:[%s6171_s30 + $0x48] sm:$0xfe]  }
  0x4a   : > { %875 = vrot.lane.b32.xlu1 %v5570_v58, %s6049_s8  ;;  %v518_v58 = vshll.u32 %v5591_v50, 16  ;;  %v1073_v20 = vrot.slane %v1071_v14, 1  ;;  %v1304_v36 = vrot.slane %v5604_v30, 1  ;;  %v5606_v37 = vld [vmem:[%s6171_s30 + $0x50] ss:$0 sps:$4 sm:$0x11]  }
  0x4b   : > { %873 = vrot.lane.b32.xlu0 %v5569_v54, %s6049_s8  ;;  %v1863_v54 = vsel %vm726_vm0, %v1861_v38, %v1862_v40  ;;  %v1306_v39 = vrot.slane %v5605_v34, 1  ;;  %v1633_v40 = vshrl.u32 %v5609_v31, 16  ;;  %v1307_v41 = vrot.slane %v5606_v37, 1  ;;  %v5607_v47 = vld [vmem:[%s6171_s30 + $0x48] sm:$0xff]   ;;  %v5608_v50 = vld [vmem:[%s6171_s30 + $0x54] sm:$0xff]  }
  0x4c   : > { %v520_v61 = vrot.slane %v518_v58, 1  ;;  %v1074_v25 = vor.u32 %v1073_v20, %v1069_v12  ;;  %v1635_v42 = vshll.u32 %v5609_v31, 16  ;;  %v1305_v43 = vsel %vm726_vm0, %v1303_v33, %v1304_v36  ;;  %v5612_v49 = vld [vmem:[%s6171_s30 + $0x5c] ss:$0 sps:$4 sm:$0x11]   ;;  %v5615_v55 = vld [vmem:[%s6171_s30 + $0x48] sm:$0xff]  }
  0x4d   : > { %v1308_v46 = vsel %vm726_vm0, %v1306_v39, %v1307_v41  ;;  %v1645_v52 = vshrl.u32 %v5611_v48, 16  ;;  %v1647_v53 = vshll.u32 %v5611_v48, 16  ;;  %v5613_v58 = vld [vmem:[%s6171_s30 + $0x48] sm:$0xfe]   ;;  %v5617_v6 = vld [vmem:[%s6171_s30 + $0x54] sm:$0xfe]  }
  0x4e   : > { %1146 = vrot.lane.b32.xlu1 %v1067_v13, %s6053_s13  ;;  %v521_v2 = vor.u32 %v520_v61, %v516_v57  ;;  %v741_v13 = vsel %vm726_vm0, %v739_v0, %v740_v4  ;;  %v1867_v62 = vrot.slane %v5613_v58, 1  ;;  %v528_v0 = vshrl.u32 %v5615_v55, 16  ;;  %v5618_v10 = vld [vmem:[%s6171_s30 + $0x5c] ss:$0 sps:$4 sm:$0x11]   ;;  %v5627_v31 = vld [vmem:[%s6171_s30 + $0x54] sm:$0xff]  }
  0x4f   : > { %1144 = vrot.lane.b32.xlu0 %v1055_v8, %s6053_s13  ;;  %v1649_v60 = vrot.slane %v1647_v53, 1  ;;  %v530_v4 = vshll.u32 %v5615_v55, 16  ;;  %v1870_v12 = vrot.slane %v5617_v6, 1  ;;  %v5624_v30 = vld [vmem:[%s6171_s30 + $0x5c] ss:$0 sps:$4 sm:$0x11]  }
  0x50   : > { %v526_v8 = vsel %vm454_vm1, %v521_v2, %v525_v3  ;;  %v5616_v3 = vld [vmem:[%s6171_s30 + $0x50] ss:$0 sps:$4 sm:$0x11]   ;;  %v5629_v33 = vld [vmem:[%s6171_s30 + $0x60] sm:$0xff]   ;;  %v1093_v36 = vshrl.u32 %v5627_v31, 16  ;;  %v1095_v39 = vshll.u32 %v5627_v31, 16 }
  0x51   : > { %v1650_v2 = vor.u32 %v1649_v60, %v1645_v52  ;;  %v535_v9 = vshll.u32 %v5616_v3, 16  ;;  %v1105_v41 = vshrl.u32 %v5629_v33, 16  ;;  %v5631_v52 = vld [vmem:[%s6171_s30 + $0x54] sm:$0xfe]   ;;  %v5637_v55 = vld [vmem:[%s6171_s30 + $0x60] sm:$0xff]   ;;  %v5639_v3 = vld [vmem:[%s6171_s30 + $0x6c] sm:$0xff]  }
  0x52   : > { %1327 = vrot.lane.b32.xlu1 %v1302_v22, %s6050_s9  ;;  %v5634_v60 = vld [vmem:[%s6171_s30 + $0x68] ss:$0 sps:$4 sm:$0x11]  }
  0x53   : > { %1325 = vrot.lane.b32.xlu0 %v1299_v17, %s6050_s9  ;;  %v5600_v17 = vld [vmem:[%s6171_s30 + $0x44] ss:$0 sps:$4 sm:$0x11]   ;;  %v5645_v31 = vld [vmem:[%s6171_s30 + $0x68] ss:$0 sps:$4 sm:$0x11]  }
  0x54   : > { %v1076_v22 = vshll.u32 %v5600_v17, 16 }
  0x56   : > { %1439 = vrot.lane.b32.xlu1 %v5580_v24, %s6054_s14  ;;  %v1085_v24 = vrot.slane %v1083_v18, 1  ;;  %v1078_v26 = vrot.slane %v1076_v22, 1  ;;  %v5620_v18 = vld [vmem:[%s6171_s30 + $0x5c] ss:$0 sps:$4 sm:$0x11]  }
  0x57   : > { %1437 = vrot.lane.b32.xlu0 %v5579_v23, %s6054_s14  ;;  %v5602_v23 = vld [vmem:[%s6171_s30 + $0x50] ss:$0 sps:$4 sm:$0x11]  }
  0x58   : > { %v1086_v27 = vor.u32 %v1085_v24, %v1081_v15  ;;  %v1088_v28 = vshll.u32 %v5602_v23, 16  ;;  %v1079_v35 = vsel %vm454_vm1, %v1074_v25, %v1078_v26  ;;  %v537_v15 = vrot.slane %v535_v9, 1  ;;  %v5622_v24 = vld [vmem:[%s6171_s30 + $0x50] ss:$0 sps:$4 sm:$0x11]  }
  0x59   : > { %v547_v23 = vshll.u32 %v5620_v18, 16  ;;  %v5623_v26 = vld [vmem:[%s6171_s30 + $0x54] sm:$0xfe]   ;;  %v746_v29 = vrot.slane %v5622_v24, 1 }
  0x5a   : > { %1710 = vrot.lane.b32.xlu1 %v1631_v45, %s6055_s15  ;;  %v1090_v32 = vrot.slane %v1088_v28, 1  ;;  %v1637_v45 = vrot.slane %v1635_v42, 1  ;;  %v1107_v42 = vshll.u32 %v5629_v33, 16  ;;  %v5646_v33 = vld [vmem:[%s6171_s30 + $0xc] sm:$0xff]  }
  0x5b   : > { %1708 = vrot.lane.b32.xlu0 %v1619_v44, %s6055_s15  ;;  %v5610_v44 = vld [vmem:[%s6171_s30 + $0x50] ss:$0 sps:$4 sm:$0x11]   ;;  %v549_v28 = vrot.slane %v547_v23, 1  ;;  %335 = vst.msk [vmem:[#allocation3 + $0x8] sm:$0xff] %vm333_vm2, %v5646_v33 }
  0x5c   : > { %v1091_v38 = vsel %vm454_vm1, %v1086_v27, %v1090_v32  ;;  %v1640_v51 = vshll.u32 %v5610_v44, 16  ;;  %v1638_v56 = vor.u32 %v1637_v45, %v1633_v40  ;;  %v748_v32 = vrot.slane %v5623_v26, 1 }
  0x5d   : > { %v1097_v44 = vrot.slane %v1095_v39, 1  ;;  %v1109_v48 = vrot.slane %v1107_v42, 1  ;;  %v5647_v39 = vld [vmem:[%s6171_s30 + $0x6c] sm:$0xfe]  }
  0x5e   : > { %583 = vrot.lane.b32.xlu1 %v514_v59, %s6052_s12  ;;  %v1642_v57 = vrot.slane %v1640_v51, 1  ;;  %v5614_v59 = vld [vmem:[%s6171_s30 + $0x50] ss:$0 sps:$4 sm:$0x11]  }
  0x5f   : > { %1889 = vrot.lane.b32.xlu0 %v1863_v54, %s6056_s16  ;;  %v1652_v54 = vshll.u32 %v5612_v49, 16  ;;  %v1868_v63 = vrot.slane %v5614_v59, 1  ;;  %v1098_v49 = vor.u32 %v1097_v44, %v1093_v36  ;;  %v1110_v53 = vor.u32 %v1109_v48, %v1105_v41  ;;  %v5633_v59 = vld [vmem:[%s6171_s30 + $0x60] sm:$0xfe]   ;;  %v5649_v41 = vld [vmem:[%s6171_s30 + $0x6c] sm:$0xff]  }
  0x60   : > { %v1643_v5 = vsel %vm454_vm1, %v1638_v56, %v1642_v57  ;;  %v1309_v57 = vrot.slane %v5631_v52, 1  ;;  %v564_v48 = vshrl.u32 %v5649_v41, 16 }
  0x61   : > { %v1654_v61 = vrot.slane %v1652_v54, 1  ;;  %v1869_v17 = vsel %vm726_vm0, %v1867_v62, %v1868_v63  ;;  %v5632_v54 = vld [vmem:[%s6171_s30 + $0x5c] ss:$0 sps:$4 sm:$0x11]   ;;  %v1312_v63 = vrot.slane %v5633_v59, 1 }
  0x62   : > { %585 = vrot.lane.b32.xlu1 %v526_v8, %s6052_s12  ;;  %v532_v8 = vrot.slane %v530_v4, 1  ;;  %v1310_v58 = vrot.slane %v5632_v54, 1 }
  0x63   : > { %1891 = vrot.lane.b32.xlu0 %v1866_v1, %s6056_s16  ;;  %v5619_v1 = vld [vmem:[%s6171_s30 + $0x54] sm:$0xff]   ;;  %v1655_v7 = vsel %vm454_vm1, %v1650_v2, %v1654_v61  ;;  %v5638_v2 = vld [vmem:[%s6171_s30 + $0x68] ss:$0 sps:$4 sm:$0x11]  }
  0x64   : > { %v540_v11 = vshrl.u32 %v5619_v1, 16  ;;  %v533_v14 = vor.u32 %v532_v8, %v528_v0  ;;  %v1313_v0 = vrot.slane %v5634_v60, 1  ;;  %v1311_v4 = vsel %vm726_vm0, %v1309_v57, %v1310_v58 }
  0x66   : > { %767 = vrot.lane.b32.xlu1 %v744_v16, %s6051_s10  ;;  %v1871_v16 = vrot.slane %v5618_v10, 1  ;;  %v538_v20 = vsel %vm454_vm1, %v533_v14, %v537_v15  ;;  %v1314_v9 = vsel %vm726_vm0, %v1312_v63, %v1313_v0  ;;  %v5635_v10 = vld [vmem:[%s6171_s30 + $0x60] sm:$0xff]   ;;  %v1671_v14 = vshll.u32 %v5639_v3, 16  ;;  %v5636_v15 = vld [vmem:[%s6171_s30 + $0x6c] sm:$0xff]  }
  0x67   : > { %765 = vrot.lane.b32.xlu0 %v741_v13, %s6051_s10  ;;  %v542_v13 = vshll.u32 %v5619_v1, 16  ;;  %v1659_v1 = vshll.u32 %v5637_v55, 16  ;;  %v5653_v63 = vld [vmem:[%s6171_s30 + $0x6c] sm:$0xfe]  }
  0x68   : > { %v1872_v27 = vsel %vm726_vm0, %v1870_v12, %v1871_v16  ;;  %v5640_v12 = vld [vmem:[%s6171_s30 + $0x74] ss:$0 sps:$4 sm:$0x11]   ;;  %v5641_v16 = vld [vmem:[%s6171_s30] sm:$0xff]   ;;  %v1673_v18 = vrot.slane %v1671_v14, 1 }
  0x69   : > { %v1661_v8 = vrot.slane %v1659_v1, 1  ;;  %334 = vst.msk [vmem:[#allocation3] sm:$0xff] %vm333_vm2, %v5641_v16  ;;  %v5654_v0 = vld [vmem:[%s6171_s30 + $0x74] ss:$0 sps:$4 sm:$0x11]  }
  0x6a   : > { %879 = vrot.lane.b32.xlu1 %v5598_v21, %s6049_s8  ;;  %v5621_v21 = vld [vmem:[%s6171_s30 + $0x48] sm:$0xfe]  }
  0x6b   : > { %877 = vrot.lane.b32.xlu0 %v5597_v19, %s6049_s8  ;;  %v544_v19 = vrot.slane %v542_v13, 1  ;;  %v745_v25 = vrot.slane %v5621_v21, 1  ;;  %v1669_v13 = vshrl.u32 %v5639_v3, 16  ;;  %v754_v3 = vrot.slane %v5653_v63, 1  ;;  %v5681_v63 = vld [vmem:[%s6171_s30 + $0x3c] sm:$0xff]  }
  0x6c   : > { %339 = vst.msk [vmem:[#allocation3 + $0x28] sm:$0xff] %vm333_vm2, %v5681_v63 }
  0x6d   : > { %v545_v22 = vor.u32 %v544_v19, %v540_v11  ;;  %v747_v37 = vsel %vm726_vm0, %v745_v25, %v746_v29  ;;  %v1664_v11 = vshll.u32 %v5638_v2, 16  ;;  %v1676_v19 = vshll.u32 %v5640_v12, 16  ;;  %v5643_v25 = vld [vmem:[%s6171_s30 + $0x68] ss:$0 sps:$4 sm:$0x11]  }
  0x6e   : > { %1150 = vrot.lane.b32.xlu1 %v1091_v38, %s6053_s13  ;;  %v5628_v38 = vld [vmem:[%s6171_s30 + $0x5c] ss:$0 sps:$4 sm:$0x11]   ;;  %v1674_v23 = vor.u32 %v1673_v18, %v1669_v13  ;;  %v5658_v12 = vld [vmem:[%s6171_s30 + $0x74] ss:$0 sps:$4 sm:$0x11]  }
  0x6f   : > { %1148 = vrot.lane.b32.xlu0 %v1079_v35, %s6053_s13  ;;  %v550_v34 = vsel %vm454_vm1, %v545_v22, %v549_v28  ;;  %v749_v35 = vrot.slane %v5624_v30, 1  ;;  %v1100_v45 = vshll.u32 %v5628_v38, 16  ;;  %v5642_v22 = vld [vmem:[%s6171_s30 + $0x60] sm:$0xfe]   ;;  %v1678_v24 = vrot.slane %v1676_v19, 1 }
  0x70   : > { %v1873_v28 = vrot.slane %v5642_v22, 1  ;;  %v1874_v30 = vrot.slane %v5643_v25, 1  ;;  %v1124_v16 = vshll.u32 %v5658_v12, 16  ;;  %v5661_v22 = vld [vmem:[%s7409_s1] sm:$0xff]  }
  0x71   : > { %v750_v40 = vsel %vm726_vm0, %v748_v32, %v749_v35  ;;  %v1679_v35 = vsel %vm454_vm1, %v1674_v23, %v1678_v24  ;;  %5399 = vmatprep.subr.bf16.mxu0 %v5661_v22 }
  0x72   : > { %1331 = vrot.lane.b32.xlu1 %v1308_v46, %s6050_s9  ;;  %v5630_v46 = vld [vmem:[%s6171_s30 + $0x68] ss:$0 sps:$4 sm:$0x11]   ;;  %v1875_v42 = vsel %vm726_vm0, %v1873_v28, %v1874_v30  ;;  %v1126_v23 = vrot.slane %v1124_v16, 1  ;;  %v5663_v28 = vld [vmem:[%s6171_s30 + $0x6c] sm:$0xfe]   ;;  %5400 = vmatpush3.bf16.msra.mxu0 %v5661_v22 }
  0x73   : > { %1329 = vrot.lane.b32.xlu0 %v1305_v43, %s6050_s9  ;;  %v5625_v43 = vld [vmem:[%s6171_s30 + $0x54] sm:$0xff]   ;;  %v1112_v51 = vshll.u32 %v5630_v46, 16  ;;  %v1876_v46 = vrot.slane %v5647_v39, 1 }
  0x74   : > { %v5665_v39 = vld [vmem:[%s6171_s30 + $0x78] sm:$0xfe]  }
  0x75   : > { %v1114_v56 = vrot.slane %v1112_v51, 1  ;;  %v5650_v51 = vld [vmem:[%s6171_s30 + $0x74] ss:$0 sps:$4 sm:$0x11]  }
  0x76   : > { %1443 = vrot.lane.b32.xlu1 %v5608_v50, %s6054_s14  ;;  %v1102_v50 = vrot.slane %v1100_v45, 1  ;;  %v571_v54 = vshll.u32 %v5650_v51, 16  ;;  %v5672_v51 = vld [vmem:[%s6171_s30 + $0x78] sm:$0xff]  }
  0x77   : > { %1441 = vrot.lane.b32.xlu0 %v5607_v47, %s6054_s14  ;;  %v5626_v47 = vld [vmem:[%s6171_s30 + $0x60] sm:$0xff]   ;;  %v1115_v62 = vsel %vm454_vm1, %v1110_v53, %v1114_v56  ;;  %v5652_v56 = vld [vmem:[%s6171_s30 + $0x68] ss:$0 sps:$4 sm:$0x11]  }
  0x78   : > { %v1103_v61 = vsel %vm454_vm1, %v1098_v49, %v1102_v50  ;;  %v566_v49 = vshll.u32 %v5649_v41, 16  ;;  %v573_v60 = vrot.slane %v571_v54, 1  ;;  %v5668_v41 = vld [vmem:[%s6171_s30 + $0x24] sm:$0xff]  }
  0x79   : > { %337 = vst.msk [vmem:[#allocation3 + $0x18] sm:$0xff] %vm333_vm2, %v5668_v41 }
  0x7a   : > { %1714 = vrot.lane.b32.xlu1 %v1655_v7, %s6055_s15  ;;  %v1657_v7 = vshrl.u32 %v5637_v55, 16  ;;  %v568_v53 = vrot.slane %v566_v49, 1  ;;  %v5651_v55 = vld [vmem:[%s6171_s30 + $0x60] sm:$0xfe]  }
  0x7b   : > { %1712 = vrot.lane.b32.xlu0 %v1643_v5, %s6055_s15  ;;  %v5670_v49 = vld [vmem:[%s6171_s30 + $0x84] sm:$0xff]  }
  0x7c   : > { %v1662_v21 = vor.u32 %v1661_v8, %v1657_v7  ;;  %v569_v58 = vor.u32 %v568_v53, %v564_v48  ;;  %v5655_v8 = vld [vmem:[%s6171_s30 + $0x6c] sm:$0xff]   ;;  %v5673_v53 = vld [vmem:[%s6171_s30 + $0x80] ss:$0 sps:$4 sm:$0x11]  }
  0x7e   : > { %587 = vrot.lane.b32.xlu1 %v538_v20, %s6052_s12  ;;  %v5644_v20 = vld [vmem:[%s6171_s30 + $0x60] sm:$0xff]   ;;  %v574_v1 = vsel %vm454_vm1, %v569_v58, %v573_v60  ;;  %v1688_v58 = vshll.u32 %v5673_v53, 16  ;;  %v5675_v60 = vld [vmem:[%s6171_s30 + $0x8c] ss:$0 sps:$4 sm:$0x11]  }
  0x7f   : > { %1893 = vrot.lane.b32.xlu0 %v1869_v17, %s6056_s16  ;;  %v1666_v17 = vrot.slane %v1664_v11, 1  ;;  %v552_v29 = vshrl.u32 %v5644_v20, 16  ;;  %v554_v32 = vshll.u32 %v5644_v20, 16  ;;  %v5656_v11 = vld [vmem:[%s6171_s30 + $0x78] sm:$0xff]  }
  0x81   : > { %v556_v36 = vrot.slane %v554_v32, 1  ;;  %v5664_v32 = vld [vmem:[%s6171_s30 + $0x74] ss:$0 sps:$4 sm:$0x11]  }
  0x82   : > { %589 = vrot.lane.b32.xlu1 %v550_v34, %s6052_s12  ;;  %v1667_v34 = vsel %vm454_vm1, %v1662_v21, %v1666_v17  ;;  %v5660_v17 = vld [vmem:[%s6171_s30 + $0x80] ss:$0 sps:$4 sm:$0x11]  }
  0x83   : > { %1895 = vrot.lane.b32.xlu0 %v1872_v27, %s6056_s16  ;;  %v1136_v25 = vshll.u32 %v5660_v17, 16  ;;  %v5679_v17 = vld [vmem:[%s6171_s30 + $0x8c] ss:$0 sps:$4 sm:$0x11]  }
  0x86   : > { %771 = vrot.lane.b32.xlu1 %v750_v40, %s6051_s10  ;;  %v5648_v40 = vld [vmem:[%s6171_s30 + $0x74] ss:$0 sps:$4 sm:$0x11]  }
  0x87   : > { %769 = vrot.lane.b32.xlu0 %v747_v37, %s6051_s10  ;;  %v559_v37 = vshll.u32 %v5645_v31, 16  ;;  %v1138_v31 = vrot.slane %v1136_v25, 1  ;;  %v1883_v25 = vrot.slane %v5679_v17, 1 }
  0x89   : > { %v561_v44 = vrot.slane %v559_v37, 1 }
  0x8a   : > { %883 = vrot.lane.b32.xlu1 %v5626_v47, %s6049_s8  ;;  %v1877_v47 = vrot.slane %v5648_v40, 1  ;;  %v5666_v40 = vld [vmem:[%s6171_s30 + $0x80] ss:$0 sps:$4 sm:$0x11]  }
  0x8b   : > { %881 = vrot.lane.b32.xlu0 %v5625_v43, %s6049_s8  ;;  %v557_v43 = vor.u32 %v556_v36, %v552_v29  ;;  %v5667_v36 = vld [vmem:[%s7409_s1 + $0x8] sm:$0xff]  }
  0x8c   : > { %v1878_v57 = vsel %vm726_vm0, %v1876_v46, %v1877_v47  ;;  %5401 = vmatprep.subr.bf16.mxu0 %v5667_v36  ;;  %v5669_v47 = vld [vmem:[%s6171_s30 + $0x78] sm:$0xff]  }
  0x8d   : > { %v562_v50 = vsel %vm454_vm1, %v557_v43, %v561_v44  ;;  %v1318_v43 = vrot.slane %v5665_v39, 1  ;;  %v1319_v44 = vrot.slane %v5666_v40, 1  ;;  %5402 = vmatpush3.bf16.msra.mxu0 %v5667_v36 }
  0x8e   : > { %1154 = vrot.lane.b32.xlu1 %v1115_v62, %s6053_s13  ;;  %v752_v62 = vrot.slane %v5652_v56, 1  ;;  %v1683_v56 = vshll.u32 %v5672_v51, 16 }
  0x8f   : > { %1152 = vrot.lane.b32.xlu0 %v1103_v61, %s6053_s13  ;;  %v751_v61 = vrot.slane %v5651_v55, 1  ;;  %v1320_v48 = vsel %vm726_vm0, %v1318_v43, %v1319_v44  ;;  %v1681_v55 = vshrl.u32 %v5672_v51, 16 }
  0x92   : > { %1335 = vrot.lane.b32.xlu1 %v1314_v9, %s6050_s9  ;;  %v5657_v9 = vld [vmem:[%s6171_s30 + $0x6c] sm:$0xff]  }
  0x93   : > { %v6377_v5 = vpop.permute.xlu1 %871  ;;  %v6379_v6 = vpop.permute.xlu0 %869  ;;  %1333 = vrot.lane.b32.xlu0 %v1311_v4, %s6050_s9  ;;  %v753_v4 = vsel %vm726_vm0, %v751_v61, %v752_v62  ;;  %v1117_v14 = vshrl.u32 %v5657_v9, 16  ;;  %v5680_v61 = vld [vmem:[%s6171_s30 + $0x30] sm:$0xff]   ;;  %v1685_v62 = vrot.slane %v1683_v56, 1 }
  0x94   : > { %338 = vst.msk [vmem:[#allocation3 + $0x20] sm:$0xff] %vm333_vm2, %v5680_v61 }
  0x96   : > { %1447 = vrot.lane.b32.xlu1 %v5636_v15, %s6054_s14  ;;  %v1119_v15 = vshll.u32 %v5657_v9, 16  ;;  %v5677_v9 = vld [vmem:[%s6171_s30 + $0x80] ss:$0 sps:$4 sm:$0x11]  }
  0x97   : > { %v6392_v26 = vpop.permute.xlu0 %1321  ;;  %1445 = vrot.lane.b32.xlu0 %v5635_v10, %s6054_s14 }
  0x98   : > { %v758_v27 = vpop.permute.xlu1 %757  ;;  %v1121_v21 = vrot.slane %v1119_v15, 1  ;;  %v5678_v15 = vld [vmem:[%s6171_s30 + $0x84] sm:$0xfe]  }
  0x99   : > { %v1882_v22 = vrot.slane %v5678_v15, 1 }
  0x9a   : > { %1718 = vrot.lane.b32.xlu1 %v1679_v35, %s6055_s15  ;;  %v1315_v35 = vrot.slane %v5663_v28, 1  ;;  %v5684_v28 = vld [vmem:[%s6171_s30 + $0x60] sm:$0xff]  }
  0x9b   : > { %1716 = vrot.lane.b32.xlu0 %v1667_v34, %s6055_s15  ;;  %342 = vst.msk [vmem:[#allocation3 + $0x40] sm:$0xff] %vm333_vm2, %v5684_v28 }
  0x9c   : > { %v760_v38 = vpop.permute.xlu1 %759 }
  0x9d   : > { %v576_v45 = vpop.permute.xlu0 %575 }
  0x9e   : > { %606 = vst.msk [vmem:[#allocation3] sm:$0xff] %vm605_vm3, %v576_v45  ;;  %591 = vrot.lane.b32.xlu1 %v562_v50, %s6052_s12  ;;  %v5671_v50 = vld [vmem:[%s7409_s1 + $0x10] ss:$0 sps:$4 sm:$0x33]  }
  0x9f   : > { %788 = vst.msk [vmem:[#allocation3] sm:$0xff] %vm787_vm4, %v758_v27  ;;  %1897 = vrot.lane.b32.xlu0 %v1875_v42, %s6056_s16  ;;  %v1122_v27 = vor.u32 %v1121_v21, %v1117_v14  ;;  %5445 = vmatprep.subr.msk.bf16.mxu0 %vm1994_vm11, %v5671_v50  ;;  %v1880_v14 = vrot.slane %v5677_v9, 1 }
  0xa0   : > { %v1324_v52 = vpop.permute.xlu1 %1323  ;;  %900 = vst.msk [vmem:[#allocation3] sm:$0xff] %vm899_vm5, %v6379_v6  ;;  %v755_v6 = vrot.slane %v5654_v0, 1  ;;  %v1690_v0 = vrot.slane %v1688_v58, 1 }
  0xa1   : > { %v578_v59 = vpop.permute.xlu0 %577  ;;  %v1127_v34 = vsel %vm454_vm1, %v1122_v27, %v1126_v23  ;;  %v1884_v27 = vsel %vm726_vm0, %v1882_v22, %v1883_v25 }
  0xa2   : > { %607 = vst.msk [vmem:[#allocation3 + $0x8] sm:$0xff] %vm605_vm3, %v578_v59  ;;  %593 = vrot.lane.b32.xlu1 %v574_v1, %s6052_s12  ;;  %v756_v10 = vsel %vm726_vm0, %v754_v3, %v755_v6  ;;  %v5674_v59 = vld [vmem:[%s6171_s30 + $0x84] sm:$0xff]   ;;  %v1700_v3 = vshll.u32 %v5675_v60, 16 }
  0xa3   : > { %789 = vst.msk [vmem:[#allocation3 + $0x8] sm:$0xff] %vm787_vm4, %v760_v38  ;;  %1899 = vrot.lane.b32.xlu0 %v1878_v57, %s6056_s16  ;;  %v1316_v38 = vrot.slane %v5664_v32, 1  ;;  %v1693_v1 = vshrl.u32 %v5674_v59, 16 }
  0xa4   : > { %v1143_v2 = vpop.permute.xlu1 %1142  ;;  %901 = vst.msk [vmem:[#allocation3 + $0x8] sm:$0xff] %vm899_vm5, %v6377_v5  ;;  %v5659_v5 = vld [vmem:[%s6171_s30 + $0x78] sm:$0xff]   ;;  %v1702_v12 = vrot.slane %v1700_v3, 1 }
  0xa5   : > { %1172 = vst.msk [vmem:[#allocation3 + $0x8] sm:$0xff] %vm1170_vm6, %v1143_v2  ;;  %v1141_v7 = vpop.permute.xlu0 %1140  ;;  %v1129_v18 = vshrl.u32 %v5659_v5, 16  ;;  %v1131_v19 = vshll.u32 %v5659_v5, 16  ;;  %v1317_v42 = vsel %vm726_vm0, %v1315_v35, %v1316_v38  ;;  %v1695_v2 = vshll.u32 %v5674_v59, 16 }
  0xa6   : > { %1171 = vst.msk [vmem:[#allocation3] sm:$0xff] %vm1170_vm6, %v1141_v7  ;;  %775 = vrot.lane.b32.xlu1 %v756_v10, %s6051_s10  ;;  %v1686_v7 = vor.u32 %v1685_v62, %v1681_v55 }
  0xa7   : > { %1353 = vst.msk [vmem:[#allocation3 + $0x8] sm:$0xff] %vm1351_vm7, %v1324_v52  ;;  %773 = vrot.lane.b32.xlu0 %v753_v4, %s6051_s10  ;;  %1352 = vst.msk [vmem:[#allocation3] sm:$0xff] %vm1351_vm7, %v6392_v26  ;;  %v1133_v24 = vrot.slane %v1131_v19, 1  ;;  %v5662_v26 = vld [vmem:[%s6171_s30 + $0x18] sm:$0xff]   ;;  %v1996_v52 = vsel %vm1994_vm11, %v5671_v50, 0 }
  0xa8   : > { %v1436_v13 = vpop.permute.xlu1 %1435  ;;  %336 = vst.msk [vmem:[#allocation3 + $0x10] sm:$0xff] %vm333_vm2, %v5662_v26  ;;  %5404 = vmatpush3.bf16.msra.mxu0 %v1996_v52  ;;  %v1691_v5 = vsel %vm454_vm1, %v1686_v7, %v1690_v0  ;;  %v5683_v26 = vld [vmem:[%s6171_s30 + $0x54] sm:$0xff]   ;;  %vm2438_vm11 = vsmask.f32 4368 }
  0xa9   : > { %1465 = vst.msk [vmem:[#allocation3 + $0x8] sm:$0xff] %vm1463_vm8, %v1436_v13  ;;  %v1434_v20 = vpop.permute.xlu0 %1433  ;;  %v1134_v30 = vor.u32 %v1133_v24, %v1129_v18  ;;  %v5682_v18 = vld [vmem:[%s6171_s30 + $0x48] sm:$0xff]  }
  0xaa   : > { %1464 = vst.msk [vmem:[#allocation3] sm:$0xff] %vm1463_vm8, %v1434_v20  ;;  %887 = vrot.lane.b32.xlu1 %v5656_v11, %s6049_s8  ;;  %v1697_v11 = vrot.slane %v1695_v2, 1 }
  0xab   : > { %885 = vrot.lane.b32.xlu0 %v5655_v8, %s6049_s8  ;;  %v1139_v37 = vsel %vm454_vm1, %v1134_v30, %v1138_v31  ;;  %v5676_v8 = vld [vmem:[%s6171_s30 + $0x78] sm:$0xfe]   ;;  %340 = vst.msk [vmem:[#allocation3 + $0x30] sm:$0xff] %vm333_vm2, %v5682_v18  ;;  %341 = vst.msk [vmem:[#allocation3 + $0x38] sm:$0xff] %vm333_vm2, %v5683_v26  ;;  %v5685_v30 = vld [vmem:[%s6171_s30 + $0x6c] sm:$0xff]  }
  0xac   : > { %v1707_v29 = vpop.permute.xlu1 %1706  ;;  %v1879_v13 = vrot.slane %v5676_v8, 1  ;;  %v1698_v16 = vor.u32 %v1697_v11, %v1693_v1  ;;  %343 = vst.msk [vmem:[#allocation3 + $0x48] sm:$0xff] %vm333_vm2, %v5685_v30  ;;  %vm2356_vm2 = vsmask.f32 7938 }
  0xad   : > { %v1705_v33 = vpop.permute.xlu0 %1704  ;;  %1736 = vst.msk [vmem:[#allocation3 + $0x8] sm:$0xff] %vm1734_vm9, %v1707_v29 }
  0xae   : > { %1735 = vst.msk [vmem:[#allocation3] sm:$0xff] %vm1734_vm9, %v1705_v33  ;;  %1158 = vrot.lane.b32.xlu1 %v1139_v37, %s6053_s13  ;;  %v1881_v21 = vsel %vm726_vm0, %v1879_v13, %v1880_v14  ;;  %v1703_v23 = vsel %vm454_vm1, %v1698_v16, %v1702_v12 }
  0xaf   : > { %1156 = vrot.lane.b32.xlu0 %v1127_v34, %s6053_s13 }
  0xb0   : > { %v580_v46 = vpop.permute.xlu1 %579 }
  0xb1   : > { %v1886_v45 = vpop.permute.xlu0 %1885  ;;  %608 = vst.msk [vmem:[#allocation3 + $0x10] sm:$0xff] %vm605_vm3, %v580_v46 }
  0xb2   : > { %1916 = vst.msk [vmem:[#allocation3] sm:$0xff] %vm1915_vm10, %v1886_v45  ;;  %1339 = vrot.lane.b32.xlu1 %v1320_v48, %s6050_s9 }
  0xb3   : > { %1337 = vrot.lane.b32.xlu0 %v1317_v42, %s6050_s9  ;;  %s6060_s9 = smov 14  }
  0xb4   : > { %v582_v57 = vpop.permute.xlu1 %581 }
  0xb5   : > { %v1888_v54 = vpop.permute.xlu0 %1887  ;;  %609 = vst.msk [vmem:[#allocation3 + $0x18] sm:$0xff] %vm605_vm3, %v582_v57 }
  0xb6   : > { %1917 = vst.msk [vmem:[#allocation3 + $0x8] sm:$0xff] %vm1915_vm10, %v1888_v54  ;;  %1451 = vrot.lane.b32.xlu1 %v5670_v49, %s6054_s14 }
  0xb7   : > { %1449 = vrot.lane.b32.xlu0 %v5669_v47, %s6054_s14 }
  0xb8   : > { %v764_v10 = vpop.permute.xlu1 %763 }
  0xb9   : > { %v762_v4 = vpop.permute.xlu0 %761  ;;  %v1926_v6 = vld [vmem:[#allocation3] sm:$0xff]  ;;  %791 = vst.msk [vmem:[#allocation3 + $0x18] sm:$0xff] %vm787_vm4, %v764_v10 }
  0xba   : > { %790 = vst.msk [vmem:[#allocation3 + $0x10] sm:$0xff] %vm787_vm4, %v762_v4  ;;  %5405 = vmatprep.mubr.msk.bf16.mxu0 %vm1963_vm12, %v1926_v6  ;;  %1722 = vrot.lane.b32.xlu1 %v1703_v23, %s6055_s15 }
  0xbb   : > { %1720 = vrot.lane.b32.xlu0 %v1691_v5, %s6055_s15  ;;  %s5040_s15 = sshll.u32 %s6031_s21, 3 }
  0xbc   : > { %v876_v24 = vpop.permute.xlu1 %875 }
  0xbd   : > { %v874_v19 = vpop.permute.xlu0 %873  ;;  %v1927_v20 = vld [vmem:[#allocation3 + $0x8] sm:$0xff]  ;;  %903 = vst.msk [vmem:[#allocation3 + $0x18] sm:$0xff] %vm899_vm5, %v876_v24 }
  0xbe   : > { %902 = vst.msk [vmem:[#allocation3 + $0x10] sm:$0xff] %vm899_vm5, %v874_v19  ;;  %5406 = vmatmul.mubr.msk.bf16.vlgmr.msra.gmra.mrb[0].mxu0 %vm1963_vm12, %v1927_v20  ;;  %1903 = vrot.lane.b32.xlu1 %v1884_v27, %s6056_s16 }
  0xbf   : > { %1901 = vrot.lane.b32.xlu0 %v1881_v21, %s6056_s16  ;;  %s5041_s16 = sadd.s32 4294967295, %s5040_s15  ;;  %s5308_s15 = sshll.u32 %s6031_s21, 4 }
  0xc0   : > { %v1147_v31 = vpop.permute.xlu1 %1146 }
  0xc1   : > { %v1145_v29 = vpop.permute.xlu0 %1144  ;;  %1174 = vst.msk [vmem:[#allocation3 + $0x18] sm:$0xff] %vm1170_vm6, %v1147_v31 }
  0xc2   : > { %1173 = vst.msk [vmem:[#allocation3 + $0x10] sm:$0xff] %vm1170_vm6, %v1145_v29  ;;  %v2329_v29 = vld [vmem:[#allocation2 + $0xc] sm:$0x1] }
  0xc3   : > { %v2330_v31 = vsel %vm6579_vm15, 0, %v2329_v29 }
  0xc4   : > { %v1328_v33 = vpop.permute.xlu1 %1327  ;;  %2331 = vst [vmem:[#allocation2 + $0xc] sm:$0x1] %v2330_v31 }
  0xc5   : > { %v1326_v32 = vpop.permute.xlu0 %1325  ;;  %1355 = vst.msk [vmem:[#allocation3 + $0x18] sm:$0xff] %vm1351_vm7, %v1328_v33 }
  0xc6   : > { %1354 = vst.msk [vmem:[#allocation3 + $0x10] sm:$0xff] %vm1351_vm7, %v1326_v32 }
  0xc8   : > { %v1440_v35 = vpop.permute.xlu1 %1439 }
  0xc9   : > { %v1438_v34 = vpop.permute.xlu0 %1437  ;;  %1467 = vst.msk [vmem:[#allocation3 + $0x18] sm:$0xff] %vm1463_vm8, %v1440_v35 }
  0xca   : > { %1466 = vst.msk [vmem:[#allocation3 + $0x10] sm:$0xff] %vm1463_vm8, %v1438_v34  ;;  %v2326_v34 = vld [vmem:[#allocation2] sm:$0x1] }
  0xcb   : > { %v2327_v35 = vsel %vm6579_vm15, 0, %v2326_v34 }
  0xcc   : > { %v1711_v37 = vpop.permute.xlu1 %1710  ;;  %2328 = vst [vmem:[#allocation2] sm:$0x1] %v2327_v35 }
  0xcd   : > { %v1709_v36 = vpop.permute.xlu0 %1708  ;;  %1738 = vst.msk [vmem:[#allocation3 + $0x18] sm:$0xff] %vm1734_vm9, %v1711_v37 }
  0xce   : > { %1737 = vst.msk [vmem:[#allocation3 + $0x10] sm:$0xff] %vm1734_vm9, %v1709_v36  ;;  %v2361_v36 = vld [vmem:[#allocation2 + $0x14] sm:$0x1] }
  0xd0   : > { %v584_v39 = vpop.permute.xlu1 %583 }
  0xd1   : > { %v1890_v38 = vpop.permute.xlu0 %1889  ;;  %610 = vst.msk [vmem:[#allocation3 + $0x20] sm:$0xff] %vm605_vm3, %v584_v39 }
  0xd2   : > { %1918 = vst.msk [vmem:[#allocation3 + $0x10] sm:$0xff] %vm1915_vm10, %v1890_v38  ;;  %v2358_v38 = vld [vmem:[#allocation2 + $0x8] sm:$0x1] }
  0xd4   : > { %v586_v41 = vpop.permute.xlu1 %585 }
  0xd5   : > { %v1892_v40 = vpop.permute.xlu0 %1891  ;;  %611 = vst.msk [vmem:[#allocation3 + $0x28] sm:$0xff] %vm605_vm3, %v586_v41 }
  0xd6   : > { %1919 = vst.msk [vmem:[#allocation3 + $0x18] sm:$0xff] %vm1915_vm10, %v1892_v40 }
  0xd8   : > { %v768_v44 = vpop.permute.xlu1 %767 }
  0xd9   : > { %v766_v42 = vpop.permute.xlu0 %765  ;;  %v1928_v43 = vld [vmem:[#allocation3 + $0x10] sm:$0xff]  ;;  %793 = vst.msk [vmem:[#allocation3 + $0x28] sm:$0xff] %vm787_vm4, %v768_v44  ;;  %v2332_v44 = vld [vmem:[#allocation2 + $0x18] sm:$0x1] }
  0xda   : > { %792 = vst.msk [vmem:[#allocation3 + $0x20] sm:$0xff] %vm787_vm4, %v766_v42  ;;  %5409 = vmatprep.mubr.msk.bf16.mxu0 %vm1963_vm12, %v1928_v43  ;;  %v2335_v42 = vld [vmem:[#allocation2 + $0x24] sm:$0x1] }
  0xdb   : > { %v2336_v43 = vsel %vm6579_vm15, 0, %v2335_v42 }
  0xdc   : > { %v880_v47 = vpop.permute.xlu1 %879  ;;  %2337 = vst [vmem:[#allocation2 + $0x24] sm:$0x1] %v2336_v43 }
  0xdd   : > { %v878_v45 = vpop.permute.xlu0 %877  ;;  %v1929_v46 = vld [vmem:[#allocation3 + $0x18] sm:$0xff]  ;;  %905 = vst.msk [vmem:[#allocation3 + $0x28] sm:$0xff] %vm899_vm5, %v880_v47 }
  0xde   : > { %904 = vst.msk [vmem:[#allocation3 + $0x20] sm:$0xff] %vm899_vm5, %v878_v45  ;;  %5410 = vmatmul.mubr.msk.bf16.gmra.mrb[4].mxu0 %vm1963_vm12, %v1929_v46  ;;  %v2333_v45 = vsel %vm6579_vm15, 0, %v2332_v44  ;;  %v2367_v46 = vld [vmem:[#allocation2 + $0x2c] sm:$0x1] }
  0xdf   : > { %2334 = vst [vmem:[#allocation2 + $0x18] sm:$0x1] %v2333_v45 }
  0xe0   : > { %v1151_v49 = vpop.permute.xlu1 %1150 }
  0xe1   : > { %v1149_v48 = vpop.permute.xlu0 %1148  ;;  %1176 = vst.msk [vmem:[#allocation3 + $0x28] sm:$0xff] %vm1170_vm6, %v1151_v49 }
  0xe2   : > { %1175 = vst.msk [vmem:[#allocation3 + $0x20] sm:$0xff] %vm1170_vm6, %v1149_v48  ;;  %v2364_v48 = vld [vmem:[#allocation2 + $0x20] sm:$0x1] }
  0xe4   : > { %v1332_v51 = vpop.permute.xlu1 %1331 }
  0xe5   : > { %v1330_v50 = vpop.permute.xlu0 %1329  ;;  %1357 = vst.msk [vmem:[#allocation3 + $0x28] sm:$0xff] %vm1351_vm7, %v1332_v51 }
  0xe6   : > { %1356 = vst.msk [vmem:[#allocation3 + $0x20] sm:$0xff] %vm1351_vm7, %v1330_v50  ;;  %v2341_v50 = vld [vmem:[#allocation2 + $0x3c] sm:$0x1] }
  0xe7   : > { %v2342_v51 = vsel %vm6579_vm15, 0, %v2341_v50 }
  0xe8   : > { %v1444_v53 = vpop.permute.xlu1 %1443  ;;  %2343 = vst [vmem:[#allocation2 + $0x3c] sm:$0x1] %v2342_v51 }
  0xe9   : > { %v1442_v52 = vpop.permute.xlu0 %1441  ;;  %1469 = vst.msk [vmem:[#allocation3 + $0x28] sm:$0xff] %vm1463_vm8, %v1444_v53 }
  0xea   : > { %1468 = vst.msk [vmem:[#allocation3 + $0x20] sm:$0xff] %vm1463_vm8, %v1442_v52  ;;  %v2338_v52 = vld [vmem:[#allocation2 + $0x30] sm:$0x1] }
  0xeb   : > { %v2339_v53 = vsel %vm6579_vm15, 0, %v2338_v52 }
  0xec   : > { %v1715_v55 = vpop.permute.xlu1 %1714  ;;  %2340 = vst [vmem:[#allocation2 + $0x30] sm:$0x1] %v2339_v53 }
  0xed   : > { %v1713_v54 = vpop.permute.xlu0 %1712  ;;  %1740 = vst.msk [vmem:[#allocation3 + $0x28] sm:$0xff] %vm1734_vm9, %v1715_v55 }
  0xee   : > { %1739 = vst.msk [vmem:[#allocation3 + $0x20] sm:$0xff] %vm1734_vm9, %v1713_v54  ;;  %v2373_v54 = vld [vmem:[#allocation2 + $0x44] sm:$0x1] }
  0xf0   : > { %v588_v57 = vpop.permute.xlu1 %587 }
  0xf1   : > { %v1894_v56 = vpop.permute.xlu0 %1893  ;;  %612 = vst.msk [vmem:[#allocation3 + $0x30] sm:$0xff] %vm605_vm3, %v588_v57 }
  0xf2   : > { %1920 = vst.msk [vmem:[#allocation3 + $0x20] sm:$0xff] %vm1915_vm10, %v1894_v56  ;;  %v2370_v56 = vld [vmem:[#allocation2 + $0x38] sm:$0x1] }
  0xf4   : > { %v590_v59 = vpop.permute.xlu1 %589 }
  0xf5   : > { %v1896_v58 = vpop.permute.xlu0 %1895  ;;  %613 = vst.msk [vmem:[#allocation3 + $0x38] sm:$0xff] %vm605_vm3, %v590_v59 }
  0xf6   : > { %1921 = vst.msk [vmem:[#allocation3 + $0x28] sm:$0xff] %vm1915_vm10, %v1896_v58  ;;  %v6618_v58 = vld [vmem:[%s7410_s2] ss:$0 sm:$0xff] }
  0xf8   : > { %v772_v62 = vpop.permute.xlu1 %771 }
  0xf9   : > { %v770_v60 = vpop.permute.xlu0 %769  ;;  %v1930_v61 = vld [vmem:[#allocation3 + $0x20] sm:$0xff]  ;;  %795 = vst.msk [vmem:[#allocation3 + $0x38] sm:$0xff] %vm787_vm4, %v772_v62 }
  0xfa   : > { %794 = vst.msk [vmem:[#allocation3 + $0x30] sm:$0xff] %vm787_vm4, %v770_v60  ;;  %5413 = vmatprep.mubr.msk.bf16.mxu0 %vm1963_vm12, %v1930_v61 }
  0xfc   : > { %v884_v1 = vpop.permute.xlu1 %883 }
  0xfd   : > { %v882_v63 = vpop.permute.xlu0 %881  ;;  %v1931_v0 = vld [vmem:[#allocation3 + $0x28] sm:$0xff]  ;;  %907 = vst.msk [vmem:[#allocation3 + $0x38] sm:$0xff] %vm899_vm5, %v884_v1 }
  0xfe   : > { %906 = vst.msk [vmem:[#allocation3 + $0x30] sm:$0xff] %vm899_vm5, %v882_v63  ;;  %5414 = vmatmul.mubr.msk.bf16.gmra.mrb[8].mxu0 %vm1963_vm12, %v1931_v0 }
 0x100   : > { %v1155_v3 = vpop.permute.xlu1 %1154 }
 0x101   : > { %v1153_v2 = vpop.permute.xlu0 %1152  ;;  %1178 = vst.msk [vmem:[#allocation3 + $0x38] sm:$0xff] %vm1170_vm6, %v1155_v3  ;;  %v2347_v3 = vld [vmem:[#allocation2 + $0x54] sm:$0x1] }
 0x102   : > { %1177 = vst.msk [vmem:[#allocation3 + $0x30] sm:$0xff] %vm1170_vm6, %v1153_v2 }
 0x104   : > { %v1336_v6 = vpop.permute.xlu1 %1335 }
 0x105   : > { %v1334_v4 = vpop.permute.xlu0 %1333  ;;  %1359 = vst.msk [vmem:[#allocation3 + $0x38] sm:$0xff] %vm1351_vm7, %v1336_v6 }
 0x106   : > { %1358 = vst.msk [vmem:[#allocation3 + $0x30] sm:$0xff] %vm1351_vm7, %v1334_v4 }
 0x108   : > { %v1448_v8 = vpop.permute.xlu1 %1447 }
 0x109   : > { %v1446_v7 = vpop.permute.xlu0 %1445  ;;  %1471 = vst.msk [vmem:[#allocation3 + $0x38] sm:$0xff] %vm1463_vm8, %v1448_v8 }
 0x10a   : > { %1470 = vst.msk [vmem:[#allocation3 + $0x30] sm:$0xff] %vm1463_vm8, %v1446_v7  ;;  %v2348_v7 = vsel %vm6579_vm15, 0, %v2347_v3 }
 0x10b   : > { %2349 = vst [vmem:[#allocation2 + $0x54] sm:$0x1] %v2348_v7 }
 0x10c   : > { %v1719_v10 = vpop.permute.xlu1 %1718 }
 0x10d   : > { %v1717_v9 = vpop.permute.xlu0 %1716  ;;  %1742 = vst.msk [vmem:[#allocation3 + $0x38] sm:$0xff] %vm1734_vm9, %v1719_v10 }
 0x10e   : > { %1741 = vst.msk [vmem:[#allocation3 + $0x30] sm:$0xff] %vm1734_vm9, %v1717_v9 }
 0x110   : > { %v592_v12 = vpop.permute.xlu1 %591 }
 0x111   : > { %v1898_v11 = vpop.permute.xlu0 %1897  ;;  %614 = vst.msk [vmem:[#allocation3 + $0x40] sm:$0xff] %vm605_vm3, %v592_v12 }
 0x112   : > { %1922 = vst.msk [vmem:[#allocation3 + $0x30] sm:$0xff] %vm1915_vm10, %v1898_v11 }
 0x114   : > { %v594_v13 = vpop.permute.xlu1 %593 }
 0x115   : > { %v1900_v5 = vpop.permute.xlu0 %1899  ;;  %615 = vst.msk [vmem:[#allocation3 + $0x48] sm:$0xff] %vm605_vm3, %v594_v13  ;;  %vm6586_vm3 = vmand %vm2323_vm13, %vm2356_vm2  ;;  %v2344_v13 = vld [vmem:[#allocation2 + $0x48] sm:$0x1] }
 0x116   : > { %1923 = vst.msk [vmem:[#allocation3 + $0x38] sm:$0xff] %vm1915_vm10, %v1900_v5  ;;  %v2362_v37 = vsel %vm6586_vm3, 0, %v2361_v36  ;;  %v2359_v39 = vsel %vm6586_vm3, 0, %v2358_v38  ;;  %v2368_v47 = vsel %vm6586_vm3, 0, %v2367_v46  ;;  %v2365_v49 = vsel %vm6586_vm3, 0, %v2364_v48  ;;  %vm6673_vm13 = vmor %vm2324_vm14, %vm2438_vm11 }
 0x117   : > { %2363 = vst [vmem:[#allocation2 + $0x14] sm:$0x1] %v2362_v37  ;;  %2360 = vst [vmem:[#allocation2 + $0x8] sm:$0x1] %v2359_v39  ;;  %v2374_v55 = vsel %vm6586_vm3, 0, %v2373_v54  ;;  %v2371_v57 = vsel %vm6586_vm3, 0, %v2370_v56 }
 0x118   : > { %v776_v16 = vpop.permute.xlu1 %775  ;;  %2369 = vst [vmem:[#allocation2 + $0x2c] sm:$0x1] %v2368_v47  ;;  %2366 = vst [vmem:[#allocation2 + $0x20] sm:$0x1] %v2365_v49 }
 0x119   : > { %v774_v14 = vpop.permute.xlu0 %773  ;;  %v1932_v15 = vld [vmem:[#allocation3 + $0x30] sm:$0xff]  ;;  %797 = vst.msk [vmem:[#allocation3 + $0x48] sm:$0xff] %vm787_vm4, %v776_v16  ;;  %2375 = vst [vmem:[#allocation2 + $0x44] sm:$0x1] %v2374_v55 }
 0x11a   : > { %796 = vst.msk [vmem:[#allocation3 + $0x40] sm:$0xff] %vm787_vm4, %v774_v14  ;;  %5417 = vmatprep.mubr.msk.bf16.mxu0 %vm1963_vm12, %v1932_v15  ;;  %2372 = vst [vmem:[#allocation2 + $0x38] sm:$0x1] %v2371_v57  ;;  %v2345_v14 = vsel %vm6579_vm15, 0, %v2344_v13  ;;  %v2379_v15 = vld [vmem:[#allocation2 + $0x5c] sm:$0x1] }
 0x11b   : > { %2346 = vst [vmem:[#allocation2 + $0x48] sm:$0x1] %v2345_v14  ;;  %v2380_v16 = vsel %vm6586_vm3, 0, %v2379_v15 }
 0x11c   : > { %v888_v19 = vpop.permute.xlu1 %887  ;;  %2381 = vst [vmem:[#allocation2 + $0x5c] sm:$0x1] %v2380_v16 }
 0x11d   : > { %v886_v17 = vpop.permute.xlu0 %885  ;;  %v1933_v18 = vld [vmem:[#allocation3 + $0x38] sm:$0xff]  ;;  %909 = vst.msk [vmem:[#allocation3 + $0x48] sm:$0xff] %vm899_vm5, %v888_v19 }
 0x11e   : > { %908 = vst.msk [vmem:[#allocation3 + $0x40] sm:$0xff] %vm899_vm5, %v886_v17  ;;  %5418 = vmatmul.mubr.msk.bf16.gmra.mrb[12].mxu0 %vm1963_vm12, %v1933_v18  ;;  %v2376_v17 = vld [vmem:[#allocation2 + $0x50] sm:$0x1]  ;;  %v2654_v16 = vld [vmem:[#allocation2 + $0x14] sm:$0x1] }
 0x11f   : > { %v2377_v19 = vsel %vm6586_vm3, 0, %v2376_v17 }
 0x120   : > { %v1159_v21 = vpop.permute.xlu1 %1158  ;;  %2378 = vst [vmem:[#allocation2 + $0x50] sm:$0x1] %v2377_v19 }
 0x121   : > { %v1157_v20 = vpop.permute.xlu0 %1156  ;;  %1180 = vst.msk [vmem:[#allocation3 + $0x48] sm:$0xff] %vm1170_vm6, %v1159_v21 }
 0x122   : > { %1179 = vst.msk [vmem:[#allocation3 + $0x40] sm:$0xff] %vm1170_vm6, %v1157_v20 }
 0x124   : > { %v1340_v23 = vpop.permute.xlu1 %1339 }
 0x125   : > { %v1338_v22 = vpop.permute.xlu0 %1337  ;;  %1361 = vst.msk [vmem:[#allocation3 + $0x48] sm:$0xff] %vm1351_vm7, %v1340_v23 }
 0x126   : > { %1360 = vst.msk [vmem:[#allocation3 + $0x40] sm:$0xff] %vm1351_vm7, %v1338_v22 }
 0x128   : > { %v1452_v25 = vpop.permute.xlu1 %1451 }
 0x129   : > { %v1450_v24 = vpop.permute.xlu0 %1449  ;;  %1473 = vst.msk [vmem:[#allocation3 + $0x48] sm:$0xff] %vm1463_vm8, %v1452_v25  ;;  %v6633_v25 = vstv %s5041_s16  ;;  %s5252_s16 = sshll.u32 %s6035_s22, 5 }
 0x12a   : > { %1472 = vst.msk [vmem:[#allocation3 + $0x40] sm:$0xff] %vm1463_vm8, %v1450_v24  ;;  %vm2243_vm6 = vcmp.ge.s32.totalorder %v6633_v25, 0  ;;  %vm2253_vm7 = vcmp.lt.s32.totalorder %v6633_v25, 16 }
 0x12c   : > { %v1723_v27 = vpop.permute.xlu1 %1722 }
 0x12d   : > { %v1721_v26 = vpop.permute.xlu0 %1720  ;;  %1744 = vst.msk [vmem:[#allocation3 + $0x48] sm:$0xff] %vm1734_vm9, %v1723_v27 }
 0x12e   : > { %1743 = vst.msk [vmem:[#allocation3 + $0x40] sm:$0xff] %vm1734_vm9, %v1721_v26  ;;  %vm6642_vm9 = vmand %vm2243_vm6, %vm2253_vm7  ;;  %vm2777_vm7 = vcmask 15360  }
 0x130   : > { %v1904_v32 = vpop.permute.xlu1 %1903 }
 0x131   : > { %v1902_v28 = vpop.permute.xlu0 %1901  ;;  %1925 = vst.msk [vmem:[#allocation3 + $0x48] sm:$0xff] %vm1915_vm10, %v1904_v32 }
 0x132   : > { %1924 = vst.msk [vmem:[#allocation3 + $0x40] sm:$0xff] %vm1915_vm10, %v1902_v28  ;;  %v2234_v28 = vadd.s32 1, %v6633_v25  ;;  %vm2640_vm10 = vcmask 11264  }
 0x134   : > { %vm2244_vm4 = vcmp.ge.s32.totalorder %v2234_v28, 0  ;;  %vm2254_vm5 = vcmp.lt.s32.totalorder %v2234_v28, 16  ;;  %v2353_v28 = vld [vmem:[#allocation2 + $0x6c] sm:$0x1] }
 0x135   : > { %vm6638_vm8 = vmand %vm2244_vm4, %vm2254_vm5 }
 0x138   : > { %v1935_v41 = vld [vmem:[#allocation3 + $0x48] sm:$0xff] }
 0x139   : > { %v1934_v40 = vld [vmem:[#allocation3 + $0x40] sm:$0xff] }
 0x13a   : > { %5421 = vmatprep.mubr.msk.bf16.mxu0 %vm1963_vm12, %v1934_v40 }
 0x13b   : > { %5422 = vmatmul.mubr.msk.bf16.gmra.mrb[16].mxu0 %vm1963_vm12, %v1935_v41  ;;  %vm6667_vm12 = vmand %vm2640_vm10, %vm2356_vm2 }
 0x191   : > { %v5407_v59 = vpop.f32.mrb[0].mxu0 }
 0x192   : > { %v2041_v60 = vadd.f32 %v5407_v59, %v6618_v58  ;;  %v2032_v61 = vpop.f32.mrb[1].mxu0 }
 0x193   : > { %v2033_v62 = vadd.f32 %v6618_v58, %v2032_v61  ;;  %v5408_v63 = vpop.f32.mrb[2].mxu0 }
 0x194   : > { %v2113_v0 = vsub.f32 0.0, %v2041_v60  ;;  %v2044_v1 = vadd.f32 %v5408_v63, %v6618_v58  ;;  %v2035_v2 = vpop.f32.mrb[3].mxu0 }
 0x195   : > { %v2111_v4 = vsub.f32 0.0, %v2033_v62  ;;  %v2036_v6 = vadd.f32 %v6618_v58, %v2035_v2 }
 0x196   : > { %v2135_v8 = vmul.f32 1.442695, %v2113_v0  ;;  %v2114_v9 = vsub.f32 0.0, %v2044_v1 }
 0x197   : > { %v2131_v10 = vmul.f32 1.442695, %v2111_v4  ;;  %v2112_v11 = vsub.f32 0.0, %v2036_v6  ;;  %v2650_v4 = vld [vmem:[#allocation2 + $0xc] sm:$0xf] }
 0x198   : > { %5808 = vpow2.f32 %v2135_v8  ;;  %v2137_v12 = vmul.f32 1.442695, %v2114_v9 }
 0x199   : > { %5810 = vpow2.f32 %v2131_v10  ;;  %v2133_v5 = vmul.f32 1.442695, %v2112_v11  ;;  %v2642_v11 = vld [vmem:[#allocation2] sm:$0xf] }
 0x19a   : > { %5812 = vpow2.f32 %v2137_v12 }
 0x19b   : > { %5814 = vpow2.f32 %v2133_v5 }
 0x1a2   : > { %v5809_v18 = vpop.eup %5808 }
 0x1a3   : > { %v5811_v20 = vpop.eup %5810  ;;  %v2173_v21 = vadd.f32 1.0, %v5809_v18 }
 0x1a4   : > { %v5813_v22 = vpop.eup %5812  ;;  %v2171_v23 = vadd.f32 1.0, %v5811_v20 }
 0x1a5   : > { %v5815_v24 = vpop.eup %5814  ;;  %5816 = vrcp.f32 %v2173_v21  ;;  %v2174_v26 = vadd.f32 1.0, %v5813_v22  ;;  %v2647_v22 = vld [vmem:[#allocation2 + $0x8] sm:$0x1] }
 0x1a6   : > { %5818 = vrcp.f32 %v2171_v23  ;;  %v2172_v27 = vadd.f32 1.0, %v5815_v24 }
 0x1a7   : > { %5820 = vrcp.f32 %v2174_v26 }
 0x1a8   : > { %5822 = vrcp.f32 %v2172_v27 }
 0x1af   : > { %v5817_v29 = vpop.eup %5816 }
 0x1b0   : > { %v5819_v32 = vpop.eup %5818  ;;  %v2213_v34 = vmul.f32 %v5817_v29, %v2041_v60 }
 0x1b1   : > { %v5821_v36 = vpop.eup %5820  ;;  %v2211_v37 = vmul.f32 %v5819_v32, %v2033_v62  ;;  %v5411_v38 = vpop.f32.mrb[4].mxu0 }
 0x1b2   : > { %v5823_v39 = vpop.eup %5822  ;;  %v2295_v40 = vsel %vm6638_vm8, %v2213_v34, 0.0  ;;  %v2214_v41 = vmul.f32 %v5821_v36, %v2044_v1  ;;  %v6649_v42 = vadd.f32 %v5411_v38, %v6618_v58  ;;  %v2048_v43 = vpop.f32.mrb[5].mxu0  ;;  %v2350_v34 = vld [vmem:[#allocation2 + $0x60] sm:$0x1] }
 0x1b3   : > { %v5258_v44 = vpack.c.bf16 %v2295_v40, %v2295_v40  ;;  %v2293_v45 = vsel %vm6642_vm9, %v2211_v37, 0.0  ;;  %v2212_v46 = vmul.f32 %v5823_v39, %v2036_v6  ;;  %v6654_v47 = vadd.f32 %v6618_v58, %v2048_v43  ;;  %v5412_v48 = vpop.f32.mrb[6].mxu0  ;;  %v2385_v37 = vld [vmem:[#allocation2 + $0x74] sm:$0x1] }
 0x1b4   : > { %v5256_v49 = vpack.c.bf16 %v2293_v45, %v2293_v45  ;;  %v2296_v50 = vsel %vm6638_vm8, %v2214_v41, 0.0  ;;  %v2117_v51 = vsub.f32 0.0, %v6649_v42  ;;  %v6660_v52 = vadd.f32 %v5412_v48, %v6618_v58  ;;  %v2051_v53 = vpop.f32.mrb[7].mxu0 }
 0x1b5   : > { %v2458_v54 = vshrl.u32 %v5258_v44, 16  ;;  %v2461_v55 = vshll.u32 %v5258_v44, 16  ;;  %v5259_v56 = vpack.c.bf16 %v2296_v50, %v2296_v50  ;;  %v2294_v57 = vsel %vm6642_vm9, %v2212_v46, 0.0  ;;  %v2382_v44 = vld [vmem:[#allocation2 + $0x68] sm:$0x1] }
 0x1b6   : > { %v2441_v59 = vshrl.u32 %v5256_v49, 16  ;;  %v2444_v60 = vshll.u32 %v5256_v49, 16  ;;  %v5257_v61 = vpack.c.bf16 %v2294_v57, %v2294_v57  ;;  %v2143_v62 = vmul.f32 1.442695, %v2117_v51 }
 0x1b7   : > { %v2460_v63 = vrot.slane %v2458_v54, 7  ;;  %v2466_v0 = vshrl.u32 %v5259_v56, 16  ;;  %v2469_v1 = vshll.u32 %v5259_v56, 16  ;;  %v2115_v2 = vsub.f32 0.0, %v6654_v47 }
 0x1b8   : > { %v2443_v6 = vrot.slane %v2441_v59, 7  ;;  %v2449_v7 = vshrl.u32 %v5257_v61, 16  ;;  %v2452_v8 = vshll.u32 %v5257_v61, 16  ;;  %5824 = vpow2.f32 %v2143_v62 }
 0x1b9   : > { %v2463_v9 = vor.u32 %v2461_v55, %v2460_v63  ;;  %v2464_v10 = vrot.slane %v2460_v63, 4  ;;  %v2468_v12 = vrot.slane %v2466_v0, 7  ;;  %v2139_v5 = vmul.f32 1.442695, %v2115_v2 }
 0x1ba   : > { %v2446_v13 = vor.u32 %v2444_v60, %v2443_v6  ;;  %v2447_v14 = vrot.slane %v2443_v6, 4  ;;  %v2451_v17 = vrot.slane %v2449_v7, 7  ;;  %v2118_v18 = vsub.f32 0.0, %v6660_v52 }
 0x1bb   : > { %v2651_v19 = vsel %vm6667_vm12, %v2463_v9, %v2650_v4  ;;  %v2471_v20 = vor.u32 %v2469_v1, %v2468_v12  ;;  %v2473_v21 = vrot.slane %v2468_v12, 4  ;;  %5826 = vpow2.f32 %v2139_v5 }
 0x1bc   : > { %2652 = vst [vmem:[#allocation2 + $0xc] sm:$0xf] %v2651_v19  ;;  %v2643_v23 = vsel %vm6667_vm12, %v2446_v13, %v2642_v11  ;;  %v2454_v24 = vor.u32 %v2452_v8, %v2451_v17  ;;  %v2456_v26 = vrot.slane %v2451_v17, 4  ;;  %v2145_v27 = vmul.f32 1.442695, %v2118_v18 }
 0x1bd   : > { %2644 = vst [vmem:[#allocation2] sm:$0xf] %v2643_v23  ;;  %v2472_v29 = vsel %vm6673_vm13, %v2464_v10, %v2471_v20  ;;  %v2655_v31 = vsel %vm6579_vm15, %v2473_v21, %v2654_v16  ;;  %v6687_v32 = vadd.f32 %v6618_v58, %v2051_v53  ;;  %v2354_v39 = vsel %vm6579_vm15, 0, %v2353_v28 }
 0x1be   : > { %2653 = vst.msk [vmem:[#allocation2 + $0x10] sm:$0xf] %vm2640_vm10, %v2472_v29  ;;  %2656 = vst [vmem:[#allocation2 + $0x14] sm:$0x1] %v2655_v31  ;;  %v2455_v35 = vsel %vm6673_vm13, %v2447_v14, %v2454_v24  ;;  %v2648_v36 = vsel %vm6579_vm15, %v2456_v26, %v2647_v22  ;;  %5828 = vpow2.f32 %v2145_v27  ;;  %v2351_v40 = vsel %vm6579_vm15, 0, %v2350_v34 }
 0x1bf   : > { %2646 = vst.msk [vmem:[#allocation2 + $0x4] sm:$0xf] %vm2640_vm10, %v2455_v35  ;;  %2649 = vst [vmem:[#allocation2 + $0x8] sm:$0x1] %v2648_v36  ;;  %v2116_v38 = vsub.f32 0.0, %v6687_v32  ;;  %v2236_v41 = vadd.s32 3, %v6633_v25 }
 0x1c0   : > { %2355 = vst [vmem:[#allocation2 + $0x6c] sm:$0x1] %v2354_v39  ;;  %2352 = vst [vmem:[#allocation2 + $0x60] sm:$0x1] %v2351_v40  ;;  %v2386_v43 = vsel %vm6586_vm3, 0, %v2385_v37  ;;  %v2383_v46 = vsel %vm6586_vm3, 0, %v2382_v44 }
 0x1c1   : > { %v2141_v45 = vmul.f32 1.442695, %v2116_v38  ;;  %2387 = vst [vmem:[#allocation2 + $0x74] sm:$0x1] %v2386_v43  ;;  %2384 = vst [vmem:[#allocation2 + $0x68] sm:$0x1] %v2383_v46 }
 0x1c2   : > { %v5825_v48 = vpop.eup %5824  ;;  %v2235_v50 = vadd.s32 2, %v6633_v25  ;;  %vm2246_vm14 = vcmp.ge.s32.totalorder %v2236_v41, 0  ;;  %vm2256_vm2 = vcmp.lt.s32.totalorder %v2236_v41, 16 }
 0x1c3   : > { %v2177_v49 = vadd.f32 1.0, %v5825_v48  ;;  %5830 = vpow2.f32 %v2141_v45  ;;  %vm6715_vm3 = vmand %vm2246_vm14, %vm2256_vm2 }
 0x1c4   : > { %vm2245_vm4 = vcmp.ge.s32.totalorder %v2235_v50, 0  ;;  %vm2255_vm5 = vcmp.lt.s32.totalorder %v2235_v50, 16 }
 0x1c5   : > { %v5827_v51 = vpop.eup %5826  ;;  %5832 = vrcp.f32 %v2177_v49  ;;  %v5686_v53 = vld [vmem:[#allocation2 + $0xc] sm:$0xff]   ;;  %v5688_v33 = vld [vmem:[#allocation2 + $0x14] ss:$0 sps:$4 sm:$0x11]   ;;  %vm6726_vm6 = vmand %vm2245_vm4, %vm2255_vm5 }
 0x1c6   : > { %v2175_v54 = vadd.f32 1.0, %v5827_v51  ;;  %v5687_v55 = vld [vmem:[#allocation2 + $0xc] sm:$0xfe]   ;;  %3205 = vrot.lane.b32.xlu0 %v5686_v53, %s6057_s17  ;;  %v3095_v0 = vrot.slane %v5688_v33, 1  ;;  %v5693_v11 = vld [vmem:[#allocation2] sm:$0xfe]  }
 0x1c7   : > { %v5691_v56 = vld [vmem:[#allocation2 + $0xc] sm:$0xff]   ;;  %v3094_v60 = vrot.slane %v5687_v55, 1  ;;  %v5690_v1 = vld [vmem:[#allocation2 + $0x14] ss:$0 sps:$4 sm:$0x11]   ;;  %v3091_v18 = vrot.slane %v5693_v11, 1 }
 0x1c8   : > { %v5695_v57 = vld [vmem:[#allocation2 + $0xc] sm:$0xff]   ;;  %v5829_v59 = vpop.eup %5828  ;;  %5834 = vrcp.f32 %v2175_v54  ;;  %v2887_v62 = vshrl.u32 %v5691_v56, 16  ;;  %v2889_v2 = vshll.u32 %v5691_v56, 16  ;;  %v3544_v8 = vrot.slane %v5690_v1, 1  ;;  %v6711_v19 = vld [vmem:[#allocation2] sm:$0xff]  }
 0x1c9   : > { %v5689_v61 = vld [vmem:[#allocation2 + $0xc] sm:$0xfe]   ;;  %v2178_v63 = vadd.f32 1.0, %v5829_v59  ;;  %v3327_v6 = vshrl.u32 %v5695_v57, 16  ;;  %v3096_v7 = vsel %vm726_vm0, %v3094_v60, %v3095_v0  ;;  %v3329_v26 = vshll.u32 %v5695_v57, 16 }
 0x1ca   : > { %v3543_v4 = vrot.slane %v5689_v61, 1  ;;  %v5692_v9 = vld [vmem:[#allocation2 + $0x14] ss:$0 sps:$4 sm:$0x11]   ;;  %v2891_v10 = vrot.slane %v2889_v2, 1  ;;  %3117 = vrot.lane.b32.xlu1 %v3096_v7, %s6052_s12  ;;  %v5779_v46 = vld [vmem:[#allocation2 + $0xc] sm:$0xff]  }
 0x1cb   : > { %5836 = vrcp.f32 %v2178_v63  ;;  %v2894_v14 = vshll.u32 %v5692_v9, 16  ;;  %v5694_v16 = vld [vmem:[#allocation2 + $0x8] ss:$0 sps:$4 sm:$0x11]   ;;  %v3331_v34 = vrot.slane %v3329_v26, 1  ;;  %v2877_v53 = vshll.u32 %v6711_v19, 16 }
 0x1cc   : > { %v3545_v5 = vsel %vm726_vm0, %v3543_v4, %v3544_v8  ;;  %v2892_v13 = vor.u32 %v2891_v10, %v2887_v62  ;;  %v3092_v23 = vrot.slane %v5694_v16, 1  ;;  %v5696_v24 = vld [vmem:[#allocation2 + $0x14] ss:$0 sps:$4 sm:$0x11]   ;;  %2779 = vst.msk [vmem:[#allocation4 + $0x8] sm:$0xff] %vm2777_vm7, %v5779_v46  ;;  %v5786_v63 = vld [vmem:[#allocation2] sm:$0xff]  }
 0x1cd   : > { %v5831_v12 = vpop.eup %5830  ;;  %3567 = vrot.lane.b32.xlu0 %v3545_v5, %s6058_s26  ;;  %v2896_v22 = vrot.slane %v2894_v14, 1  ;;  %v3334_v35 = vshll.u32 %v5696_v24, 16  ;;  %v3332_v45 = vor.u32 %v3331_v34, %v3327_v6  ;;  %v2664_v57 = vld [vmem:[#allocation2 + $0x24] sm:$0xf]  ;;  %v2879_v8 = vrot.slane %v2877_v53, 1  ;;  %2778 = vst.msk [vmem:[#allocation4] sm:$0xff] %vm2777_vm7, %v5786_v63 }
 0x1ce   : > { %v2176_v17 = vadd.f32 1.0, %v5831_v12  ;;  %v3093_v29 = vsel %vm726_vm0, %v3091_v18, %v3092_v23  ;;  %v5698_v10 = vld [vmem:[#allocation2 + $0x8] ss:$0 sps:$4 sm:$0x11]   ;;  %v2875_v11 = vshrl.u32 %v6711_v19, 16  ;;  %v6777_v53 = vadd.s32 7, %v6633_v25 }
 0x1cf   : > { %v5833_v20 = vpop.eup %5832  ;;  %v2897_v28 = vsel %vm454_vm1, %v2892_v13, %v2896_v22  ;;  %v3336_v51 = vrot.slane %v3334_v35, 1  ;;  %v2657_v18 = vld [vmem:[#allocation2 + $0x18] sm:$0xf]  ;;  %v2238_v35 = vadd.s32 5, %v6633_v25  ;;  %v6785_v63 = vadd.s32 6, %v6633_v25 }
 0x1d0   : > { %v2217_v27 = vmul.f32 %v5833_v20, %v6649_v42  ;;  %5838 = vrcp.f32 %v2176_v17  ;;  %2972 = vrot.lane.b32.xlu1 %v2897_v28, %s6059_s27  ;;  %v2880_v24 = vor.u32 %v2879_v8, %v2875_v11  ;;  %v2882_v28 = vshll.u32 %v5698_v10, 16 }
 0x1d1   : > { %v5415_v31 = vpop.f32.mrb[8].mxu0  ;;  %3115 = vrot.lane.b32.xlu0 %v3093_v29, %s6052_s12  ;;  %v3337_v4 = vsel %vm454_vm1, %v3332_v45, %v3336_v51  ;;  %v2661_v51 = vld [vmem:[#allocation2 + $0x20] sm:$0x1]  ;;  %vm2248_vm8 = vcmp.ge.s32.totalorder %v2238_v35, 0  ;;  %vm2258_vm9 = vcmp.lt.s32.totalorder %v2238_v35, 16  ;;  %vm2250_vm5 = vcmp.ge.s32.totalorder %v6777_v53, 0 }
 0x1d2   : > { %v5835_v36 = vpop.eup %5834  ;;  %v2299_v37 = vsel %vm6715_vm3, %v2217_v27, 0.0  ;;  %v6733_v42 = vadd.f32 %v5415_v31, %v6618_v58  ;;  %v2064_v39 = vpop.f32.mrb[9].mxu0  ;;  %v2668_v31 = vld [vmem:[#allocation2 + $0x2c] sm:$0x1]  ;;  %vm6796_vm2 = vmand %vm2248_vm8, %vm2258_vm9  ;;  %vm2259_vm8 = vcmp.lt.s32.totalorder %v6785_v63, 16 }
 0x1d3   : > { %v5262_v40 = vpack.c.bf16 %v2299_v37, %v2299_v37  ;;  %v2215_v41 = vmul.f32 %v5835_v36, %v6654_v47  ;;  %v6737_v43 = vadd.f32 %v6618_v58, %v2064_v39  ;;  %v5416_v44 = vpop.f32.mrb[10].mxu0  ;;  %v2884_v39 = vrot.slane %v2882_v28, 1 }
 0x1d4   : > { %v2121_v48 = vsub.f32 0.0, %v6733_v42  ;;  %v6741_v49 = vadd.f32 %v5416_v44, %v6618_v58  ;;  %v2067_v50 = vpop.f32.mrb[11].mxu0  ;;  %v2237_v44 = vadd.s32 4, %v6633_v25 }
 0x1d5   : > { %v5837_v54 = vpop.eup %5836  ;;  %v2492_v55 = vshrl.u32 %v5262_v40, 16  ;;  %v2495_v56 = vshll.u32 %v5262_v40, 16  ;;  %v2297_v47 = vsel %vm6726_vm6, %v2215_v41, 0.0  ;;  %v2119_v33 = vsub.f32 0.0, %v6737_v43  ;;  %3422 = vrot.lane.b32.xlu0 %v3337_v4, %s6051_s10 }
 0x1d6   : > { %v5260_v59 = vpack.c.bf16 %v2297_v47, %v2297_v47  ;;  %v2218_v60 = vmul.f32 %v5837_v54, %v6660_v52  ;;  %v2151_v61 = vmul.f32 1.442695, %v2121_v48  ;;  %v2122_v62 = vsub.f32 0.0, %v6741_v49 }
 0x1d7   : > { %v2494_v0 = vrot.slane %v2492_v55, 7  ;;  %v2147_v1 = vmul.f32 1.442695, %v2119_v33  ;;  %v6751_v2 = vadd.f32 %v6618_v58, %v2067_v50  ;;  %v2885_v45 = vsel %vm454_vm1, %v2880_v24, %v2884_v39 }
 0x1d8   : > { %v2475_v6 = vshrl.u32 %v5260_v59, 16  ;;  %v2300_v7 = vsel %vm6715_vm3, %v2218_v60, 0.0  ;;  %5840 = vpow2.f32 %v2151_v61  ;;  %v2478_v13 = vshll.u32 %v5260_v59, 16 }
 0x1d9   : > { %v2497_v52 = vor.u32 %v2495_v56, %v2494_v0  ;;  %v5263_v9 = vpack.c.bf16 %v2300_v7, %v2300_v7  ;;  %5842 = vpow2.f32 %v2147_v1  ;;  %v2153_v14 = vmul.f32 1.442695, %v2122_v62  ;;  %2970 = vrot.lane.b32.xlu0 %v2885_v45, %s6059_s27 }
 0x1da   : > { %v5839_v12 = vpop.eup %5838  ;;  %v2477_v5 = vrot.slane %v2475_v6, 7  ;;  %v2120_v16 = vsub.f32 0.0, %v6751_v2  ;;  %vm2247_vm11 = vcmp.ge.s32.totalorder %v2237_v44, 0  ;;  %vm2257_vm14 = vcmp.lt.s32.totalorder %v2237_v44, 16 }
 0x1db   : > { %v2665_v17 = vsel %vm6667_vm12, %v2497_v52, %v2664_v57  ;;  %v2500_v20 = vshrl.u32 %v5263_v9, 16  ;;  %v2216_v21 = vmul.f32 %v5839_v12, %v6687_v32  ;;  %5844 = vpow2.f32 %v2153_v14  ;;  %vm6806_vm4 = vmand %vm2247_vm11, %vm2257_vm14 }
 0x1dc   : > { %2666 = vst [vmem:[#allocation2 + $0x24] sm:$0xf] %v2665_v17  ;;  %v2480_v22 = vor.u32 %v2478_v13, %v2477_v5  ;;  %v2149_v23 = vmul.f32 1.442695, %v2120_v16  ;;  %v2503_v19 = vshll.u32 %v5263_v9, 16  ;;  %v2498_v32 = vrot.slane %v2494_v0, 4 }
 0x1dd   : > { %v2502_v26 = vrot.slane %v2500_v20, 7  ;;  %v2298_v27 = vsel %vm6726_vm6, %v2216_v21, 0.0  ;;  %v2481_v55 = vrot.slane %v2477_v5, 4  ;;  %v6788_v7 = vadd.s32 9, %v6633_v25 }
 0x1de   : > { %v2658_v29 = vsel %vm6667_vm12, %v2480_v22, %v2657_v18  ;;  %v5261_v34 = vpack.c.bf16 %v2298_v27, %v2298_v27  ;;  %5846 = vpow2.f32 %v2149_v23  ;;  %v6801_v14 = vadd.s32 8, %v6633_v25 }
 0x1df   : > { %2659 = vst [vmem:[#allocation2 + $0x18] sm:$0xf] %v2658_v29  ;;  %v2505_v36 = vor.u32 %v2503_v19, %v2502_v26  ;;  %v2507_v37 = vrot.slane %v2502_v26, 4  ;;  %vm2260_vm3 = vcmp.lt.s32.totalorder %v6777_v53, 16  ;;  %vm2249_vm6 = vcmp.ge.s32.totalorder %v6785_v63, 0 }
 0x1e0   : > { %v2483_v40 = vshrl.u32 %v5261_v34, 16  ;;  %v2486_v50 = vshll.u32 %v5261_v34, 16  ;;  %vm6913_vm9 = vmand %vm2250_vm5, %vm2260_vm3  ;;  %vm2252_vm14 = vcmp.ge.s32.totalorder %v6788_v7, 0  ;;  %vm2261_vm5 = vcmp.lt.s32.totalorder %v6801_v14, 16 }
 0x1e1   : > { %v2506_v41 = vsel %vm6673_vm13, %v2498_v32, %v2505_v36  ;;  %v2669_v38 = vsel %vm6579_vm15, %v2507_v37, %v2668_v31  ;;  %vm6925_vm11 = vmand %vm2249_vm6, %vm2259_vm8  ;;  %vm2994_vm8 = vcmask 31760  }
 0x1e2   : > { %v5841_v46 = vpop.eup %5840  ;;  %2667 = vst.msk [vmem:[#allocation2 + $0x28] sm:$0xf] %vm2640_vm10, %v2506_v41  ;;  %2670 = vst [vmem:[#allocation2 + $0x2c] sm:$0x1] %v2669_v38  ;;  %v2485_v48 = vrot.slane %v2483_v40, 7 }
 0x1e3   : > { %v5843_v54 = vpop.eup %5842  ;;  %v2181_v56 = vadd.f32 1.0, %v5841_v46 }
 0x1e4   : > { %v2488_v47 = vor.u32 %v2486_v50, %v2485_v48  ;;  %v2490_v33 = vrot.slane %v2485_v48, 4  ;;  %v2179_v57 = vadd.f32 1.0, %v5843_v54 }
 0x1e5   : > { %5848 = vrcp.f32 %v2181_v56  ;;  %v5845_v59 = vpop.eup %5844 }
 0x1e6   : > { %v2489_v60 = vsel %vm6673_vm13, %v2481_v55, %v2488_v47  ;;  %v2662_v61 = vsel %vm6579_vm15, %v2490_v33, %v2661_v51  ;;  %5850 = vrcp.f32 %v2179_v57  ;;  %v2182_v62 = vadd.f32 1.0, %v5845_v59  ;;  %v2678_v57 = vld [vmem:[#allocation2 + $0x3c] sm:$0xf] }
 0x1e7   : > { %2660 = vst.msk [vmem:[#allocation2 + $0x1c] sm:$0xf] %vm2640_vm10, %v2489_v60  ;;  %2663 = vst [vmem:[#allocation2 + $0x20] sm:$0x1] %v2662_v61 }
 0x1e8   : > { %v5847_v0 = vpop.eup %5846  ;;  %5852 = vrcp.f32 %v2182_v62 }
 0x1e9   : > { %v2180_v1 = vadd.f32 1.0, %v5847_v0  ;;  %v5699_v4 = vld [vmem:[#allocation2 + $0x24] sm:$0xff]   ;;  %v5704_v52 = vld [vmem:[#allocation2 + $0x2c] ss:$0 sps:$4 sm:$0x11]  }
 0x1ea   : > { %v5700_v6 = vld [vmem:[#allocation2 + $0x24] sm:$0xff]   ;;  %3659 = vrot.lane.b32.xlu1 %v5699_v4, %s6049_s8  ;;  %v3101_v5 = vrot.slane %v5704_v52, 1  ;;  %v5706_v13 = vld [vmem:[#allocation2 + $0x2c] ss:$0 sps:$4 sm:$0x11]  }
 0x1eb   : > { %5854 = vrcp.f32 %v2180_v1  ;;  %v5703_v8 = vld [vmem:[#allocation2 + $0x24] sm:$0xfe]   ;;  %3209 = vrot.lane.b32.xlu0 %v5700_v6, %s6057_s17  ;;  %v3999_v21 = vrot.slane %v5706_v13, 1  ;;  %v2671_v0 = vld [vmem:[#allocation2 + $0x30] sm:$0xf] }
 0x1ec   : > { %v6791_v9 = vld [vmem:[#allocation2 + $0x24] sm:$0xff]   ;;  %v3100_v12 = vrot.slane %v5703_v8, 1 }
 0x1ed   : > { %v5705_v10 = vld [vmem:[#allocation2 + $0x24] sm:$0xfe]   ;;  %v3793_v19 = vshll.u32 %v6791_v9, 16  ;;  %v3791_v31 = vshrl.u32 %v6791_v9, 16 }
 0x1ee   : > { %v5701_v16 = vld [vmem:[#allocation2 + $0x18] sm:$0xff]   ;;  %v3998_v17 = vrot.slane %v5705_v10, 1  ;;  %v6813_v25 = vld [vmem:[#allocation2 + $0x20] ss:$0 sps:$4 sm:$0x11]  }
 0x1ef   : > { %v5849_v18 = vpop.eup %5848  ;;  %v5702_v20 = vld [vmem:[#allocation2 + $0x18] sm:$0xff]   ;;  %3207 = vrot.lane.b32.xlu1 %v5701_v16, %s6057_s17  ;;  %v6833_v44 = vrot.slane %v3793_v19, 1 }
 0x1f0   : > { %v5851_v22 = vpop.eup %5850  ;;  %v2221_v23 = vmul.f32 %v5849_v18, %v6733_v42  ;;  %v6811_v26 = vld [vmem:[#allocation2 + $0x18] sm:$0xfe]   ;;  %3657 = vrot.lane.b32.xlu0 %v5702_v20, %s6049_s8  ;;  %v3102_v42 = vsel %vm726_vm0, %v3100_v12, %v3101_v5  ;;  %v4000_v28 = vsel %vm726_vm0, %v3998_v17, %v3999_v21  ;;  %v5709_v12 = vld [vmem:[#allocation2 + $0x24] sm:$0xfe]   ;;  %v2682_v21 = vld [vmem:[#allocation2 + $0x44] sm:$0x1] }
 0x1f1   : > { %v2219_v27 = vmul.f32 %v5851_v22, %v6737_v43  ;;  %v5419_v29 = vpop.f32.mrb[12].mxu0  ;;  %v3546_v36 = vrot.slane %v6811_v26, 1  ;;  %v3547_v43 = vrot.slane %v6813_v25, 1  ;;  %v5710_v5 = vld [vmem:[#allocation2 + $0x2c] ss:$0 sps:$4 sm:$0x11]   ;;  %v3796_v26 = vor.u32 %v6833_v44, %v3791_v31 }
 0x1f2   : > { %v2303_v34 = vsel %vm6796_vm2, %v2221_v23, 0.0  ;;  %v6824_v35 = vadd.f32 %v5419_v29, %v6618_v58  ;;  %v2080_v32 = vpop.f32.mrb[13].mxu0  ;;  %v5853_v37 = vpop.eup %5852  ;;  %v5713_v23 = vld [vmem:[#allocation2 + $0x18] sm:$0xfe]  }
 0x1f3   : > { %v5266_v39 = vpack.c.bf16 %v2303_v34, %v2303_v34  ;;  %v2301_v40 = vsel %vm6806_vm4, %v2219_v27, 0.0  ;;  %v6831_v41 = vadd.f32 %v6618_v58, %v2080_v32  ;;  %v5420_v38 = vpop.f32.mrb[14].mxu0  ;;  %v2222_v46 = vmul.f32 %v5853_v37, %v6741_v49  ;;  %3121 = vrot.lane.b32.xlu1 %v3102_v42, %s6052_s12  ;;  %v5714_v42 = vld [vmem:[#allocation2 + $0x20] ss:$0 sps:$4 sm:$0x11]  }
 0x1f4   : > { %v5264_v45 = vpack.c.bf16 %v2301_v40, %v2301_v40  ;;  %v2125_v48 = vsub.f32 0.0, %v6824_v35  ;;  %v6839_v50 = vadd.f32 %v5420_v38, %v6618_v58  ;;  %v2083_v51 = vpop.f32.mrb[15].mxu0  ;;  %4021 = vrot.lane.b32.xlu0 %v4000_v28, %s6053_s13  ;;  %v6855_v28 = vld [vmem:[#allocation2 + $0x24] sm:$0xff]   ;;  %v2675_v38 = vld [vmem:[#allocation2 + $0x38] sm:$0x1] }
 0x1f5   : > { %v5855_v54 = vpop.eup %5854  ;;  %v2526_v55 = vshrl.u32 %v5266_v39, 16  ;;  %v2529_v56 = vshll.u32 %v5266_v39, 16  ;;  %v2123_v47 = vsub.f32 0.0, %v6831_v41  ;;  %v6844_v33 = vadd.f32 %v6618_v58, %v2083_v51 }
 0x1f6   : > { %v2509_v49 = vshrl.u32 %v5264_v45, 16  ;;  %v2512_v59 = vshll.u32 %v5264_v45, 16  ;;  %v2304_v60 = vsel %vm6796_vm2, %v2222_v46, 0.0  ;;  %v2220_v61 = vmul.f32 %v5855_v54, %v6751_v2  ;;  %v5712_v2 = vld [vmem:[#allocation2 + $0x2c] ss:$0 sps:$4 sm:$0x11]  }
 0x1f7   : > { %v2528_v62 = vrot.slane %v2526_v55, 7  ;;  %v5267_v1 = vpack.c.bf16 %v2304_v60, %v2304_v60  ;;  %v2159_v4 = vmul.f32 1.442695, %v2125_v48  ;;  %v2155_v6 = vmul.f32 1.442695, %v2123_v47  ;;  %v5800_v47 = vld [vmem:[#allocation2 + $0x24] sm:$0xff]  }
 0x1f8   : > { %v2511_v8 = vrot.slane %v2509_v49, 7  ;;  %v2302_v52 = vsel %vm6806_vm4, %v2220_v61, 0.0  ;;  %v2126_v58 = vsub.f32 0.0, %v6839_v50  ;;  %v2124_v10 = vsub.f32 0.0, %v6844_v33  ;;  %v5717_v55 = vld [vmem:[#allocation2 + $0x18] sm:$0xfe]  }
 0x1f9   : > { %v2531_v13 = vor.u32 %v2529_v56, %v2528_v62  ;;  %v2532_v11 = vrot.slane %v2528_v62, 4  ;;  %v2534_v16 = vshrl.u32 %v5267_v1, 16  ;;  %v2537_v17 = vshll.u32 %v5267_v1, 16  ;;  %v5716_v46 = vld [vmem:[#allocation2 + $0x2c] ss:$0 sps:$4 sm:$0x11]  }
 0x1fa   : > { %v2514_v18 = vor.u32 %v2512_v59, %v2511_v8  ;;  %v2515_v20 = vrot.slane %v2511_v8, 4  ;;  %v5265_v22 = vpack.c.bf16 %v2302_v52, %v2302_v52  ;;  %5856 = vpow2.f32 %v2159_v4  ;;  %v6865_v56 = vld [vmem:[#allocation2 + $0x18] sm:$0xff]   ;;  %2781 = vst.msk [vmem:[#allocation4 + $0x18] sm:$0xff] %vm2777_vm7, %v5800_v47  ;;  %v5721_v1 = vld [vmem:[#allocation2 + $0x24] sm:$0xff]  }
 0x1fb   : > { %v2679_v24 = vsel %vm6667_vm12, %v2531_v13, %v2678_v57  ;;  %v2536_v19 = vrot.slane %v2534_v16, 7  ;;  %5858 = vpow2.f32 %v2155_v6  ;;  %v2161_v27 = vmul.f32 1.442695, %v2126_v58  ;;  %v5720_v8 = vld [vmem:[#allocation2 + $0x20] ss:$0 sps:$4 sm:$0x11]  }
 0x1fc   : > { %2680 = vst [vmem:[#allocation2 + $0x3c] sm:$0xf] %v2679_v24  ;;  %v2672_v29 = vsel %vm6667_vm12, %v2514_v18, %v2671_v0  ;;  %v2517_v34 = vshrl.u32 %v5265_v22, 16  ;;  %v2520_v32 = vshll.u32 %v5265_v22, 16  ;;  %v2157_v37 = vmul.f32 1.442695, %v2124_v10 }
 0x1fd   : > { %2673 = vst [vmem:[#allocation2 + $0x30] sm:$0xf] %v2672_v29  ;;  %v2539_v39 = vor.u32 %v2537_v17, %v2536_v19  ;;  %v2541_v40 = vrot.slane %v2536_v19, 4  ;;  %5860 = vpow2.f32 %v2161_v27  ;;  %v3548_v45 = vsel %vm726_vm0, %v3546_v36, %v3547_v43  ;;  %v5718_v43 = vld [vmem:[#allocation2 + $0x20] ss:$0 sps:$4 sm:$0x11]  }
 0x1fe   : > { %v2519_v48 = vrot.slane %v2517_v34, 7  ;;  %5862 = vpow2.f32 %v2157_v37  ;;  %3569 = vrot.lane.b32.xlu1 %v3548_v45, %s6058_s26  ;;  %v3549_v51 = vrot.slane %v5709_v12, 1  ;;  %v3550_v54 = vrot.slane %v5710_v5, 1  ;;  %v5801_v52 = vld [vmem:[#allocation2 + $0x18] sm:$0xff]  }
 0x1ff   : > { %v2540_v57 = vsel %vm6673_vm13, %v2532_v11, %v2539_v39  ;;  %v2683_v25 = vsel %vm6579_vm15, %v2541_v40, %v2682_v21  ;;  %v3798_v36 = vshll.u32 %v5712_v2, 16  ;;  %v3995_v61 = vrot.slane %v5713_v23, 1  ;;  %v5722_v13 = vld [vmem:[#allocation2 + $0x2c] ss:$0 sps:$4 sm:$0x11]   ;;  %2780 = vst.msk [vmem:[#allocation4 + $0x10] sm:$0xff] %vm2777_vm7, %v5801_v52 }
 0x200   : > { %2681 = vst.msk [vmem:[#allocation2 + $0x40] sm:$0xf] %vm2640_vm10, %v2540_v57  ;;  %2684 = vst [vmem:[#allocation2 + $0x44] sm:$0x1] %v2683_v25  ;;  %v2522_v49 = vor.u32 %v2520_v32, %v2519_v48  ;;  %v2524_v59 = vrot.slane %v2519_v48, 4  ;;  %v3551_v60 = vsel %vm726_vm0, %v3549_v51, %v3550_v54  ;;  %v3996_v0 = vrot.slane %v5714_v42, 1 }
 0x201   : > { %3571 = vrot.lane.b32.xlu0 %v3551_v60, %s6058_s26  ;;  %v3800_v62 = vrot.slane %v3798_v36, 1  ;;  %v2913_v9 = vshll.u32 %v6855_v28, 16  ;;  %v2918_v4 = vshll.u32 %v5716_v46, 16  ;;  %v3097_v6 = vrot.slane %v5717_v55, 1 }
 0x202   : > { %v2523_v31 = vsel %vm6673_vm13, %v2515_v20, %v2522_v49  ;;  %v2676_v44 = vsel %vm6579_vm15, %v2524_v59, %v2675_v38  ;;  %v2911_v10 = vshrl.u32 %v6855_v28, 16  ;;  %v3098_v5 = vrot.slane %v5718_v43, 1  ;;  %v5723_v20 = vld [vmem:[#allocation2 + $0x18] sm:$0xff]   ;;  %v5724_v40 = vld [vmem:[#allocation2 + $0x20] ss:$0 sps:$4 sm:$0x11]  }
 0x203   : > { %2674 = vst.msk [vmem:[#allocation2 + $0x34] sm:$0xf] %vm2640_vm10, %v2523_v31  ;;  %2677 = vst [vmem:[#allocation2 + $0x38] sm:$0x1] %v2676_v44  ;;  %v3801_v58 = vsel %vm454_vm1, %v3796_v26, %v3800_v62  ;;  %v2915_v12 = vrot.slane %v2913_v9, 1  ;;  %v3997_v16 = vsel %vm726_vm0, %v3995_v61, %v3996_v0  ;;  %v2920_v17 = vrot.slane %v2918_v4, 1 }
 0x204   : > { %v5857_v11 = vpop.eup %5856  ;;  %3876 = vrot.lane.b32.xlu1 %v3801_v58, %s6060_s9  ;;  %v3341_v2 = vshll.u32 %v6865_v56, 16  ;;  %v3346_v18 = vshll.u32 %v5720_v8, 16  ;;  %v3099_v24 = vsel %vm726_vm0, %v3097_v6, %v3098_v5  ;;  %v3339_v19 = vshrl.u32 %v6865_v56, 16  ;;  %v5725_v38 = vld [vmem:[#allocation2 + $0x18] sm:$0xff]  }
 0x205   : > { %v5859_v21 = vpop.eup %5858  ;;  %v2185_v22 = vadd.f32 1.0, %v5857_v11  ;;  %4019 = vrot.lane.b32.xlu0 %v3997_v16, %s6053_s13  ;;  %v2916_v23 = vor.u32 %v2915_v12, %v2911_v10  ;;  %v3351_v28 = vshrl.u32 %v5721_v1, 16  ;;  %v3353_v29 = vshll.u32 %v5721_v1, 16  ;;  %v5726_v26 = vld [vmem:[#allocation2 + $0x20] ss:$0 sps:$4 sm:$0x11]  }
 0x206   : > { %v2183_v27 = vadd.f32 1.0, %v5859_v21  ;;  %v3343_v42 = vrot.slane %v3341_v2, 1  ;;  %v3348_v37 = vrot.slane %v3346_v18, 1  ;;  %v3358_v39 = vshll.u32 %v5722_v13, 16  ;;  %v2696_v12 = vld [vmem:[#allocation2 + $0x5c] sm:$0x1] }
 0x207   : > { %v5861_v34 = vpop.eup %5860  ;;  %5864 = vrcp.f32 %v2185_v22  ;;  %v2921_v32 = vsel %vm454_vm1, %v2916_v23, %v2920_v17  ;;  %v3355_v51 = vrot.slane %v3353_v29, 1  ;;  %v2899_v55 = vshrl.u32 %v5723_v20, 16  ;;  %v5727_v31 = vld [vmem:[#allocation2 + $0x3c] sm:$0xff]   ;;  %v5732_v52 = vld [vmem:[#allocation2 + $0x44] ss:$0 sps:$4 sm:$0x11]  }
 0x208   : > { %v5863_v45 = vpop.eup %5862  ;;  %5866 = vrcp.f32 %v2183_v27  ;;  %v2186_v46 = vadd.f32 1.0, %v5861_v34  ;;  %2976 = vrot.lane.b32.xlu1 %v2921_v32, %s6059_s27  ;;  %v3344_v48 = vor.u32 %v3343_v42, %v3339_v19  ;;  %v2901_v56 = vshll.u32 %v5723_v20, 16  ;;  %v6904_v44 = vld [vmem:[#allocation2 + $0x3c] sm:$0xff]  }
 0x209   : > { %v2184_v54 = vadd.f32 1.0, %v5863_v45  ;;  %3119 = vrot.lane.b32.xlu0 %v3099_v24, %s6052_s12  ;;  %v2906_v47 = vshll.u32 %v5724_v40, 16  ;;  %v3356_v57 = vor.u32 %v3355_v51, %v3351_v28  ;;  %v3360_v25 = vrot.slane %v3358_v39, 1  ;;  %v5731_v8 = vld [vmem:[#allocation2 + $0x3c] sm:$0xfe]  }
 0x20a   : > { %5868 = vrcp.f32 %v2186_v46  ;;  %v3349_v36 = vsel %vm454_vm1, %v3344_v48, %v3348_v37  ;;  %v2903_v43 = vrot.slane %v2901_v56, 1  ;;  %v3781_v49 = vshll.u32 %v5725_v38, 16  ;;  %v6918_v16 = vld [vmem:[#allocation2 + $0x3c] sm:$0xfe]   ;;  %v5729_v51 = vld [vmem:[#allocation2 + $0x30] sm:$0xff]  }
 0x20b   : > { %5870 = vrcp.f32 %v2184_v54  ;;  %v3361_v59 = vsel %vm454_vm1, %v3356_v57, %v3360_v25  ;;  %v3779_v60 = vshrl.u32 %v5725_v38, 16  ;;  %v3786_v61 = vshll.u32 %v5726_v26, 16  ;;  %v5728_v53 = vld [vmem:[#allocation2 + $0x3c] sm:$0xff]   ;;  %v5734_v26 = vld [vmem:[#allocation2 + $0x44] ss:$0 sps:$4 sm:$0x11]  }
 0x20c   : > { %3424 = vrot.lane.b32.xlu1 %v3349_v36, %s6051_s10  ;;  %v2904_v62 = vor.u32 %v2903_v43, %v2899_v55  ;;  %v2908_v0 = vrot.slane %v2906_v47, 1  ;;  %v3783_v9 = vrot.slane %v3781_v49, 1  ;;  %v3815_v58 = vshrl.u32 %v6904_v44, 16  ;;  %v6933_v20 = vld [vmem:[%s7410_s2] ss:$0 sm:$0xff] }
 0x20d   : > { %3426 = vrot.lane.b32.xlu0 %v3361_v59, %s6051_s10  ;;  %v3788_v1 = vrot.slane %v3786_v61, 1  ;;  %v3106_v11 = vrot.slane %v5731_v8, 1  ;;  %v3107_v22 = vrot.slane %v5732_v52, 1  ;;  %v3817_v23 = vshll.u32 %v6904_v44, 16  ;;  %v2692_v36 = vld [vmem:[#allocation2 + $0x54] sm:$0xf] }
 0x20e   : > { %v2909_v4 = vsel %vm454_vm1, %v2904_v62, %v2908_v0  ;;  %v3784_v6 = vor.u32 %v3783_v9, %v3779_v60  ;;  %v5423_v13 = vpop.f32.mrb[16].mxu0  ;;  %v4004_v27 = vrot.slane %v6918_v16, 1  ;;  %v5730_v59 = vld [vmem:[#allocation2 + $0x30] sm:$0xff]   ;;  %v2685_v62 = vld [vmem:[#allocation2 + $0x48] sm:$0xf]  ;;  %vm2262_vm2 = vcmp.lt.s32.totalorder %v6788_v7, 16 }
 0x20f   : > { %v6936_v21 = vadd.f32 %v6933_v20, %v5423_v13  ;;  %v3108_v32 = vsel %vm726_vm0, %v3106_v11, %v3107_v22  ;;  %v5735_v60 = vld [vmem:[#allocation2 + $0x30] sm:$0xfe]   ;;  %v5737_v8 = vld [vmem:[#allocation2 + $0x3c] sm:$0xfe]   ;;  %vm2251_vm4 = vcmp.ge.s32.totalorder %v6801_v14, 0  ;;  %vm7022_vm3 = vmand %vm2252_vm14, %vm2262_vm2  ;;  %vm4079_vm14 = vcmask 146432  }
 0x210   : > { %2974 = vrot.lane.b32.xlu1 %v2909_v4, %s6059_s27  ;;  %v3789_v5 = vsel %vm454_vm1, %v3784_v6, %v3788_v1  ;;  %v5736_v6 = vld [vmem:[#allocation2 + $0x38] ss:$0 sps:$4 sm:$0x11]   ;;  %v5738_v11 = vld [vmem:[#allocation2 + $0x44] ss:$0 sps:$4 sm:$0x11]   ;;  %vm7032_vm6 = vmand %vm2251_vm4, %vm2261_vm5 }
 0x211   : > { %v5865_v10 = vpop.eup %5864  ;;  %3874 = vrot.lane.b32.xlu0 %v3789_v5, %s6060_s9  ;;  %v2129_v29 = vsub.f32 0.0, %v6936_v21  ;;  %v5754_v7 = vld [vmem:[#allocation2 + $0x38] ss:$0 sps:$4 sm:$0x11]   ;;  %vm4590_vm2 = vcmask 27648  }
 0x212   : > { %v5867_v17 = vpop.eup %5866  ;;  %v2225_v2 = vmul.f32 %v5865_v10, %v6824_v35  ;;  %v2096_v35 = vpop.f32.mrb[17].mxu0  ;;  %v3810_v14 = vshll.u32 %v5754_v7, 16 }
 0x213   : > { %v2223_v63 = vmul.f32 %v5867_v17, %v6831_v41  ;;  %v6941_v24 = vadd.f32 %v6933_v20, %v2096_v35  ;;  %v5424_v19 = vpop.f32.mrb[18].mxu0  ;;  %v2167_v54 = vmul.f32 1.442695, %v2129_v29 }
 0x214   : > { %v5869_v42 = vpop.eup %5868  ;;  %v2307_v28 = vsel %vm6913_vm9, %v2225_v2, 0.0  ;;  %3663 = vrot.lane.b32.xlu1 %v5727_v31, %s6049_s8  ;;  %v6949_v34 = vadd.f32 %v6933_v20, %v5424_v19  ;;  %v2099_v41 = vpop.f32.mrb[19].mxu0 }
 0x215   : > { %v5871_v37 = vpop.eup %5870  ;;  %v5270_v39 = vpack.c.bf16 %v2307_v28, %v2307_v28  ;;  %v2305_v40 = vsel %vm6925_vm11, %v2223_v63, 0.0  ;;  %v2226_v38 = vmul.f32 %v5869_v42, %v6839_v50  ;;  %v2127_v45 = vsub.f32 0.0, %v6941_v24  ;;  %3213 = vrot.lane.b32.xlu0 %v5728_v53, %s6057_s17  ;;  %v2689_v53 = vld [vmem:[#allocation2 + $0x50] sm:$0x1] }
 0x216   : > { %v5268_v46 = vpack.c.bf16 %v2305_v40, %v2305_v40  ;;  %v2224_v48 = vmul.f32 %v5871_v37, %v6844_v33  ;;  %v2130_v55 = vsub.f32 0.0, %v6949_v34  ;;  %5872 = vpow2.f32 %v2167_v54 }
 0x217   : > { %v2560_v56 = vshrl.u32 %v5270_v39, 16  ;;  %v2563_v47 = vshll.u32 %v5270_v39, 16  ;;  %v2308_v57 = vsel %vm6913_vm9, %v2226_v38, 0.0  ;;  %v2163_v25 = vmul.f32 1.442695, %v2127_v45  ;;  %v6980_v45 = vld [vmem:[#allocation2 + $0x3c] sm:$0xff]  }
 0x218   : > { %v2543_v50 = vshrl.u32 %v5268_v46, 16  ;;  %v2546_v43 = vshll.u32 %v5268_v46, 16  ;;  %v5271_v49 = vpack.c.bf16 %v2308_v57, %v2308_v57  ;;  %v2306_v33 = vsel %vm6925_vm11, %v2224_v48, 0.0  ;;  %3211 = vrot.lane.b32.xlu1 %v5729_v51, %s6057_s17  ;;  %v5740_v39 = vld [vmem:[#allocation2 + $0x44] ss:$0 sps:$4 sm:$0x11]  }
 0x219   : > { %v2562_v61 = vrot.slane %v2560_v56, 7  ;;  %v5269_v0 = vpack.c.bf16 %v2306_v33, %v2306_v33  ;;  %v2169_v9 = vmul.f32 1.442695, %v2130_v55  ;;  %3661 = vrot.lane.b32.xlu0 %v5730_v59, %s6049_s8  ;;  %5874 = vpow2.f32 %v2163_v25  ;;  %v5741_v55 = vld [vmem:[#allocation2 + $0x30] sm:$0xfe]  }
 0x21a   : > { %v2545_v1 = vrot.slane %v2543_v50, 7  ;;  %v2568_v31 = vshrl.u32 %v5271_v49, 16  ;;  %v2571_v4 = vshll.u32 %v5271_v49, 16  ;;  %v4005_v63 = vrot.slane %v5734_v26, 1 }
 0x21b   : > { %v2565_v52 = vor.u32 %v2563_v47, %v2562_v61  ;;  %v2566_v10 = vrot.slane %v2562_v61, 4  ;;  %v2551_v5 = vshrl.u32 %v5269_v0, 16  ;;  %v2554_v13 = vshll.u32 %v5269_v0, 16  ;;  %v5742_v57 = vld [vmem:[#allocation2 + $0x38] ss:$0 sps:$4 sm:$0x11]  }
 0x21c   : > { %v2548_v17 = vor.u32 %v2546_v43, %v2545_v1  ;;  %v2549_v2 = vrot.slane %v2545_v1, 4  ;;  %v2570_v18 = vrot.slane %v2568_v31, 7  ;;  %5876 = vpow2.f32 %v2169_v9  ;;  %3125 = vrot.lane.b32.xlu1 %v3108_v32, %s6052_s12  ;;  %v5802_v32 = vld [vmem:[%s7411_s3] sm:$0xff]   ;;  %v5805_v1 = vld [vmem:[#allocation2 + $0x30] sm:$0xff]  }
 0x21d   : > { %v2693_v35 = vsel %vm6667_vm12, %v2565_v52, %v2692_v36  ;;  %v2553_v22 = vrot.slane %v2551_v5, 7  ;;  %v6969_v19 = vadd.f32 %v6933_v20, %v2099_v41  ;;  %v3552_v37 = vrot.slane %v5735_v60, 1  ;;  %5425 = vmatprep.subr.bf16.mxu1 %v5802_v32  ;;  %v5804_v43 = vld [vmem:[#allocation2 + $0x3c] sm:$0xff]   ;;  %v5744_v60 = vld [vmem:[#allocation2 + $0x44] ss:$0 sps:$4 sm:$0x11]  }
 0x21e   : > { %2694 = vst [vmem:[#allocation2 + $0x54] sm:$0xf] %v2693_v35  ;;  %v2686_v42 = vsel %vm6667_vm12, %v2548_v17, %v2685_v62  ;;  %v2573_v28 = vor.u32 %v2571_v4, %v2570_v18  ;;  %v2575_v29 = vrot.slane %v2570_v18, 4  ;;  %v4006_v20 = vsel %vm726_vm0, %v4004_v27, %v4005_v63  ;;  %5426 = vmatpush3.bf16.msra.mxu1 %v5802_v32  ;;  %v5746_v17 = vld [vmem:[#allocation2 + $0x38] ss:$0 sps:$4 sm:$0x11]  }
 0x21f   : > { %2687 = vst [vmem:[#allocation2 + $0x48] sm:$0xf] %v2686_v42  ;;  %v2556_v40 = vor.u32 %v2554_v13, %v2553_v22  ;;  %v2558_v38 = vrot.slane %v2553_v22, 4  ;;  %v2128_v41 = vsub.f32 0.0, %v6969_v19  ;;  %4025 = vrot.lane.b32.xlu0 %v4006_v20, %s6053_s13  ;;  %v3553_v51 = vrot.slane %v5736_v6, 1  ;;  %2783 = vst.msk [vmem:[#allocation4 + $0x28] sm:$0xff] %vm2777_vm7, %v5804_v43 }
 0x220   : > { %v2574_v46 = vsel %vm6673_vm13, %v2566_v10, %v2573_v28  ;;  %v2697_v48 = vsel %vm6579_vm15, %v2575_v29, %v2696_v12  ;;  %v3555_v54 = vrot.slane %v5737_v8, 1  ;;  %v3556_v47 = vrot.slane %v5738_v11, 1  ;;  %v5873_v49 = vpop.eup %5872  ;;  %v5745_v10 = vld [vmem:[#allocation2 + $0x30] sm:$0xfe]   ;;  %v5749_v12 = vld [vmem:[#allocation2 + $0x3c] sm:$0xff]   ;;  %2782 = vst.msk [vmem:[#allocation4 + $0x20] sm:$0xff] %vm2777_vm7, %v5805_v1 }
 0x221   : > { %2695 = vst.msk [vmem:[#allocation2 + $0x58] sm:$0xf] %vm2640_vm10, %v2574_v46  ;;  %2698 = vst [vmem:[#allocation2 + $0x5c] sm:$0x1] %v2697_v48  ;;  %v2557_v16 = vsel %vm6673_vm13, %v2549_v2, %v2556_v40  ;;  %v2690_v27 = vsel %vm6579_vm15, %v2558_v38, %v2689_v53  ;;  %v2165_v56 = vmul.f32 1.442695, %v2128_v41  ;;  %v3554_v25 = vsel %vm726_vm0, %v3552_v37, %v3553_v51 }
 0x222   : > { %2688 = vst.msk [vmem:[#allocation2 + $0x4c] sm:$0xf] %vm2640_vm10, %v2557_v16  ;;  %2691 = vst [vmem:[#allocation2 + $0x50] sm:$0x1] %v2690_v27  ;;  %v3819_v26 = vrot.slane %v3817_v23, 1  ;;  %v3822_v36 = vshll.u32 %v5740_v39, 16  ;;  %3573 = vrot.lane.b32.xlu1 %v3554_v25, %s6058_s26  ;;  %v3557_v33 = vsel %vm726_vm0, %v3555_v54, %v3556_v47 }
 0x223   : > { %v4001_v50 = vrot.slane %v5741_v55, 1  ;;  %5878 = vpow2.f32 %v2165_v56  ;;  %v4002_v59 = vrot.slane %v5742_v57, 1  ;;  %v5875_v61 = vpop.eup %5874  ;;  %v2189_v62 = vadd.f32 1.0, %v5873_v49  ;;  %3575 = vrot.lane.b32.xlu0 %v3557_v33, %s6058_s26  ;;  %v5747_v23 = vld [vmem:[#allocation2 + $0x30] sm:$0xff]  }
 0x224   : > { %v3820_v0 = vor.u32 %v3819_v26, %v3815_v58  ;;  %v3824_v9 = vrot.slane %v3822_v36, 1  ;;  %v2187_v31 = vadd.f32 1.0, %v5875_v61  ;;  %v2935_v4 = vshrl.u32 %v6980_v45, 16  ;;  %v5748_v22 = vld [vmem:[#allocation2 + $0x38] ss:$0 sps:$4 sm:$0x11]  }
 0x225   : > { %v2937_v6 = vshll.u32 %v6980_v45, 16  ;;  %v2942_v8 = vshll.u32 %v5744_v60, 16  ;;  %5880 = vrcp.f32 %v2189_v62  ;;  %v4003_v58 = vsel %vm726_vm0, %v4001_v50, %v4002_v59  ;;  %v5751_v42 = vld [vmem:[#allocation2 + $0x30] sm:$0xff]   ;;  %v5750_v32 = vld [vmem:[#allocation2 + $0x44] ss:$0 sps:$4 sm:$0x11]  }
 0x226   : > { %v5877_v52 = vpop.eup %5876  ;;  %v3825_v44 = vsel %vm454_vm1, %v3820_v0, %v3824_v9  ;;  %5882 = vrcp.f32 %v2187_v31  ;;  %v3103_v2 = vrot.slane %v5745_v10, 1  ;;  %v3363_v18 = vshrl.u32 %v5747_v23, 16  ;;  %v5753_v40 = vld [vmem:[#allocation2 + $0x30] sm:$0xff]   ;;  %v5752_v16 = vld [vmem:[#allocation2 + $0x38] ss:$0 sps:$4 sm:$0x11]  }
 0x227   : > { %v2190_v5 = vadd.f32 1.0, %v5877_v52  ;;  %3880 = vrot.lane.b32.xlu1 %v3825_v44, %s6060_s9  ;;  %v2939_v13 = vrot.slane %v2937_v6, 1  ;;  %v2944_v11 = vrot.slane %v2942_v8, 1  ;;  %4023 = vrot.lane.b32.xlu0 %v4003_v58, %s6053_s13  ;;  %v3104_v35 = vrot.slane %v5746_v17, 1 }
 0x228   : > { %v3365_v63 = vshll.u32 %v5747_v23, 16  ;;  %v3370_v39 = vshll.u32 %v5748_v22, 16  ;;  %v3375_v38 = vshrl.u32 %v5749_v12, 16  ;;  %v3377_v20 = vshll.u32 %v5749_v12, 16  ;;  %v7041_v31 = vld [vmem:[#allocation2 + $0x54] sm:$0xff]  }
 0x229   : > { %5884 = vrcp.f32 %v2190_v5  ;;  %v2940_v53 = vor.u32 %v2939_v13, %v2935_v4  ;;  %v3105_v29 = vsel %vm726_vm0, %v3103_v2, %v3104_v35  ;;  %v3382_v48 = vshll.u32 %v5750_v32, 16  ;;  %v5755_v10 = vld [vmem:[#allocation2 + $0x54] sm:$0xff]   ;;  %v2706_v2 = vld [vmem:[#allocation2 + $0x6c] sm:$0xf] }
 0x22a   : > { %v3367_v37 = vrot.slane %v3365_v63, 1  ;;  %v3372_v46 = vrot.slane %v3370_v39, 1  ;;  %v2923_v51 = vshrl.u32 %v5751_v42, 16  ;;  %v3379_v55 = vrot.slane %v3377_v20, 1  ;;  %v5759_v35 = vld [vmem:[#allocation2 + $0x54] sm:$0xfe]  }
 0x22b   : > { %v2945_v28 = vsel %vm454_vm1, %v2940_v53, %v2944_v11  ;;  %3123 = vrot.lane.b32.xlu0 %v3105_v29, %s6052_s12  ;;  %v2925_v27 = vshll.u32 %v5751_v42, 16  ;;  %v3384_v47 = vrot.slane %v3382_v48, 1  ;;  %v3803_v57 = vshrl.u32 %v5753_v40, 16  ;;  %v5756_v11 = vld [vmem:[#allocation2 + $0x54] sm:$0xff]   ;;  %v2699_v42 = vld [vmem:[#allocation2 + $0x60] sm:$0xf] }
 0x22c   : > { %2980 = vrot.lane.b32.xlu1 %v2945_v28, %s6059_s27  ;;  %v3368_v45 = vor.u32 %v3367_v37, %v3363_v18  ;;  %v3380_v36 = vor.u32 %v3379_v55, %v3375_v38  ;;  %v2930_v43 = vshll.u32 %v5752_v16, 16  ;;  %v3805_v60 = vshll.u32 %v5753_v40, 16  ;;  %v5760_v28 = vld [vmem:[#allocation2 + $0x5c] ss:$0 sps:$4 sm:$0x11]   ;;  %v5757_v40 = vld [vmem:[#allocation2 + $0x48] sm:$0xff]  }
 0x22d   : > { %v5879_v41 = vpop.eup %5878  ;;  %v2927_v50 = vrot.slane %v2925_v27, 1  ;;  %v3812_v58 = vrot.slane %v3810_v14, 1  ;;  %v3839_v17 = vshrl.u32 %v7041_v31, 16  ;;  %v3841_v22 = vshll.u32 %v7041_v31, 16  ;;  %v5761_v48 = vld [vmem:[#allocation2 + $0x54] sm:$0xfe]  }
 0x22e   : > { %v2188_v54 = vadd.f32 1.0, %v5879_v41  ;;  %v3373_v56 = vsel %vm454_vm1, %v3368_v45, %v3372_v46  ;;  %v3385_v62 = vsel %vm454_vm1, %v3380_v36, %v3384_v47  ;;  %v2932_v9 = vrot.slane %v2930_v43, 1  ;;  %v2710_v41 = vld [vmem:[#allocation2 + $0x74] sm:$0x1] }
 0x22f   : > { %v5881_v25 = vpop.eup %5880  ;;  %v2928_v0 = vor.u32 %v2927_v50, %v2923_v51  ;;  %3430 = vrot.lane.b32.xlu0 %v3385_v62, %s6051_s10  ;;  %v3807_v1 = vrot.slane %v3805_v60, 1  ;;  %v3112_v45 = vrot.slane %v5759_v35, 1  ;;  %v3113_v46 = vrot.slane %v5760_v28, 1  ;;  %v5762_v27 = vld [vmem:[#allocation2 + $0x5c] ss:$0 sps:$4 sm:$0x11]  }
 0x230   : > { %5886 = vrcp.f32 %v2188_v54  ;;  %3428 = vrot.lane.b32.xlu1 %v3373_v56, %s6051_s10  ;;  %v5883_v49 = vpop.eup %5882  ;;  %v2229_v33 = vmul.f32 %v5881_v25, %v6936_v21  ;;  %v7059_v56 = vld [vmem:[#allocation2 + $0x54] sm:$0xff]   ;;  %vm3139_vm9 = vcmask 48160   ;;  %v5758_v25 = vld [vmem:[#allocation2 + $0x48] sm:$0xff]   ;;  %v4010_v26 = vrot.slane %v5761_v48, 1 }
 0x231   : > { %v2227_v61 = vmul.f32 %v5883_v49, %v6941_v24  ;;  %v2933_v8 = vsel %vm454_vm1, %v2928_v0, %v2932_v9  ;;  %v3808_v44 = vor.u32 %v3807_v1, %v3803_v57  ;;  %v3114_v60 = vsel %vm726_vm0, %v3112_v45, %v3113_v46  ;;  %v5773_v45 = vld [vmem:[#allocation2 + $0x48] sm:$0xfe]   ;;  %v5774_v46 = vld [vmem:[#allocation2 + $0x50] ss:$0 sps:$4 sm:$0x11]  }
 0x232   : > { %v2311_v21 = vsel %vm7022_vm3, %v2229_v33, 0.0  ;;  %v5763_v33 = vld [vmem:[#allocation2 + $0x48] sm:$0xfe]   ;;  %v3843_v62 = vrot.slane %v3841_v22, 1  ;;  %vm4104_vm11 = vcmask 1040384  }
 0x233   : > { %v5885_v23 = vpop.eup %5884  ;;  %v5274_v4 = vpack.c.bf16 %v2311_v21, %v2311_v21  ;;  %v2309_v6 = vsel %vm7032_vm6, %v2227_v61, 0.0  ;;  %v5764_v61 = vld [vmem:[#allocation2 + $0x50] ss:$0 sps:$4 sm:$0x11]   ;;  %v3558_v21 = vrot.slane %v5763_v33, 1 }
 0x234   : > { %v2230_v24 = vmul.f32 %v5885_v23, %v6949_v34  ;;  %v5272_v52 = vpack.c.bf16 %v2309_v6, %v2309_v6  ;;  %2978 = vrot.lane.b32.xlu1 %v2933_v8, %s6059_s27  ;;  %v3813_v34 = vsel %vm454_vm1, %v3808_v44, %v3812_v58  ;;  %v4011_v23 = vrot.slane %v5762_v27, 1  ;;  %v5766_v8 = vld [vmem:[#allocation2 + $0x5c] ss:$0 sps:$4 sm:$0x11]  }
 0x235   : > { %v2594_v12 = vshrl.u32 %v5274_v4, 16  ;;  %v2597_v5 = vshll.u32 %v5274_v4, 16  ;;  %3878 = vrot.lane.b32.xlu0 %v3813_v34, %s6060_s9  ;;  %v3559_v14 = vrot.slane %v5764_v61, 1  ;;  %v5765_v4 = vld [vmem:[#allocation2 + $0x54] sm:$0xfe]   ;;  %v2959_v6 = vshrl.u32 %v7059_v56, 16 }
 0x236   : > { %v2312_v13 = vsel %vm7022_vm3, %v2230_v24, 0.0  ;;  %v2577_v18 = vshrl.u32 %v5272_v52, 16  ;;  %v2580_v37 = vshll.u32 %v5272_v52, 16  ;;  %v2703_v24 = vld [vmem:[#allocation2 + $0x68] sm:$0x1]  ;;  %v2961_v52 = vshll.u32 %v7059_v56, 16 }
 0x237   : > { %v5275_v53 = vpack.c.bf16 %v2312_v13, %v2312_v13  ;;  %v2596_v63 = vrot.slane %v2594_v12, 7  ;;  %v3561_v58 = vrot.slane %v5765_v4, 1  ;;  %v4012_v12 = vsel %vm726_vm0, %v4010_v26, %v4011_v23  ;;  %v5768_v13 = vld [vmem:[#allocation2 + $0x5c] ss:$0 sps:$4 sm:$0x11]  }
 0x238   : > { %v7054_v29 = vrot.slane %v2577_v18, 7  ;;  %3667 = vrot.lane.b32.xlu1 %v5755_v10, %s6049_s8  ;;  %v7065_v36 = vpop.permute.xlu0 %3205  ;;  %v3560_v18 = vsel %vm726_vm0, %v3558_v21, %v3559_v14  ;;  %v3844_v35 = vor.u32 %v3843_v62, %v3839_v17  ;;  %v3846_v22 = vshll.u32 %v5768_v13, 16  ;;  %v5782_v21 = vld [vmem:[#allocation2 + $0x48] sm:$0xff]  }
 0x239   : > { %v2602_v39 = vshrl.u32 %v5275_v53, 16  ;;  %v2605_v32 = vshll.u32 %v5275_v53, 16  ;;  %v2599_v20 = vor.u32 %v2597_v5, %v2596_v63  ;;  %v2600_v51 = vrot.slane %v2596_v63, 4  ;;  %3217 = vrot.lane.b32.xlu0 %v5756_v11, %s6057_s17  ;;  %v5769_v63 = vld [vmem:[#allocation2 + $0x48] sm:$0xfe]  }
 0x23a   : > { %v5887_v38 = vpop.eup %5886  ;;  %v2582_v54 = vor.u32 %v2580_v37, %v7054_v29  ;;  %v2583_v57 = vrot.slane %v7054_v29, 4  ;;  %v3562_v5 = vrot.slane %v5766_v8, 1  ;;  %v2963_v53 = vrot.slane %v2961_v52, 1  ;;  %v5775_v37 = vld [vmem:[#allocation2 + $0x48] sm:$0xff]  }
 0x23b   : > { %v2604_v55 = vrot.slane %v2602_v39, 7  ;;  %v2228_v16 = vmul.f32 %v5887_v38, %v6969_v19  ;;  %v2707_v47 = vsel %vm6667_vm12, %v2599_v20, %v2706_v2  ;;  %v3848_v17 = vrot.slane %v3846_v22, 1  ;;  %v5777_v38 = vld [vmem:[#allocation2 + $0x54] sm:$0xff]  }
 0x23c   : > { %2708 = vst [vmem:[#allocation2 + $0x6c] sm:$0xf] %v2707_v47  ;;  %v2700_v50 = vsel %vm6667_vm12, %v2582_v54, %v2699_v42  ;;  %3215 = vrot.lane.b32.xlu1 %v5757_v40, %s6057_s17  ;;  %v3118_v0 = vpop.permute.xlu1 %3117  ;;  %v5770_v42 = vld [vmem:[#allocation2 + $0x50] ss:$0 sps:$4 sm:$0x11]   ;;  %v3563_v31 = vsel %vm726_vm0, %v3561_v58, %v3562_v5  ;;  %v4007_v39 = vrot.slane %v5769_v63, 1  ;;  %v2964_v30 = vor.u32 %v2963_v53, %v2959_v6 }
 0x23d   : > { %v2607_v19 = vor.u32 %v2605_v32, %v2604_v55  ;;  %v2609_v43 = vrot.slane %v2604_v55, 4  ;;  %v2310_v49 = vsel %vm7032_vm6, %v2228_v16, 0.0  ;;  %2701 = vst [vmem:[#allocation2 + $0x60] sm:$0xf] %v2700_v50  ;;  %3665 = vrot.lane.b32.xlu0 %v5758_v25, %s6049_s8  ;;  %v4008_v32 = vrot.slane %v5770_v42, 1 }
 0x23e   : > { %v5273_v7 = vpack.c.bf16 %v2310_v49, %v2310_v49  ;;  %v5772_v40 = vld [vmem:[#allocation2 + $0x5c] ss:$0 sps:$4 sm:$0x11]   ;;  %v3849_v20 = vsel %vm454_vm1, %v3844_v35, %v3848_v17  ;;  %v3109_v54 = vrot.slane %v5773_v45, 1  ;;  %v3110_v55 = vrot.slane %v5774_v46, 1 }
 0x23f   : > { %v2608_v9 = vsel %vm6673_vm13, %v2600_v51, %v2607_v19  ;;  %v2711_v3 = vsel %vm6579_vm15, %v2609_v43, %v2710_v41  ;;  %v7082_v10 = vpop.permute.xlu0 %3567  ;;  %v2966_v41 = vshll.u32 %v5772_v40, 16  ;;  %v4009_v48 = vsel %vm726_vm0, %v4007_v39, %v4008_v32  ;;  %v5776_v16 = vld [vmem:[#allocation2 + $0x50] ss:$0 sps:$4 sm:$0x11]   ;;  %v5780_v43 = vld [vmem:[#allocation2 + $0x48] sm:$0xff]  }
 0x240   : > { %2709 = vst.msk [vmem:[#allocation2 + $0x70] sm:$0xf] %vm2640_vm10, %v2608_v9  ;;  %2712 = vst [vmem:[#allocation2 + $0x74] sm:$0x1] %v2711_v3  ;;  %v2585_v59 = vshrl.u32 %v5273_v7, 16  ;;  %v2588_v1 = vshll.u32 %v5273_v7, 16  ;;  %3129 = vrot.lane.b32.xlu1 %v3114_v60, %s6052_s12  ;;  %v3111_v33 = vsel %vm726_vm0, %v3109_v54, %v3110_v55 }
 0x241   : > { %4029 = vrot.lane.b32.xlu0 %v4012_v12, %s6053_s13  ;;  %v2968_v51 = vrot.slane %v2966_v41, 1  ;;  %v3387_v27 = vshrl.u32 %v5775_v37, 16  ;;  %v3389_v56 = vshll.u32 %v5775_v37, 16  ;;  %v5778_v25 = vld [vmem:[#allocation2 + $0x5c] ss:$0 sps:$4 sm:$0x11]  }
 0x242   : > { %v2587_v44 = vrot.slane %v2585_v59, 7  ;;  %v2973_v34 = vpop.permute.xlu1 %2972  ;;  %v3399_v50 = vshrl.u32 %v5777_v38, 16  ;;  %v3401_v19 = vshll.u32 %v5777_v38, 16  ;;  %v3406_v60 = vshll.u32 %v5778_v25, 16  ;;  %v5806_v25 = vld [vmem:[#allocation2 + $0x54] sm:$0xff]  }
 0x243   : > { %2996 = vst.msk [vmem:[#allocation4 + $0x8] sm:$0xff] %vm2994_vm8, %v2973_v34  ;;  %v3116_v15 = vpop.permute.xlu0 %3115  ;;  %v2969_v47 = vsel %vm454_vm1, %v2964_v30, %v2968_v51  ;;  %v3391_v26 = vrot.slane %v3389_v56, 1  ;;  %v2947_v9 = vshrl.u32 %v5780_v43, 16  ;;  %v2949_v3 = vshll.u32 %v5780_v43, 16 }
 0x244   : > { %v2590_v11 = vor.u32 %v2588_v1, %v2587_v44  ;;  %v2592_v2 = vrot.slane %v2587_v44, 4  ;;  %3577 = vrot.lane.b32.xlu1 %v3560_v18, %s6058_s26  ;;  %3141 = vst.msk [vmem:[#allocation4 + $0x8] sm:$0xff] %vm3139_vm9, %v3118_v0  ;;  %v3403_v62 = vrot.slane %v3401_v19, 1  ;;  %v5781_v0 = vld [vmem:[#allocation2 + $0x50] ss:$0 sps:$4 sm:$0x11]  }
 0x245   : > { %3579 = vrot.lane.b32.xlu0 %v3563_v31, %s6058_s26  ;;  %v3392_v61 = vor.u32 %v3391_v26, %v3387_v27  ;;  %v3408_v23 = vrot.slane %v3406_v60, 1  ;;  %v2951_v14 = vrot.slane %v2949_v3, 1  ;;  %v2954_v4 = vshll.u32 %v5781_v0, 16  ;;  %v5783_v6 = vld [vmem:[#allocation2 + $0x50] ss:$0 sps:$4 sm:$0x11]  }
 0x246   : > { %v2591_v28 = vsel %vm6673_vm13, %v2583_v57, %v2590_v11  ;;  %v2704_v29 = vsel %vm6579_vm15, %v2592_v2, %v2703_v24  ;;  %v3394_v57 = vshll.u32 %v5776_v16, 16  ;;  %v3404_v1 = vor.u32 %v3403_v62, %v3399_v50  ;;  %2785 = vst.msk [vmem:[#allocation4 + $0x38] sm:$0xff] %vm2777_vm7, %v5806_v25 }
 0x247   : > { %2702 = vst.msk [vmem:[#allocation2 + $0x64] sm:$0xf] %vm2640_vm10, %v2591_v28  ;;  %2705 = vst [vmem:[#allocation2 + $0x68] sm:$0x1] %v2704_v29  ;;  %v3423_v49 = vpop.permute.xlu0 %3422  ;;  %v3829_v24 = vshll.u32 %v5782_v21, 16  ;;  %vm3229_vm15 = vcmask 64560   ;;  %v2952_v52 = vor.u32 %v2951_v14, %v2947_v9 }
 0x248   : > { %3884 = vrot.lane.b32.xlu1 %v3849_v20, %s6060_s9  ;;  %v3396_v7 = vrot.slane %v3394_v57, 1  ;;  %v3409_v8 = vsel %vm454_vm1, %v3404_v1, %v3408_v23  ;;  %v2956_v44 = vrot.slane %v2954_v4, 1  ;;  %v3827_v58 = vshrl.u32 %v5782_v21, 16  ;;  %v5794_v35 = vld [vmem:[#allocation2 + $0x6c] sm:$0xff]  }
 0x249   : > { %4027 = vrot.lane.b32.xlu0 %v4009_v48, %s6053_s13  ;;  %v3831_v5 = vrot.slane %v3829_v24, 1  ;;  %v3834_v13 = vshll.u32 %v5783_v6, 16  ;;  %vm3446_vm10 = vcmask 80960   ;;  %v5784_v63 = vld [vmem:[#allocation2 + $0x6c] sm:$0xff]   ;;  %v3863_v16 = vshrl.u32 %v5794_v35, 16 }
 0x24a   : > { %v3397_v59 = vsel %vm454_vm1, %v3392_v61, %v3396_v7  ;;  %v2957_v11 = vsel %vm454_vm1, %v2952_v52, %v2956_v44  ;;  %v5795_v55 = vld [vmem:[#allocation2 + $0x74] ss:$0 sps:$4 sm:$0x11]   ;;  %vm3591_vm12 = vcmask 97360   ;;  %v5798_v7 = vld [vmem:[#allocation2 + $0x6c] sm:$0xfe]  }
 0x24b   : > { %v2971_v12 = vpop.permute.xlu0 %2970  ;;  %v3832_v2 = vor.u32 %v3831_v5, %v3827_v58  ;;  %v3836_v18 = vrot.slane %v3834_v13, 1  ;;  %v5799_v0 = vld [vmem:[#allocation2 + $0x74] ss:$0 sps:$4 sm:$0x11]   ;;  %vm3681_vm13 = vcmask 113760   ;;  %v5807_v1 = vld [vmem:[#allocation2 + $0x48] sm:$0xff]  }
 0x24c   : > { %2984 = vrot.lane.b32.xlu1 %v2969_v47, %s6059_s27  ;;  %2995 = vst.msk [vmem:[#allocation4] sm:$0xff] %vm2994_vm8, %v2971_v12  ;;  %v3870_v47 = vshll.u32 %v5795_v55, 16  ;;  %v4017_v14 = vrot.slane %v5799_v0, 1 }
 0x24d   : > { %3127 = vrot.lane.b32.xlu0 %v3111_v33, %s6052_s12  ;;  %3140 = vst.msk [vmem:[#allocation4] sm:$0xff] %vm3139_vm9, %v3116_v15  ;;  %v3837_v22 = vsel %vm454_vm1, %v3832_v2, %v3836_v18  ;;  %v3865_v15 = vshll.u32 %v5794_v35, 16 }
 0x24e   : > { %3230 = vst.msk [vmem:[#allocation4] sm:$0xff] %vm3229_vm15, %v7065_v36  ;;  %v5788_v53 = vld [vmem:[#allocation2 + $0x60] sm:$0xff]   ;;  %v5789_v34 = vld [vmem:[#allocation2 + $0x68] ss:$0 sps:$4 sm:$0x11]   ;;  %v3872_v61 = vrot.slane %v3870_v47, 1 }
 0x24f   : > { %3447 = vst.msk [vmem:[#allocation4] sm:$0xff] %vm3446_vm10, %v3423_v49  ;;  %v3853_v42 = vshll.u32 %v5788_v53, 16  ;;  %v5785_v28 = vld [vmem:[#allocation2 + $0x60] sm:$0xff]   ;;  %v3858_v29 = vshll.u32 %v5789_v34, 16  ;;  %v3851_v39 = vshrl.u32 %v5788_v53, 16  ;;  %v3867_v27 = vrot.slane %v3865_v15, 1 }
 0x250   : > { %3432 = vrot.lane.b32.xlu1 %v3397_v59, %s6051_s10  ;;  %v5790_v37 = vld [vmem:[#allocation2 + $0x60] sm:$0xfe]   ;;  %v5791_v31 = vld [vmem:[#allocation2 + $0x68] ss:$0 sps:$4 sm:$0x11]   ;;  %3592 = vst.msk [vmem:[#allocation4] sm:$0xff] %vm3591_vm12, %v7082_v10 }
 0x251   : > { %3434 = vrot.lane.b32.xlu0 %v3409_v8, %s6051_s10  ;;  %v5787_v17 = vld [vmem:[#allocation2 + $0x60] sm:$0xff]   ;;  %v3855_v36 = vrot.slane %v3853_v42, 1  ;;  %v3860_v32 = vrot.slane %v3858_v29, 1  ;;  %v3564_v40 = vrot.slane %v5790_v37, 1  ;;  %v3565_v38 = vrot.slane %v5791_v31, 1  ;;  %2784 = vst.msk [vmem:[#allocation4 + $0x30] sm:$0xff] %vm2777_vm7, %v5807_v1 }
 0x252   : > { %v5792_v30 = vld [vmem:[#allocation2 + $0x60] sm:$0xfe]   ;;  %v5793_v41 = vld [vmem:[#allocation2 + $0x68] ss:$0 sps:$4 sm:$0x11]   ;;  %v3868_v50 = vor.u32 %v3867_v27, %v3863_v16  ;;  %v4016_v59 = vrot.slane %v5798_v7, 1 }
 0x253   : > { %v3856_v20 = vor.u32 %v3855_v36, %v3851_v39  ;;  %v5796_v45 = vld [vmem:[#allocation2 + $0x60] sm:$0xff]   ;;  %v4013_v54 = vrot.slane %v5792_v30, 1  ;;  %v4014_v56 = vrot.slane %v5793_v41, 1  ;;  %v5797_v57 = vld [vmem:[#allocation2 + $0x68] ss:$0 sps:$4 sm:$0x11]   ;;  %v3566_v26 = vsel %vm726_vm0, %v3564_v40, %v3565_v38 }
 0x254   : > { %2982 = vrot.lane.b32.xlu1 %v2957_v11, %s6059_s27  ;;  %v3413_v19 = vshll.u32 %v5796_v45, 16  ;;  %v3411_v49 = vshrl.u32 %v5796_v45, 16  ;;  %v3418_v33 = vshll.u32 %v5797_v57, 16  ;;  %v3873_v3 = vsel %vm454_vm1, %v3868_v50, %v3872_v61  ;;  %v5803_v10 = vld [vmem:[%s7411_s3 + $0x8] ss:$0 sps:$4 sm:$0x11]  }
 0x255   : > { %3882 = vrot.lane.b32.xlu0 %v3837_v22, %s6060_s9  ;;  %v3861_v51 = vsel %vm454_vm1, %v3856_v20, %v3860_v32  ;;  %v4015_v9 = vsel %vm726_vm0, %v4013_v54, %v4014_v56  ;;  %5446 = vmatprep.subr.msk.bf16.mxu1 %vm4104_vm11, %v5803_v10  ;;  %v4106_v4 = vsel %vm4104_vm11, %v5803_v10, 0  ;;  %v4018_v52 = vsel %vm726_vm0, %v4016_v59, %v4017_v14 }
 0x256   : > { %v3415_v62 = vrot.slane %v3413_v19, 1  ;;  %v3420_v21 = vrot.slane %v3418_v33, 1  ;;  %5428 = vmatpush3.bf16.msra.mxu1 %v4106_v4  ;;  %vm4043_vm7 = vcmask 146560   ;;  %v7216_v4 = vld [vmem:[%s7412_s4] ss:$0 sm:$0xff] }
 0x258   : > { %3671 = vrot.lane.b32.xlu1 %v5784_v63, %s6049_s8  ;;  %v3416_v23 = vor.u32 %v3415_v62, %v3411_v49 }
 0x259   : > { %3669 = vrot.lane.b32.xlu0 %v5785_v28, %s6049_s8 }
 0x25a   : > { %v3421_v6 = vsel %vm454_vm1, %v3416_v23, %v3420_v21  ;;  %vm3898_vm1 = vcmask 130160  }
 0x25c   : > { %v7121_v46 = vpop.permute.xlu1 %3659  ;;  %3219 = vrot.lane.b32.xlu1 %v5787_v17, %s6057_s17 }
 0x25d   : > { %v7124_v48 = vpop.permute.xlu0 %3209  ;;  %3886 = vrot.lane.b32.xlu0 %v3861_v51, %s6060_s9 }
 0x260   : > { %3581 = vrot.lane.b32.xlu1 %v3566_v26, %s6058_s26  ;;  %s239_s26 = sand.u32 1, %s6023_s19  }
 0x261   : > { %v3208_v43 = vpop.permute.xlu1 %3207  ;;  %4031 = vrot.lane.b32.xlu0 %v4015_v9, %s6053_s13  ;;  %s4714_s27 = sshll.u32 %s239_s26, 6 }
 0x262   : > { %3231 = vst.msk [vmem:[#allocation4 + $0x8] sm:$0xff] %vm3229_vm15, %v3208_v43  ;;  %v3658_v60 = vpop.permute.xlu0 %3657 }
 0x263   : > { %3682 = vst.msk [vmem:[#allocation4] sm:$0xff] %vm3681_vm13, %v3658_v60 }
 0x264   : > { %3888 = vrot.lane.b32.xlu1 %v3873_v3, %s6060_s9  ;;  %s7233_s9 = scalar_lea.vmem [#allocation5], %s4714_s27  ;;  %s6061_s27 = smov [#allocation5]  }
 0x265   : > { %v3122_v24 = vpop.permute.xlu1 %3121  ;;  %s4624_s21 = sshll.u32 %s7233_s9, 4  ;;  %s7337_s21 = int_to_ptr.vmem [resolvable:$true] %s4624_s21 }
 0x266   : > { %v4022_v8 = vpop.permute.xlu0 %4021 }
 0x268   : > { %3436 = vrot.lane.b32.xlu1 %v3421_v6, %s6051_s10  ;;  %s7355_s10 = scalar_lea.sflag [#allocation6], %s239_s26 }
 0x26c   : > { %4033 = vrot.lane.b32.xlu1 %v4018_v52, %s6053_s13  ;;  %s5953_s13 = scalar_lea.vmem %s7337_s21, 1024 }
 0x26d   : > { %p5954_p0 = scmp.ne.s32.totalorder %s7337_s21, %s5953_s13 }
 0x26f   : > { %p5955_p1 = pnand %p5954_p0, %p6144_p3 }
 0x270   : > { %v3570_v44 = vpop.permute.xlu1 %3569 }
 0x271   : > { %p5956_p2 = pneg %p5955_p1 }
 0x273   : > { %v3572_v58 = vpop.permute.xlu0 %3571 }
 0x276   : > { %v3877_v12 = vpop.permute.xlu1 %3876 }
 0x277   : > { %v4020_v5 = vpop.permute.xlu0 %4019 }
 0x27a   : > { %v2977_v13 = vpop.permute.xlu1 %2976 }
 0x27b   : > { %2998 = vst.msk [vmem:[#allocation4 + $0x18] sm:$0xff] %vm2994_vm8, %v2977_v13  ;;  %v3120_v11 = vpop.permute.xlu0 %3119 }
 0x27c   : > { %3143 = vst.msk [vmem:[#allocation4 + $0x18] sm:$0xff] %vm3139_vm9, %v3122_v24 }
 0x27e   : > { %v3425_v2 = vpop.permute.xlu1 %3424 }
 0x27f   : > { %3448 = vst.msk [vmem:[#allocation4 + $0x8] sm:$0xff] %vm3446_vm10, %v3425_v2  ;;  %v3427_v18 = vpop.permute.xlu0 %3426 }
 0x280   : > { %3593 = vst.msk [vmem:[#allocation4 + $0x8] sm:$0xff] %vm3591_vm12, %v3570_v44 }
 0x281   : > { %3683 = vst.msk [vmem:[#allocation4 + $0x8] sm:$0xff] %vm3681_vm13, %v7121_v46 }
 0x282   : > { %3900 = vst.msk [vmem:[#allocation4 + $0x8] sm:$0xff] %vm3898_vm1, %v3877_v12  ;;  %v2975_v53 = vpop.permute.xlu1 %2974 }
 0x283   : > { %4045 = vst.msk [vmem:[#allocation4 + $0x8] sm:$0xff] %vm4043_vm7, %v4022_v8  ;;  %v3875_v34 = vpop.permute.xlu0 %3874 }
 0x284   : > { %2997 = vst.msk [vmem:[#allocation4 + $0x10] sm:$0xff] %vm2994_vm8, %v2975_v53 }
 0x285   : > { %3142 = vst.msk [vmem:[#allocation4 + $0x10] sm:$0xff] %vm3139_vm9, %v3120_v11 }
 0x286   : > { %3232 = vst.msk [vmem:[#allocation4 + $0x10] sm:$0xff] %vm3229_vm15, %v7124_v48  ;;  %v3664_v35 = vpop.permute.xlu1 %3663 }
 0x287   : > { %3899 = vst.msk [vmem:[#allocation4] sm:$0xff] %vm3898_vm1, %v3875_v34  ;;  %v3214_v22 = vpop.permute.xlu0 %3213 }
 0x288   : > { %3449 = vst.msk [vmem:[#allocation4 + $0x10] sm:$0xff] %vm3446_vm10, %v3427_v18 }
 0x289   : > { %4044 = vst.msk [vmem:[#allocation4] sm:$0xff] %vm4043_vm7, %v4020_v5 }
 0x28a   : > { %3594 = vst.msk [vmem:[#allocation4 + $0x10] sm:$0xff] %vm3591_vm12, %v3572_v58  ;;  %v3212_v63 = vpop.permute.xlu1 %3211  ;;  %v4053_v29 = vld [vmem:[#allocation4 + $0x8] sm:$0xff] }
 0x28b   : > { %3233 = vst.msk [vmem:[#allocation4 + $0x18] sm:$0xff] %vm3229_vm15, %v3212_v63  ;;  %v3662_v42 = vpop.permute.xlu0 %3661 }
 0x28c   : > { %3684 = vst.msk [vmem:[#allocation4 + $0x10] sm:$0xff] %vm3681_vm13, %v3662_v42 }
 0x28e   : > { %v3126_v37 = vpop.permute.xlu1 %3125 }
 0x290   : > { %v4052_v28 = vld [vmem:[#allocation4] sm:$0xff] }
 0x291   : > { %5429 = vmatprep.mubr.msk.bf16.mxu1 %vm4079_vm14, %v4052_v28  ;;  %v4026_v31 = vpop.permute.xlu0 %4025 }
 0x292   : > { %5430 = vmatmul.mubr.msk.bf16.vlgmr.msra.gmra.mrb[0].mxu1 %vm4079_vm14, %v4053_v29 }
 0x294   : > { %v3574_v17 = vpop.permute.xlu1 %3573 }
 0x295   : > { %v3576_v39 = vpop.permute.xlu0 %3575 }
 0x299   : > { %v3881_v36 = vpop.permute.xlu1 %3880  ;;  %v4024_v32 = vpop.permute.xlu0 %4023 }
 0x29d   : > { %v3124_v38 = vpop.permute.xlu0 %3123 }
 0x29e   : > { %v2981_v40 = vpop.permute.xlu1 %2980 }
 0x29f   : > { %3000 = vst.msk [vmem:[#allocation4 + $0x28] sm:$0xff] %vm2994_vm8, %v2981_v40 }
 0x2a0   : > { %3145 = vst.msk [vmem:[#allocation4 + $0x28] sm:$0xff] %vm3139_vm9, %v3126_v37  ;;  %v5212_v37 = vld [vmem:[%s6171_s30 + $0x24] sm:$0xff]  }
 0x2a1   : > { %v3431_v20 = vpop.permute.xlu0 %3430 }
 0x2a2   : > { %v3429_v15 = vpop.permute.xlu1 %3428 }
 0x2a3   : > { %3450 = vst.msk [vmem:[#allocation4 + $0x18] sm:$0xff] %vm3446_vm10, %v3429_v15  ;;  %v4409_v15 = vunpack.c.h.bf16 %v5212_v37 }
 0x2a4   : > { %3595 = vst.msk [vmem:[#allocation4 + $0x18] sm:$0xff] %vm3591_vm12, %v3574_v17 }
 0x2a5   : > { %3685 = vst.msk [vmem:[#allocation4 + $0x18] sm:$0xff] %vm3681_vm13, %v3664_v35 }
 0x2a6   : > { %3902 = vst.msk [vmem:[#allocation4 + $0x18] sm:$0xff] %vm3898_vm1, %v3881_v36  ;;  %v2979_v30 = vpop.permute.xlu1 %2978 }
 0x2a7   : > { %4047 = vst.msk [vmem:[#allocation4 + $0x18] sm:$0xff] %vm4043_vm7, %v4026_v31  ;;  %v3879_v41 = vpop.permute.xlu0 %3878 }
 0x2a8   : > { %2999 = vst.msk [vmem:[#allocation4 + $0x20] sm:$0xff] %vm2994_vm8, %v2979_v30 }
 0x2a9   : > { %3144 = vst.msk [vmem:[#allocation4 + $0x20] sm:$0xff] %vm3139_vm9, %v3124_v38  ;;  %v4408_v38 = vunpack.c.l.bf16 %v5212_v37 }
 0x2aa   : > { %3234 = vst.msk [vmem:[#allocation4 + $0x20] sm:$0xff] %vm3229_vm15, %v3214_v22  ;;  %v3668_v45 = vpop.permute.xlu1 %3667 }
 0x2ab   : > { %3451 = vst.msk [vmem:[#allocation4 + $0x20] sm:$0xff] %vm3446_vm10, %v3431_v20  ;;  %v3218_v46 = vpop.permute.xlu0 %3217  ;;  %v5211_v20 = vld [vmem:[%s6171_s30 + $0x20] sm:$0x1] }
 0x2ac   : > { %3901 = vst.msk [vmem:[#allocation4 + $0x10] sm:$0xff] %vm3898_vm1, %v3879_v41 }
 0x2ad   : > { %4046 = vst.msk [vmem:[#allocation4 + $0x10] sm:$0xff] %vm4043_vm7, %v4024_v32  ;;  %v5214_v32 = vld [vmem:[%s6171_s30 + $0x2c] sm:$0x1] }
 0x2ae   : > { %3596 = vst.msk [vmem:[#allocation4 + $0x20] sm:$0xff] %vm3591_vm12, %v3576_v39  ;;  %v3216_v48 = vpop.permute.xlu1 %3215  ;;  %v4055_v16 = vld [vmem:[#allocation4 + $0x18] sm:$0xff]  ;;  %v5372_v39 = vld [vmem:[%s6171_s30 + $0x18] sm:$0xff]  }
 0x2af   : > { %3235 = vst.msk [vmem:[#allocation4 + $0x28] sm:$0xff] %vm3229_vm15, %v3216_v48  ;;  %v3666_v51 = vpop.permute.xlu0 %3665  ;;  %v5351_v30 = vunpack.c.l.bf16 %v5372_v39  ;;  %v5352_v41 = vunpack.c.h.bf16 %v5372_v39  ;;  %v4459_v48 = vrot.slane %v4408_v38, 1 }
 0x2b0   : > { %3686 = vst.msk [vmem:[#allocation4 + $0x20] sm:$0xff] %vm3681_vm13, %v3666_v51  ;;  %v4460_v51 = vrot.slane %v4409_v15, 1  ;;  %v5217_v15 = vld [vmem:[%s6171_s30 + $0x38] sm:$0x1] }
 0x2b2   : > { %v3130_v55 = vpop.permute.xlu1 %3129 }
 0x2b3   : > { %v4030_v27 = vpop.permute.xlu0 %4029 }
 0x2b4   : > { %v4054_v54 = vld [vmem:[#allocation4 + $0x10] sm:$0xff] }
 0x2b5   : > { %5433 = vmatprep.mubr.msk.bf16.mxu1 %vm4079_vm14, %v4054_v54  ;;  %v4454_v54 = vrot.slane %v5351_v30, 1 }
 0x2b6   : > { %5434 = vmatmul.mubr.msk.bf16.gmra.mrb[4].mxu1 %vm4079_vm14, %v4055_v16  ;;  %v3578_v56 = vpop.permute.xlu1 %3577 }
 0x2b7   : > { %v3580_v47 = vpop.permute.xlu0 %3579 }
 0x2ba   : > { %v3885_v57 = vpop.permute.xlu1 %3884 }
 0x2bb   : > { %v4028_v25 = vpop.permute.xlu0 %4027 }
 0x2be   : > { %v2985_v26 = vpop.permute.xlu1 %2984 }
 0x2bf   : > { %3002 = vst.msk [vmem:[#allocation4 + $0x38] sm:$0xff] %vm2994_vm8, %v2985_v26  ;;  %v3128_v50 = vpop.permute.xlu0 %3127 }
 0x2c0   : > { %3147 = vst.msk [vmem:[#allocation4 + $0x38] sm:$0xff] %vm3139_vm9, %v3130_v55  ;;  %v4455_v55 = vrot.slane %v5352_v41, 1 }
 0x2c2   : > { %v3433_v19 = vpop.permute.xlu1 %3432  ;;  %v4456_v26 = vsel %vm726_vm0, %v4454_v54, %v4455_v55 }
 0x2c3   : > { %3452 = vst.msk [vmem:[#allocation4 + $0x28] sm:$0xff] %vm3446_vm10, %v3433_v19  ;;  %v3435_v43 = vpop.permute.xlu0 %3434 }
 0x2c4   : > { %3597 = vst.msk [vmem:[#allocation4 + $0x28] sm:$0xff] %vm3591_vm12, %v3578_v56 }
 0x2c5   : > { %3687 = vst.msk [vmem:[#allocation4 + $0x28] sm:$0xff] %vm3681_vm13, %v3668_v45  ;;  %v4410_v45 = vunpack.c.l.bf16 %v5214_v32 }
 0x2c6   : > { %3904 = vst.msk [vmem:[#allocation4 + $0x28] sm:$0xff] %vm3898_vm1, %v3885_v57  ;;  %v2983_v49 = vpop.permute.xlu1 %2982 }
 0x2c7   : > { %4049 = vst.msk [vmem:[#allocation4 + $0x28] sm:$0xff] %vm4043_vm7, %v4030_v27  ;;  %v3883_v33 = vpop.permute.xlu0 %3882  ;;  %v4462_v16 = vrot.slane %v4410_v45, 1  ;;  %v4413_v45 = vunpack.c.l.bf16 %v5217_v15  ;;  %v5226_v15 = vld [vmem:[%s6171_s30 + $0x5c] sm:$0x1] }
 0x2c8   : > { %3001 = vst.msk [vmem:[#allocation4 + $0x30] sm:$0xff] %vm2994_vm8, %v2983_v49 }
 0x2c9   : > { %3146 = vst.msk [vmem:[#allocation4 + $0x30] sm:$0xff] %vm3139_vm9, %v3128_v50 }
 0x2ca   : > { %3236 = vst.msk [vmem:[#allocation4 + $0x30] sm:$0xff] %vm3229_vm15, %v3218_v46  ;;  %v3672_v7 = vpop.permute.xlu1 %3671  ;;  %v4407_v46 = vunpack.c.l.bf16 %v5211_v20 }
 0x2cb   : > { %3453 = vst.msk [vmem:[#allocation4 + $0x30] sm:$0xff] %vm3446_vm10, %v3435_v43  ;;  %v3670_v60 = vpop.permute.xlu0 %3669  ;;  %v4463_v43 = vsel %vm726_vm0, %v4460_v51, %v4462_v16  ;;  %v4467_v16 = vrot.slane %v4413_v45, 1 }
 0x2cc   : > { %3903 = vst.msk [vmem:[#allocation4 + $0x20] sm:$0xff] %vm3898_vm1, %v3883_v33  ;;  %v4457_v27 = vrot.slane %v4407_v46, 1 }
 0x2cd   : > { %4048 = vst.msk [vmem:[#allocation4 + $0x20] sm:$0xff] %vm4043_vm7, %v4028_v25 }
 0x2ce   : > { %3598 = vst.msk [vmem:[#allocation4 + $0x30] sm:$0xff] %vm3591_vm12, %v3580_v47  ;;  %v3220_v61 = vpop.permute.xlu1 %3219  ;;  %v4057_v3 = vld [vmem:[#allocation4 + $0x28] sm:$0xff]  ;;  %v4461_v47 = vsel %vm726_vm0, %v4459_v48, %v4460_v51 }
 0x2cf   : > { %3688 = vst.msk [vmem:[#allocation4 + $0x30] sm:$0xff] %vm3681_vm13, %v3670_v60  ;;  %v3887_v62 = vpop.permute.xlu0 %3886  ;;  %v4458_v60 = vsel %vm726_vm0, %v4455_v55, %v4457_v27 }
 0x2d0   : > { %3237 = vst.msk [vmem:[#allocation4 + $0x38] sm:$0xff] %vm3229_vm15, %v3220_v61 }
 0x2d1   : > { %3905 = vst.msk [vmem:[#allocation4 + $0x30] sm:$0xff] %vm3898_vm1, %v3887_v62 }
 0x2d2   : > { %v3582_v9 = vpop.permute.xlu1 %3581 }
 0x2d3   : > { %v4032_v23 = vpop.permute.xlu0 %4031 }
 0x2d4   : > { %v4056_v0 = vld [vmem:[#allocation4 + $0x20] sm:$0xff]  ;;  %4050 = vst.msk [vmem:[#allocation4 + $0x30] sm:$0xff] %vm4043_vm7, %v4032_v23 }
 0x2d5   : > { %5437 = vmatprep.mubr.msk.bf16.mxu1 %vm4079_vm14, %v4056_v0 }
 0x2d6   : > { %5438 = vmatmul.mubr.msk.bf16.gmra.mrb[8].mxu1 %vm4079_vm14, %v4057_v3  ;;  %v3889_v21 = vpop.permute.xlu1 %3888 }
 0x2da   : > { %v3437_v59 = vpop.permute.xlu1 %3436 }
 0x2db   : > { %3454 = vst.msk [vmem:[#allocation4 + $0x38] sm:$0xff] %vm3446_vm10, %v3437_v59  ;;  %v4058_v10 = vld [vmem:[#allocation4 + $0x30] sm:$0xff] }
 0x2dc   : > { %3599 = vst.msk [vmem:[#allocation4 + $0x38] sm:$0xff] %vm3591_vm12, %v3582_v9  ;;  %5441 = vmatprep.mubr.msk.bf16.mxu1 %vm4079_vm14, %v4058_v10 }
 0x2dd   : > { %3689 = vst.msk [vmem:[#allocation4 + $0x38] sm:$0xff] %vm3681_vm13, %v3672_v7 }
 0x2de   : > { %3906 = vst.msk [vmem:[#allocation4 + $0x38] sm:$0xff] %vm3898_vm1, %v3889_v21  ;;  %v4034_v1 = vpop.permute.xlu1 %4033 }
 0x2df   : > { %4051 = vst.msk [vmem:[#allocation4 + $0x38] sm:$0xff] %vm4043_vm7, %v4034_v1 }
 0x2e6   : > { %v4059_v14 = vld [vmem:[#allocation4 + $0x38] sm:$0xff] }
 0x2e7   : > { %5442 = vmatmul.mubr.msk.bf16.gmra.mrb[12].mxu1 %vm4079_vm14, %v4059_v14 }
 0x365   : > { %v5431_v6 = vpop.f32.mrb[0].mxu1 }
 0x366   : > { %v4151_v24 = vadd.f32 %v5431_v6, %v7216_v4  ;;  %v4142_v8 = vpop.f32.mrb[1].mxu1 }
 0x367   : > { %v4143_v52 = vadd.f32 %v7216_v4, %v4142_v8  ;;  %v5432_v44 = vpop.f32.mrb[2].mxu1 }
 0x368   : > { %v4207_v58 = vsub.f32 0.0, %v4151_v24  ;;  %v4154_v12 = vadd.f32 %v5432_v44, %v7216_v4  ;;  %v4145_v5 = vpop.f32.mrb[3].mxu1 }
 0x369   : > { %v4205_v13 = vsub.f32 0.0, %v4143_v52  ;;  %v4146_v11 = vadd.f32 %v7216_v4, %v4145_v5 }
 0x36a   : > { %v4225_v2 = vmul.f32 1.442695, %v4207_v58  ;;  %v4208_v18 = vsub.f32 0.0, %v4154_v12 }
 0x36b   : > { %v4221_v53 = vmul.f32 1.442695, %v4205_v13  ;;  %v4206_v34 = vsub.f32 0.0, %v4146_v11 }
 0x36c   : > { %5888 = vpow2.f32 %v4225_v2  ;;  %v4227_v35 = vmul.f32 1.442695, %v4208_v18 }
 0x36d   : > { %5890 = vpow2.f32 %v4221_v53  ;;  %v4223_v22 = vmul.f32 1.442695, %v4206_v34 }
 0x36e   : > { %5892 = vpow2.f32 %v4227_v35 }
 0x36f   : > { %5894 = vpow2.f32 %v4223_v22 }
 0x376   : > { %v5889_v63 = vpop.eup %5888 }
 0x377   : > { %v5891_v42 = vpop.eup %5890  ;;  %v4255_v28 = vadd.f32 1.0, %v5889_v63 }
 0x378   : > { %v5893_v29 = vpop.eup %5892  ;;  %v4253_v31 = vadd.f32 1.0, %v5891_v42 }
 0x379   : > { %v5895_v17 = vpop.eup %5894  ;;  %5896 = vrcp.f32 %v4255_v28  ;;  %v4256_v36 = vadd.f32 1.0, %v5893_v29  ;;  %v5218_v29 = vld [vmem:[%s6171_s30 + $0x3c] sm:$0xff]  }
 0x37a   : > { %5898 = vrcp.f32 %v4253_v31  ;;  %v4254_v40 = vadd.f32 1.0, %v5895_v17  ;;  %v5373_v17 = vld [vmem:[%s6171_s30 + $0x30] sm:$0xff]   ;;  %v4415_v38 = vunpack.c.h.bf16 %v5218_v29 }
 0x37b   : > { %5900 = vrcp.f32 %v4256_v36  ;;  %v5220_v36 = vld [vmem:[%s6171_s30 + $0x44] sm:$0x1]  ;;  %v5355_v20 = vunpack.c.l.bf16 %v5373_v17  ;;  %v5356_v30 = vunpack.c.h.bf16 %v5373_v17 }
 0x37c   : > { %5902 = vrcp.f32 %v4254_v40  ;;  %v4414_v40 = vunpack.c.l.bf16 %v5218_v29  ;;  %v4416_v41 = vunpack.c.l.bf16 %v5220_v36  ;;  %v4470_v48 = vrot.slane %v4415_v38, 1 }
 0x37d   : > { %v4464_v51 = vrot.slane %v5355_v20, 1  ;;  %v4465_v54 = vrot.slane %v5356_v30, 1 }
 0x37e   : > { %v4469_v46 = vrot.slane %v4414_v40, 1  ;;  %v4472_v55 = vrot.slane %v4416_v41, 1 }
 0x383   : > { %v5897_v56 = vpop.eup %5896 }
 0x384   : > { %v5899_v57 = vpop.eup %5898  ;;  %v4287_v25 = vmul.f32 %v5897_v56, %v4151_v24  ;;  %v4471_v56 = vsel %vm726_vm0, %v4469_v46, %v4470_v48  ;;  %v5223_v46 = vld [vmem:[%s6171_s30 + $0x50] sm:$0x1] }
 0x385   : > { %v5901_v50 = vpop.eup %5900  ;;  %v4285_v19 = vmul.f32 %v5899_v57, %v4143_v52 }
 0x386   : > { %v5903_v49 = vpop.eup %5902  ;;  %v4512_v33 = vadd.f32 %v4461_v47, %v4287_v25  ;;  %v4288_v7 = vmul.f32 %v5901_v50, %v4154_v12 }
 0x387   : > { %v4510_v61 = vadd.f32 %v4456_v26, %v4285_v19  ;;  %v4286_v62 = vmul.f32 %v5903_v49, %v4146_v11 }
 0x388   : > { %v5294_v0 = vpack.c.bf16 %v4512_v33, %v4512_v33  ;;  %v5317_v9 = vpack.c.bf16 %v4288_v7, %v4287_v25  ;;  %v4513_v3 = vadd.f32 %v4463_v43, %v4288_v7  ;;  %v4466_v25 = vsel %vm726_vm0, %v4464_v51, %v4465_v54 }
 0x389   : > { %v5292_v23 = vpack.c.bf16 %v4510_v61, %v4510_v61  ;;  %v5312_v21 = vpack.c.bf16 %v4286_v62, %v4285_v19  ;;  %v4511_v59 = vadd.f32 %v4458_v60, %v4286_v62  ;;  %v5435_v14 = vpop.f32.mrb[4].mxu1  ;;  %v4473_v19 = vsel %vm726_vm0, %v4470_v48, %v4472_v55 }
 0x38a   : > { %5365 = vst [vmem:[%s7233_s9 + $0x8] sm:$0xff] %v5317_v9   ;;  %v5295_v10 = vpack.c.bf16 %v4513_v3, %v4513_v3  ;;  %v4167_v6 = vadd.f32 %v5435_v14, %v7216_v4  ;;  %v4158_v24 = vpop.f32.mrb[5].mxu1  ;;  %v4468_v7 = vsel %vm726_vm0, %v4465_v54, %v4467_v16 }
 0x38b   : > { %4593 = vst.msk [vmem:[%s7233_s9 + $0x8] sm:$0xf] %vm4590_vm2, %v5294_v0  ;;  %5313 = vst [vmem:[%s7233_s9] sm:$0xff] %v5312_v21   ;;  %v5293_v1 = vpack.c.bf16 %v4511_v59, %v4511_v59  ;;  %v4159_v8 = vadd.f32 %v7216_v4, %v4158_v24  ;;  %v5436_v52 = vpop.f32.mrb[6].mxu1 }
 0x38c   : > { %4594 = vst.msk [vmem:[%s7233_s9 + $0xc] sm:$0xf] %vm4590_vm2, %v5295_v10  ;;  %4591 = vst.msk [vmem:[%s7233_s9] sm:$0xf] %vm4590_vm2, %v5292_v23  ;;  %v4211_v44 = vsub.f32 0.0, %v4167_v6  ;;  %v4170_v58 = vadd.f32 %v5436_v52, %v7216_v4  ;;  %v4161_v12 = vpop.f32.mrb[7].mxu1 }
 0x38d   : > { %4592 = vst.msk [vmem:[%s7233_s9 + $0x4] sm:$0xf] %vm4590_vm2, %v5293_v1  ;;  %v4209_v5 = vsub.f32 0.0, %v4159_v8  ;;  %v4162_v13 = vadd.f32 %v7216_v4, %v4161_v12 }
 0x38e   : > { %v4233_v11 = vmul.f32 1.442695, %v4211_v44  ;;  %v4212_v2 = vsub.f32 0.0, %v4170_v58 }
 0x38f   : > { %v4229_v18 = vmul.f32 1.442695, %v4209_v5  ;;  %v4210_v53 = vsub.f32 0.0, %v4162_v13 }
 0x390   : > { %5904 = vpow2.f32 %v4233_v11  ;;  %v4235_v34 = vmul.f32 1.442695, %v4212_v2 }
 0x391   : > { %5906 = vpow2.f32 %v4229_v18  ;;  %v4231_v35 = vmul.f32 1.442695, %v4210_v53 }
 0x392   : > { %5908 = vpow2.f32 %v4235_v34 }
 0x393   : > { %5910 = vpow2.f32 %v4231_v35 }
 0x39a   : > { %v5905_v22 = vpop.eup %5904 }
 0x39b   : > { %v5907_v63 = vpop.eup %5906  ;;  %v4259_v42 = vadd.f32 1.0, %v5905_v22  ;;  %v5224_v22 = vld [vmem:[%s6171_s30 + $0x54] sm:$0xff]  }
 0x39c   : > { %v5909_v28 = vpop.eup %5908  ;;  %v4257_v37 = vadd.f32 1.0, %v5907_v63  ;;  %v4421_v38 = vunpack.c.h.bf16 %v5224_v22 }
 0x39d   : > { %v5911_v31 = vpop.eup %5910  ;;  %5912 = vrcp.f32 %v4259_v42  ;;  %v4260_v39 = vadd.f32 1.0, %v5909_v28 }
 0x39e   : > { %5914 = vrcp.f32 %v4257_v37  ;;  %v4258_v32 = vadd.f32 1.0, %v5911_v31  ;;  %v5374_v37 = vld [vmem:[%s6171_s30 + $0x48] sm:$0xff]  }
 0x39f   : > { %5916 = vrcp.f32 %v4260_v39  ;;  %v4420_v39 = vunpack.c.l.bf16 %v5224_v22  ;;  %v5359_v45 = vunpack.c.l.bf16 %v5374_v37  ;;  %v5360_v55 = vunpack.c.h.bf16 %v5374_v37 }
 0x3a0   : > { %5918 = vrcp.f32 %v4258_v32 }
 0x3a7   : > { %v5913_v27 = vpop.eup %5912 }
 0x3a8   : > { %v5915_v47 = vpop.eup %5914  ;;  %v4291_v57 = vmul.f32 %v5913_v27, %v4167_v6 }
 0x3a9   : > { %v5917_v26 = vpop.eup %5916  ;;  %v4289_v50 = vmul.f32 %v5915_v47, %v4159_v8  ;;  %v5439_v62 = vpop.f32.mrb[8].mxu1 }
 0x3aa   : > { %v5919_v43 = vpop.eup %5918  ;;  %v4516_v49 = vadd.f32 %v4471_v56, %v4291_v57  ;;  %v4292_v33 = vmul.f32 %v5917_v26, %v4170_v58  ;;  %v7258_v23 = vadd.f32 %v5439_v62, %v7216_v4  ;;  %v4174_v21 = vpop.f32.mrb[9].mxu1  ;;  %v4422_v56 = vunpack.c.l.bf16 %v5226_v15 }
 0x3ab   : > { %v4514_v60 = vadd.f32 %v4466_v25, %v4289_v50  ;;  %v4290_v61 = vmul.f32 %v5919_v43, %v4162_v13  ;;  %v7261_v14 = vadd.f32 %v7216_v4, %v4174_v21  ;;  %v5440_v6 = vpop.f32.mrb[10].mxu1  ;;  %v4419_v25 = vunpack.c.l.bf16 %v5223_v46 }
 0x3ac   : > { %v5298_v0 = vpack.c.bf16 %v4516_v49, %v4516_v49  ;;  %v5327_v9 = vpack.c.bf16 %v4292_v33, %v4291_v57  ;;  %v4517_v3 = vadd.f32 %v4473_v19, %v4292_v33  ;;  %v4215_v8 = vsub.f32 0.0, %v7258_v23  ;;  %v4177_v44 = vpop.f32.mrb[11].mxu1 }
 0x3ad   : > { %v5296_v59 = vpack.c.bf16 %v4514_v60, %v4514_v60  ;;  %v5322_v10 = vpack.c.bf16 %v4290_v61, %v4289_v50  ;;  %v4515_v1 = vadd.f32 %v4468_v7, %v4290_v61  ;;  %v7266_v52 = vadd.f32 %v5440_v6, %v7216_v4 }
 0x3ae   : > { %5367 = vst [vmem:[%s7233_s9 + $0x18] sm:$0xff] %v5327_v9   ;;  %v5299_v24 = vpack.c.bf16 %v4517_v3, %v4517_v3  ;;  %v4213_v12 = vsub.f32 0.0, %v7261_v14  ;;  %v7273_v5 = vadd.f32 %v7216_v4, %v4177_v44  ;;  %v4241_v13 = vmul.f32 1.442695, %v4215_v8 }
 0x3af   : > { %4597 = vst.msk [vmem:[%s7233_s9 + $0x18] sm:$0xf] %vm4590_vm2, %v5298_v0  ;;  %5366 = vst [vmem:[%s7233_s9 + $0x10] sm:$0xff] %v5322_v10   ;;  %v5297_v58 = vpack.c.bf16 %v4515_v1, %v4515_v1  ;;  %v4216_v11 = vsub.f32 0.0, %v7266_v52  ;;  %v4479_v19 = vrot.slane %v4420_v39, 1  ;;  %v4480_v43 = vrot.slane %v4421_v38, 1 }
 0x3b0   : > { %4598 = vst.msk [vmem:[%s7233_s9 + $0x1c] sm:$0xf] %vm4590_vm2, %v5299_v24  ;;  %4595 = vst.msk [vmem:[%s7233_s9 + $0x10] sm:$0xf] %vm4590_vm2, %v5296_v59  ;;  %v4237_v2 = vmul.f32 1.442695, %v4213_v12  ;;  %5920 = vpow2.f32 %v4241_v13 }
 0x3b1   : > { %4596 = vst.msk [vmem:[%s7233_s9 + $0x14] sm:$0xf] %vm4590_vm2, %v5297_v58  ;;  %v4214_v18 = vsub.f32 0.0, %v7273_v5  ;;  %v4243_v53 = vmul.f32 1.442695, %v4216_v11  ;;  %v4474_v33 = vrot.slane %v5359_v45, 1  ;;  %v4481_v0 = vsel %vm726_vm0, %v4479_v19, %v4480_v43 }
 0x3b2   : > { %5922 = vpow2.f32 %v4237_v2  ;;  %v4475_v7 = vrot.slane %v5360_v55, 1  ;;  %v4482_v61 = vrot.slane %v4422_v56, 1 }
 0x3b3   : > { %v4239_v34 = vmul.f32 1.442695, %v4214_v18  ;;  %5924 = vpow2.f32 %v4243_v53 }
 0x3b4   : > { %v4476_v21 = vsel %vm726_vm0, %v4474_v33, %v4475_v7  ;;  %v4483_v1 = vsel %vm726_vm0, %v4480_v43, %v4482_v61 }
 0x3b5   : > { %5926 = vpow2.f32 %v4239_v34 }
 0x3ba   : > { %v5921_v35 = vpop.eup %5920  ;;  %v5443_v31 = vpop.f32.mrb[12].mxu1 }
 0x3bb   : > { %v4263_v42 = vadd.f32 1.0, %v5921_v35  ;;  %v7286_v32 = vadd.f32 %v5443_v31, %v7216_v4  ;;  %v4190_v40 = vpop.f32.mrb[13].mxu1  ;;  %v5232_v31 = vld [vmem:[%s6171_s30 + $0x74] sm:$0x1] }
 0x3bc   : > { %v5923_v63 = vpop.eup %5922  ;;  %v7290_v30 = vadd.f32 %v7216_v4, %v4190_v40  ;;  %v5444_v41 = vpop.f32.mrb[14].mxu1  ;;  %v5229_v40 = vld [vmem:[%s6171_s30 + $0x68] sm:$0x1] }
 0x3bd   : > { %v5925_v28 = vpop.eup %5924  ;;  %v4261_v29 = vadd.f32 1.0, %v5923_v63  ;;  %5928 = vrcp.f32 %v4263_v42  ;;  %v4219_v48 = vsub.f32 0.0, %v7286_v32  ;;  %v7295_v51 = vadd.f32 %v5444_v41, %v7216_v4  ;;  %v4193_v54 = vpop.f32.mrb[15].mxu1  ;;  %v5230_v63 = vld [vmem:[%s6171_s30 + $0x6c] sm:$0xff]  }
 0x3be   : > { %v4264_v36 = vadd.f32 1.0, %v5925_v28  ;;  %v4217_v16 = vsub.f32 0.0, %v7290_v30  ;;  %v7299_v27 = vadd.f32 %v7216_v4, %v4193_v54  ;;  %v4477_v4 = vrot.slane %v4419_v25, 1 }
 0x3bf   : > { %v5927_v17 = vpop.eup %5926  ;;  %5930 = vrcp.f32 %v4261_v29  ;;  %v4249_v47 = vmul.f32 1.442695, %v4219_v48  ;;  %v4220_v57 = vsub.f32 0.0, %v7295_v51  ;;  %v5375_v29 = vld [vmem:[%s6171_s30 + $0x60] sm:$0xff]   ;;  %v4426_v39 = vunpack.c.l.bf16 %v5230_v63  ;;  %s4621_s30 = sadd.s32 %s5308_s15, %s5252_s16  ;;  %s5957_s15 = sshll.u32 %s6061_s27, 4  ;;  %s5958_s15 = int_to_ptr.vmem [resolvable:$false] %s5957_s15 }
 0x3c0   : > { %v4262_v20 = vadd.f32 1.0, %v5927_v17  ;;  %5932 = vrcp.f32 %v4264_v36  ;;  %v4245_v26 = vmul.f32 1.442695, %v4217_v16  ;;  %v4218_v50 = vsub.f32 0.0, %v7299_v27  ;;  %s5253_s22 = sshll.u32 %s4621_s30, 6  ;;  %s5959_s16 = scalar_lea.vmem %s5958_s15, 2048 }
 0x3c1   : > { %v4251_v49 = vmul.f32 1.442695, %v4220_v57  ;;  %v4478_v44 = vsel %vm726_vm0, %v4475_v7, %v4477_v4  ;;  %v4427_v36 = vunpack.c.h.bf16 %v5230_v63  ;;  %v5363_v38 = vunpack.c.l.bf16 %v5375_v29  ;;  %s7345_s17 = scalar_lea.hbm %s7413_s5, %s5253_s22  ;;  %p5960_p4 = scmp.lt.s32.totalorder %s7337_s21, %s5958_s15 }
 0x3c2   : > { %5934 = vrcp.f32 %v4262_v20  ;;  %v4247_v60 = vmul.f32 1.442695, %v4218_v50  ;;  %v5364_v15 = vunpack.c.h.bf16 %v5375_v29  ;;  %v4428_v20 = vunpack.c.l.bf16 %v5232_v31  ;;  %p5961_p5 = scmp.lt.s32.totalorder %s5959_s16, %s5953_s13 }
 0x3c3   : > { %5936 = vpow2.f32 %v4249_v47  ;;  %v4425_v41 = vunpack.c.l.bf16 %v5229_v40  ;;  %v4489_v45 = vrot.slane %v4426_v39, 1  ;;  %v4490_v46 = vrot.slane %v4427_v36, 1 }
 0x3c4   : > { %5938 = vpow2.f32 %v4245_v26  ;;  %v4484_v48 = vrot.slane %v5363_v38, 1  ;;  %v4485_v54 = vrot.slane %v5364_v15, 1  ;;  %v4492_v55 = vrot.slane %v4428_v20, 1  ;;  %p5962_p6 = por %p5961_p5, %p5960_p4 }
 0x3c5   : > { %5940 = vpow2.f32 %v4251_v49  ;;  %v4487_v16 = vrot.slane %v4425_v41, 1  ;;  %v4491_v47 = vsel %vm726_vm0, %v4489_v45, %v4490_v46 }
 0x3c6   : > { %5942 = vpow2.f32 %v4247_v60  ;;  %v4486_v26 = vsel %vm726_vm0, %v4484_v48, %v4485_v54  ;;  %v4493_v43 = vsel %vm726_vm0, %v4490_v46, %v4492_v55  ;;  %p5963_p7 = pnand %p5962_p6, %p5956_p2 }
 0x3c7   : > { %v5929_v62 = vpop.eup %5928  ;;  %v4488_v60 = vsel %vm726_vm0, %v4485_v54, %v4487_v16 }
 0x3c8   : > { %v4295_v3 = vmul.f32 %v5929_v62, %v7258_v23 }
 0x3c9   : > { %v5931_v9 = vpop.eup %5930 }
 0x3ca   : > { %v5933_v59 = vpop.eup %5932  ;;  %v4293_v10 = vmul.f32 %v5931_v9, %v7261_v14  ;;  %v4520_v24 = vadd.f32 %v4481_v0, %v4295_v3 }
 0x3cb   : > { %v4296_v8 = vmul.f32 %v5933_v59, %v7266_v52 }
 0x3cc   : > { %v5935_v6 = vpop.eup %5934  ;;  %v4518_v58 = vadd.f32 %v4476_v21, %v4293_v10  ;;  %v5302_v23 = vpack.c.bf16 %v4520_v24, %v4520_v24 }
 0x3cd   : > { %v4294_v12 = vmul.f32 %v5935_v6, %v7273_v5  ;;  %v5337_v13 = vpack.c.bf16 %v4296_v8, %v4295_v3  ;;  %v4521_v11 = vadd.f32 %v4483_v1, %v4296_v8  ;;  %v5937_v14 = vpop.eup %5936 }
 0x3ce   : > { %v5300_v2 = vpack.c.bf16 %v4518_v58, %v4518_v58  ;;  %v5939_v34 = vpop.eup %5938  ;;  %v4267_v35 = vadd.f32 1.0, %v5937_v14 }
 0x3cf   : > { %v5332_v18 = vpack.c.bf16 %v4294_v12, %v4293_v10  ;;  %v4519_v53 = vadd.f32 %v4478_v44, %v4294_v12  ;;  %5369 = vst [vmem:[%s7233_s9 + $0x28] sm:$0xff] %v5337_v13   ;;  %v5303_v52 = vpack.c.bf16 %v4521_v11, %v4521_v11  ;;  %v5941_v22 = vpop.eup %5940  ;;  %v4265_v42 = vadd.f32 1.0, %v5939_v34 }
 0x3d0   : > { %4601 = vst.msk [vmem:[%s7233_s9 + $0x28] sm:$0xf] %vm4590_vm2, %v5302_v23  ;;  %v5943_v28 = vpop.eup %5942  ;;  %5944 = vrcp.f32 %v4267_v35  ;;  %v4268_v37 = vadd.f32 1.0, %v5941_v22 }
 0x3d1   : > { %5368 = vst [vmem:[%s7233_s9 + $0x20] sm:$0xff] %v5332_v18   ;;  %v5301_v5 = vpack.c.bf16 %v4519_v53, %v4519_v53  ;;  %4602 = vst.msk [vmem:[%s7233_s9 + $0x2c] sm:$0xf] %vm4590_vm2, %v5303_v52  ;;  %5946 = vrcp.f32 %v4265_v42  ;;  %v4266_v17 = vadd.f32 1.0, %v5943_v28 }
 0x3d2   : > { %4599 = vst.msk [vmem:[%s7233_s9 + $0x20] sm:$0xf] %vm4590_vm2, %v5300_v2  ;;  %5948 = vrcp.f32 %v4268_v37 }
 0x3d3   : > { %4600 = vst.msk [vmem:[%s7233_s9 + $0x24] sm:$0xf] %vm4590_vm2, %v5301_v5  ;;  %5950 = vrcp.f32 %v4266_v17 }
 0x3da   : > { %v5945_v56 = vpop.eup %5944 }
 0x3db   : > { %v5947_v57 = vpop.eup %5946  ;;  %v4299_v25 = vmul.f32 %v5945_v56, %v7286_v32 }
 0x3dc   : > { %v5949_v50 = vpop.eup %5948  ;;  %v4297_v19 = vmul.f32 %v5947_v57, %v7290_v30 }
 0x3dd   : > { %v5951_v49 = vpop.eup %5950  ;;  %v4524_v33 = vadd.f32 %v4491_v47, %v4299_v25  ;;  %v4300_v7 = vmul.f32 %v5949_v50, %v7295_v51 }
 0x3de   : > { %v4522_v61 = vadd.f32 %v4486_v26, %v4297_v19  ;;  %v4298_v32 = vmul.f32 %v5951_v49, %v7299_v27 }
 0x3df   : > { %v5306_v4 = vpack.c.bf16 %v4524_v33, %v4524_v33  ;;  %v5347_v30 = vpack.c.bf16 %v4300_v7, %v4299_v25  ;;  %v4525_v62 = vadd.f32 %v4493_v43, %v4300_v7 }
 0x3e0   : > { %v5304_v0 = vpack.c.bf16 %v4522_v61, %v4522_v61  ;;  %v5342_v9 = vpack.c.bf16 %v4298_v32, %v4297_v19  ;;  %v4523_v3 = vadd.f32 %v4488_v60, %v4298_v32 }
 0x3e1   : > { %5371 = vst [vmem:[%s7233_s9 + $0x38] sm:$0xff] %v5347_v30   ;;  %v5307_v51 = vpack.c.bf16 %v4525_v62, %v4525_v62 }
 0x3e2   : > { %4605 = vst.msk [vmem:[%s7233_s9 + $0x38] sm:$0xf] %vm4590_vm2, %v5306_v4  ;;  %5370 = vst [vmem:[%s7233_s9 + $0x30] sm:$0xff] %v5342_v9   ;;  %v5305_v27 = vpack.c.bf16 %v4523_v3, %v4523_v3 }
 0x3e3   : > { %4606 = vst.msk [vmem:[%s7233_s9 + $0x3c] sm:$0xf] %vm4590_vm2, %v5307_v51  ;;  %4603 = vst.msk [vmem:[%s7233_s9 + $0x30] sm:$0xf] %vm4590_vm2, %v5304_v0 }
 0x3e4   : > { %4604 = vst.msk [vmem:[%s7233_s9 + $0x34] sm:$0xf] %vm4590_vm2, %v5305_v27 }
 0x3e5   : > { %5966 = shalt.err (!%p5963_p7)
}
 0x3e6   : > { %s5967_s26 = scalar_lea.hbm %s7345_s17, 1024  ;;  %s5971_s22 = scalar_lea.hbm %s7413_s5, 4096 }
 0x3e7   : > { %p5968_p9 = scmp.ne.s32.totalorder %s7345_s17, %s5967_s26  ;;  %p5972_p12 = scmp.lt.u32.totalorder %s7345_s17, %s7413_s5 }
 0x3e8   : > { %p5973_p13 = scmp.lt.u32.totalorder %s5971_s22, %s5967_s26  ;;  %p5975_p1 = scmp.lt.u32.totalorder %s5967_s26, %s7345_s17 }
 0x3e9   : > { %p5969_p10 = pnand %p5968_p9, %p6144_p3 }
 0x3ea   : > { %p5974_p0 = por %p5973_p13, %p5972_p12 }
 0x3eb   : > { %p5970_p11 = pneg %p5969_p10 }
 0x3ec   : > { %p5976_p2 = por %p5975_p1, %p5974_p0 }
 0x3ee   : > { %p5977_p4 = pnand %p5976_p2, %p5970_p11 }
 0x3f0   : > { %5980 = shalt.err (!%p5977_p4)
}
 0x3f1   : > { %s6062_s13 = smov 64  }
 0x3f2   : > { %5449 = dma.vmem_to_hbm [thread:$0]  (%p6144_p3), %s7337_s21, 1024, %s7345_s17, %s7355_s10, %s6062_s13, %s6062_s13, %s6052_s12  }
 0x3f3 PF: > { %p5455_p5 = scmp.ge.s32.totalorder %s6047_s25, 2  ;;  %s4639_s27 = sand.u32 1, %s6019_s18  }
 0x3f4   : > { %s4640_s15 = scalar_lea.sflag [#allocation6], %s4639_s27 }
 0x3f5   : > { %p5452_p6 = pnand %p5455_p5, %p6153_p8 }
 0x3f7   : > { %6014 = dma.done.wait (!%p5452_p6), %s4640_s15, 1024  }
 0x3f8   : > { %6016 = vsyncadd (!%p5452_p6), %s4640_s15, 4294966272  ;;  %s18_s25 = sadd.s32 1, %s6047_s25   ;;  %s7444_s18 = smov %s6023_s19 }
 0x3f9   : > { %p15_p7 = scmp.ge.s32.totalorder %s18_s25, 6   ;;  %s7445_s19 = smov %s6027_s20 }
 0x3fa   : > { %s7446_s20 = smov %s6162_s11  ;;  %s7447_s21 = smov %s6039_s23 }
 0x3fb   : > { %s7448_s22 = smov %s6043_s24  ;;  %s7449_s23 = smov %s7452_s28 }
 0x3fc   : > { %s7450_s24 = smov %s7456_s29  ;;  %17 = sbr.rel (!%p15_p7) target bundleno = 5 (0x5), region = 79 }
 0x403   :  { %4645 = vsyncpa [#allocation6], 1 }
 0x404   :  { %4647 = vsyncpa [#allocation6 + $0x1], 1 }

</bundles_post_ra>
